<compile_context>
chip_gen: v7x
topology: tpu7x:2x2x1
jax: 0.10.0
libtpu: 0.0.40
codegen_flags: <defaults>
</compile_context>

<pallas_src>
import functools

import numpy as np
import jax
import jax.numpy as jnp
from jax import lax
from jax.experimental import pallas as pl
from jax.experimental.pallas import tpu as pltpu

NEG_INF = -1e9  # finite mask value -> no NaN even for fully-masked rows


# ----------------------------------------------------------------------------
# In-kernel math helpers (used inside Pallas kernels only)
# ----------------------------------------------------------------------------
def _ln(x, g, b):
    mu = jnp.mean(x, axis=-1, keepdims=True)
    xc = x - mu
    var = jnp.mean(xc * xc, axis=-1, keepdims=True)
    return xc * lax.rsqrt(var + 1e-5) * g + b


def _gelu(x):  # exact (erf) GELU, matching F.gelu default
    return 0.5 * x * (1.0 + lax.erf(x * (1.0 / np.sqrt(2.0))))


def _softmax_last(x):
    m = jnp.max(x, axis=-1, keepdims=True)
    e = jnp.exp(x - m)
    return e * pl.reciprocal(jnp.sum(e, axis=-1, keepdims=True), approx=True)


def _mha(x_q, x_kv, bias, wqkv, bqkv, wo, bo, nhead):
    """Full MHA block for one batch element.
    x_q:(Lq,D) f32, x_kv:(Lk,D) f32, bias:(Lq|1,Lk) additive f32,
    wqkv:(D,3D) bf16, bqkv:(1,3D) f32, wo:(D,D) bf16, bo:(1,D) f32."""
    D = x_q.shape[-1]
    Dh = D // nhead
    scale = 1.0 / float(np.sqrt(Dh))
    xq = x_q.astype(jnp.bfloat16)
    xk = x_kv.astype(jnp.bfloat16)
    q = jnp.dot(xq, wqkv[:, :D], preferred_element_type=jnp.float32) + bqkv[:, :D]
    k = jnp.dot(xk, wqkv[:, D:2 * D], preferred_element_type=jnp.float32) + bqkv[:, D:2 * D]
    v = jnp.dot(xk, wqkv[:, 2 * D:], preferred_element_type=jnp.float32) + bqkv[:, 2 * D:]
    heads = []
    for h in range(nhead):  # static unroll (nhead is small)
        lo, hi = h * Dh, (h + 1) * Dh
        qh = (q[:, lo:hi] * scale).astype(jnp.bfloat16)
        kh = k[:, lo:hi].astype(jnp.bfloat16)
        vh = v[:, lo:hi].astype(jnp.bfloat16)
        s = lax.dot_general(qh, kh, (((1,), (1,)), ((), ())),
                            preferred_element_type=jnp.float32) + bias
        p = _softmax_last(s)
        heads.append(jnp.dot(p.astype(jnp.bfloat16), vh,
                             preferred_element_type=jnp.float32))
    o = jnp.concatenate(heads, axis=-1).astype(jnp.bfloat16)
    return jnp.dot(o, wo, preferred_element_type=jnp.float32) + bo


def _ffn(x, w1, b1, w2, b2):
    h = _gelu(jnp.dot(x.astype(jnp.bfloat16), w1,
                      preferred_element_type=jnp.float32) + b1)
    return jnp.dot(h.astype(jnp.bfloat16), w2,
                   preferred_element_type=jnp.float32) + b2


# ----------------------------------------------------------------------------
# Pallas kernels
# ----------------------------------------------------------------------------
def _linear_kernel(x_ref, w_ref, b_ref, o_ref):
    o_ref[...] = jnp.dot(x_ref[...].astype(jnp.bfloat16), w_ref[...],
                         preferred_element_type=jnp.float32) + b_ref[...]


def _highway2_kernel(x_ref, wt1, bt1, wg1, bg1, wt2, bt2, wg2, bg2, o_ref):
    x = x_ref[...]
    xb = x.astype(jnp.bfloat16)
    t1 = jnp.maximum(jnp.dot(xb, wt1[...], preferred_element_type=jnp.float32) + bt1[...], 0.0)
    g1 = jax.nn.sigmoid(jnp.dot(xb, wg1[...], preferred_element_type=jnp.float32) + bg1[...])
    h1 = g1 * t1 + (1.0 - g1) * x
    hb = h1.astype(jnp.bfloat16)
    t2 = jnp.maximum(jnp.dot(hb, wt2[...], preferred_element_type=jnp.float32) + bt2[...], 0.0)
    g2 = jax.nn.sigmoid(jnp.dot(hb, wg2[...], preferred_element_type=jnp.float32) + bg2[...])
    o_ref[...] = g2 * t2 + (1.0 - g2) * h1


def _enc_layer_kernel(nhead, x_ref, bias_ref,
                      wqkv, bqkv, wo, bo, n1g, n1b, w1, b1, w2, b2, n2g, n2b,
                      o_ref):
    """One full nn.TransformerEncoderLayer (post-norm, GELU) per batch element."""
    x = x_ref[...]
    a = _mha(x, x, bias_ref[...], wqkv[...], bqkv[...], wo[...], bo[...], nhead)
    x = _ln(x + a, n1g[...], n1b[...])
    f = _ffn(x, w1[...], b1[...], w2[...], b2[...])
    o_ref[...] = _ln(x + f, n2g[...], n2b[...])


def _dec_layer_kernel(nhead, tgt_ref, mq_ref, mp_ref, bs_ref, bq_ref, bp_ref,
                      sa_wqkv, sa_bqkv, sa_wo, sa_bo,
                      qa_wqkv, qa_bqkv, qa_wo, qa_bo,
                      pa_wqkv, pa_bqkv, pa_wo, pa_bo,
                      n1g, n1b, n2g, n2b, n3g, n3b, n4g, n4b,
                      w1, b1, w2, b2, o_ref):
    """One full TransformerDecoderLayer (self + 2 cross attns + FFN) per batch."""
    t = tgt_ref[...]
    a = _mha(t, t, bs_ref[...], sa_wqkv[...], sa_bqkv[...], sa_wo[...], sa_bo[...], nhead)
    t = _ln(t + a, n1g[...], n1b[...])
    a = _mha(t, mq_ref[...], bq_ref[...], qa_wqkv[...], qa_bqkv[...], qa_wo[...], qa_bo[...], nhead)
    t = _ln(t + a, n2g[...], n2b[...])
    a = _mha(t, mp_ref[...], bp_ref[...], pa_wqkv[...], pa_bqkv[...], pa_wo[...], pa_bo[...], nhead)
    t = _ln(t + a, n3g[...], n3b[...])
    f = _ffn(t, w1[...], b1[...], w2[...], b2[...])
    o_ref[...] = _ln(t + f, n4g[...], n4b[...])


def _dual_attn_kernel(num_para, eq_ref, ep_ref, w1_ref, w2_ref, w3_ref,
                      gp_ref, gq_ref):
    """Dual attention for one batch element.
    U[n,p,q] = Ep[n,p]·w1 + Eq[q]·w2 + (Ep[n,p]*Eq[q])·w3  (decomposed; never
    materializes the (np,pl,ql,3H) broadcast).  Outputs are lane-dense (...,5H)
    and already transposed for the modeling linears."""
    Eq = eq_ref[...]                                                        # (ql, H)
    w1 = w1_ref[...]
    w2 = w2_ref[...]
    w3 = w3_ref[...]
    rhs = Eq * w3 + w1                                                      # (ql, H)
    uq_row = lax.dot_general(w2, Eq, (((1,), (1,)), ((), ())),
                             preferred_element_type=jnp.float32)            # (1, ql)
    uq_col = jnp.sum(Eq * w2, axis=-1, keepdims=True)                       # (ql, 1)
    b1_max = None
    b2_max = None
    for n in range(num_para):  # static unroll
        Epn = ep_ref[n]                                                     # (pl, H)
        U = lax.dot_general(Epn, rhs, (((1,), (1,)), ((), ())),
                            preferred_element_type=jnp.float32) + uq_row    # (pl, ql)
        UT = lax.dot_general(rhs, Epn, (((1,), (1,)), ((), ())),
                             preferred_element_type=jnp.float32) + uq_col   # (ql, pl)
        A = _softmax_last(U)    # softmax over q
        BT = _softmax_last(UT)  # softmax over p (kept transposed)
        A1 = jnp.dot(A, Eq, preferred_element_type=jnp.float32)             # (pl, H)
        B1 = jnp.dot(BT, Epn, preferred_element_type=jnp.float32)           # (ql, H)
        A2 = jnp.dot(A, B1, preferred_element_type=jnp.float32)             # (pl, H)
        B2 = jnp.dot(BT, A1, preferred_element_type=jnp.float32)            # (ql, H)
        gp_ref[n] = jnp.concatenate([Epn, A1, A2, Epn * A1, Epn * A2], axis=-1)
        b1_max = B1 if b1_max is None else jnp.maximum(b1_max, B1)
        b2_max = B2 if b2_max is None else jnp.maximum(b2_max, B2)
    gq_ref[...] = jnp.concatenate([Eq, b1_max, b2_max, Eq * b1_max, Eq * b2_max], axis=-1)


def _pointer_gen_kernel(dims, s_ref, mq_ref, mp_ref, beta_ref, qidx_ref, pidx_ref,
                        wext_ref, bext_ref, embT_ref,
                        vpm_ref, ups_ref, cps_ref,
                        vqm_ref, uqs_ref, cqs_ref,
                        wfin_ref, bfin_ref, o_ref):
    """Multi-source pointer-generator for one batch element, with the width-1
    copy projections collapsed by linearity (never builds (al,np,pl,H))."""
    qp_v, ext_v = dims
    s = s_ref[...]              # (al, H)
    Mq = mq_ref[...]            # (ql, H)
    Mp = mp_ref[...]            # (NPL, H)
    AL = s.shape[0]
    NPL = Mp.shape[0]
    QL = Mq.shape[0]

    # generation (vocabulary) distribution
    pv1 = jnp.dot(s.astype(jnp.bfloat16), wext_ref[...],
                  preferred_element_type=jnp.float32) + bext_ref[...]       # (al, G2)
    pv2 = jnp.dot(pv1.astype(jnp.bfloat16), embT_ref[...],
                  preferred_element_type=jnp.float32)                       # (al, Vc)
    Pv = jnp.concatenate([_softmax_last(pv2),
                          jnp.zeros((AL, qp_v), jnp.float32)], axis=-1)     # (al, ext_v)

    # paragraph copy distribution
    term_pm = lax.dot_general(vpm_ref[...], Mp, (((1,), (1,)), ((), ())),
                              preferred_element_type=jnp.float32)           # (1, NPL)
    term_ps = jnp.sum(s * ups_ref[...], axis=-1, keepdims=True) + cps_ref[...]  # (al, 1)
    alpha_pt = _softmax_last(term_ps + term_pm)                             # (al, NPL)
    alpha_w = alpha_pt * beta_ref[...]                                      # beta expanded (1, NPL)
    alpha_p = alpha_w * pl.reciprocal(jnp.sum(alpha_w, axis=-1, keepdims=True), approx=True)
    onehot_p = (pidx_ref[...] ==
                lax.broadcasted_iota(jnp.int32, (NPL, ext_v), 1)).astype(jnp.float32)
    Pp = jnp.dot(alpha_p, onehot_p, preferred_element_type=jnp.float32)     # scatter-add equiv
    c_p = jnp.dot(alpha_p, Mp, preferred_element_type=jnp.float32)          # (al, H)

    # question copy distribution
    term_qm = lax.dot_general(vqm_ref[...], Mq, (((1,), (1,)), ((), ())),
                              preferred_element_type=jnp.float32)           # (1, ql)
    term_qs = jnp.sum(s * uqs_ref[...], axis=-1, keepdims=True) + cqs_ref[...]
    alpha_q = _softmax_last(term_qs + term_qm)                              # (al, ql)
    onehot_q = (qidx_ref[...] ==
                lax.broadcasted_iota(jnp.int32, (QL, ext_v), 1)).astype(jnp.float32)
    Pq = jnp.dot(alpha_q, onehot_q, preferred_element_type=jnp.float32)
    c_q = jnp.dot(alpha_q, Mq, preferred_element_type=jnp.float32)

    lam_in = jnp.concatenate([s, c_q, c_p], axis=-1)                        # (al, 3H)
    lam = _softmax_last(jnp.dot(lam_in, wfin_ref[...],
                                preferred_element_type=jnp.float32) + bfin_ref[...])
    o_ref[...] = lam[:, 0:1] * Pv + lam[:, 1:2] * Pq + lam[:, 2:3] * Pp


# ----------------------------------------------------------------------------
# pallas_call wrappers
# ----------------------------------------------------------------------------
def _batched_pallas(kernel, batch, batched_inputs, weight_inputs, out_shapes):
    """grid=(batch,) kernel; batched inputs indexed by the grid, weights full-block."""
    in_specs = []
    args = []
    for a in batched_inputs:
        nd = a.ndim
        in_specs.append(pl.BlockSpec((None,) + a.shape[1:],
                                     lambda b, _n=nd: (b,) + (0,) * (_n - 1)))
        args.append(a)
    for a in weight_inputs:
        nd = a.ndim
        in_specs.append(pl.BlockSpec(a.shape, lambda b, _n=nd: (0,) * _n))
        args.append(a)
    out_specs = []
    out_shape = []
    for shp, dt in out_shapes:
        nd = len(shp) + 1
        out_specs.append(pl.BlockSpec((None,) + tuple(shp),
                                      lambda b, _n=nd: (b,) + (0,) * (_n - 1)))
        out_shape.append(jax.ShapeDtypeStruct((batch,) + tuple(shp), dt))
    single = len(out_shape) == 1
    return pl.pallas_call(
        kernel,
        grid=(batch,),
        in_specs=in_specs,
        out_specs=out_specs[0] if single else tuple(out_specs),
        out_shape=out_shape[0] if single else tuple(out_shape),
        compiler_params=pltpu.CompilerParams(dimension_semantics=("parallel",)),
    )(*args)


def pallas_linear(x, p):
    """x:(...,K) @ p['w']:(K,N) bf16 + p['b']:(1,N) -> (...,N) f32."""
    lead = x.shape[:-1]
    K = x.shape[-1]
    N = p['w'].shape[1]
    M = int(np.prod(lead)) if lead else 1
    x2 = x.reshape(M, K)
    # TODO(synk): at real (large) configs tile over rows / hidden dim instead of
    # a single whole-array block (keep buffered operands <= ~8-16 MiB for v7x VMEM).
    out = pl.pallas_call(
        _linear_kernel,
        grid=(1,),
        in_specs=[pl.BlockSpec((M, K), lambda i: (0, 0)),
                  pl.BlockSpec((K, N), lambda i: (0, 0)),
                  pl.BlockSpec((1, N), lambda i: (0, 0))],
        out_specs=pl.BlockSpec((M, N), lambda i: (0, 0)),
        out_shape=jax.ShapeDtypeStruct((M, N), jnp.float32),
        compiler_params=pltpu.CompilerParams(dimension_semantics=("arbitrary",)),
    )(x2, p['w'], p['b'])
    return out.reshape(lead + (N,))


def pallas_highway(x2, hw):
    """Two fused highway steps over a flat (M, E) row matrix."""
    M, E = x2.shape
    ws = (hw['t1']['w'], hw['t1']['b'], hw['g1']['w'], hw['g1']['b'],
          hw['t2']['w'], hw['t2']['b'], hw['g2']['w'], hw['g2']['b'])
    return pl.pallas_call(
        _highway2_kernel,
        grid=(1,),
        in_specs=[pl.BlockSpec((M, E), lambda i: (0, 0))] +
                 [pl.BlockSpec(a.shape, lambda i, _n=a.ndim: (0,) * _n) for a in ws],
        out_specs=pl.BlockSpec((M, E), lambda i: (0, 0)),
        out_shape=jax.ShapeDtypeStruct((M, E), jnp.float32),
        compiler_params=pltpu.CompilerParams(dimension_semantics=("arbitrary",)),
    )(x2, *ws)


def encoder_stack(x, layers, nhead, kpm_bias):
    """x:(G,L,D), kpm_bias:(G,1,L) additive; one fused pallas_call per layer."""
    G, L, D = x.shape
    for lp in layers:
        weights = [lp['attn']['wqkv'], lp['attn']['bqkv'], lp['attn']['wo'], lp['attn']['bo'],
                   lp['norm1']['g'], lp['norm1']['b'],
                   lp['lin1']['w'], lp['lin1']['b'], lp['lin2']['w'], lp['lin2']['b'],
                   lp['norm2']['g'], lp['norm2']['b']]
        x = _batched_pallas(functools.partial(_enc_layer_kernel, nhead), G,
                            [x, kpm_bias], weights, [((L, D), jnp.float32)])
    return x


# ----------------------------------------------------------------------------
# Model forward (glue in plain JAX, all hot paths in the fused kernels above)
# ----------------------------------------------------------------------------
def elmo_embed(char_emb, ch):
    # TODO(synk): real ELMo (pretrained char-CNN + biLSTM LM) has no Pallas
    # equivalent; replaced by a deterministic char-mean embedding of same shape.
    return jnp.tanh(jnp.mean(char_emb[ch], axis=-2))


def reader_ranker_forward(params, cfg, e_q, e_p, ch_q, ch_p, qseq_len, seq_len):
    B = e_q.shape[0]
    E, H = cfg['emb_size'], cfg['hidden_size']
    npar, plen, qlen = cfg['num_para'], cfg['max_plen'], cfg['max_qlen']
    nhead = cfg['n_attention_heads']

    c_q = elmo_embed(params['char_emb'], ch_q)
    c_p = elmo_embed(params['char_emb'], ch_p.reshape(B * npar, plen, -1)).reshape(B, npar, plen, -1)
    x_q = jnp.concatenate([e_q, c_q], axis=2)                                 # (B, ql, E)
    x_p = jnp.concatenate([e_p, c_p], axis=3).reshape(B * npar, plen, E)

    # shared highway weights -> one fused call over ALL question + paragraph rows
    rows = jnp.concatenate([x_q.reshape(B * qlen, E),
                            x_p.reshape(B * npar * plen, E)], axis=0)
    hrows = pallas_highway(rows, params['highway_enc'])
    hq = hrows[:B * qlen].reshape(B, qlen, E)
    hp = hrows[B * qlen:].reshape(B * npar, plen, E)

    q_kpm = jnp.arange(qlen)[None, :] >= qseq_len[:, None]                    # (B, ql)
    sl = seq_len.reshape(B * npar)
    p_kpm = jnp.arange(plen)[None, :] >= sl[:, None]                          # (B*np, pl)
    q_bias = jnp.where(q_kpm, NEG_INF, 0.0).astype(jnp.float32)[:, None, :]
    p_bias = jnp.where(p_kpm, NEG_INF, 0.0).astype(jnp.float32)[:, None, :]

    Eq = pallas_linear(hq, params['shared_encoder_linear'])
    Eq = encoder_stack(Eq, params['shared_encoder_layers'], nhead, q_bias)
    Ep = pallas_linear(hp, params['shared_encoder_linear'])
    Ep = encoder_stack(Ep, params['shared_encoder_layers'], nhead, p_bias)
    Ep = Ep.reshape(B, npar, plen, H)

    # dual attention (one fused kernel per batch element, lane-dense outputs)
    dw = params['dual_attention']
    Gp, Gq = _batched_pallas(functools.partial(_dual_attn_kernel, npar), B,
                             [Eq, Ep], [dw['w1'], dw['w2'], dw['w3']],
                             [((npar, plen, 5 * H), jnp.float32),
                              ((qlen, 5 * H), jnp.float32)])

    Mp_in = pallas_linear(Gp.reshape(B * npar, plen, 5 * H), params['modeling_linear_p'])
    M_p_k = encoder_stack(Mp_in, params['modeling_encoder_layers_p'], nhead, p_bias)
    M_p_k = M_p_k.reshape(B, npar, plen, H)
    Mq_in = pallas_linear(Gq, params['modeling_linear_q'])
    M_q = encoder_stack(Mq_in, params['modeling_encoder_layers_q'], nhead, q_bias)

    # tiny scalar heads (width-1 outputs): plain-JAX lane reductions, no pallas launch
    M_1 = M_p_k[:, :, 0, :]                                                   # (B, np, H)
    beta_p = jax.nn.sigmoid(jnp.einsum('bnh,h->bn', M_1, params['ranker_w']))
    prob_ans = jax.nn.sigmoid(jnp.einsum('bk,k->b', M_1.reshape(B, npar * H),
                                         params['anspos_w']))
    p_mask = p_kpm.reshape(B, npar, plen)
    return beta_p, prob_ans, M_q, q_kpm, M_p_k, p_mask


def ans_decoder_forward(params, cfg, e_ans, ch_ans, aseq_len, M_q, q_kpm, M_p_k, p_mask,
                        beta_p, q_words_idx, p_words_idx):
    B = e_ans.shape[0]
    E, H = cfg['emb_size'], cfg['hidden_size']
    npar, plen, qlen, al = cfg['num_para'], cfg['max_plen'], cfg['max_qlen'], cfg['max_ans_len']
    nhead = cfg['n_attention_heads']
    NPL = npar * plen

    c_ans = elmo_embed(params['char_emb'], ch_ans)
    x_ans = jnp.concatenate([e_ans, c_ans], axis=2)
    ha = pallas_highway(x_ans.reshape(B * al, E), params['highway_dec']).reshape(B, al, E)
    tgt = pallas_linear(ha, params['transformer_decoder_linear'])

    ans_kpm = jnp.arange(al)[None, :] >= aseq_len[:, None]
    causal = jnp.where(jnp.tril(jnp.ones((al, al), jnp.float32)) == 1.0, 0.0, NEG_INF)
    bias_self = (causal[None, :, :] +
                 jnp.where(ans_kpm, NEG_INF, 0.0)[:, None, :]).astype(jnp.float32)
    bias_q = jnp.where(q_kpm, NEG_INF, 0.0).astype(jnp.float32)[:, None, :]
    p_kpm_flat = p_mask.reshape(B, NPL)
    bias_p = jnp.where(p_kpm_flat, NEG_INF, 0.0).astype(jnp.float32)[:, None, :]

    M_p_all = M_p_k.reshape(B, NPL, H)
    s = tgt
    for lp in params['decoder_layers']:
        weights = [lp['self_attn']['wqkv'], lp['self_attn']['bqkv'],
                   lp['self_attn']['wo'], lp['self_attn']['bo'],
                   lp['attn_q']['wqkv'], lp['attn_q']['bqkv'],
                   lp['attn_q']['wo'], lp['attn_q']['bo'],
                   lp['attn_p']['wqkv'], lp['attn_p']['bqkv'],
                   lp['attn_p']['wo'], lp['attn_p']['bo'],
                   lp['norm1']['g'], lp['norm1']['b'], lp['norm2']['g'], lp['norm2']['b'],
                   lp['norm3']['g'], lp['norm3']['b'], lp['norm4']['g'], lp['norm4']['b'],
                   lp['lin1']['w'], lp['lin1']['b'], lp['lin2']['w'], lp['lin2']['b']]
        s = _batched_pallas(functools.partial(_dec_layer_kernel, nhead), B,
                            [s, M_q, M_p_all, bias_self, bias_q, bias_p],
                            weights, [((al, H), jnp.float32)])

    # fused pointer-generator
    ptr = params['pointer']
    ext_v = cfg['common_vocab_size'] + cfg['qp_vocab_size']
    beta_exp = jnp.repeat(beta_p, plen, axis=-1)[:, None, :]                  # (B, 1, NPL)
    qidx = q_words_idx.reshape(B, qlen, 1).astype(jnp.int32)
    pidx = p_words_idx.reshape(B, NPL, 1).astype(jnp.int32)
    kern = functools.partial(_pointer_gen_kernel, (cfg['qp_vocab_size'], ext_v))
    P_y = _batched_pallas(kern, B,
                          [s, M_q, M_p_all, beta_exp, qidx, pidx],
                          [ptr['w_ext'], ptr['b_ext'], ptr['embT'],
                           ptr['v_pm'], ptr['u_ps'], ptr['c_ps'],
                           ptr['v_qm'], ptr['u_qs'], ptr['c_qs'],
                           ptr['w_fin'], ptr['b_fin']],
                          [((al, ext_v), jnp.float32)])
    return P_y


def model_forward(params, cfg, e_q, e_p, ch_q, ch_p, qseq_len, q_words_idx,
                  seq_len, p_words_idx, e_ans, ch_ans, aseq_len):
    beta_p, prob_ans, M_q, q_mask, M_p_k, p_mask = reader_ranker_forward(
        params, cfg, e_q, e_p, ch_q, ch_p, qseq_len, seq_len)
    P_y = ans_decoder_forward(params, cfg, e_ans, ch_ans, aseq_len, M_q, q_mask,
                              M_p_k, p_mask, beta_p, q_words_idx, p_words_idx)
    return beta_p, prob_ans, P_y


# ----------------------------------------------------------------------------
# Deterministic parameter initialization (kernel-ready layouts, built once)
# ----------------------------------------------------------------------------
class KeyGen:
    def __init__(self, key):
        self._key = key

    def __call__(self):
        self._key, k = jax.random.split(self._key)
        return k


def make_params(cfg, key):
    kg = KeyGen(key)
    H, E, dff = cfg['hidden_size'], cfg['emb_size'], cfg['dim_feedforward']
    G2 = cfg['glove_emb_size'] + 2

    def raw_lin(out_d, in_d, bias=True):
        bound = 1.0 / np.sqrt(in_d)
        w = jax.random.uniform(kg(), (out_d, in_d), jnp.float32, -bound, bound)
        b = jax.random.uniform(kg(), (out_d,), jnp.float32, -bound, bound) if bias else None
        return w, b

    def plin(out_d, in_d):      # (K, N) bf16 weight, (1, N) f32 bias
        w, b = raw_lin(out_d, in_d)
        return {'w': jnp.transpose(w).astype(jnp.bfloat16), 'b': b.reshape(1, out_d)}

    def pmha(d):
        bound = 1.0 / np.sqrt(d)
        in_w = jax.random.uniform(kg(), (3 * d, d), jnp.float32, -bound, bound)
        wo, bo = raw_lin(d, d)
        return {'wqkv': jnp.transpose(in_w).astype(jnp.bfloat16),
                'bqkv': jnp.zeros((1, 3 * d), jnp.float32),
                'wo': jnp.transpose(wo).astype(jnp.bfloat16),
                'bo': bo.reshape(1, d)}

    def ln(d):
        return {'g': jnp.ones((1, d), jnp.float32), 'b': jnp.zeros((1, d), jnp.float32)}

    def enc_layer():
        return {'attn': pmha(H), 'lin1': plin(dff, H), 'lin2': plin(H, dff),
                'norm1': ln(H), 'norm2': ln(H)}

    def dec_layer():
        return {'self_attn': pmha(H), 'attn_q': pmha(H), 'attn_p': pmha(H),
                'lin1': plin(dff, H), 'lin2': plin(H, dff),
                'norm1': ln(H), 'norm2': ln(H), 'norm3': ln(H), 'norm4': ln(H)}

    def highway():
        return {'t1': plin(E, E), 'g1': plin(E, E), 't2': plin(E, E), 'g2': plin(E, E)}

    char_emb = jax.random.normal(kg(), (cfg['char_vocab'], cfg['elmo_dim']), jnp.float32) * 0.1
    emb_matrix = jax.random.normal(kg(), (cfg['common_vocab_size'], G2), jnp.float32) * 0.1

    dual_w, _ = raw_lin(1, 3 * H, bias=False)                                 # (1, 3H)
    ranker_w, _ = raw_lin(1, H, bias=False)
    anspos_w, _ = raw_lin(1, cfg['num_para'] * H, bias=False)

    # pointer-gen params; the width-1 copy projections are collapsed by linearity:
    # copy_dist_linear_p((pm(M) + ps(s))) = M @ (Wpm^T wp^T) + s @ (Wps^T wp^T) + bps·wp
    Wpm, _ = raw_lin(H, H, bias=False)
    Wps, bps = raw_lin(H, H)
    wp, _ = raw_lin(1, H, bias=False)
    Wqm, _ = raw_lin(H, H, bias=False)
    Wqs, bqs = raw_lin(H, H)
    wq, _ = raw_lin(1, H, bias=False)
    wfin, bfin = raw_lin(3, 3 * H)
    ext_lin = plin(G2, H)
    pointer = {
        'w_ext': ext_lin['w'], 'b_ext': ext_lin['b'],
        'embT': jnp.transpose(emb_matrix).astype(jnp.bfloat16),               # (G2, Vc)
        'v_pm': wp @ Wpm, 'u_ps': wp @ Wps,
        'c_ps': jnp.sum(wp * bps.reshape(1, H)).reshape(1, 1),
        'v_qm': wq @ Wqm, 'u_qs': wq @ Wqs,
        'c_qs': jnp.sum(wq * bqs.reshape(1, H)).reshape(1, 1),
        'w_fin': jnp.transpose(wfin),                                         # (3H, 3) f32
        'b_fin': bfin.reshape(1, 3),
    }

    return {
        'char_emb': char_emb,
        'highway_enc': highway(),
        'highway_dec': highway(),
        'shared_encoder_linear': plin(H, E),
        'shared_encoder_layers': [enc_layer() for _ in range(cfg['n_shared_encoder_blocks'])],
        'dual_attention': {'w1': dual_w[:, :H], 'w2': dual_w[:, H:2 * H], 'w3': dual_w[:, 2 * H:]},
        'modeling_linear_q': plin(H, 5 * H),
        'modeling_linear_p': plin(H, 5 * H),
        'modeling_encoder_layers_q': [enc_layer() for _ in range(cfg['n_modeling_encoder_blocks_q'])],
        'modeling_encoder_layers_p': [enc_layer() for _ in range(cfg['n_modeling_encoder_blocks_p'])],
        'ranker_w': ranker_w.reshape(H),
        'anspos_w': anspos_w.reshape(cfg['num_para'] * H),
        'transformer_decoder_linear': plin(H, E),
        'decoder_layers': [dec_layer() for _ in range(cfg['n_decoder_blocks'])],
        'pointer': pointer,
    }


# ----------------------------------------------------------------------------
if __name__ == "__main__":
    cfg = dict(
        emb_size=32, hidden_size=32, n_attention_heads=4, dim_feedforward=64,
        dropout=0.3, max_qlen=8, max_plen=8, max_ans_len=8, num_para=2,
        n_shared_encoder_blocks=1, n_modeling_encoder_blocks_q=1,
        n_modeling_encoder_blocks_p=1, n_decoder_blocks=1,
        glove_emb_size=14, common_vocab_size=32, qp_vocab_size=16,
        elmo_dim=16, char_vocab=20,
    )
    B = 2
    glove_part = cfg['emb_size'] - cfg['elmo_dim']        # 16
    ext_vocab = cfg['common_vocab_size'] + cfg['qp_vocab_size']
    char_len = 5

    root = jax.random.PRNGKey(0)
    k_par, k_in = jax.random.split(root)
    params = make_params(cfg, k_par)

    ks = jax.random.split(k_in, 10)
    e_q = jax.random.normal(ks[0], (B, cfg['max_qlen'], glove_part), jnp.float32)
    e_p = jax.random.normal(ks[1], (B, cfg['num_para'], cfg['max_plen'], glove_part), jnp.float32)
    ch_q = jax.random.randint(ks[2], (B, cfg['max_qlen'], char_len), 0, cfg['char_vocab'])
    ch_p = jax.random.randint(ks[3], (B, cfg['num_para'], cfg['max_plen'], char_len), 0, cfg['char_vocab'])
    e_ans = jax.random.normal(ks[4], (B, cfg['max_ans_len'], glove_part), jnp.float32)
    ch_ans = jax.random.randint(ks[5], (B, cfg['max_ans_len'], char_len), 0, cfg['char_vocab'])
    q_words_idx = jax.random.randint(ks[6], (B, cfg['max_qlen']), 0, ext_vocab)
    p_words_idx = jax.random.randint(ks[7], (B, cfg['num_para'], cfg['max_plen']), 0, ext_vocab)
    qseq_len = jnp.array([8, 5], jnp.int32)
    seq_len = jnp.array([[8, 6], [7, 8]], jnp.int32)
    aseq_len = jnp.array([8, 4], jnp.int32)

    fwd = jax.jit(lambda p, *args: model_forward(p, cfg, *args))
    beta_p, prob_ans, P_y = fwd(params, e_q, e_p, ch_q, ch_p, qseq_len,
                                q_words_idx, seq_len, p_words_idx,
                                e_ans, ch_ans, aseq_len)
    (beta_p, prob_ans, P_y) = jax.block_until_ready((beta_p, prob_ans, P_y))

    assert beta_p.shape == (B, cfg['num_para'])
    assert prob_ans.shape == (B,)
    assert P_y.shape == (B, cfg['max_ans_len'], ext_vocab)
    assert bool(jnp.all(jnp.isfinite(beta_p)))
    assert bool(jnp.all(jnp.isfinite(prob_ans)))
    assert bool(jnp.all(jnp.isfinite(P_y)))
    print("KERNEL_OK")
</pallas_src>

<mosaic_0001>
module attributes {stable_mosaic.version = 11 : i64} {
  func.func @_linear_kernel(%arg0: i32, %arg1: memref<16x32xf32, #tpu.memory_space<vmem>>, %arg2: memref<32x32xbf16, #tpu.memory_space<vmem>>, %arg3: memref<1x32xf32, #tpu.memory_space<vmem>>, %arg4: memref<16x32xf32, #tpu.memory_space<vmem>>) attributes {dimension_semantics = [#tpu.dimension_semantics<arbitrary>], iteration_bounds = array<i64: 1>, scalar_prefetch = 0 : i64, scratch_operands = 0 : i64, tpu.core_type = #tpu.core_type<tc>, window_params = [{pipeline_mode = #tpu.pipeline_mode<synchronous>, transform_indices = @transform_0, window_bounds = array<i64: 16, 32>}, {pipeline_mode = #tpu.pipeline_mode<synchronous>, transform_indices = @transform_1, window_bounds = array<i64: 32, 32>}, {pipeline_mode = #tpu.pipeline_mode<synchronous>, transform_indices = @transform_2, window_bounds = array<i64: 1, 32>}, {pipeline_mode = #tpu.pipeline_mode<synchronous>, transform_indices = @transform_3, window_bounds = array<i64: 16, 32>}]} {
    %c0 = arith.constant 0 : index
    %c0_0 = arith.constant 0 : index
    %0 = vector.load %arg1[%c0, %c0_0] : memref<16x32xf32, #tpu.memory_space<vmem>>, vector<16x32xf32>
    %1 = arith.truncf %0 : vector<16x32xf32> to vector<16x32xbf16>
    %c0_1 = arith.constant 0 : index
    %c0_2 = arith.constant 0 : index
    %2 = vector.load %arg2[%c0_1, %c0_2] : memref<32x32xbf16, #tpu.memory_space<vmem>>, vector<32x32xbf16>
    %cst = arith.constant dense<0.000000e+00> : vector<16x32xf32>
    %3 = tpu.matmul %1, %2, %cst {dimension_numbers = #tpu.dot_dimension_numbers<[1], [0], [0], [1], [0, 0, 1, 1], [], []>} : vector<16x32xbf16>, vector<32x32xbf16>, vector<16x32xf32> -> vector<16x32xf32>
    %c0_3 = arith.constant 0 : index
    %c0_4 = arith.constant 0 : index
    %4 = vector.load %arg3[%c0_3, %c0_4] : memref<1x32xf32, #tpu.memory_space<vmem>>, vector<1x32xf32>
    %5 = vector.broadcast %4 : vector<1x32xf32> to vector<16x32xf32>
    %6 = arith.addf %3, %5 : vector<16x32xf32>
    %c0_5 = arith.constant 0 : index
    %c0_6 = arith.constant 0 : index
    %7 = vector.load %arg4[%c0_5, %c0_6] : memref<16x32xf32, #tpu.memory_space<vmem>>, vector<16x32xf32>
    tpu.vector_store %arg4[%c0_5, %c0_6], %6 {strides = array<i32>} : memref<16x32xf32, #tpu.memory_space<vmem>>, vector<16x32xf32>,
    return
  }
  func.func @transform_0(%arg0: i32) -> (i32, i32) {
    %c0_i32 = arith.constant 0 : i32
    %c0_i32_0 = arith.constant 0 : i32
    %c0_i32_1 = arith.constant 0 : i32
    return %c0_i32, %c0_i32_0 : i32, i32
  }
  func.func @transform_1(%arg0: i32) -> (i32, i32) {
    %c0_i32 = arith.constant 0 : i32
    %c0_i32_0 = arith.constant 0 : i32
    %c0_i32_1 = arith.constant 0 : i32
    return %c0_i32, %c0_i32_0 : i32, i32
  }
  func.func @transform_2(%arg0: i32) -> (i32, i32) {
    %c0_i32 = arith.constant 0 : i32
    %c0_i32_0 = arith.constant 0 : i32
    %c0_i32_1 = arith.constant 0 : i32
    return %c0_i32, %c0_i32_0 : i32, i32
  }
  func.func @transform_3(%arg0: i32) -> (i32, i32) {
    %c0_i32 = arith.constant 0 : i32
    %c0_i32_0 = arith.constant 0 : i32
    %c0_i32_1 = arith.constant 0 : i32
    return %c0_i32, %c0_i32_0 : i32, i32
  }
}

module attributes {stable_mosaic.version = 11 : i64} {
  func.func @_highway2_kernel(%arg0: i32, %arg1: memref<48x32xf32, #tpu.memory_space<vmem>>, %arg2: memref<32x32xbf16, #tpu.memory_space<vmem>>, %arg3: memref<1x32xf32, #tpu.memory_space<vmem>>, %arg4: memref<32x32xbf16, #tpu.memory_space<vmem>>, %arg5: memref<1x32xf32, #tpu.memory_space<vmem>>, %arg6: memref<32x32xbf16, #tpu.memory_space<vmem>>, %arg7: memref<1x32xf32, #tpu.memory_space<vmem>>, %arg8: memref<32x32xbf16, #tpu.memory_space<vmem>>, %arg9: memref<1x32xf32, #tpu.memory_space<vmem>>, %arg10: memref<48x32xf32, #tpu.memory_space<vmem>>) attributes {dimension_semantics = [#tpu.dimension_semantics<arbitrary>], iteration_bounds = array<i64: 1>, scalar_prefetch = 0 : i64, scratch_operands = 0 : i64, tpu.core_type = #tpu.core_type<tc>, window_params = [{pipeline_mode = #tpu.pipeline_mode<synchronous>, transform_indices = @transform_0, window_bounds = array<i64: 48, 32>}, {pipeline_mode = #tpu.pipeline_mode<synchronous>, transform_indices = @transform_1, window_bounds = array<i64: 32, 32>}, {pipeline_mode = #tpu.pipeline_mode<synchronous>, transform_indices = @transform_2, window_bounds = array<i64: 1, 32>}, {pipeline_mode = #tpu.pipeline_mode<synchronous>, transform_indices = @transform_3, window_bounds = array<i64: 32, 32>}, {pipeline_mode = #tpu.pipeline_mode<synchronous>, transform_indices = @transform_4, window_bounds = array<i64: 1, 32>}, {pipeline_mode = #tpu.pipeline_mode<synchronous>, transform_indices = @transform_5, window_bounds = array<i64: 32, 32>}, {pipeline_mode = #tpu.pipeline_mode<synchronous>, transform_indices = @transform_6, window_bounds = array<i64: 1, 32>}, {pipeline_mode = #tpu.pipeline_mode<synchronous>, transform_indices = @transform_7, window_bounds = array<i64: 32, 32>}, {pipeline_mode = #tpu.pipeline_mode<synchronous>, transform_indices = @transform_8, window_bounds = array<i64: 1, 32>}, {pipeline_mode = #tpu.pipeline_mode<synchronous>, transform_indices = @transform_9, window_bounds = array<i64: 48, 32>}]} {
    %c0 = arith.constant 0 : index
    %c0_0 = arith.constant 0 : index
    %0 = vector.load %arg1[%c0, %c0_0] : memref<48x32xf32, #tpu.memory_space<vmem>>, vector<48x32xf32>
    %1 = arith.truncf %0 : vector<48x32xf32> to vector<48x32xbf16>
    %c0_1 = arith.constant 0 : index
    %c0_2 = arith.constant 0 : index
    %2 = vector.load %arg2[%c0_1, %c0_2] : memref<32x32xbf16, #tpu.memory_space<vmem>>, vector<32x32xbf16>
    %cst = arith.constant dense<0.000000e+00> : vector<48x32xf32>
    %3 = tpu.matmul %1, %2, %cst {dimension_numbers = #tpu.dot_dimension_numbers<[1], [0], [0], [1], [0, 0, 1, 1], [], []>} : vector<48x32xbf16>, vector<32x32xbf16>, vector<48x32xf32> -> vector<48x32xf32>
    %c0_3 = arith.constant 0 : index
    %c0_4 = arith.constant 0 : index
    %4 = vector.load %arg3[%c0_3, %c0_4] : memref<1x32xf32, #tpu.memory_space<vmem>>, vector<1x32xf32>
    %5 = vector.broadcast %4 : vector<1x32xf32> to vector<48x32xf32>
    %6 = arith.addf %3, %5 : vector<48x32xf32>
    %cst_5 = arith.constant 0.000000e+00 : f32
    %7 = vector.broadcast %cst_5 : f32 to vector<48x32xf32>
    %8 = arith.maximumf %6, %7 : vector<48x32xf32>
    %c0_6 = arith.constant 0 : index
    %c0_7 = arith.constant 0 : index
    %9 = vector.load %arg4[%c0_6, %c0_7] : memref<32x32xbf16, #tpu.memory_space<vmem>>, vector<32x32xbf16>
    %cst_8 = arith.constant dense<0.000000e+00> : vector<48x32xf32>
    %10 = tpu.matmul %1, %9, %cst_8 {dimension_numbers = #tpu.dot_dimension_numbers<[1], [0], [0], [1], [0, 0, 1, 1], [], []>} : vector<48x32xbf16>, vector<32x32xbf16>, vector<48x32xf32> -> vector<48x32xf32>
    %c0_9 = arith.constant 0 : index
    %c0_10 = arith.constant 0 : index
    %11 = vector.load %arg5[%c0_9, %c0_10] : memref<1x32xf32, #tpu.memory_space<vmem>>, vector<1x32xf32>
    %12 = vector.broadcast %11 : vector<1x32xf32> to vector<48x32xf32>
    %13 = arith.addf %10, %12 : vector<48x32xf32>
    %14 = arith.negf %13 : vector<48x32xf32>
    %15 = math.exp %14 : vector<48x32xf32>
    %cst_11 = arith.constant 1.000000e+00 : f32
    %16 = vector.broadcast %cst_11 : f32 to vector<48x32xf32>
    %17 = arith.addf %16, %15 : vector<48x32xf32>
    %18 = arith.divf %16, %17 : vector<48x32xf32>
    %19 = arith.mulf %18, %8 : vector<48x32xf32>
    %cst_12 = arith.constant 1.000000e+00 : f32
    %20 = vector.broadcast %cst_12 : f32 to vector<48x32xf32>
    %21 = arith.subf %20, %18 : vector<48x32xf32>
    %22 = arith.mulf %21, %0 : vector<48x32xf32>
    %23 = arith.addf %19, %22 : vector<48x32xf32>
    %24 = arith.truncf %23 : vector<48x32xf32> to vector<48x32xbf16>
    %c0_13 = arith.constant 0 : index
    %c0_14 = arith.constant 0 : index
    %25 = vector.load %arg6[%c0_13, %c0_14] : memref<32x32xbf16, #tpu.memory_space<vmem>>, vector<32x32xbf16>
    %cst_15 = arith.constant dense<0.000000e+00> : vector<48x32xf32>
    %26 = tpu.matmul %24, %25, %cst_15 {dimension_numbers = #tpu.dot_dimension_numbers<[1], [0], [0], [1], [0, 0, 1, 1], [], []>} : vector<48x32xbf16>, vector<32x32xbf16>, vector<48x32xf32> -> vector<48x32xf32>
    %c0_16 = arith.constant 0 : index
    %c0_17 = arith.constant 0 : index
    %27 = vector.load %arg7[%c0_16, %c0_17] : memref<1x32xf32, #tpu.memory_space<vmem>>, vector<1x32xf32>
    %28 = vector.broadcast %27 : vector<1x32xf32> to vector<48x32xf32>
    %29 = arith.addf %26, %28 : vector<48x32xf32>
    %cst_18 = arith.constant 0.000000e+00 : f32
    %30 = vector.broadcast %cst_18 : f32 to vector<48x32xf32>
    %31 = arith.maximumf %29, %30 : vector<48x32xf32>
    %c0_19 = arith.constant 0 : index
    %c0_20 = arith.constant 0 : index
    %32 = vector.load %arg8[%c0_19, %c0_20] : memref<32x32xbf16, #tpu.memory_space<vmem>>, vector<32x32xbf16>
    %cst_21 = arith.constant dense<0.000000e+00> : vector<48x32xf32>
    %33 = tpu.matmul %24, %32, %cst_21 {dimension_numbers = #tpu.dot_dimension_numbers<[1], [0], [0], [1], [0, 0, 1, 1], [], []>} : vector<48x32xbf16>, vector<32x32xbf16>, vector<48x32xf32> -> vector<48x32xf32>
    %c0_22 = arith.constant 0 : index
    %c0_23 = arith.constant 0 : index
    %34 = vector.load %arg9[%c0_22, %c0_23] : memref<1x32xf32, #tpu.memory_space<vmem>>, vector<1x32xf32>
    %35 = vector.broadcast %34 : vector<1x32xf32> to vector<48x32xf32>
    %36 = arith.addf %33, %35 : vector<48x32xf32>
    %37 = arith.negf %36 : vector<48x32xf32>
    %38 = math.exp %37 : vector<48x32xf32>
    %cst_24 = arith.constant 1.000000e+00 : f32
    %39 = vector.broadcast %cst_24 : f32 to vector<48x32xf32>
    %40 = arith.addf %39, %38 : vector<48x32xf32>
    %41 = arith.divf %39, %40 : vector<48x32xf32>
    %42 = arith.mulf %41, %31 : vector<48x32xf32>
    %cst_25 = arith.constant 1.000000e+00 : f32
    %43 = vector.broadcast %cst_25 : f32 to vector<48x32xf32>
    %44 = arith.subf %43, %41 : vector<48x32xf32>
    %45 = arith.mulf %44, %23 : vector<48x32xf32>
    %46 = arith.addf %42, %45 : vector<48x32xf32>
    %c0_26 = arith.constant 0 : index
    %c0_27 = arith.constant 0 : index
    %47 = vector.load %arg10[%c0_26, %c0_27] : memref<48x32xf32, #tpu.memory_space<vmem>>, vector<48x32xf32>
    tpu.vector_store %arg10[%c0_26, %c0_27], %46 {strides = array<i32>} : memref<48x32xf32, #tpu.memory_space<vmem>>, vector<48x32xf32>,
    return
  }
  func.func @transform_0(%arg0: i32) -> (i32, i32) {
    %c0_i32 = arith.constant 0 : i32
    %c0_i32_0 = arith.constant 0 : i32
    %c0_i32_1 = arith.constant 0 : i32
    return %c0_i32, %c0_i32_0 : i32, i32
  }
  func.func @transform_1(%arg0: i32) -> (i32, i32) {
    %c0_i32 = arith.constant 0 : i32
    %c0_i32_0 = arith.constant 0 : i32
    %c0_i32_1 = arith.constant 0 : i32
    return %c0_i32, %c0_i32_0 : i32, i32
  }
  func.func @transform_2(%arg0: i32) -> (i32, i32) {
    %c0_i32 = arith.constant 0 : i32
    %c0_i32_0 = arith.constant 0 : i32
    %c0_i32_1 = arith.constant 0 : i32
    return %c0_i32, %c0_i32_0 : i32, i32
  }
  func.func @transform_3(%arg0: i32) -> (i32, i32) {
    %c0_i32 = arith.constant 0 : i32
    %c0_i32_0 = arith.constant 0 : i32
    %c0_i32_1 = arith.constant 0 : i32
    return %c0_i32, %c0_i32_0 : i32, i32
  }
  func.func @transform_4(%arg0: i32) -> (i32, i32) {
    %c0_i32 = arith.constant 0 : i32
    %c0_i32_0 = arith.constant 0 : i32
    %c0_i32_1 = arith.constant 0 : i32
    return %c0_i32, %c0_i32_0 : i32, i32
  }
  func.func @transform_5(%arg0: i32) -> (i32, i32) {
    %c0_i32 = arith.constant 0 : i32
    %c0_i32_0 = arith.constant 0 : i32
    %c0_i32_1 = arith.constant 0 : i32
    return %c0_i32, %c0_i32_0 : i32, i32
  }
  func.func @transform_6(%arg0: i32) -> (i32, i32) {
    %c0_i32 = arith.constant 0 : i32
    %c0_i32_0 = arith.constant 0 : i32
    %c0_i32_1 = arith.constant 0 : i32
    return %c0_i32, %c0_i32_0 : i32, i32
  }
  func.func @transform_7(%arg0: i32) -> (i32, i32) {
    %c0_i32 = arith.constant 0 : i32
    %c0_i32_0 = arith.constant 0 : i32
    %c0_i32_1 = arith.constant 0 : i32
    return %c0_i32, %c0_i32_0 : i32, i32
  }
  func.func @transform_8(%arg0: i32) -> (i32, i32) {
    %c0_i32 = arith.constant 0 : i32
    %c0_i32_0 = arith.constant 0 : i32
    %c0_i32_1 = arith.constant 0 : i32
    return %c0_i32, %c0_i32_0 : i32, i32
  }
  func.func @transform_9(%arg0: i32) -> (i32, i32) {
    %c0_i32 = arith.constant 0 : i32
    %c0_i32_0 = arith.constant 0 : i32
    %c0_i32_1 = arith.constant 0 : i32
    return %c0_i32, %c0_i32_0 : i32, i32
  }
}

module attributes {stable_mosaic.version = 11 : i64} {
  func.func @_linear_kernel(%arg0: i32, %arg1: memref<32x32xf32, #tpu.memory_space<vmem>>, %arg2: memref<32x32xbf16, #tpu.memory_space<vmem>>, %arg3: memref<1x32xf32, #tpu.memory_space<vmem>>, %arg4: memref<32x32xf32, #tpu.memory_space<vmem>>) attributes {dimension_semantics = [#tpu.dimension_semantics<arbitrary>], iteration_bounds = array<i64: 1>, scalar_prefetch = 0 : i64, scratch_operands = 0 : i64, tpu.core_type = #tpu.core_type<tc>, window_params = [{pipeline_mode = #tpu.pipeline_mode<synchronous>, transform_indices = @transform_0, window_bounds = array<i64: 32, 32>}, {pipeline_mode = #tpu.pipeline_mode<synchronous>, transform_indices = @transform_1, window_bounds = array<i64: 32, 32>}, {pipeline_mode = #tpu.pipeline_mode<synchronous>, transform_indices = @transform_2, window_bounds = array<i64: 1, 32>}, {pipeline_mode = #tpu.pipeline_mode<synchronous>, transform_indices = @transform_3, window_bounds = array<i64: 32, 32>}]} {
    %c0 = arith.constant 0 : index
    %c0_0 = arith.constant 0 : index
    %0 = vector.load %arg1[%c0, %c0_0] : memref<32x32xf32, #tpu.memory_space<vmem>>, vector<32x32xf32>
    %1 = arith.truncf %0 : vector<32x32xf32> to vector<32x32xbf16>
    %c0_1 = arith.constant 0 : index
    %c0_2 = arith.constant 0 : index
    %2 = vector.load %arg2[%c0_1, %c0_2] : memref<32x32xbf16, #tpu.memory_space<vmem>>, vector<32x32xbf16>
    %cst = arith.constant dense<0.000000e+00> : vector<32x32xf32>
    %3 = tpu.matmul %1, %2, %cst {dimension_numbers = #tpu.dot_dimension_numbers<[1], [0], [0], [1], [0, 0, 1, 1], [], []>} : vector<32x32xbf16>, vector<32x32xbf16>, vector<32x32xf32> -> vector<32x32xf32>
    %c0_3 = arith.constant 0 : index
    %c0_4 = arith.constant 0 : index
    %4 = vector.load %arg3[%c0_3, %c0_4] : memref<1x32xf32, #tpu.memory_space<vmem>>, vector<1x32xf32>
    %5 = vector.broadcast %4 : vector<1x32xf32> to vector<32x32xf32>
    %6 = arith.addf %3, %5 : vector<32x32xf32>
    %c0_5 = arith.constant 0 : index
    %c0_6 = arith.constant 0 : index
    %7 = vector.load %arg4[%c0_5, %c0_6] : memref<32x32xf32, #tpu.memory_space<vmem>>, vector<32x32xf32>
    tpu.vector_store %arg4[%c0_5, %c0_6], %6 {strides = array<i32>} : memref<32x32xf32, #tpu.memory_space<vmem>>, vector<32x32xf32>,
    return
  }
  func.func @transform_0(%arg0: i32) -> (i32, i32) {
    %c0_i32 = arith.constant 0 : i32
    %c0_i32_0 = arith.constant 0 : i32
    %c0_i32_1 = arith.constant 0 : i32
    return %c0_i32, %c0_i32_0 : i32, i32
  }
  func.func @transform_1(%arg0: i32) -> (i32, i32) {
    %c0_i32 = arith.constant 0 : i32
    %c0_i32_0 = arith.constant 0 : i32
    %c0_i32_1 = arith.constant 0 : i32
    return %c0_i32, %c0_i32_0 : i32, i32
  }
  func.func @transform_2(%arg0: i32) -> (i32, i32) {
    %c0_i32 = arith.constant 0 : i32
    %c0_i32_0 = arith.constant 0 : i32
    %c0_i32_1 = arith.constant 0 : i32
    return %c0_i32, %c0_i32_0 : i32, i32
  }
  func.func @transform_3(%arg0: i32) -> (i32, i32) {
    %c0_i32 = arith.constant 0 : i32
    %c0_i32_0 = arith.constant 0 : i32
    %c0_i32_1 = arith.constant 0 : i32
    return %c0_i32, %c0_i32_0 : i32, i32
  }
}

module attributes {stable_mosaic.version = 11 : i64} {
  func.func @_enc_layer_kernel(%arg0: i32, %arg1: memref<1x8x32xf32, #tpu.memory_space<vmem>>, %arg2: memref<1x1x8xf32, #tpu.memory_space<vmem>>, %arg3: memref<32x96xbf16, #tpu.memory_space<vmem>>, %arg4: memref<1x96xf32, #tpu.memory_space<vmem>>, %arg5: memref<32x32xbf16, #tpu.memory_space<vmem>>, %arg6: memref<1x32xf32, #tpu.memory_space<vmem>>, %arg7: memref<1x32xf32, #tpu.memory_space<vmem>>, %arg8: memref<1x32xf32, #tpu.memory_space<vmem>>, %arg9: memref<32x64xbf16, #tpu.memory_space<vmem>>, %arg10: memref<1x64xf32, #tpu.memory_space<vmem>>, %arg11: memref<64x32xbf16, #tpu.memory_space<vmem>>, %arg12: memref<1x32xf32, #tpu.memory_space<vmem>>, %arg13: memref<1x32xf32, #tpu.memory_space<vmem>>, %arg14: memref<1x32xf32, #tpu.memory_space<vmem>>, %arg15: memref<1x8x32xf32, #tpu.memory_space<vmem>>) attributes {dimension_semantics = [#tpu.dimension_semantics<parallel>], iteration_bounds = array<i64: 2>, scalar_prefetch = 0 : i64, scratch_operands = 0 : i64, tpu.core_type = #tpu.core_type<tc>, window_params = [{transform_indices = @transform_0, window_bounds = array<i64: 1, 8, 32>}, {transform_indices = @transform_1, window_bounds = array<i64: 1, 1, 8>}, {pipeline_mode = #tpu.pipeline_mode<synchronous>, transform_indices = @transform_2, window_bounds = array<i64: 32, 96>}, {pipeline_mode = #tpu.pipeline_mode<synchronous>, transform_indices = @transform_3, window_bounds = array<i64: 1, 96>}, {pipeline_mode = #tpu.pipeline_mode<synchronous>, transform_indices = @transform_4, window_bounds = array<i64: 32, 32>}, {pipeline_mode = #tpu.pipeline_mode<synchronous>, transform_indices = @transform_5, window_bounds = array<i64: 1, 32>}, {pipeline_mode = #tpu.pipeline_mode<synchronous>, transform_indices = @transform_6, window_bounds = array<i64: 1, 32>}, {pipeline_mode = #tpu.pipeline_mode<synchronous>, transform_indices = @transform_7, window_bounds = array<i64: 1, 32>}, {pipeline_mode = #tpu.pipeline_mode<synchronous>, transform_indices = @transform_8, window_bounds = array<i64: 32, 64>}, {pipeline_mode = #tpu.pipeline_mode<synchronous>, transform_indices = @transform_9, window_bounds = array<i64: 1, 64>}, {pipeline_mode = #tpu.pipeline_mode<synchronous>, transform_indices = @transform_10, window_bounds = array<i64: 64, 32>}, {pipeline_mode = #tpu.pipeline_mode<synchronous>, transform_indices = @transform_11, window_bounds = array<i64: 1, 32>}, {pipeline_mode = #tpu.pipeline_mode<synchronous>, transform_indices = @transform_12, window_bounds = array<i64: 1, 32>}, {pipeline_mode = #tpu.pipeline_mode<synchronous>, transform_indices = @transform_13, window_bounds = array<i64: 1, 32>}, {transform_indices = @transform_14, window_bounds = array<i64: 1, 8, 32>}]} {
    %c0 = arith.constant 0 : index
    %c0_0 = arith.constant 0 : index
    %c0_1 = arith.constant 0 : index
    %0 = vector.load %arg1[%c0, %c0_0, %c0_1] : memref<1x8x32xf32, #tpu.memory_space<vmem>>, vector<1x8x32xf32>
    %1 = vector.shape_cast %0 : vector<1x8x32xf32> to vector<8x32xf32>
    %c0_2 = arith.constant 0 : index
    %c0_3 = arith.constant 0 : index
    %c0_4 = arith.constant 0 : index
    %2 = vector.load %arg2[%c0_2, %c0_3, %c0_4] : memref<1x1x8xf32, #tpu.memory_space<vmem>>, vector<1x1x8xf32>
    %3 = vector.shape_cast %2 : vector<1x1x8xf32> to vector<1x8xf32>
    %c0_5 = arith.constant 0 : index
    %c0_6 = arith.constant 0 : index
    %4 = vector.load %arg3[%c0_5, %c0_6] : memref<32x96xbf16, #tpu.memory_space<vmem>>, vector<32x96xbf16>
    %c0_7 = arith.constant 0 : index
    %c0_8 = arith.constant 0 : index
    %5 = vector.load %arg4[%c0_7, %c0_8] : memref<1x96xf32, #tpu.memory_space<vmem>>, vector<1x96xf32>
    %c0_9 = arith.constant 0 : index
    %c0_10 = arith.constant 0 : index
    %6 = vector.load %arg5[%c0_9, %c0_10] : memref<32x32xbf16, #tpu.memory_space<vmem>>, vector<32x32xbf16>
    %c0_11 = arith.constant 0 : index
    %c0_12 = arith.constant 0 : index
    %7 = vector.load %arg6[%c0_11, %c0_12] : memref<1x32xf32, #tpu.memory_space<vmem>>, vector<1x32xf32>
    %8 = arith.truncf %1 : vector<8x32xf32> to vector<8x32xbf16>
    %9 = arith.truncf %1 : vector<8x32xf32> to vector<8x32xbf16>
    %10 = vector.extract_strided_slice %4 {offsets = [0, 0], sizes = [32, 32], strides = [1, 1]} : vector<32x96xbf16> to vector<32x32xbf16>
    %cst = arith.constant dense<0.000000e+00> : vector<8x32xf32>
    %11 = tpu.matmul %8, %10, %cst {dimension_numbers = #tpu.dot_dimension_numbers<[1], [0], [0], [1], [0, 0, 1, 1], [], []>} : vector<8x32xbf16>, vector<32x32xbf16>, vector<8x32xf32> -> vector<8x32xf32>
    %12 = vector.extract_strided_slice %5 {offsets = [0, 0], sizes = [1, 32], strides = [1, 1]} : vector<1x96xf32> to vector<1x32xf32>
    %13 = vector.broadcast %12 : vector<1x32xf32> to vector<8x32xf32>
    %14 = arith.addf %11, %13 : vector<8x32xf32>
    %15 = vector.extract_strided_slice %4 {offsets = [0, 32], sizes = [32, 32], strides = [1, 1]} : vector<32x96xbf16> to vector<32x32xbf16>
    %cst_13 = arith.constant dense<0.000000e+00> : vector<8x32xf32>
    %16 = tpu.matmul %9, %15, %cst_13 {dimension_numbers = #tpu.dot_dimension_numbers<[1], [0], [0], [1], [0, 0, 1, 1], [], []>} : vector<8x32xbf16>, vector<32x32xbf16>, vector<8x32xf32> -> vector<8x32xf32>
    %17 = vector.extract_strided_slice %5 {offsets = [0, 32], sizes = [1, 32], strides = [1, 1]} : vector<1x96xf32> to vector<1x32xf32>
    %18 = vector.broadcast %17 : vector<1x32xf32> to vector<8x32xf32>
    %19 = arith.addf %16, %18 : vector<8x32xf32>
    %20 = vector.extract_strided_slice %4 {offsets = [0, 64], sizes = [32, 32], strides = [1, 1]} : vector<32x96xbf16> to vector<32x32xbf16>
    %cst_14 = arith.constant dense<0.000000e+00> : vector<8x32xf32>
    %21 = tpu.matmul %9, %20, %cst_14 {dimension_numbers = #tpu.dot_dimension_numbers<[1], [0], [0], [1], [0, 0, 1, 1], [], []>} : vector<8x32xbf16>, vector<32x32xbf16>, vector<8x32xf32> -> vector<8x32xf32>
    %22 = vector.extract_strided_slice %5 {offsets = [0, 64], sizes = [1, 32], strides = [1, 1]} : vector<1x96xf32> to vector<1x32xf32>
    %23 = vector.broadcast %22 : vector<1x32xf32> to vector<8x32xf32>
    %24 = arith.addf %21, %23 : vector<8x32xf32>
    %25 = vector.extract_strided_slice %14 {offsets = [0, 0], sizes = [8, 8], strides = [1, 1]} : vector<8x32xf32> to vector<8x8xf32>
    %cst_15 = arith.constant 0.353553385 : f32
    %26 = vector.broadcast %cst_15 : f32 to vector<8x8xf32>
    %27 = arith.mulf %25, %26 : vector<8x8xf32>
    %28 = arith.truncf %27 : vector<8x8xf32> to vector<8x8xbf16>
    %29 = vector.extract_strided_slice %19 {offsets = [0, 0], sizes = [8, 8], strides = [1, 1]} : vector<8x32xf32> to vector<8x8xf32>
    %30 = arith.truncf %29 : vector<8x8xf32> to vector<8x8xbf16>
    %31 = vector.extract_strided_slice %24 {offsets = [0, 0], sizes = [8, 8], strides = [1, 1]} : vector<8x32xf32> to vector<8x8xf32>
    %32 = arith.truncf %31 : vector<8x8xf32> to vector<8x8xbf16>
    %cst_16 = arith.constant dense<0.000000e+00> : vector<8x8xf32>
    %33 = tpu.matmul %28, %30, %cst_16 {dimension_numbers = #tpu.dot_dimension_numbers<[1], [1], [0], [0], [0, 0, 1, 0], [], []>} : vector<8x8xbf16>, vector<8x8xbf16>, vector<8x8xf32> -> vector<8x8xf32>
    %34 = vector.broadcast %3 : vector<1x8xf32> to vector<8x8xf32>
    %35 = arith.addf %33, %34 : vector<8x8xf32>
    %cst_17 = arith.constant dense<0xFF800000> : vector<8xf32>
    %36 = vector.multi_reduction <maximumf>, %35, %cst_17 [1] : vector<8x8xf32> to vector<8xf32>
    %37 = vector.shape_cast %36 : vector<8xf32> to vector<8x1xf32>
    %38 = vector.broadcast %37 : vector<8x1xf32> to vector<8x8xf32>
    %39 = arith.subf %35, %38 : vector<8x8xf32>
    %40 = math.exp %39 : vector<8x8xf32>
    %cst_18 = arith.constant dense<0.000000e+00> : vector<8xf32>
    %41 = vector.multi_reduction <add>, %40, %cst_18 [1] : vector<8x8xf32> to vector<8xf32>
    %42 = vector.shape_cast %41 : vector<8xf32> to vector<8x1xf32>
    %43 = tpu.reciprocal %42 {approx = true} : vector<8x1xf32> -> vector<8x1xf32>
    %44 = vector.broadcast %43 : vector<8x1xf32> to vector<8x8xf32>
    %45 = arith.mulf %40, %44 : vector<8x8xf32>
    %46 = arith.truncf %45 : vector<8x8xf32> to vector<8x8xbf16>
    %cst_19 = arith.constant dense<0.000000e+00> : vector<8x8xf32>
    %47 = tpu.matmul %46, %32, %cst_19 {dimension_numbers = #tpu.dot_dimension_numbers<[1], [0], [0], [1], [0, 0, 1, 1], [], []>} : vector<8x8xbf16>, vector<8x8xbf16>, vector<8x8xf32> -> vector<8x8xf32>
    %48 = vector.extract_strided_slice %14 {offsets = [0, 8], sizes = [8, 8], strides = [1, 1]} : vector<8x32xf32> to vector<8x8xf32>
    %cst_20 = arith.constant 0.353553385 : f32
    %49 = vector.broadcast %cst_20 : f32 to vector<8x8xf32>
    %50 = arith.mulf %48, %49 : vector<8x8xf32>
    %51 = arith.truncf %50 : vector<8x8xf32> to vector<8x8xbf16>
    %52 = vector.extract_strided_slice %19 {offsets = [0, 8], sizes = [8, 8], strides = [1, 1]} : vector<8x32xf32> to vector<8x8xf32>
    %53 = arith.truncf %52 : vector<8x8xf32> to vector<8x8xbf16>
    %54 = vector.extract_strided_slice %24 {offsets = [0, 8], sizes = [8, 8], strides = [1, 1]} : vector<8x32xf32> to vector<8x8xf32>
    %55 = arith.truncf %54 : vector<8x8xf32> to vector<8x8xbf16>
    %cst_21 = arith.constant dense<0.000000e+00> : vector<8x8xf32>
    %56 = tpu.matmul %51, %53, %cst_21 {dimension_numbers = #tpu.dot_dimension_numbers<[1], [1], [0], [0], [0, 0, 1, 0], [], []>} : vector<8x8xbf16>, vector<8x8xbf16>, vector<8x8xf32> -> vector<8x8xf32>
    %57 = vector.broadcast %3 : vector<1x8xf32> to vector<8x8xf32>
    %58 = arith.addf %56, %57 : vector<8x8xf32>
    %cst_22 = arith.constant dense<0xFF800000> : vector<8xf32>
    %59 = vector.multi_reduction <maximumf>, %58, %cst_22 [1] : vector<8x8xf32> to vector<8xf32>
    %60 = vector.shape_cast %59 : vector<8xf32> to vector<8x1xf32>
    %61 = vector.broadcast %60 : vector<8x1xf32> to vector<8x8xf32>
    %62 = arith.subf %58, %61 : vector<8x8xf32>
    %63 = math.exp %62 : vector<8x8xf32>
    %cst_23 = arith.constant dense<0.000000e+00> : vector<8xf32>
    %64 = vector.multi_reduction <add>, %63, %cst_23 [1] : vector<8x8xf32> to vector<8xf32>
    %65 = vector.shape_cast %64 : vector<8xf32> to vector<8x1xf32>
    %66 = tpu.reciprocal %65 {approx = true} : vector<8x1xf32> -> vector<8x1xf32>
    %67 = vector.broadcast %66 : vector<8x1xf32> to vector<8x8xf32>
    %68 = arith.mulf %63, %67 : vector<8x8xf32>
    %69 = arith.truncf %68 : vector<8x8xf32> to vector<8x8xbf16>
    %cst_24 = arith.constant dense<0.000000e+00> : vector<8x8xf32>
    %70 = tpu.matmul %69, %55, %cst_24 {dimension_numbers = #tpu.dot_dimension_numbers<[1], [0], [0], [1], [0, 0, 1, 1], [], []>} : vector<8x8xbf16>, vector<8x8xbf16>, vector<8x8xf32> -> vector<8x8xf32>
    %71 = vector.extract_strided_slice %14 {offsets = [0, 16], sizes = [8, 8], strides = [1, 1]} : vector<8x32xf32> to vector<8x8xf32>
    %cst_25 = arith.constant 0.353553385 : f32
    %72 = vector.broadcast %cst_25 : f32 to vector<8x8xf32>
    %73 = arith.mulf %71, %72 : vector<8x8xf32>
    %74 = arith.truncf %73 : vector<8x8xf32> to vector<8x8xbf16>
    %75 = vector.extract_strided_slice %19 {offsets = [0, 16], sizes = [8, 8], strides = [1, 1]} : vector<8x32xf32> to vector<8x8xf32>
    %76 = arith.truncf %75 : vector<8x8xf32> to vector<8x8xbf16>
    %77 = vector.extract_strided_slice %24 {offsets = [0, 16], sizes = [8, 8], strides = [1, 1]} : vector<8x32xf32> to vector<8x8xf32>
    %78 = arith.truncf %77 : vector<8x8xf32> to vector<8x8xbf16>
    %cst_26 = arith.constant dense<0.000000e+00> : vector<8x8xf32>
    %79 = tpu.matmul %74, %76, %cst_26 {dimension_numbers = #tpu.dot_dimension_numbers<[1], [1], [0], [0], [0, 0, 1, 0], [], []>} : vector<8x8xbf16>, vector<8x8xbf16>, vector<8x8xf32> -> vector<8x8xf32>
    %80 = vector.broadcast %3 : vector<1x8xf32> to vector<8x8xf32>
    %81 = arith.addf %79, %80 : vector<8x8xf32>
    %cst_27 = arith.constant dense<0xFF800000> : vector<8xf32>
    %82 = vector.multi_reduction <maximumf>, %81, %cst_27 [1] : vector<8x8xf32> to vector<8xf32>
    %83 = vector.shape_cast %82 : vector<8xf32> to vector<8x1xf32>
    %84 = vector.broadcast %83 : vector<8x1xf32> to vector<8x8xf32>
    %85 = arith.subf %81, %84 : vector<8x8xf32>
    %86 = math.exp %85 : vector<8x8xf32>
    %cst_28 = arith.constant dense<0.000000e+00> : vector<8xf32>
    %87 = vector.multi_reduction <add>, %86, %cst_28 [1] : vector<8x8xf32> to vector<8xf32>
    %88 = vector.shape_cast %87 : vector<8xf32> to vector<8x1xf32>
    %89 = tpu.reciprocal %88 {approx = true} : vector<8x1xf32> -> vector<8x1xf32>
    %90 = vector.broadcast %89 : vector<8x1xf32> to vector<8x8xf32>
    %91 = arith.mulf %86, %90 : vector<8x8xf32>
    %92 = arith.truncf %91 : vector<8x8xf32> to vector<8x8xbf16>
    %cst_29 = arith.constant dense<0.000000e+00> : vector<8x8xf32>
    %93 = tpu.matmul %92, %78, %cst_29 {dimension_numbers = #tpu.dot_dimension_numbers<[1], [0], [0], [1], [0, 0, 1, 1], [], []>} : vector<8x8xbf16>, vector<8x8xbf16>, vector<8x8xf32> -> vector<8x8xf32>
    %94 = vector.extract_strided_slice %14 {offsets = [0, 24], sizes = [8, 8], strides = [1, 1]} : vector<8x32xf32> to vector<8x8xf32>
    %cst_30 = arith.constant 0.353553385 : f32
    %95 = vector.broadcast %cst_30 : f32 to vector<8x8xf32>
    %96 = arith.mulf %94, %95 : vector<8x8xf32>
    %97 = arith.truncf %96 : vector<8x8xf32> to vector<8x8xbf16>
    %98 = vector.extract_strided_slice %19 {offsets = [0, 24], sizes = [8, 8], strides = [1, 1]} : vector<8x32xf32> to vector<8x8xf32>
    %99 = arith.truncf %98 : vector<8x8xf32> to vector<8x8xbf16>
    %100 = vector.extract_strided_slice %24 {offsets = [0, 24], sizes = [8, 8], strides = [1, 1]} : vector<8x32xf32> to vector<8x8xf32>
    %101 = arith.truncf %100 : vector<8x8xf32> to vector<8x8xbf16>
    %cst_31 = arith.constant dense<0.000000e+00> : vector<8x8xf32>
    %102 = tpu.matmul %97, %99, %cst_31 {dimension_numbers = #tpu.dot_dimension_numbers<[1], [1], [0], [0], [0, 0, 1, 0], [], []>} : vector<8x8xbf16>, vector<8x8xbf16>, vector<8x8xf32> -> vector<8x8xf32>
    %103 = vector.broadcast %3 : vector<1x8xf32> to vector<8x8xf32>
    %104 = arith.addf %102, %103 : vector<8x8xf32>
    %cst_32 = arith.constant dense<0xFF800000> : vector<8xf32>
    %105 = vector.multi_reduction <maximumf>, %104, %cst_32 [1] : vector<8x8xf32> to vector<8xf32>
    %106 = vector.shape_cast %105 : vector<8xf32> to vector<8x1xf32>
    %107 = vector.broadcast %106 : vector<8x1xf32> to vector<8x8xf32>
    %108 = arith.subf %104, %107 : vector<8x8xf32>
    %109 = math.exp %108 : vector<8x8xf32>
    %cst_33 = arith.constant dense<0.000000e+00> : vector<8xf32>
    %110 = vector.multi_reduction <add>, %109, %cst_33 [1] : vector<8x8xf32> to vector<8xf32>
    %111 = vector.shape_cast %110 : vector<8xf32> to vector<8x1xf32>
    %112 = tpu.reciprocal %111 {approx = true} : vector<8x1xf32> -> vector<8x1xf32>
    %113 = vector.broadcast %112 : vector<8x1xf32> to vector<8x8xf32>
    %114 = arith.mulf %109, %113 : vector<8x8xf32>
    %115 = arith.truncf %114 : vector<8x8xf32> to vector<8x8xbf16>
    %cst_34 = arith.constant dense<0.000000e+00> : vector<8x8xf32>
    %116 = tpu.matmul %115, %101, %cst_34 {dimension_numbers = #tpu.dot_dimension_numbers<[1], [0], [0], [1], [0, 0, 1, 1], [], []>} : vector<8x8xbf16>, vector<8x8xbf16>, vector<8x8xf32> -> vector<8x8xf32>
    %117 = tpu.concatenate %47, %70, %93, %116 in 1 : vector<8x8xf32>, vector<8x8xf32>, vector<8x8xf32>, vector<8x8xf32> -> vector<8x32xf32>
    %118 = arith.truncf %117 : vector<8x32xf32> to vector<8x32xbf16>
    %cst_35 = arith.constant dense<0.000000e+00> : vector<8x32xf32>
    %119 = tpu.matmul %118, %6, %cst_35 {dimension_numbers = #tpu.dot_dimension_numbers<[1], [0], [0], [1], [0, 0, 1, 1], [], []>} : vector<8x32xbf16>, vector<32x32xbf16>, vector<8x32xf32> -> vector<8x32xf32>
    %120 = vector.broadcast %7 : vector<1x32xf32> to vector<8x32xf32>
    %121 = arith.addf %119, %120 : vector<8x32xf32>
    %122 = arith.addf %1, %121 : vector<8x32xf32>
    %c0_36 = arith.constant 0 : index
    %c0_37 = arith.constant 0 : index
    %123 = vector.load %arg7[%c0_36, %c0_37] : memref<1x32xf32, #tpu.memory_space<vmem>>, vector<1x32xf32>
    %c0_38 = arith.constant 0 : index
    %c0_39 = arith.constant 0 : index
    %124 = vector.load %arg8[%c0_38, %c0_39] : memref<1x32xf32, #tpu.memory_space<vmem>>, vector<1x32xf32>
    %cst_40 = arith.constant dense<0.000000e+00> : vector<8xf32>
    %125 = vector.multi_reduction <add>, %122, %cst_40 [1] : vector<8x32xf32> to vector<8xf32>
    %126 = vector.shape_cast %125 : vector<8xf32> to vector<8x1xf32>
    %cst_41 = arith.constant 3.200000e+01 : f32
    %127 = vector.broadcast %cst_41 : f32 to vector<8x1xf32>
    %128 = arith.divf %126, %127 : vector<8x1xf32>
    %129 = vector.broadcast %128 : vector<8x1xf32> to vector<8x32xf32>
    %130 = arith.subf %122, %129 : vector<8x32xf32>
    %131 = arith.mulf %130, %130 : vector<8x32xf32>
    %cst_42 = arith.constant dense<0.000000e+00> : vector<8xf32>
    %132 = vector.multi_reduction <add>, %131, %cst_42 [1] : vector<8x32xf32> to vector<8xf32>
    %133 = vector.shape_cast %132 : vector<8xf32> to vector<8x1xf32>
    %cst_43 = arith.constant 3.200000e+01 : f32
    %134 = vector.broadcast %cst_43 : f32 to vector<8x1xf32>
    %135 = arith.divf %133, %134 : vector<8x1xf32>
    %cst_44 = arith.constant 9.99999974E-6 : f32
    %136 = vector.broadcast %cst_44 : f32 to vector<8x1xf32>
    %137 = arith.addf %135, %136 : vector<8x1xf32>
    %138 = math.rsqrt %137 : vector<8x1xf32>
    %139 = vector.broadcast %138 : vector<8x1xf32> to vector<8x32xf32>
    %140 = arith.mulf %130, %139 : vector<8x32xf32>
    %141 = vector.broadcast %123 : vector<1x32xf32> to vector<8x32xf32>
    %142 = arith.mulf %140, %141 : vector<8x32xf32>
    %143 = vector.broadcast %124 : vector<1x32xf32> to vector<8x32xf32>
    %144 = arith.addf %142, %143 : vector<8x32xf32>
    %c0_45 = arith.constant 0 : index
    %c0_46 = arith.constant 0 : index
    %145 = vector.load %arg9[%c0_45, %c0_46] : memref<32x64xbf16, #tpu.memory_space<vmem>>, vector<32x64xbf16>
    %c0_47 = arith.constant 0 : index
    %c0_48 = arith.constant 0 : index
    %146 = vector.load %arg10[%c0_47, %c0_48] : memref<1x64xf32, #tpu.memory_space<vmem>>, vector<1x64xf32>
    %c0_49 = arith.constant 0 : index
    %c0_50 = arith.constant 0 : index
    %147 = vector.load %arg11[%c0_49, %c0_50] : memref<64x32xbf16, #tpu.memory_space<vmem>>, vector<64x32xbf16>
    %c0_51 = arith.constant 0 : index
    %c0_52 = arith.constant 0 : index
    %148 = vector.load %arg12[%c0_51, %c0_52] : memref<1x32xf32, #tpu.memory_space<vmem>>, vector<1x32xf32>
    %149 = arith.truncf %144 : vector<8x32xf32> to vector<8x32xbf16>
    %cst_53 = arith.constant dense<0.000000e+00> : vector<8x64xf32>
    %150 = tpu.matmul %149, %145, %cst_53 {dimension_numbers = #tpu.dot_dimension_numbers<[1], [0], [0], [1], [0, 0, 1, 1], [], []>} : vector<8x32xbf16>, vector<32x64xbf16>, vector<8x64xf32> -> vector<8x64xf32>
    %151 = vector.broadcast %146 : vector<1x64xf32> to vector<8x64xf32>
    %152 = arith.addf %150, %151 : vector<8x64xf32>
    %cst_54 = arith.constant 5.000000e-01 : f32
    %153 = vector.broadcast %cst_54 : f32 to vector<8x64xf32>
    %154 = arith.mulf %153, %152 : vector<8x64xf32>
    %cst_55 = arith.constant 0.707106769 : f32
    %155 = vector.broadcast %cst_55 : f32 to vector<8x64xf32>
    %156 = arith.mulf %152, %155 : vector<8x64xf32>
    %157 = math.erf %156 : vector<8x64xf32>
    %cst_56 = arith.constant 1.000000e+00 : f32
    %158 = vector.broadcast %cst_56 : f32 to vector<8x64xf32>
    %159 = arith.addf %158, %157 : vector<8x64xf32>
    %160 = arith.mulf %154, %159 : vector<8x64xf32>
    %161 = arith.truncf %160 : vector<8x64xf32> to vector<8x64xbf16>
    %cst_57 = arith.constant dense<0.000000e+00> : vector<8x32xf32>
    %162 = tpu.matmul %161, %147, %cst_57 {dimension_numbers = #tpu.dot_dimension_numbers<[1], [0], [0], [1], [0, 0, 1, 1], [], []>} : vector<8x64xbf16>, vector<64x32xbf16>, vector<8x32xf32> -> vector<8x32xf32>
    %163 = vector.broadcast %148 : vector<1x32xf32> to vector<8x32xf32>
    %164 = arith.addf %162, %163 : vector<8x32xf32>
    %165 = arith.addf %144, %164 : vector<8x32xf32>
    %c0_58 = arith.constant 0 : index
    %c0_59 = arith.constant 0 : index
    %166 = vector.load %arg13[%c0_58, %c0_59] : memref<1x32xf32, #tpu.memory_space<vmem>>, vector<1x32xf32>
    %c0_60 = arith.constant 0 : index
    %c0_61 = arith.constant 0 : index
    %167 = vector.load %arg14[%c0_60, %c0_61] : memref<1x32xf32, #tpu.memory_space<vmem>>, vector<1x32xf32>
    %cst_62 = arith.constant dense<0.000000e+00> : vector<8xf32>
    %168 = vector.multi_reduction <add>, %165, %cst_62 [1] : vector<8x32xf32> to vector<8xf32>
    %169 = vector.shape_cast %168 : vector<8xf32> to vector<8x1xf32>
    %cst_63 = arith.constant 3.200000e+01 : f32
    %170 = vector.broadcast %cst_63 : f32 to vector<8x1xf32>
    %171 = arith.divf %169, %170 : vector<8x1xf32>
    %172 = vector.broadcast %171 : vector<8x1xf32> to vector<8x32xf32>
    %173 = arith.subf %165, %172 : vector<8x32xf32>
    %174 = arith.mulf %173, %173 : vector<8x32xf32>
    %cst_64 = arith.constant dense<0.000000e+00> : vector<8xf32>
    %175 = vector.multi_reduction <add>, %174, %cst_64 [1] : vector<8x32xf32> to vector<8xf32>
    %176 = vector.shape_cast %175 : vector<8xf32> to vector<8x1xf32>
    %cst_65 = arith.constant 3.200000e+01 : f32
    %177 = vector.broadcast %cst_65 : f32 to vector<8x1xf32>
    %178 = arith.divf %176, %177 : vector<8x1xf32>
    %cst_66 = arith.constant 9.99999974E-6 : f32
    %179 = vector.broadcast %cst_66 : f32 to vector<8x1xf32>
    %180 = arith.addf %178, %179 : vector<8x1xf32>
    %181 = math.rsqrt %180 : vector<8x1xf32>
    %182 = vector.broadcast %181 : vector<8x1xf32> to vector<8x32xf32>
    %183 = arith.mulf %173, %182 : vector<8x32xf32>
    %184 = vector.broadcast %166 : vector<1x32xf32> to vector<8x32xf32>
    %185 = arith.mulf %183, %184 : vector<8x32xf32>
    %186 = vector.broadcast %167 : vector<1x32xf32> to vector<8x32xf32>
    %187 = arith.addf %185, %186 : vector<8x32xf32>
    %c0_67 = arith.constant 0 : index
    %c0_68 = arith.constant 0 : index
    %c0_69 = arith.constant 0 : index
    %188 = vector.load %arg15[%c0_67, %c0_68, %c0_69] : memref<1x8x32xf32, #tpu.memory_space<vmem>>, vector<1x8x32xf32>
    %189 = vector.shape_cast %188 : vector<1x8x32xf32> to vector<8x32xf32>
    %190 = vector.shape_cast %187 : vector<8x32xf32> to vector<1x8x32xf32>
    tpu.vector_store %arg15[%c0_67, %c0_68, %c0_69], %190 {strides = array<i32>} : memref<1x8x32xf32, #tpu.memory_space<vmem>>, vector<1x8x32xf32>,
    return
  }
  func.func @transform_0(%arg0: i32) -> (i32, i32, i32) {
    %c0_i32 = arith.constant 0 : i32
    %c0_i32_0 = arith.constant 0 : i32
    %c0_i32_1 = arith.constant 0 : i32
    return %arg0, %c0_i32, %c0_i32_0 : i32, i32, i32
  }
  func.func @transform_1(%arg0: i32) -> (i32, i32, i32) {
    %c0_i32 = arith.constant 0 : i32
    %c0_i32_0 = arith.constant 0 : i32
    %c0_i32_1 = arith.constant 0 : i32
    return %arg0, %c0_i32, %c0_i32_0 : i32, i32, i32
  }
  func.func @transform_2(%arg0: i32) -> (i32, i32) {
    %c0_i32 = arith.constant 0 : i32
    %c0_i32_0 = arith.constant 0 : i32
    %c0_i32_1 = arith.constant 0 : i32
    return %c0_i32, %c0_i32_0 : i32, i32
  }
  func.func @transform_3(%arg0: i32) -> (i32, i32) {
    %c0_i32 = arith.constant 0 : i32
    %c0_i32_0 = arith.constant 0 : i32
    %c0_i32_1 = arith.constant 0 : i32
    return %c0_i32, %c0_i32_0 : i32, i32
  }
  func.func @transform_4(%arg0: i32) -> (i32, i32) {
    %c0_i32 = arith.constant 0 : i32
    %c0_i32_0 = arith.constant 0 : i32
    %c0_i32_1 = arith.constant 0 : i32
    return %c0_i32, %c0_i32_0 : i32, i32
  }
  func.func @transform_5(%arg0: i32) -> (i32, i32) {
    %c0_i32 = arith.constant 0 : i32
    %c0_i32_0 = arith.constant 0 : i32
    %c0_i32_1 = arith.constant 0 : i32
    return %c0_i32, %c0_i32_0 : i32, i32
  }
  func.func @transform_6(%arg0: i32) -> (i32, i32) {
    %c0_i32 = arith.constant 0 : i32
    %c0_i32_0 = arith.constant 0 : i32
    %c0_i32_1 = arith.constant 0 : i32
    return %c0_i32, %c0_i32_0 : i32, i32
  }
  func.func @transform_7(%arg0: i32) -> (i32, i32) {
    %c0_i32 = arith.constant 0 : i32
    %c0_i32_0 = arith.constant 0 : i32
    %c0_i32_1 = arith.constant 0 : i32
    return %c0_i32, %c0_i32_0 : i32, i32
  }
  func.func @transform_8(%arg0: i32) -> (i32, i32) {
    %c0_i32 = arith.constant 0 : i32
    %c0_i32_0 = arith.constant 0 : i32
    %c0_i32_1 = arith.constant 0 : i32
    return %c0_i32, %c0_i32_0 : i32, i32
  }
  func.func @transform_9(%arg0: i32) -> (i32, i32) {
    %c0_i32 = arith.constant 0 : i32
    %c0_i32_0 = arith.constant 0 : i32
    %c0_i32_1 = arith.constant 0 : i32
    return %c0_i32, %c0_i32_0 : i32, i32
  }
  func.func @transform_10(%arg0: i32) -> (i32, i32) {
    %c0_i32 = arith.constant 0 : i32
    %c0_i32_0 = arith.constant 0 : i32
    %c0_i32_1 = arith.constant 0 : i32
    return %c0_i32, %c0_i32_0 : i32, i32
  }
  func.func @transform_11(%arg0: i32) -> (i32, i32) {
    %c0_i32 = arith.constant 0 : i32
    %c0_i32_0 = arith.constant 0 : i32
    %c0_i32_1 = arith.constant 0 : i32
    return %c0_i32, %c0_i32_0 : i32, i32
  }
  func.func @transform_12(%arg0: i32) -> (i32, i32) {
    %c0_i32 = arith.constant 0 : i32
    %c0_i32_0 = arith.constant 0 : i32
    %c0_i32_1 = arith.constant 0 : i32
    return %c0_i32, %c0_i32_0 : i32, i32
  }
  func.func @transform_13(%arg0: i32) -> (i32, i32) {
    %c0_i32 = arith.constant 0 : i32
    %c0_i32_0 = arith.constant 0 : i32
    %c0_i32_1 = arith.constant 0 : i32
    return %c0_i32, %c0_i32_0 : i32, i32
  }
  func.func @transform_14(%arg0: i32) -> (i32, i32, i32) {
    %c0_i32 = arith.constant 0 : i32
    %c0_i32_0 = arith.constant 0 : i32
    %c0_i32_1 = arith.constant 0 : i32
    return %arg0, %c0_i32, %c0_i32_0 : i32, i32, i32
  }
}

module attributes {stable_mosaic.version = 11 : i64} {
  func.func @_enc_layer_kernel(%arg0: i32, %arg1: memref<1x8x32xf32, #tpu.memory_space<vmem>>, %arg2: memref<1x1x8xf32, #tpu.memory_space<vmem>>, %arg3: memref<32x96xbf16, #tpu.memory_space<vmem>>, %arg4: memref<1x96xf32, #tpu.memory_space<vmem>>, %arg5: memref<32x32xbf16, #tpu.memory_space<vmem>>, %arg6: memref<1x32xf32, #tpu.memory_space<vmem>>, %arg7: memref<1x32xf32, #tpu.memory_space<vmem>>, %arg8: memref<1x32xf32, #tpu.memory_space<vmem>>, %arg9: memref<32x64xbf16, #tpu.memory_space<vmem>>, %arg10: memref<1x64xf32, #tpu.memory_space<vmem>>, %arg11: memref<64x32xbf16, #tpu.memory_space<vmem>>, %arg12: memref<1x32xf32, #tpu.memory_space<vmem>>, %arg13: memref<1x32xf32, #tpu.memory_space<vmem>>, %arg14: memref<1x32xf32, #tpu.memory_space<vmem>>, %arg15: memref<1x8x32xf32, #tpu.memory_space<vmem>>) attributes {dimension_semantics = [#tpu.dimension_semantics<parallel>], iteration_bounds = array<i64: 4>, scalar_prefetch = 0 : i64, scratch_operands = 0 : i64, tpu.core_type = #tpu.core_type<tc>, window_params = [{transform_indices = @transform_0, window_bounds = array<i64: 1, 8, 32>}, {transform_indices = @transform_1, window_bounds = array<i64: 1, 1, 8>}, {pipeline_mode = #tpu.pipeline_mode<synchronous>, transform_indices = @transform_2, window_bounds = array<i64: 32, 96>}, {pipeline_mode = #tpu.pipeline_mode<synchronous>, transform_indices = @transform_3, window_bounds = array<i64: 1, 96>}, {pipeline_mode = #tpu.pipeline_mode<synchronous>, transform_indices = @transform_4, window_bounds = array<i64: 32, 32>}, {pipeline_mode = #tpu.pipeline_mode<synchronous>, transform_indices = @transform_5, window_bounds = array<i64: 1, 32>}, {pipeline_mode = #tpu.pipeline_mode<synchronous>, transform_indices = @transform_6, window_bounds = array<i64: 1, 32>}, {pipeline_mode = #tpu.pipeline_mode<synchronous>, transform_indices = @transform_7, window_bounds = array<i64: 1, 32>}, {pipeline_mode = #tpu.pipeline_mode<synchronous>, transform_indices = @transform_8, window_bounds = array<i64: 32, 64>}, {pipeline_mode = #tpu.pipeline_mode<synchronous>, transform_indices = @transform_9, window_bounds = array<i64: 1, 64>}, {pipeline_mode = #tpu.pipeline_mode<synchronous>, transform_indices = @transform_10, window_bounds = array<i64: 64, 32>}, {pipeline_mode = #tpu.pipeline_mode<synchronous>, transform_indices = @transform_11, window_bounds = array<i64: 1, 32>}, {pipeline_mode = #tpu.pipeline_mode<synchronous>, transform_indices = @transform_12, window_bounds = array<i64: 1, 32>}, {pipeline_mode = #tpu.pipeline_mode<synchronous>, transform_indices = @transform_13, window_bounds = array<i64: 1, 32>}, {transform_indices = @transform_14, window_bounds = array<i64: 1, 8, 32>}]} {
    %c0 = arith.constant 0 : index
    %c0_0 = arith.constant 0 : index
    %c0_1 = arith.constant 0 : index
    %0 = vector.load %arg1[%c0, %c0_0, %c0_1] : memref<1x8x32xf32, #tpu.memory_space<vmem>>, vector<1x8x32xf32>
    %1 = vector.shape_cast %0 : vector<1x8x32xf32> to vector<8x32xf32>
    %c0_2 = arith.constant 0 : index
    %c0_3 = arith.constant 0 : index
    %c0_4 = arith.constant 0 : index
    %2 = vector.load %arg2[%c0_2, %c0_3, %c0_4] : memref<1x1x8xf32, #tpu.memory_space<vmem>>, vector<1x1x8xf32>
    %3 = vector.shape_cast %2 : vector<1x1x8xf32> to vector<1x8xf32>
    %c0_5 = arith.constant 0 : index
    %c0_6 = arith.constant 0 : index
    %4 = vector.load %arg3[%c0_5, %c0_6] : memref<32x96xbf16, #tpu.memory_space<vmem>>, vector<32x96xbf16>
    %c0_7 = arith.constant 0 : index
    %c0_8 = arith.constant 0 : index
    %5 = vector.load %arg4[%c0_7, %c0_8] : memref<1x96xf32, #tpu.memory_space<vmem>>, vector<1x96xf32>
    %c0_9 = arith.constant 0 : index
    %c0_10 = arith.constant 0 : index
    %6 = vector.load %arg5[%c0_9, %c0_10] : memref<32x32xbf16, #tpu.memory_space<vmem>>, vector<32x32xbf16>
    %c0_11 = arith.constant 0 : index
    %c0_12 = arith.constant 0 : index
    %7 = vector.load %arg6[%c0_11, %c0_12] : memref<1x32xf32, #tpu.memory_space<vmem>>, vector<1x32xf32>
    %8 = arith.truncf %1 : vector<8x32xf32> to vector<8x32xbf16>
    %9 = arith.truncf %1 : vector<8x32xf32> to vector<8x32xbf16>
    %10 = vector.extract_strided_slice %4 {offsets = [0, 0], sizes = [32, 32], strides = [1, 1]} : vector<32x96xbf16> to vector<32x32xbf16>
    %cst = arith.constant dense<0.000000e+00> : vector<8x32xf32>
    %11 = tpu.matmul %8, %10, %cst {dimension_numbers = #tpu.dot_dimension_numbers<[1], [0], [0], [1], [0, 0, 1, 1], [], []>} : vector<8x32xbf16>, vector<32x32xbf16>, vector<8x32xf32> -> vector<8x32xf32>
    %12 = vector.extract_strided_slice %5 {offsets = [0, 0], sizes = [1, 32], strides = [1, 1]} : vector<1x96xf32> to vector<1x32xf32>
    %13 = vector.broadcast %12 : vector<1x32xf32> to vector<8x32xf32>
    %14 = arith.addf %11, %13 : vector<8x32xf32>
    %15 = vector.extract_strided_slice %4 {offsets = [0, 32], sizes = [32, 32], strides = [1, 1]} : vector<32x96xbf16> to vector<32x32xbf16>
    %cst_13 = arith.constant dense<0.000000e+00> : vector<8x32xf32>
    %16 = tpu.matmul %9, %15, %cst_13 {dimension_numbers = #tpu.dot_dimension_numbers<[1], [0], [0], [1], [0, 0, 1, 1], [], []>} : vector<8x32xbf16>, vector<32x32xbf16>, vector<8x32xf32> -> vector<8x32xf32>
    %17 = vector.extract_strided_slice %5 {offsets = [0, 32], sizes = [1, 32], strides = [1, 1]} : vector<1x96xf32> to vector<1x32xf32>
    %18 = vector.broadcast %17 : vector<1x32xf32> to vector<8x32xf32>
    %19 = arith.addf %16, %18 : vector<8x32xf32>
    %20 = vector.extract_strided_slice %4 {offsets = [0, 64], sizes = [32, 32], strides = [1, 1]} : vector<32x96xbf16> to vector<32x32xbf16>
    %cst_14 = arith.constant dense<0.000000e+00> : vector<8x32xf32>
    %21 = tpu.matmul %9, %20, %cst_14 {dimension_numbers = #tpu.dot_dimension_numbers<[1], [0], [0], [1], [0, 0, 1, 1], [], []>} : vector<8x32xbf16>, vector<32x32xbf16>, vector<8x32xf32> -> vector<8x32xf32>
    %22 = vector.extract_strided_slice %5 {offsets = [0, 64], sizes = [1, 32], strides = [1, 1]} : vector<1x96xf32> to vector<1x32xf32>
    %23 = vector.broadcast %22 : vector<1x32xf32> to vector<8x32xf32>
    %24 = arith.addf %21, %23 : vector<8x32xf32>
    %25 = vector.extract_strided_slice %14 {offsets = [0, 0], sizes = [8, 8], strides = [1, 1]} : vector<8x32xf32> to vector<8x8xf32>
    %cst_15 = arith.constant 0.353553385 : f32
    %26 = vector.broadcast %cst_15 : f32 to vector<8x8xf32>
    %27 = arith.mulf %25, %26 : vector<8x8xf32>
    %28 = arith.truncf %27 : vector<8x8xf32> to vector<8x8xbf16>
    %29 = vector.extract_strided_slice %19 {offsets = [0, 0], sizes = [8, 8], strides = [1, 1]} : vector<8x32xf32> to vector<8x8xf32>
    %30 = arith.truncf %29 : vector<8x8xf32> to vector<8x8xbf16>
    %31 = vector.extract_strided_slice %24 {offsets = [0, 0], sizes = [8, 8], strides = [1, 1]} : vector<8x32xf32> to vector<8x8xf32>
    %32 = arith.truncf %31 : vector<8x8xf32> to vector<8x8xbf16>
    %cst_16 = arith.constant dense<0.000000e+00> : vector<8x8xf32>
    %33 = tpu.matmul %28, %30, %cst_16 {dimension_numbers = #tpu.dot_dimension_numbers<[1], [1], [0], [0], [0, 0, 1, 0], [], []>} : vector<8x8xbf16>, vector<8x8xbf16>, vector<8x8xf32> -> vector<8x8xf32>
    %34 = vector.broadcast %3 : vector<1x8xf32> to vector<8x8xf32>
    %35 = arith.addf %33, %34 : vector<8x8xf32>
    %cst_17 = arith.constant dense<0xFF800000> : vector<8xf32>
    %36 = vector.multi_reduction <maximumf>, %35, %cst_17 [1] : vector<8x8xf32> to vector<8xf32>
    %37 = vector.shape_cast %36 : vector<8xf32> to vector<8x1xf32>
    %38 = vector.broadcast %37 : vector<8x1xf32> to vector<8x8xf32>
    %39 = arith.subf %35, %38 : vector<8x8xf32>
    %40 = math.exp %39 : vector<8x8xf32>
    %cst_18 = arith.constant dense<0.000000e+00> : vector<8xf32>
    %41 = vector.multi_reduction <add>, %40, %cst_18 [1] : vector<8x8xf32> to vector<8xf32>
    %42 = vector.shape_cast %41 : vector<8xf32> to vector<8x1xf32>
    %43 = tpu.reciprocal %42 {approx = true} : vector<8x1xf32> -> vector<8x1xf32>
    %44 = vector.broadcast %43 : vector<8x1xf32> to vector<8x8xf32>
    %45 = arith.mulf %40, %44 : vector<8x8xf32>
    %46 = arith.truncf %45 : vector<8x8xf32> to vector<8x8xbf16>
    %cst_19 = arith.constant dense<0.000000e+00> : vector<8x8xf32>
    %47 = tpu.matmul %46, %32, %cst_19 {dimension_numbers = #tpu.dot_dimension_numbers<[1], [0], [0], [1], [0, 0, 1, 1], [], []>} : vector<8x8xbf16>, vector<8x8xbf16>, vector<8x8xf32> -> vector<8x8xf32>
    %48 = vector.extract_strided_slice %14 {offsets = [0, 8], sizes = [8, 8], strides = [1, 1]} : vector<8x32xf32> to vector<8x8xf32>
    %cst_20 = arith.constant 0.353553385 : f32
    %49 = vector.broadcast %cst_20 : f32 to vector<8x8xf32>
    %50 = arith.mulf %48, %49 : vector<8x8xf32>
    %51 = arith.truncf %50 : vector<8x8xf32> to vector<8x8xbf16>
    %52 = vector.extract_strided_slice %19 {offsets = [0, 8], sizes = [8, 8], strides = [1, 1]} : vector<8x32xf32> to vector<8x8xf32>
    %53 = arith.truncf %52 : vector<8x8xf32> to vector<8x8xbf16>
    %54 = vector.extract_strided_slice %24 {offsets = [0, 8], sizes = [8, 8], strides = [1, 1]} : vector<8x32xf32> to vector<8x8xf32>
    %55 = arith.truncf %54 : vector<8x8xf32> to vector<8x8xbf16>
    %cst_21 = arith.constant dense<0.000000e+00> : vector<8x8xf32>
    %56 = tpu.matmul %51, %53, %cst_21 {dimension_numbers = #tpu.dot_dimension_numbers<[1], [1], [0], [0], [0, 0, 1, 0], [], []>} : vector<8x8xbf16>, vector<8x8xbf16>, vector<8x8xf32> -> vector<8x8xf32>
    %57 = vector.broadcast %3 : vector<1x8xf32> to vector<8x8xf32>
    %58 = arith.addf %56, %57 : vector<8x8xf32>
    %cst_22 = arith.constant dense<0xFF800000> : vector<8xf32>
    %59 = vector.multi_reduction <maximumf>, %58, %cst_22 [1] : vector<8x8xf32> to vector<8xf32>
    %60 = vector.shape_cast %59 : vector<8xf32> to vector<8x1xf32>
    %61 = vector.broadcast %60 : vector<8x1xf32> to vector<8x8xf32>
    %62 = arith.subf %58, %61 : vector<8x8xf32>
    %63 = math.exp %62 : vector<8x8xf32>
    %cst_23 = arith.constant dense<0.000000e+00> : vector<8xf32>
    %64 = vector.multi_reduction <add>, %63, %cst_23 [1] : vector<8x8xf32> to vector<8xf32>
    %65 = vector.shape_cast %64 : vector<8xf32> to vector<8x1xf32>
    %66 = tpu.reciprocal %65 {approx = true} : vector<8x1xf32> -> vector<8x1xf32>
    %67 = vector.broadcast %66 : vector<8x1xf32> to vector<8x8xf32>
    %68 = arith.mulf %63, %67 : vector<8x8xf32>
    %69 = arith.truncf %68 : vector<8x8xf32> to vector<8x8xbf16>
    %cst_24 = arith.constant dense<0.000000e+00> : vector<8x8xf32>
    %70 = tpu.matmul %69, %55, %cst_24 {dimension_numbers = #tpu.dot_dimension_numbers<[1], [0], [0], [1], [0, 0, 1, 1], [], []>} : vector<8x8xbf16>, vector<8x8xbf16>, vector<8x8xf32> -> vector<8x8xf32>
    %71 = vector.extract_strided_slice %14 {offsets = [0, 16], sizes = [8, 8], strides = [1, 1]} : vector<8x32xf32> to vector<8x8xf32>
    %cst_25 = arith.constant 0.353553385 : f32
    %72 = vector.broadcast %cst_25 : f32 to vector<8x8xf32>
    %73 = arith.mulf %71, %72 : vector<8x8xf32>
    %74 = arith.truncf %73 : vector<8x8xf32> to vector<8x8xbf16>
    %75 = vector.extract_strided_slice %19 {offsets = [0, 16], sizes = [8, 8], strides = [1, 1]} : vector<8x32xf32> to vector<8x8xf32>
    %76 = arith.truncf %75 : vector<8x8xf32> to vector<8x8xbf16>
    %77 = vector.extract_strided_slice %24 {offsets = [0, 16], sizes = [8, 8], strides = [1, 1]} : vector<8x32xf32> to vector<8x8xf32>
    %78 = arith.truncf %77 : vector<8x8xf32> to vector<8x8xbf16>
    %cst_26 = arith.constant dense<0.000000e+00> : vector<8x8xf32>
    %79 = tpu.matmul %74, %76, %cst_26 {dimension_numbers = #tpu.dot_dimension_numbers<[1], [1], [0], [0], [0, 0, 1, 0], [], []>} : vector<8x8xbf16>, vector<8x8xbf16>, vector<8x8xf32> -> vector<8x8xf32>
    %80 = vector.broadcast %3 : vector<1x8xf32> to vector<8x8xf32>
    %81 = arith.addf %79, %80 : vector<8x8xf32>
    %cst_27 = arith.constant dense<0xFF800000> : vector<8xf32>
    %82 = vector.multi_reduction <maximumf>, %81, %cst_27 [1] : vector<8x8xf32> to vector<8xf32>
    %83 = vector.shape_cast %82 : vector<8xf32> to vector<8x1xf32>
    %84 = vector.broadcast %83 : vector<8x1xf32> to vector<8x8xf32>
    %85 = arith.subf %81, %84 : vector<8x8xf32>
    %86 = math.exp %85 : vector<8x8xf32>
    %cst_28 = arith.constant dense<0.000000e+00> : vector<8xf32>
    %87 = vector.multi_reduction <add>, %86, %cst_28 [1] : vector<8x8xf32> to vector<8xf32>
    %88 = vector.shape_cast %87 : vector<8xf32> to vector<8x1xf32>
    %89 = tpu.reciprocal %88 {approx = true} : vector<8x1xf32> -> vector<8x1xf32>
    %90 = vector.broadcast %89 : vector<8x1xf32> to vector<8x8xf32>
    %91 = arith.mulf %86, %90 : vector<8x8xf32>
    %92 = arith.truncf %91 : vector<8x8xf32> to vector<8x8xbf16>
    %cst_29 = arith.constant dense<0.000000e+00> : vector<8x8xf32>
    %93 = tpu.matmul %92, %78, %cst_29 {dimension_numbers = #tpu.dot_dimension_numbers<[1], [0], [0], [1], [0, 0, 1, 1], [], []>} : vector<8x8xbf16>, vector<8x8xbf16>, vector<8x8xf32> -> vector<8x8xf32>
    %94 = vector.extract_strided_slice %14 {offsets = [0, 24], sizes = [8, 8], strides = [1, 1]} : vector<8x32xf32> to vector<8x8xf32>
    %cst_30 = arith.constant 0.353553385 : f32
    %95 = vector.broadcast %cst_30 : f32 to vector<8x8xf32>
    %96 = arith.mulf %94, %95 : vector<8x8xf32>
    %97 = arith.truncf %96 : vector<8x8xf32> to vector<8x8xbf16>
    %98 = vector.extract_strided_slice %19 {offsets = [0, 24], sizes = [8, 8], strides = [1, 1]} : vector<8x32xf32> to vector<8x8xf32>
    %99 = arith.truncf %98 : vector<8x8xf32> to vector<8x8xbf16>
    %100 = vector.extract_strided_slice %24 {offsets = [0, 24], sizes = [8, 8], strides = [1, 1]} : vector<8x32xf32> to vector<8x8xf32>
    %101 = arith.truncf %100 : vector<8x8xf32> to vector<8x8xbf16>
    %cst_31 = arith.constant dense<0.000000e+00> : vector<8x8xf32>
    %102 = tpu.matmul %97, %99, %cst_31 {dimension_numbers = #tpu.dot_dimension_numbers<[1], [1], [0], [0], [0, 0, 1, 0], [], []>} : vector<8x8xbf16>, vector<8x8xbf16>, vector<8x8xf32> -> vector<8x8xf32>
    %103 = vector.broadcast %3 : vector<1x8xf32> to vector<8x8xf32>
    %104 = arith.addf %102, %103 : vector<8x8xf32>
    %cst_32 = arith.constant dense<0xFF800000> : vector<8xf32>
    %105 = vector.multi_reduction <maximumf>, %104, %cst_32 [1] : vector<8x8xf32> to vector<8xf32>
    %106 = vector.shape_cast %105 : vector<8xf32> to vector<8x1xf32>
    %107 = vector.broadcast %106 : vector<8x1xf32> to vector<8x8xf32>
    %108 = arith.subf %104, %107 : vector<8x8xf32>
    %109 = math.exp %108 : vector<8x8xf32>
    %cst_33 = arith.constant dense<0.000000e+00> : vector<8xf32>
    %110 = vector.multi_reduction <add>, %109, %cst_33 [1] : vector<8x8xf32> to vector<8xf32>
    %111 = vector.shape_cast %110 : vector<8xf32> to vector<8x1xf32>
    %112 = tpu.reciprocal %111 {approx = true} : vector<8x1xf32> -> vector<8x1xf32>
    %113 = vector.broadcast %112 : vector<8x1xf32> to vector<8x8xf32>
    %114 = arith.mulf %109, %113 : vector<8x8xf32>
    %115 = arith.truncf %114 : vector<8x8xf32> to vector<8x8xbf16>
    %cst_34 = arith.constant dense<0.000000e+00> : vector<8x8xf32>
    %116 = tpu.matmul %115, %101, %cst_34 {dimension_numbers = #tpu.dot_dimension_numbers<[1], [0], [0], [1], [0, 0, 1, 1], [], []>} : vector<8x8xbf16>, vector<8x8xbf16>, vector<8x8xf32> -> vector<8x8xf32>
    %117 = tpu.concatenate %47, %70, %93, %116 in 1 : vector<8x8xf32>, vector<8x8xf32>, vector<8x8xf32>, vector<8x8xf32> -> vector<8x32xf32>
    %118 = arith.truncf %117 : vector<8x32xf32> to vector<8x32xbf16>
    %cst_35 = arith.constant dense<0.000000e+00> : vector<8x32xf32>
    %119 = tpu.matmul %118, %6, %cst_35 {dimension_numbers = #tpu.dot_dimension_numbers<[1], [0], [0], [1], [0, 0, 1, 1], [], []>} : vector<8x32xbf16>, vector<32x32xbf16>, vector<8x32xf32> -> vector<8x32xf32>
    %120 = vector.broadcast %7 : vector<1x32xf32> to vector<8x32xf32>
    %121 = arith.addf %119, %120 : vector<8x32xf32>
    %122 = arith.addf %1, %121 : vector<8x32xf32>
    %c0_36 = arith.constant 0 : index
    %c0_37 = arith.constant 0 : index
    %123 = vector.load %arg7[%c0_36, %c0_37] : memref<1x32xf32, #tpu.memory_space<vmem>>, vector<1x32xf32>
    %c0_38 = arith.constant 0 : index
    %c0_39 = arith.constant 0 : index
    %124 = vector.load %arg8[%c0_38, %c0_39] : memref<1x32xf32, #tpu.memory_space<vmem>>, vector<1x32xf32>
    %cst_40 = arith.constant dense<0.000000e+00> : vector<8xf32>
    %125 = vector.multi_reduction <add>, %122, %cst_40 [1] : vector<8x32xf32> to vector<8xf32>
    %126 = vector.shape_cast %125 : vector<8xf32> to vector<8x1xf32>
    %cst_41 = arith.constant 3.200000e+01 : f32
    %127 = vector.broadcast %cst_41 : f32 to vector<8x1xf32>
    %128 = arith.divf %126, %127 : vector<8x1xf32>
    %129 = vector.broadcast %128 : vector<8x1xf32> to vector<8x32xf32>
    %130 = arith.subf %122, %129 : vector<8x32xf32>
    %131 = arith.mulf %130, %130 : vector<8x32xf32>
    %cst_42 = arith.constant dense<0.000000e+00> : vector<8xf32>
    %132 = vector.multi_reduction <add>, %131, %cst_42 [1] : vector<8x32xf32> to vector<8xf32>
    %133 = vector.shape_cast %132 : vector<8xf32> to vector<8x1xf32>
    %cst_43 = arith.constant 3.200000e+01 : f32
    %134 = vector.broadcast %cst_43 : f32 to vector<8x1xf32>
    %135 = arith.divf %133, %134 : vector<8x1xf32>
    %cst_44 = arith.constant 9.99999974E-6 : f32
    %136 = vector.broadcast %cst_44 : f32 to vector<8x1xf32>
    %137 = arith.addf %135, %136 : vector<8x1xf32>
    %138 = math.rsqrt %137 : vector<8x1xf32>
    %139 = vector.broadcast %138 : vector<8x1xf32> to vector<8x32xf32>
    %140 = arith.mulf %130, %139 : vector<8x32xf32>
    %141 = vector.broadcast %123 : vector<1x32xf32> to vector<8x32xf32>
    %142 = arith.mulf %140, %141 : vector<8x32xf32>
    %143 = vector.broadcast %124 : vector<1x32xf32> to vector<8x32xf32>
    %144 = arith.addf %142, %143 : vector<8x32xf32>
    %c0_45 = arith.constant 0 : index
    %c0_46 = arith.constant 0 : index
    %145 = vector.load %arg9[%c0_45, %c0_46] : memref<32x64xbf16, #tpu.memory_space<vmem>>, vector<32x64xbf16>
    %c0_47 = arith.constant 0 : index
    %c0_48 = arith.constant 0 : index
    %146 = vector.load %arg10[%c0_47, %c0_48] : memref<1x64xf32, #tpu.memory_space<vmem>>, vector<1x64xf32>
    %c0_49 = arith.constant 0 : index
    %c0_50 = arith.constant 0 : index
    %147 = vector.load %arg11[%c0_49, %c0_50] : memref<64x32xbf16, #tpu.memory_space<vmem>>, vector<64x32xbf16>
    %c0_51 = arith.constant 0 : index
    %c0_52 = arith.constant 0 : index
    %148 = vector.load %arg12[%c0_51, %c0_52] : memref<1x32xf32, #tpu.memory_space<vmem>>, vector<1x32xf32>
    %149 = arith.truncf %144 : vector<8x32xf32> to vector<8x32xbf16>
    %cst_53 = arith.constant dense<0.000000e+00> : vector<8x64xf32>
    %150 = tpu.matmul %149, %145, %cst_53 {dimension_numbers = #tpu.dot_dimension_numbers<[1], [0], [0], [1], [0, 0, 1, 1], [], []>} : vector<8x32xbf16>, vector<32x64xbf16>, vector<8x64xf32> -> vector<8x64xf32>
    %151 = vector.broadcast %146 : vector<1x64xf32> to vector<8x64xf32>
    %152 = arith.addf %150, %151 : vector<8x64xf32>
    %cst_54 = arith.constant 5.000000e-01 : f32
    %153 = vector.broadcast %cst_54 : f32 to vector<8x64xf32>
    %154 = arith.mulf %153, %152 : vector<8x64xf32>
    %cst_55 = arith.constant 0.707106769 : f32
    %155 = vector.broadcast %cst_55 : f32 to vector<8x64xf32>
    %156 = arith.mulf %152, %155 : vector<8x64xf32>
    %157 = math.erf %156 : vector<8x64xf32>
    %cst_56 = arith.constant 1.000000e+00 : f32
    %158 = vector.broadcast %cst_56 : f32 to vector<8x64xf32>
    %159 = arith.addf %158, %157 : vector<8x64xf32>
    %160 = arith.mulf %154, %159 : vector<8x64xf32>
    %161 = arith.truncf %160 : vector<8x64xf32> to vector<8x64xbf16>
    %cst_57 = arith.constant dense<0.000000e+00> : vector<8x32xf32>
    %162 = tpu.matmul %161, %147, %cst_57 {dimension_numbers = #tpu.dot_dimension_numbers<[1], [0], [0], [1], [0, 0, 1, 1], [], []>} : vector<8x64xbf16>, vector<64x32xbf16>, vector<8x32xf32> -> vector<8x32xf32>
    %163 = vector.broadcast %148 : vector<1x32xf32> to vector<8x32xf32>
    %164 = arith.addf %162, %163 : vector<8x32xf32>
    %165 = arith.addf %144, %164 : vector<8x32xf32>
    %c0_58 = arith.constant 0 : index
    %c0_59 = arith.constant 0 : index
    %166 = vector.load %arg13[%c0_58, %c0_59] : memref<1x32xf32, #tpu.memory_space<vmem>>, vector<1x32xf32>
    %c0_60 = arith.constant 0 : index
    %c0_61 = arith.constant 0 : index
    %167 = vector.load %arg14[%c0_60, %c0_61] : memref<1x32xf32, #tpu.memory_space<vmem>>, vector<1x32xf32>
    %cst_62 = arith.constant dense<0.000000e+00> : vector<8xf32>
    %168 = vector.multi_reduction <add>, %165, %cst_62 [1] : vector<8x32xf32> to vector<8xf32>
    %169 = vector.shape_cast %168 : vector<8xf32> to vector<8x1xf32>
    %cst_63 = arith.constant 3.200000e+01 : f32
    %170 = vector.broadcast %cst_63 : f32 to vector<8x1xf32>
    %171 = arith.divf %169, %170 : vector<8x1xf32>
    %172 = vector.broadcast %171 : vector<8x1xf32> to vector<8x32xf32>
    %173 = arith.subf %165, %172 : vector<8x32xf32>
    %174 = arith.mulf %173, %173 : vector<8x32xf32>
    %cst_64 = arith.constant dense<0.000000e+00> : vector<8xf32>
    %175 = vector.multi_reduction <add>, %174, %cst_64 [1] : vector<8x32xf32> to vector<8xf32>
    %176 = vector.shape_cast %175 : vector<8xf32> to vector<8x1xf32>
    %cst_65 = arith.constant 3.200000e+01 : f32
    %177 = vector.broadcast %cst_65 : f32 to vector<8x1xf32>
    %178 = arith.divf %176, %177 : vector<8x1xf32>
    %cst_66 = arith.constant 9.99999974E-6 : f32
    %179 = vector.broadcast %cst_66 : f32 to vector<8x1xf32>
    %180 = arith.addf %178, %179 : vector<8x1xf32>
    %181 = math.rsqrt %180 : vector<8x1xf32>
    %182 = vector.broadcast %181 : vector<8x1xf32> to vector<8x32xf32>
    %183 = arith.mulf %173, %182 : vector<8x32xf32>
    %184 = vector.broadcast %166 : vector<1x32xf32> to vector<8x32xf32>
    %185 = arith.mulf %183, %184 : vector<8x32xf32>
    %186 = vector.broadcast %167 : vector<1x32xf32> to vector<8x32xf32>
    %187 = arith.addf %185, %186 : vector<8x32xf32>
    %c0_67 = arith.constant 0 : index
    %c0_68 = arith.constant 0 : index
    %c0_69 = arith.constant 0 : index
    %188 = vector.load %arg15[%c0_67, %c0_68, %c0_69] : memref<1x8x32xf32, #tpu.memory_space<vmem>>, vector<1x8x32xf32>
    %189 = vector.shape_cast %188 : vector<1x8x32xf32> to vector<8x32xf32>
    %190 = vector.shape_cast %187 : vector<8x32xf32> to vector<1x8x32xf32>
    tpu.vector_store %arg15[%c0_67, %c0_68, %c0_69], %190 {strides = array<i32>} : memref<1x8x32xf32, #tpu.memory_space<vmem>>, vector<1x8x32xf32>,
    return
  }
  func.func @transform_0(%arg0: i32) -> (i32, i32, i32) {
    %c0_i32 = arith.constant 0 : i32
    %c0_i32_0 = arith.constant 0 : i32
    %c0_i32_1 = arith.constant 0 : i32
    return %arg0, %c0_i32, %c0_i32_0 : i32, i32, i32
  }
  func.func @transform_1(%arg0: i32) -> (i32, i32, i32) {
    %c0_i32 = arith.constant 0 : i32
    %c0_i32_0 = arith.constant 0 : i32
    %c0_i32_1 = arith.constant 0 : i32
    return %arg0, %c0_i32, %c0_i32_0 : i32, i32, i32
  }
  func.func @transform_2(%arg0: i32) -> (i32, i32) {
    %c0_i32 = arith.constant 0 : i32
    %c0_i32_0 = arith.constant 0 : i32
    %c0_i32_1 = arith.constant 0 : i32
    return %c0_i32, %c0_i32_0 : i32, i32
  }
  func.func @transform_3(%arg0: i32) -> (i32, i32) {
    %c0_i32 = arith.constant 0 : i32
    %c0_i32_0 = arith.constant 0 : i32
    %c0_i32_1 = arith.constant 0 : i32
    return %c0_i32, %c0_i32_0 : i32, i32
  }
  func.func @transform_4(%arg0: i32) -> (i32, i32) {
    %c0_i32 = arith.constant 0 : i32
    %c0_i32_0 = arith.constant 0 : i32
    %c0_i32_1 = arith.constant 0 : i32
    return %c0_i32, %c0_i32_0 : i32, i32
  }
  func.func @transform_5(%arg0: i32) -> (i32, i32) {
    %c0_i32 = arith.constant 0 : i32
    %c0_i32_0 = arith.constant 0 : i32
    %c0_i32_1 = arith.constant 0 : i32
    return %c0_i32, %c0_i32_0 : i32, i32
  }
  func.func @transform_6(%arg0: i32) -> (i32, i32) {
    %c0_i32 = arith.constant 0 : i32
    %c0_i32_0 = arith.constant 0 : i32
    %c0_i32_1 = arith.constant 0 : i32
    return %c0_i32, %c0_i32_0 : i32, i32
  }
  func.func @transform_7(%arg0: i32) -> (i32, i32) {
    %c0_i32 = arith.constant 0 : i32
    %c0_i32_0 = arith.constant 0 : i32
    %c0_i32_1 = arith.constant 0 : i32
    return %c0_i32, %c0_i32_0 : i32, i32
  }
  func.func @transform_8(%arg0: i32) -> (i32, i32) {
    %c0_i32 = arith.constant 0 : i32
    %c0_i32_0 = arith.constant 0 : i32
    %c0_i32_1 = arith.constant 0 : i32
    return %c0_i32, %c0_i32_0 : i32, i32
  }
  func.func @transform_9(%arg0: i32) -> (i32, i32) {
    %c0_i32 = arith.constant 0 : i32
    %c0_i32_0 = arith.constant 0 : i32
    %c0_i32_1 = arith.constant 0 : i32
    return %c0_i32, %c0_i32_0 : i32, i32
  }
  func.func @transform_10(%arg0: i32) -> (i32, i32) {
    %c0_i32 = arith.constant 0 : i32
    %c0_i32_0 = arith.constant 0 : i32
    %c0_i32_1 = arith.constant 0 : i32
    return %c0_i32, %c0_i32_0 : i32, i32
  }
  func.func @transform_11(%arg0: i32) -> (i32, i32) {
    %c0_i32 = arith.constant 0 : i32
    %c0_i32_0 = arith.constant 0 : i32
    %c0_i32_1 = arith.constant 0 : i32
    return %c0_i32, %c0_i32_0 : i32, i32
  }
  func.func @transform_12(%arg0: i32) -> (i32, i32) {
    %c0_i32 = arith.constant 0 : i32
    %c0_i32_0 = arith.constant 0 : i32
    %c0_i32_1 = arith.constant 0 : i32
    return %c0_i32, %c0_i32_0 : i32, i32
  }
  func.func @transform_13(%arg0: i32) -> (i32, i32) {
    %c0_i32 = arith.constant 0 : i32
    %c0_i32_0 = arith.constant 0 : i32
    %c0_i32_1 = arith.constant 0 : i32
    return %c0_i32, %c0_i32_0 : i32, i32
  }
  func.func @transform_14(%arg0: i32) -> (i32, i32, i32) {
    %c0_i32 = arith.constant 0 : i32
    %c0_i32_0 = arith.constant 0 : i32
    %c0_i32_1 = arith.constant 0 : i32
    return %arg0, %c0_i32, %c0_i32_0 : i32, i32, i32
  }
}

module attributes {stable_mosaic.version = 11 : i64} {
  func.func @_dual_attn_kernel(%arg0: i32, %arg1: memref<1x8x32xf32, #tpu.memory_space<vmem>>, %arg2: memref<1x2x8x32xf32, #tpu.memory_space<vmem>>, %arg3: memref<1x32xf32, #tpu.memory_space<vmem>>, %arg4: memref<1x32xf32, #tpu.memory_space<vmem>>, %arg5: memref<1x32xf32, #tpu.memory_space<vmem>>, %arg6: memref<1x2x8x160xf32, #tpu.memory_space<vmem>>, %arg7: memref<1x8x160xf32, #tpu.memory_space<vmem>>) attributes {dimension_semantics = [#tpu.dimension_semantics<parallel>], iteration_bounds = array<i64: 2>, scalar_prefetch = 0 : i64, scratch_operands = 0 : i64, tpu.core_type = #tpu.core_type<tc>, window_params = [{transform_indices = @transform_0, window_bounds = array<i64: 1, 8, 32>}, {transform_indices = @transform_1, window_bounds = array<i64: 1, 2, 8, 32>}, {pipeline_mode = #tpu.pipeline_mode<synchronous>, transform_indices = @transform_2, window_bounds = array<i64: 1, 32>}, {pipeline_mode = #tpu.pipeline_mode<synchronous>, transform_indices = @transform_3, window_bounds = array<i64: 1, 32>}, {pipeline_mode = #tpu.pipeline_mode<synchronous>, transform_indices = @transform_4, window_bounds = array<i64: 1, 32>}, {transform_indices = @transform_5, window_bounds = array<i64: 1, 2, 8, 160>}, {transform_indices = @transform_6, window_bounds = array<i64: 1, 8, 160>}]} {
    %c0 = arith.constant 0 : index
    %c0_0 = arith.constant 0 : index
    %c0_1 = arith.constant 0 : index
    %0 = vector.load %arg1[%c0, %c0_0, %c0_1] : memref<1x8x32xf32, #tpu.memory_space<vmem>>, vector<1x8x32xf32>
    %1 = vector.shape_cast %0 : vector<1x8x32xf32> to vector<8x32xf32>
    %c0_2 = arith.constant 0 : index
    %c0_3 = arith.constant 0 : index
    %2 = vector.load %arg3[%c0_2, %c0_3] : memref<1x32xf32, #tpu.memory_space<vmem>>, vector<1x32xf32>
    %c0_4 = arith.constant 0 : index
    %c0_5 = arith.constant 0 : index
    %3 = vector.load %arg4[%c0_4, %c0_5] : memref<1x32xf32, #tpu.memory_space<vmem>>, vector<1x32xf32>
    %c0_6 = arith.constant 0 : index
    %c0_7 = arith.constant 0 : index
    %4 = vector.load %arg5[%c0_6, %c0_7] : memref<1x32xf32, #tpu.memory_space<vmem>>, vector<1x32xf32>
    %5 = vector.broadcast %4 : vector<1x32xf32> to vector<8x32xf32>
    %6 = arith.mulf %1, %5 : vector<8x32xf32>
    %7 = vector.broadcast %2 : vector<1x32xf32> to vector<8x32xf32>
    %8 = arith.addf %6, %7 : vector<8x32xf32>
    %cst = arith.constant dense<0.000000e+00> : vector<1x8xf32>
    %9 = tpu.matmul %3, %1, %cst {dimension_numbers = #tpu.dot_dimension_numbers<[1], [1], [0], [0], [0, 0, 1, 0], [], []>} : vector<1x32xf32>, vector<8x32xf32>, vector<1x8xf32> -> vector<1x8xf32>
    %10 = vector.broadcast %3 : vector<1x32xf32> to vector<8x32xf32>
    %11 = arith.mulf %1, %10 : vector<8x32xf32>
    %cst_8 = arith.constant dense<0.000000e+00> : vector<8xf32>
    %12 = vector.multi_reduction <add>, %11, %cst_8 [1] : vector<8x32xf32> to vector<8xf32>
    %13 = vector.shape_cast %12 : vector<8xf32> to vector<8x1xf32>
    %c0_9 = arith.constant 0 : index
    %c0_10 = arith.constant 0 : index
    %c0_11 = arith.constant 0 : index
    %c0_12 = arith.constant 0 : index
    %14 = vector.load %arg2[%c0_9, %c0_10, %c0_11, %c0_12] : memref<1x2x8x32xf32, #tpu.memory_space<vmem>>, vector<1x1x8x32xf32>
    %15 = vector.shape_cast %14 : vector<1x1x8x32xf32> to vector<8x32xf32>
    %cst_13 = arith.constant dense<0.000000e+00> : vector<8x8xf32>
    %16 = tpu.matmul %15, %8, %cst_13 {dimension_numbers = #tpu.dot_dimension_numbers<[1], [1], [0], [0], [0, 0, 1, 0], [], []>} : vector<8x32xf32>, vector<8x32xf32>, vector<8x8xf32> -> vector<8x8xf32>
    %17 = vector.broadcast %9 : vector<1x8xf32> to vector<8x8xf32>
    %18 = arith.addf %16, %17 : vector<8x8xf32>
    %cst_14 = arith.constant dense<0.000000e+00> : vector<8x8xf32>
    %19 = tpu.matmul %8, %15, %cst_14 {dimension_numbers = #tpu.dot_dimension_numbers<[1], [1], [0], [0], [0, 0, 1, 0], [], []>} : vector<8x32xf32>, vector<8x32xf32>, vector<8x8xf32> -> vector<8x8xf32>
    %20 = vector.broadcast %13 : vector<8x1xf32> to vector<8x8xf32>
    %21 = arith.addf %19, %20 : vector<8x8xf32>
    %cst_15 = arith.constant dense<0xFF800000> : vector<8xf32>
    %22 = vector.multi_reduction <maximumf>, %18, %cst_15 [1] : vector<8x8xf32> to vector<8xf32>
    %23 = vector.shape_cast %22 : vector<8xf32> to vector<8x1xf32>
    %24 = vector.broadcast %23 : vector<8x1xf32> to vector<8x8xf32>
    %25 = arith.subf %18, %24 : vector<8x8xf32>
    %26 = math.exp %25 : vector<8x8xf32>
    %cst_16 = arith.constant dense<0.000000e+00> : vector<8xf32>
    %27 = vector.multi_reduction <add>, %26, %cst_16 [1] : vector<8x8xf32> to vector<8xf32>
    %28 = vector.shape_cast %27 : vector<8xf32> to vector<8x1xf32>
    %29 = tpu.reciprocal %28 {approx = true} : vector<8x1xf32> -> vector<8x1xf32>
    %30 = vector.broadcast %29 : vector<8x1xf32> to vector<8x8xf32>
    %31 = arith.mulf %26, %30 : vector<8x8xf32>
    %cst_17 = arith.constant dense<0xFF800000> : vector<8xf32>
    %32 = vector.multi_reduction <maximumf>, %21, %cst_17 [1] : vector<8x8xf32> to vector<8xf32>
    %33 = vector.shape_cast %32 : vector<8xf32> to vector<8x1xf32>
    %34 = vector.broadcast %33 : vector<8x1xf32> to vector<8x8xf32>
    %35 = arith.subf %21, %34 : vector<8x8xf32>
    %36 = math.exp %35 : vector<8x8xf32>
    %cst_18 = arith.constant dense<0.000000e+00> : vector<8xf32>
    %37 = vector.multi_reduction <add>, %36, %cst_18 [1] : vector<8x8xf32> to vector<8xf32>
    %38 = vector.shape_cast %37 : vector<8xf32> to vector<8x1xf32>
    %39 = tpu.reciprocal %38 {approx = true} : vector<8x1xf32> -> vector<8x1xf32>
    %40 = vector.broadcast %39 : vector<8x1xf32> to vector<8x8xf32>
    %41 = arith.mulf %36, %40 : vector<8x8xf32>
    %cst_19 = arith.constant dense<0.000000e+00> : vector<8x32xf32>
    %42 = tpu.matmul %31, %1, %cst_19 {dimension_numbers = #tpu.dot_dimension_numbers<[1], [0], [0], [1], [0, 0, 1, 1], [], []>} : vector<8x8xf32>, vector<8x32xf32>, vector<8x32xf32> -> vector<8x32xf32>
    %cst_20 = arith.constant dense<0.000000e+00> : vector<8x32xf32>
    %43 = tpu.matmul %41, %15, %cst_20 {dimension_numbers = #tpu.dot_dimension_numbers<[1], [0], [0], [1], [0, 0, 1, 1], [], []>} : vector<8x8xf32>, vector<8x32xf32>, vector<8x32xf32> -> vector<8x32xf32>
    %cst_21 = arith.constant dense<0.000000e+00> : vector<8x32xf32>
    %44 = tpu.matmul %31, %43, %cst_21 {dimension_numbers = #tpu.dot_dimension_numbers<[1], [0], [0], [1], [0, 0, 1, 1], [], []>} : vector<8x8xf32>, vector<8x32xf32>, vector<8x32xf32> -> vector<8x32xf32>
    %cst_22 = arith.constant dense<0.000000e+00> : vector<8x32xf32>
    %45 = tpu.matmul %41, %42, %cst_22 {dimension_numbers = #tpu.dot_dimension_numbers<[1], [0], [0], [1], [0, 0, 1, 1], [], []>} : vector<8x8xf32>, vector<8x32xf32>, vector<8x32xf32> -> vector<8x32xf32>
    %46 = arith.mulf %15, %42 : vector<8x32xf32>
    %47 = arith.mulf %15, %44 : vector<8x32xf32>
    %48 = tpu.concatenate %15, %42, %44, %46, %47 in 1 : vector<8x32xf32>, vector<8x32xf32>, vector<8x32xf32>, vector<8x32xf32>, vector<8x32xf32> -> vector<8x160xf32>
    %c0_23 = arith.constant 0 : index
    %c0_24 = arith.constant 0 : index
    %c0_25 = arith.constant 0 : index
    %c0_26 = arith.constant 0 : index
    %49 = vector.load %arg6[%c0_23, %c0_24, %c0_25, %c0_26] : memref<1x2x8x160xf32, #tpu.memory_space<vmem>>, vector<1x1x8x160xf32>
    %50 = vector.shape_cast %49 : vector<1x1x8x160xf32> to vector<8x160xf32>
    %51 = vector.shape_cast %48 : vector<8x160xf32> to vector<1x1x8x160xf32>
    tpu.vector_store %arg6[%c0_23, %c0_24, %c0_25, %c0_26], %51 {strides = array<i32>} : memref<1x2x8x160xf32, #tpu.memory_space<vmem>>, vector<1x1x8x160xf32>,
    %c0_27 = arith.constant 0 : index
    %c1 = arith.constant 1 : index
    %c0_28 = arith.constant 0 : index
    %c0_29 = arith.constant 0 : index
    %52 = vector.load %arg2[%c0_27, %c1, %c0_28, %c0_29] : memref<1x2x8x32xf32, #tpu.memory_space<vmem>>, vector<1x1x8x32xf32>
    %53 = vector.shape_cast %52 : vector<1x1x8x32xf32> to vector<8x32xf32>
    %cst_30 = arith.constant dense<0.000000e+00> : vector<8x8xf32>
    %54 = tpu.matmul %53, %8, %cst_30 {dimension_numbers = #tpu.dot_dimension_numbers<[1], [1], [0], [0], [0, 0, 1, 0], [], []>} : vector<8x32xf32>, vector<8x32xf32>, vector<8x8xf32> -> vector<8x8xf32>
    %55 = vector.broadcast %9 : vector<1x8xf32> to vector<8x8xf32>
    %56 = arith.addf %54, %55 : vector<8x8xf32>
    %cst_31 = arith.constant dense<0.000000e+00> : vector<8x8xf32>
    %57 = tpu.matmul %8, %53, %cst_31 {dimension_numbers = #tpu.dot_dimension_numbers<[1], [1], [0], [0], [0, 0, 1, 0], [], []>} : vector<8x32xf32>, vector<8x32xf32>, vector<8x8xf32> -> vector<8x8xf32>
    %58 = vector.broadcast %13 : vector<8x1xf32> to vector<8x8xf32>
    %59 = arith.addf %57, %58 : vector<8x8xf32>
    %cst_32 = arith.constant dense<0xFF800000> : vector<8xf32>
    %60 = vector.multi_reduction <maximumf>, %56, %cst_32 [1] : vector<8x8xf32> to vector<8xf32>
    %61 = vector.shape_cast %60 : vector<8xf32> to vector<8x1xf32>
    %62 = vector.broadcast %61 : vector<8x1xf32> to vector<8x8xf32>
    %63 = arith.subf %56, %62 : vector<8x8xf32>
    %64 = math.exp %63 : vector<8x8xf32>
    %cst_33 = arith.constant dense<0.000000e+00> : vector<8xf32>
    %65 = vector.multi_reduction <add>, %64, %cst_33 [1] : vector<8x8xf32> to vector<8xf32>
    %66 = vector.shape_cast %65 : vector<8xf32> to vector<8x1xf32>
    %67 = tpu.reciprocal %66 {approx = true} : vector<8x1xf32> -> vector<8x1xf32>
    %68 = vector.broadcast %67 : vector<8x1xf32> to vector<8x8xf32>
    %69 = arith.mulf %64, %68 : vector<8x8xf32>
    %cst_34 = arith.constant dense<0xFF800000> : vector<8xf32>
    %70 = vector.multi_reduction <maximumf>, %59, %cst_34 [1] : vector<8x8xf32> to vector<8xf32>
    %71 = vector.shape_cast %70 : vector<8xf32> to vector<8x1xf32>
    %72 = vector.broadcast %71 : vector<8x1xf32> to vector<8x8xf32>
    %73 = arith.subf %59, %72 : vector<8x8xf32>
    %74 = math.exp %73 : vector<8x8xf32>
    %cst_35 = arith.constant dense<0.000000e+00> : vector<8xf32>
    %75 = vector.multi_reduction <add>, %74, %cst_35 [1] : vector<8x8xf32> to vector<8xf32>
    %76 = vector.shape_cast %75 : vector<8xf32> to vector<8x1xf32>
    %77 = tpu.reciprocal %76 {approx = true} : vector<8x1xf32> -> vector<8x1xf32>
    %78 = vector.broadcast %77 : vector<8x1xf32> to vector<8x8xf32>
    %79 = arith.mulf %74, %78 : vector<8x8xf32>
    %cst_36 = arith.constant dense<0.000000e+00> : vector<8x32xf32>
    %80 = tpu.matmul %69, %1, %cst_36 {dimension_numbers = #tpu.dot_dimension_numbers<[1], [0], [0], [1], [0, 0, 1, 1], [], []>} : vector<8x8xf32>, vector<8x32xf32>, vector<8x32xf32> -> vector<8x32xf32>
    %cst_37 = arith.constant dense<0.000000e+00> : vector<8x32xf32>
    %81 = tpu.matmul %79, %53, %cst_37 {dimension_numbers = #tpu.dot_dimension_numbers<[1], [0], [0], [1], [0, 0, 1, 1], [], []>} : vector<8x8xf32>, vector<8x32xf32>, vector<8x32xf32> -> vector<8x32xf32>
    %cst_38 = arith.constant dense<0.000000e+00> : vector<8x32xf32>
    %82 = tpu.matmul %69, %81, %cst_38 {dimension_numbers = #tpu.dot_dimension_numbers<[1], [0], [0], [1], [0, 0, 1, 1], [], []>} : vector<8x8xf32>, vector<8x32xf32>, vector<8x32xf32> -> vector<8x32xf32>
    %cst_39 = arith.constant dense<0.000000e+00> : vector<8x32xf32>
    %83 = tpu.matmul %79, %80, %cst_39 {dimension_numbers = #tpu.dot_dimension_numbers<[1], [0], [0], [1], [0, 0, 1, 1], [], []>} : vector<8x8xf32>, vector<8x32xf32>, vector<8x32xf32> -> vector<8x32xf32>
    %84 = arith.mulf %53, %80 : vector<8x32xf32>
    %85 = arith.mulf %53, %82 : vector<8x32xf32>
    %86 = tpu.concatenate %53, %80, %82, %84, %85 in 1 : vector<8x32xf32>, vector<8x32xf32>, vector<8x32xf32>, vector<8x32xf32>, vector<8x32xf32> -> vector<8x160xf32>
    %c0_40 = arith.constant 0 : index
    %c1_41 = arith.constant 1 : index
    %c0_42 = arith.constant 0 : index
    %c0_43 = arith.constant 0 : index
    %87 = vector.load %arg6[%c0_40, %c1_41, %c0_42, %c0_43] : memref<1x2x8x160xf32, #tpu.memory_space<vmem>>, vector<1x1x8x160xf32>
    %88 = vector.shape_cast %87 : vector<1x1x8x160xf32> to vector<8x160xf32>
    %89 = vector.shape_cast %86 : vector<8x160xf32> to vector<1x1x8x160xf32>
    tpu.vector_store %arg6[%c0_40, %c1_41, %c0_42, %c0_43], %89 {strides = array<i32>} : memref<1x2x8x160xf32, #tpu.memory_space<vmem>>, vector<1x1x8x160xf32>,
    %90 = arith.maximumf %43, %81 : vector<8x32xf32>
    %91 = arith.maximumf %45, %83 : vector<8x32xf32>
    %92 = arith.mulf %1, %90 : vector<8x32xf32>
    %93 = arith.mulf %1, %91 : vector<8x32xf32>
    %94 = tpu.concatenate %1, %90, %91, %92, %93 in 1 : vector<8x32xf32>, vector<8x32xf32>, vector<8x32xf32>, vector<8x32xf32>, vector<8x32xf32> -> vector<8x160xf32>
    %c0_44 = arith.constant 0 : index
    %c0_45 = arith.constant 0 : index
    %c0_46 = arith.constant 0 : index
    %95 = vector.load %arg7[%c0_44, %c0_45, %c0_46] : memref<1x8x160xf32, #tpu.memory_space<vmem>>, vector<1x8x160xf32>
    %96 = vector.shape_cast %95 : vector<1x8x160xf32> to vector<8x160xf32>
    %97 = vector.shape_cast %94 : vector<8x160xf32> to vector<1x8x160xf32>
    tpu.vector_store %arg7[%c0_44, %c0_45, %c0_46], %97 {strides = array<i32>} : memref<1x8x160xf32, #tpu.memory_space<vmem>>, vector<1x8x160xf32>,
    return
  }
  func.func @transform_0(%arg0: i32) -> (i32, i32, i32) {
    %c0_i32 = arith.constant 0 : i32
    %c0_i32_0 = arith.constant 0 : i32
    %c0_i32_1 = arith.constant 0 : i32
    return %arg0, %c0_i32, %c0_i32_0 : i32, i32, i32
  }
  func.func @transform_1(%arg0: i32) -> (i32, i32, i32, i32) {
    %c0_i32 = arith.constant 0 : i32
    %c0_i32_0 = arith.constant 0 : i32
    %c0_i32_1 = arith.constant 0 : i32
    %c0_i32_2 = arith.constant 0 : i32
    return %arg0, %c0_i32, %c0_i32_0, %c0_i32_1 : i32, i32, i32, i32
  }
  func.func @transform_2(%arg0: i32) -> (i32, i32) {
    %c0_i32 = arith.constant 0 : i32
    %c0_i32_0 = arith.constant 0 : i32
    %c0_i32_1 = arith.constant 0 : i32
    return %c0_i32, %c0_i32_0 : i32, i32
  }
  func.func @transform_3(%arg0: i32) -> (i32, i32) {
    %c0_i32 = arith.constant 0 : i32
    %c0_i32_0 = arith.constant 0 : i32
    %c0_i32_1 = arith.constant 0 : i32
    return %c0_i32, %c0_i32_0 : i32, i32
  }
  func.func @transform_4(%arg0: i32) -> (i32, i32) {
    %c0_i32 = arith.constant 0 : i32
    %c0_i32_0 = arith.constant 0 : i32
    %c0_i32_1 = arith.constant 0 : i32
    return %c0_i32, %c0_i32_0 : i32, i32
  }
  func.func @transform_5(%arg0: i32) -> (i32, i32, i32, i32) {
    %c0_i32 = arith.constant 0 : i32
    %c0_i32_0 = arith.constant 0 : i32
    %c0_i32_1 = arith.constant 0 : i32
    %c0_i32_2 = arith.constant 0 : i32
    return %arg0, %c0_i32, %c0_i32_0, %c0_i32_1 : i32, i32, i32, i32
  }
  func.func @transform_6(%arg0: i32) -> (i32, i32, i32) {
    %c0_i32 = arith.constant 0 : i32
    %c0_i32_0 = arith.constant 0 : i32
    %c0_i32_1 = arith.constant 0 : i32
    return %arg0, %c0_i32, %c0_i32_0 : i32, i32, i32
  }
}

module attributes {stable_mosaic.version = 11 : i64} {
  func.func @_linear_kernel(%arg0: i32, %arg1: memref<32x160xf32, #tpu.memory_space<vmem>>, %arg2: memref<160x32xbf16, #tpu.memory_space<vmem>>, %arg3: memref<1x32xf32, #tpu.memory_space<vmem>>, %arg4: memref<32x32xf32, #tpu.memory_space<vmem>>) attributes {dimension_semantics = [#tpu.dimension_semantics<arbitrary>], iteration_bounds = array<i64: 1>, scalar_prefetch = 0 : i64, scratch_operands = 0 : i64, tpu.core_type = #tpu.core_type<tc>, window_params = [{pipeline_mode = #tpu.pipeline_mode<synchronous>, transform_indices = @transform_0, window_bounds = array<i64: 32, 160>}, {pipeline_mode = #tpu.pipeline_mode<synchronous>, transform_indices = @transform_1, window_bounds = array<i64: 160, 32>}, {pipeline_mode = #tpu.pipeline_mode<synchronous>, transform_indices = @transform_2, window_bounds = array<i64: 1, 32>}, {pipeline_mode = #tpu.pipeline_mode<synchronous>, transform_indices = @transform_3, window_bounds = array<i64: 32, 32>}]} {
    %c0 = arith.constant 0 : index
    %c0_0 = arith.constant 0 : index
    %0 = vector.load %arg1[%c0, %c0_0] : memref<32x160xf32, #tpu.memory_space<vmem>>, vector<32x160xf32>
    %1 = arith.truncf %0 : vector<32x160xf32> to vector<32x160xbf16>
    %c0_1 = arith.constant 0 : index
    %c0_2 = arith.constant 0 : index
    %2 = vector.load %arg2[%c0_1, %c0_2] : memref<160x32xbf16, #tpu.memory_space<vmem>>, vector<160x32xbf16>
    %cst = arith.constant dense<0.000000e+00> : vector<32x32xf32>
    %3 = tpu.matmul %1, %2, %cst {dimension_numbers = #tpu.dot_dimension_numbers<[1], [0], [0], [1], [0, 0, 1, 1], [], []>} : vector<32x160xbf16>, vector<160x32xbf16>, vector<32x32xf32> -> vector<32x32xf32>
    %c0_3 = arith.constant 0 : index
    %c0_4 = arith.constant 0 : index
    %4 = vector.load %arg3[%c0_3, %c0_4] : memref<1x32xf32, #tpu.memory_space<vmem>>, vector<1x32xf32>
    %5 = vector.broadcast %4 : vector<1x32xf32> to vector<32x32xf32>
    %6 = arith.addf %3, %5 : vector<32x32xf32>
    %c0_5 = arith.constant 0 : index
    %c0_6 = arith.constant 0 : index
    %7 = vector.load %arg4[%c0_5, %c0_6] : memref<32x32xf32, #tpu.memory_space<vmem>>, vector<32x32xf32>
    tpu.vector_store %arg4[%c0_5, %c0_6], %6 {strides = array<i32>} : memref<32x32xf32, #tpu.memory_space<vmem>>, vector<32x32xf32>,
    return
  }
  func.func @transform_0(%arg0: i32) -> (i32, i32) {
    %c0_i32 = arith.constant 0 : i32
    %c0_i32_0 = arith.constant 0 : i32
    %c0_i32_1 = arith.constant 0 : i32
    return %c0_i32, %c0_i32_0 : i32, i32
  }
  func.func @transform_1(%arg0: i32) -> (i32, i32) {
    %c0_i32 = arith.constant 0 : i32
    %c0_i32_0 = arith.constant 0 : i32
    %c0_i32_1 = arith.constant 0 : i32
    return %c0_i32, %c0_i32_0 : i32, i32
  }
  func.func @transform_2(%arg0: i32) -> (i32, i32) {
    %c0_i32 = arith.constant 0 : i32
    %c0_i32_0 = arith.constant 0 : i32
    %c0_i32_1 = arith.constant 0 : i32
    return %c0_i32, %c0_i32_0 : i32, i32
  }
  func.func @transform_3(%arg0: i32) -> (i32, i32) {
    %c0_i32 = arith.constant 0 : i32
    %c0_i32_0 = arith.constant 0 : i32
    %c0_i32_1 = arith.constant 0 : i32
    return %c0_i32, %c0_i32_0 : i32, i32
  }
}

module attributes {stable_mosaic.version = 11 : i64} {
  func.func @_linear_kernel(%arg0: i32, %arg1: memref<16x160xf32, #tpu.memory_space<vmem>>, %arg2: memref<160x32xbf16, #tpu.memory_space<vmem>>, %arg3: memref<1x32xf32, #tpu.memory_space<vmem>>, %arg4: memref<16x32xf32, #tpu.memory_space<vmem>>) attributes {dimension_semantics = [#tpu.dimension_semantics<arbitrary>], iteration_bounds = array<i64: 1>, scalar_prefetch = 0 : i64, scratch_operands = 0 : i64, tpu.core_type = #tpu.core_type<tc>, window_params = [{pipeline_mode = #tpu.pipeline_mode<synchronous>, transform_indices = @transform_0, window_bounds = array<i64: 16, 160>}, {pipeline_mode = #tpu.pipeline_mode<synchronous>, transform_indices = @transform_1, window_bounds = array<i64: 160, 32>}, {pipeline_mode = #tpu.pipeline_mode<synchronous>, transform_indices = @transform_2, window_bounds = array<i64: 1, 32>}, {pipeline_mode = #tpu.pipeline_mode<synchronous>, transform_indices = @transform_3, window_bounds = array<i64: 16, 32>}]} {
    %c0 = arith.constant 0 : index
    %c0_0 = arith.constant 0 : index
    %0 = vector.load %arg1[%c0, %c0_0] : memref<16x160xf32, #tpu.memory_space<vmem>>, vector<16x160xf32>
    %1 = arith.truncf %0 : vector<16x160xf32> to vector<16x160xbf16>
    %c0_1 = arith.constant 0 : index
    %c0_2 = arith.constant 0 : index
    %2 = vector.load %arg2[%c0_1, %c0_2] : memref<160x32xbf16, #tpu.memory_space<vmem>>, vector<160x32xbf16>
    %cst = arith.constant dense<0.000000e+00> : vector<16x32xf32>
    %3 = tpu.matmul %1, %2, %cst {dimension_numbers = #tpu.dot_dimension_numbers<[1], [0], [0], [1], [0, 0, 1, 1], [], []>} : vector<16x160xbf16>, vector<160x32xbf16>, vector<16x32xf32> -> vector<16x32xf32>
    %c0_3 = arith.constant 0 : index
    %c0_4 = arith.constant 0 : index
    %4 = vector.load %arg3[%c0_3, %c0_4] : memref<1x32xf32, #tpu.memory_space<vmem>>, vector<1x32xf32>
    %5 = vector.broadcast %4 : vector<1x32xf32> to vector<16x32xf32>
    %6 = arith.addf %3, %5 : vector<16x32xf32>
    %c0_5 = arith.constant 0 : index
    %c0_6 = arith.constant 0 : index
    %7 = vector.load %arg4[%c0_5, %c0_6] : memref<16x32xf32, #tpu.memory_space<vmem>>, vector<16x32xf32>
    tpu.vector_store %arg4[%c0_5, %c0_6], %6 {strides = array<i32>} : memref<16x32xf32, #tpu.memory_space<vmem>>, vector<16x32xf32>,
    return
  }
  func.func @transform_0(%arg0: i32) -> (i32, i32) {
    %c0_i32 = arith.constant 0 : i32
    %c0_i32_0 = arith.constant 0 : i32
    %c0_i32_1 = arith.constant 0 : i32
    return %c0_i32, %c0_i32_0 : i32, i32
  }
  func.func @transform_1(%arg0: i32) -> (i32, i32) {
    %c0_i32 = arith.constant 0 : i32
    %c0_i32_0 = arith.constant 0 : i32
    %c0_i32_1 = arith.constant 0 : i32
    return %c0_i32, %c0_i32_0 : i32, i32
  }
  func.func @transform_2(%arg0: i32) -> (i32, i32) {
    %c0_i32 = arith.constant 0 : i32
    %c0_i32_0 = arith.constant 0 : i32
    %c0_i32_1 = arith.constant 0 : i32
    return %c0_i32, %c0_i32_0 : i32, i32
  }
  func.func @transform_3(%arg0: i32) -> (i32, i32) {
    %c0_i32 = arith.constant 0 : i32
    %c0_i32_0 = arith.constant 0 : i32
    %c0_i32_1 = arith.constant 0 : i32
    return %c0_i32, %c0_i32_0 : i32, i32
  }
}

module attributes {stable_mosaic.version = 11 : i64} {
  func.func @_highway2_kernel(%arg0: i32, %arg1: memref<16x32xf32, #tpu.memory_space<vmem>>, %arg2: memref<32x32xbf16, #tpu.memory_space<vmem>>, %arg3: memref<1x32xf32, #tpu.memory_space<vmem>>, %arg4: memref<32x32xbf16, #tpu.memory_space<vmem>>, %arg5: memref<1x32xf32, #tpu.memory_space<vmem>>, %arg6: memref<32x32xbf16, #tpu.memory_space<vmem>>, %arg7: memref<1x32xf32, #tpu.memory_space<vmem>>, %arg8: memref<32x32xbf16, #tpu.memory_space<vmem>>, %arg9: memref<1x32xf32, #tpu.memory_space<vmem>>, %arg10: memref<16x32xf32, #tpu.memory_space<vmem>>) attributes {dimension_semantics = [#tpu.dimension_semantics<arbitrary>], iteration_bounds = array<i64: 1>, scalar_prefetch = 0 : i64, scratch_operands = 0 : i64, tpu.core_type = #tpu.core_type<tc>, window_params = [{pipeline_mode = #tpu.pipeline_mode<synchronous>, transform_indices = @transform_0, window_bounds = array<i64: 16, 32>}, {pipeline_mode = #tpu.pipeline_mode<synchronous>, transform_indices = @transform_1, window_bounds = array<i64: 32, 32>}, {pipeline_mode = #tpu.pipeline_mode<synchronous>, transform_indices = @transform_2, window_bounds = array<i64: 1, 32>}, {pipeline_mode = #tpu.pipeline_mode<synchronous>, transform_indices = @transform_3, window_bounds = array<i64: 32, 32>}, {pipeline_mode = #tpu.pipeline_mode<synchronous>, transform_indices = @transform_4, window_bounds = array<i64: 1, 32>}, {pipeline_mode = #tpu.pipeline_mode<synchronous>, transform_indices = @transform_5, window_bounds = array<i64: 32, 32>}, {pipeline_mode = #tpu.pipeline_mode<synchronous>, transform_indices = @transform_6, window_bounds = array<i64: 1, 32>}, {pipeline_mode = #tpu.pipeline_mode<synchronous>, transform_indices = @transform_7, window_bounds = array<i64: 32, 32>}, {pipeline_mode = #tpu.pipeline_mode<synchronous>, transform_indices = @transform_8, window_bounds = array<i64: 1, 32>}, {pipeline_mode = #tpu.pipeline_mode<synchronous>, transform_indices = @transform_9, window_bounds = array<i64: 16, 32>}]} {
    %c0 = arith.constant 0 : index
    %c0_0 = arith.constant 0 : index
    %0 = vector.load %arg1[%c0, %c0_0] : memref<16x32xf32, #tpu.memory_space<vmem>>, vector<16x32xf32>
    %1 = arith.truncf %0 : vector<16x32xf32> to vector<16x32xbf16>
    %c0_1 = arith.constant 0 : index
    %c0_2 = arith.constant 0 : index
    %2 = vector.load %arg2[%c0_1, %c0_2] : memref<32x32xbf16, #tpu.memory_space<vmem>>, vector<32x32xbf16>
    %cst = arith.constant dense<0.000000e+00> : vector<16x32xf32>
    %3 = tpu.matmul %1, %2, %cst {dimension_numbers = #tpu.dot_dimension_numbers<[1], [0], [0], [1], [0, 0, 1, 1], [], []>} : vector<16x32xbf16>, vector<32x32xbf16>, vector<16x32xf32> -> vector<16x32xf32>
    %c0_3 = arith.constant 0 : index
    %c0_4 = arith.constant 0 : index
    %4 = vector.load %arg3[%c0_3, %c0_4] : memref<1x32xf32, #tpu.memory_space<vmem>>, vector<1x32xf32>
    %5 = vector.broadcast %4 : vector<1x32xf32> to vector<16x32xf32>
    %6 = arith.addf %3, %5 : vector<16x32xf32>
    %cst_5 = arith.constant 0.000000e+00 : f32
    %7 = vector.broadcast %cst_5 : f32 to vector<16x32xf32>
    %8 = arith.maximumf %6, %7 : vector<16x32xf32>
    %c0_6 = arith.constant 0 : index
    %c0_7 = arith.constant 0 : index
    %9 = vector.load %arg4[%c0_6, %c0_7] : memref<32x32xbf16, #tpu.memory_space<vmem>>, vector<32x32xbf16>
    %cst_8 = arith.constant dense<0.000000e+00> : vector<16x32xf32>
    %10 = tpu.matmul %1, %9, %cst_8 {dimension_numbers = #tpu.dot_dimension_numbers<[1], [0], [0], [1], [0, 0, 1, 1], [], []>} : vector<16x32xbf16>, vector<32x32xbf16>, vector<16x32xf32> -> vector<16x32xf32>
    %c0_9 = arith.constant 0 : index
    %c0_10 = arith.constant 0 : index
    %11 = vector.load %arg5[%c0_9, %c0_10] : memref<1x32xf32, #tpu.memory_space<vmem>>, vector<1x32xf32>
    %12 = vector.broadcast %11 : vector<1x32xf32> to vector<16x32xf32>
    %13 = arith.addf %10, %12 : vector<16x32xf32>
    %14 = arith.negf %13 : vector<16x32xf32>
    %15 = math.exp %14 : vector<16x32xf32>
    %cst_11 = arith.constant 1.000000e+00 : f32
    %16 = vector.broadcast %cst_11 : f32 to vector<16x32xf32>
    %17 = arith.addf %16, %15 : vector<16x32xf32>
    %18 = arith.divf %16, %17 : vector<16x32xf32>
    %19 = arith.mulf %18, %8 : vector<16x32xf32>
    %cst_12 = arith.constant 1.000000e+00 : f32
    %20 = vector.broadcast %cst_12 : f32 to vector<16x32xf32>
    %21 = arith.subf %20, %18 : vector<16x32xf32>
    %22 = arith.mulf %21, %0 : vector<16x32xf32>
    %23 = arith.addf %19, %22 : vector<16x32xf32>
    %24 = arith.truncf %23 : vector<16x32xf32> to vector<16x32xbf16>
    %c0_13 = arith.constant 0 : index
    %c0_14 = arith.constant 0 : index
    %25 = vector.load %arg6[%c0_13, %c0_14] : memref<32x32xbf16, #tpu.memory_space<vmem>>, vector<32x32xbf16>
    %cst_15 = arith.constant dense<0.000000e+00> : vector<16x32xf32>
    %26 = tpu.matmul %24, %25, %cst_15 {dimension_numbers = #tpu.dot_dimension_numbers<[1], [0], [0], [1], [0, 0, 1, 1], [], []>} : vector<16x32xbf16>, vector<32x32xbf16>, vector<16x32xf32> -> vector<16x32xf32>
    %c0_16 = arith.constant 0 : index
    %c0_17 = arith.constant 0 : index
    %27 = vector.load %arg7[%c0_16, %c0_17] : memref<1x32xf32, #tpu.memory_space<vmem>>, vector<1x32xf32>
    %28 = vector.broadcast %27 : vector<1x32xf32> to vector<16x32xf32>
    %29 = arith.addf %26, %28 : vector<16x32xf32>
    %cst_18 = arith.constant 0.000000e+00 : f32
    %30 = vector.broadcast %cst_18 : f32 to vector<16x32xf32>
    %31 = arith.maximumf %29, %30 : vector<16x32xf32>
    %c0_19 = arith.constant 0 : index
    %c0_20 = arith.constant 0 : index
    %32 = vector.load %arg8[%c0_19, %c0_20] : memref<32x32xbf16, #tpu.memory_space<vmem>>, vector<32x32xbf16>
    %cst_21 = arith.constant dense<0.000000e+00> : vector<16x32xf32>
    %33 = tpu.matmul %24, %32, %cst_21 {dimension_numbers = #tpu.dot_dimension_numbers<[1], [0], [0], [1], [0, 0, 1, 1], [], []>} : vector<16x32xbf16>, vector<32x32xbf16>, vector<16x32xf32> -> vector<16x32xf32>
    %c0_22 = arith.constant 0 : index
    %c0_23 = arith.constant 0 : index
    %34 = vector.load %arg9[%c0_22, %c0_23] : memref<1x32xf32, #tpu.memory_space<vmem>>, vector<1x32xf32>
    %35 = vector.broadcast %34 : vector<1x32xf32> to vector<16x32xf32>
    %36 = arith.addf %33, %35 : vector<16x32xf32>
    %37 = arith.negf %36 : vector<16x32xf32>
    %38 = math.exp %37 : vector<16x32xf32>
    %cst_24 = arith.constant 1.000000e+00 : f32
    %39 = vector.broadcast %cst_24 : f32 to vector<16x32xf32>
    %40 = arith.addf %39, %38 : vector<16x32xf32>
    %41 = arith.divf %39, %40 : vector<16x32xf32>
    %42 = arith.mulf %41, %31 : vector<16x32xf32>
    %cst_25 = arith.constant 1.000000e+00 : f32
    %43 = vector.broadcast %cst_25 : f32 to vector<16x32xf32>
    %44 = arith.subf %43, %41 : vector<16x32xf32>
    %45 = arith.mulf %44, %23 : vector<16x32xf32>
    %46 = arith.addf %42, %45 : vector<16x32xf32>
    %c0_26 = arith.constant 0 : index
    %c0_27 = arith.constant 0 : index
    %47 = vector.load %arg10[%c0_26, %c0_27] : memref<16x32xf32, #tpu.memory_space<vmem>>, vector<16x32xf32>
    tpu.vector_store %arg10[%c0_26, %c0_27], %46 {strides = array<i32>} : memref<16x32xf32, #tpu.memory_space<vmem>>, vector<16x32xf32>,
    return
  }
  func.func @transform_0(%arg0: i32) -> (i32, i32) {
    %c0_i32 = arith.constant 0 : i32
    %c0_i32_0 = arith.constant 0 : i32
    %c0_i32_1 = arith.constant 0 : i32
    return %c0_i32, %c0_i32_0 : i32, i32
  }
  func.func @transform_1(%arg0: i32) -> (i32, i32) {
    %c0_i32 = arith.constant 0 : i32
    %c0_i32_0 = arith.constant 0 : i32
    %c0_i32_1 = arith.constant 0 : i32
    return %c0_i32, %c0_i32_0 : i32, i32
  }
  func.func @transform_2(%arg0: i32) -> (i32, i32) {
    %c0_i32 = arith.constant 0 : i32
    %c0_i32_0 = arith.constant 0 : i32
    %c0_i32_1 = arith.constant 0 : i32
    return %c0_i32, %c0_i32_0 : i32, i32
  }
  func.func @transform_3(%arg0: i32) -> (i32, i32) {
    %c0_i32 = arith.constant 0 : i32
    %c0_i32_0 = arith.constant 0 : i32
    %c0_i32_1 = arith.constant 0 : i32
    return %c0_i32, %c0_i32_0 : i32, i32
  }
  func.func @transform_4(%arg0: i32) -> (i32, i32) {
    %c0_i32 = arith.constant 0 : i32
    %c0_i32_0 = arith.constant 0 : i32
    %c0_i32_1 = arith.constant 0 : i32
    return %c0_i32, %c0_i32_0 : i32, i32
  }
  func.func @transform_5(%arg0: i32) -> (i32, i32) {
    %c0_i32 = arith.constant 0 : i32
    %c0_i32_0 = arith.constant 0 : i32
    %c0_i32_1 = arith.constant 0 : i32
    return %c0_i32, %c0_i32_0 : i32, i32
  }
  func.func @transform_6(%arg0: i32) -> (i32, i32) {
    %c0_i32 = arith.constant 0 : i32
    %c0_i32_0 = arith.constant 0 : i32
    %c0_i32_1 = arith.constant 0 : i32
    return %c0_i32, %c0_i32_0 : i32, i32
  }
  func.func @transform_7(%arg0: i32) -> (i32, i32) {
    %c0_i32 = arith.constant 0 : i32
    %c0_i32_0 = arith.constant 0 : i32
    %c0_i32_1 = arith.constant 0 : i32
    return %c0_i32, %c0_i32_0 : i32, i32
  }
  func.func @transform_8(%arg0: i32) -> (i32, i32) {
    %c0_i32 = arith.constant 0 : i32
    %c0_i32_0 = arith.constant 0 : i32
    %c0_i32_1 = arith.constant 0 : i32
    return %c0_i32, %c0_i32_0 : i32, i32
  }
  func.func @transform_9(%arg0: i32) -> (i32, i32) {
    %c0_i32 = arith.constant 0 : i32
    %c0_i32_0 = arith.constant 0 : i32
    %c0_i32_1 = arith.constant 0 : i32
    return %c0_i32, %c0_i32_0 : i32, i32
  }
}

module attributes {stable_mosaic.version = 11 : i64} {
  func.func @_dec_layer_kernel(%arg0: i32, %arg1: memref<1x8x32xf32, #tpu.memory_space<vmem>>, %arg2: memref<1x8x32xf32, #tpu.memory_space<vmem>>, %arg3: memref<1x16x32xf32, #tpu.memory_space<vmem>>, %arg4: memref<1x8x8xf32, #tpu.memory_space<vmem>>, %arg5: memref<1x1x8xf32, #tpu.memory_space<vmem>>, %arg6: memref<1x1x16xf32, #tpu.memory_space<vmem>>, %arg7: memref<32x96xbf16, #tpu.memory_space<vmem>>, %arg8: memref<1x96xf32, #tpu.memory_space<vmem>>, %arg9: memref<32x32xbf16, #tpu.memory_space<vmem>>, %arg10: memref<1x32xf32, #tpu.memory_space<vmem>>, %arg11: memref<32x96xbf16, #tpu.memory_space<vmem>>, %arg12: memref<1x96xf32, #tpu.memory_space<vmem>>, %arg13: memref<32x32xbf16, #tpu.memory_space<vmem>>, %arg14: memref<1x32xf32, #tpu.memory_space<vmem>>, %arg15: memref<32x96xbf16, #tpu.memory_space<vmem>>, %arg16: memref<1x96xf32, #tpu.memory_space<vmem>>, %arg17: memref<32x32xbf16, #tpu.memory_space<vmem>>, %arg18: memref<1x32xf32, #tpu.memory_space<vmem>>, %arg19: memref<1x32xf32, #tpu.memory_space<vmem>>, %arg20: memref<1x32xf32, #tpu.memory_space<vmem>>, %arg21: memref<1x32xf32, #tpu.memory_space<vmem>>, %arg22: memref<1x32xf32, #tpu.memory_space<vmem>>, %arg23: memref<1x32xf32, #tpu.memory_space<vmem>>, %arg24: memref<1x32xf32, #tpu.memory_space<vmem>>, %arg25: memref<1x32xf32, #tpu.memory_space<vmem>>, %arg26: memref<1x32xf32, #tpu.memory_space<vmem>>, %arg27: memref<32x64xbf16, #tpu.memory_space<vmem>>, %arg28: memref<1x64xf32, #tpu.memory_space<vmem>>, %arg29: memref<64x32xbf16, #tpu.memory_space<vmem>>, %arg30: memref<1x32xf32, #tpu.memory_space<vmem>>, %arg31: memref<1x8x32xf32, #tpu.memory_space<vmem>>) attributes {dimension_semantics = [#tpu.dimension_semantics<parallel>], iteration_bounds = array<i64: 2>, scalar_prefetch = 0 : i64, scratch_operands = 0 : i64, tpu.core_type = #tpu.core_type<tc>, window_params = [{transform_indices = @transform_0, window_bounds = array<i64: 1, 8, 32>}, {transform_indices = @transform_1, window_bounds = array<i64: 1, 8, 32>}, {transform_indices = @transform_2, window_bounds = array<i64: 1, 16, 32>}, {transform_indices = @transform_3, window_bounds = array<i64: 1, 8, 8>}, {transform_indices = @transform_4, window_bounds = array<i64: 1, 1, 8>}, {transform_indices = @transform_5, window_bounds = array<i64: 1, 1, 16>}, {pipeline_mode = #tpu.pipeline_mode<synchronous>, transform_indices = @transform_6, window_bounds = array<i64: 32, 96>}, {pipeline_mode = #tpu.pipeline_mode<synchronous>, transform_indices = @transform_7, window_bounds = array<i64: 1, 96>}, {pipeline_mode = #tpu.pipeline_mode<synchronous>, transform_indices = @transform_8, window_bounds = array<i64: 32, 32>}, {pipeline_mode = #tpu.pipeline_mode<synchronous>, transform_indices = @transform_9, window_bounds = array<i64: 1, 32>}, {pipeline_mode = #tpu.pipeline_mode<synchronous>, transform_indices = @transform_10, window_bounds = array<i64: 32, 96>}, {pipeline_mode = #tpu.pipeline_mode<synchronous>, transform_indices = @transform_11, window_bounds = array<i64: 1, 96>}, {pipeline_mode = #tpu.pipeline_mode<synchronous>, transform_indices = @transform_12, window_bounds = array<i64: 32, 32>}, {pipeline_mode = #tpu.pipeline_mode<synchronous>, transform_indices = @transform_13, window_bounds = array<i64: 1, 32>}, {pipeline_mode = #tpu.pipeline_mode<synchronous>, transform_indices = @transform_14, window_bounds = array<i64: 32, 96>}, {pipeline_mode = #tpu.pipeline_mode<synchronous>, transform_indices = @transform_15, window_bounds = array<i64: 1, 96>}, {pipeline_mode = #tpu.pipeline_mode<synchronous>, transform_indices = @transform_16, window_bounds = array<i64: 32, 32>}, {pipeline_mode = #tpu.pipeline_mode<synchronous>, transform_indices = @transform_17, window_bounds = array<i64: 1, 32>}, {pipeline_mode = #tpu.pipeline_mode<synchronous>, transform_indices = @transform_18, window_bounds = array<i64: 1, 32>}, {pipeline_mode = #tpu.pipeline_mode<synchronous>, transform_indices = @transform_19, window_bounds = array<i64: 1, 32>}, {pipeline_mode = #tpu.pipeline_mode<synchronous>, transform_indices = @transform_20, window_bounds = array<i64: 1, 32>}, {pipeline_mode = #tpu.pipeline_mode<synchronous>, transform_indices = @transform_21, window_bounds = array<i64: 1, 32>}, {pipeline_mode = #tpu.pipeline_mode<synchronous>, transform_indices = @transform_22, window_bounds = array<i64: 1, 32>}, {pipeline_mode = #tpu.pipeline_mode<synchronous>, transform_indices = @transform_23, window_bounds = array<i64: 1, 32>}, {pipeline_mode = #tpu.pipeline_mode<synchronous>, transform_indices = @transform_24, window_bounds = array<i64: 1, 32>}, {pipeline_mode = #tpu.pipeline_mode<synchronous>, transform_indices = @transform_25, window_bounds = array<i64: 1, 32>}, {pipeline_mode = #tpu.pipeline_mode<synchronous>, transform_indices = @transform_26, window_bounds = array<i64: 32, 64>}, {pipeline_mode = #tpu.pipeline_mode<synchronous>, transform_indices = @transform_27, window_bounds = array<i64: 1, 64>}, {pipeline_mode = #tpu.pipeline_mode<synchronous>, transform_indices = @transform_28, window_bounds = array<i64: 64, 32>}, {pipeline_mode = #tpu.pipeline_mode<synchronous>, transform_indices = @transform_29, window_bounds = array<i64: 1, 32>}, {transform_indices = @transform_30, window_bounds = array<i64: 1, 8, 32>}]} {
    %c0 = arith.constant 0 : index
    %c0_0 = arith.constant 0 : index
    %c0_1 = arith.constant 0 : index
    %0 = vector.load %arg1[%c0, %c0_0, %c0_1] : memref<1x8x32xf32, #tpu.memory_space<vmem>>, vector<1x8x32xf32>
    %1 = vector.shape_cast %0 : vector<1x8x32xf32> to vector<8x32xf32>
    %c0_2 = arith.constant 0 : index
    %c0_3 = arith.constant 0 : index
    %c0_4 = arith.constant 0 : index
    %2 = vector.load %arg4[%c0_2, %c0_3, %c0_4] : memref<1x8x8xf32, #tpu.memory_space<vmem>>, vector<1x8x8xf32>
    %3 = vector.shape_cast %2 : vector<1x8x8xf32> to vector<8x8xf32>
    %c0_5 = arith.constant 0 : index
    %c0_6 = arith.constant 0 : index
    %4 = vector.load %arg7[%c0_5, %c0_6] : memref<32x96xbf16, #tpu.memory_space<vmem>>, vector<32x96xbf16>
    %c0_7 = arith.constant 0 : index
    %c0_8 = arith.constant 0 : index
    %5 = vector.load %arg8[%c0_7, %c0_8] : memref<1x96xf32, #tpu.memory_space<vmem>>, vector<1x96xf32>
    %c0_9 = arith.constant 0 : index
    %c0_10 = arith.constant 0 : index
    %6 = vector.load %arg9[%c0_9, %c0_10] : memref<32x32xbf16, #tpu.memory_space<vmem>>, vector<32x32xbf16>
    %c0_11 = arith.constant 0 : index
    %c0_12 = arith.constant 0 : index
    %7 = vector.load %arg10[%c0_11, %c0_12] : memref<1x32xf32, #tpu.memory_space<vmem>>, vector<1x32xf32>
    %8 = arith.truncf %1 : vector<8x32xf32> to vector<8x32xbf16>
    %9 = arith.truncf %1 : vector<8x32xf32> to vector<8x32xbf16>
    %10 = vector.extract_strided_slice %4 {offsets = [0, 0], sizes = [32, 32], strides = [1, 1]} : vector<32x96xbf16> to vector<32x32xbf16>
    %cst = arith.constant dense<0.000000e+00> : vector<8x32xf32>
    %11 = tpu.matmul %8, %10, %cst {dimension_numbers = #tpu.dot_dimension_numbers<[1], [0], [0], [1], [0, 0, 1, 1], [], []>} : vector<8x32xbf16>, vector<32x32xbf16>, vector<8x32xf32> -> vector<8x32xf32>
    %12 = vector.extract_strided_slice %5 {offsets = [0, 0], sizes = [1, 32], strides = [1, 1]} : vector<1x96xf32> to vector<1x32xf32>
    %13 = vector.broadcast %12 : vector<1x32xf32> to vector<8x32xf32>
    %14 = arith.addf %11, %13 : vector<8x32xf32>
    %15 = vector.extract_strided_slice %4 {offsets = [0, 32], sizes = [32, 32], strides = [1, 1]} : vector<32x96xbf16> to vector<32x32xbf16>
    %cst_13 = arith.constant dense<0.000000e+00> : vector<8x32xf32>
    %16 = tpu.matmul %9, %15, %cst_13 {dimension_numbers = #tpu.dot_dimension_numbers<[1], [0], [0], [1], [0, 0, 1, 1], [], []>} : vector<8x32xbf16>, vector<32x32xbf16>, vector<8x32xf32> -> vector<8x32xf32>
    %17 = vector.extract_strided_slice %5 {offsets = [0, 32], sizes = [1, 32], strides = [1, 1]} : vector<1x96xf32> to vector<1x32xf32>
    %18 = vector.broadcast %17 : vector<1x32xf32> to vector<8x32xf32>
    %19 = arith.addf %16, %18 : vector<8x32xf32>
    %20 = vector.extract_strided_slice %4 {offsets = [0, 64], sizes = [32, 32], strides = [1, 1]} : vector<32x96xbf16> to vector<32x32xbf16>
    %cst_14 = arith.constant dense<0.000000e+00> : vector<8x32xf32>
    %21 = tpu.matmul %9, %20, %cst_14 {dimension_numbers = #tpu.dot_dimension_numbers<[1], [0], [0], [1], [0, 0, 1, 1], [], []>} : vector<8x32xbf16>, vector<32x32xbf16>, vector<8x32xf32> -> vector<8x32xf32>
    %22 = vector.extract_strided_slice %5 {offsets = [0, 64], sizes = [1, 32], strides = [1, 1]} : vector<1x96xf32> to vector<1x32xf32>
    %23 = vector.broadcast %22 : vector<1x32xf32> to vector<8x32xf32>
    %24 = arith.addf %21, %23 : vector<8x32xf32>
    %25 = vector.extract_strided_slice %14 {offsets = [0, 0], sizes = [8, 8], strides = [1, 1]} : vector<8x32xf32> to vector<8x8xf32>
    %cst_15 = arith.constant 0.353553385 : f32
    %26 = vector.broadcast %cst_15 : f32 to vector<8x8xf32>
    %27 = arith.mulf %25, %26 : vector<8x8xf32>
    %28 = arith.truncf %27 : vector<8x8xf32> to vector<8x8xbf16>
    %29 = vector.extract_strided_slice %19 {offsets = [0, 0], sizes = [8, 8], strides = [1, 1]} : vector<8x32xf32> to vector<8x8xf32>
    %30 = arith.truncf %29 : vector<8x8xf32> to vector<8x8xbf16>
    %31 = vector.extract_strided_slice %24 {offsets = [0, 0], sizes = [8, 8], strides = [1, 1]} : vector<8x32xf32> to vector<8x8xf32>
    %32 = arith.truncf %31 : vector<8x8xf32> to vector<8x8xbf16>
    %cst_16 = arith.constant dense<0.000000e+00> : vector<8x8xf32>
    %33 = tpu.matmul %28, %30, %cst_16 {dimension_numbers = #tpu.dot_dimension_numbers<[1], [1], [0], [0], [0, 0, 1, 0], [], []>} : vector<8x8xbf16>, vector<8x8xbf16>, vector<8x8xf32> -> vector<8x8xf32>
    %34 = arith.addf %33, %3 : vector<8x8xf32>
    %cst_17 = arith.constant dense<0xFF800000> : vector<8xf32>
    %35 = vector.multi_reduction <maximumf>, %34, %cst_17 [1] : vector<8x8xf32> to vector<8xf32>
    %36 = vector.shape_cast %35 : vector<8xf32> to vector<8x1xf32>
    %37 = vector.broadcast %36 : vector<8x1xf32> to vector<8x8xf32>
    %38 = arith.subf %34, %37 : vector<8x8xf32>
    %39 = math.exp %38 : vector<8x8xf32>
    %cst_18 = arith.constant dense<0.000000e+00> : vector<8xf32>
    %40 = vector.multi_reduction <add>, %39, %cst_18 [1] : vector<8x8xf32> to vector<8xf32>
    %41 = vector.shape_cast %40 : vector<8xf32> to vector<8x1xf32>
    %42 = tpu.reciprocal %41 {approx = true} : vector<8x1xf32> -> vector<8x1xf32>
    %43 = vector.broadcast %42 : vector<8x1xf32> to vector<8x8xf32>
    %44 = arith.mulf %39, %43 : vector<8x8xf32>
    %45 = arith.truncf %44 : vector<8x8xf32> to vector<8x8xbf16>
    %cst_19 = arith.constant dense<0.000000e+00> : vector<8x8xf32>
    %46 = tpu.matmul %45, %32, %cst_19 {dimension_numbers = #tpu.dot_dimension_numbers<[1], [0], [0], [1], [0, 0, 1, 1], [], []>} : vector<8x8xbf16>, vector<8x8xbf16>, vector<8x8xf32> -> vector<8x8xf32>
    %47 = vector.extract_strided_slice %14 {offsets = [0, 8], sizes = [8, 8], strides = [1, 1]} : vector<8x32xf32> to vector<8x8xf32>
    %cst_20 = arith.constant 0.353553385 : f32
    %48 = vector.broadcast %cst_20 : f32 to vector<8x8xf32>
    %49 = arith.mulf %47, %48 : vector<8x8xf32>
    %50 = arith.truncf %49 : vector<8x8xf32> to vector<8x8xbf16>
    %51 = vector.extract_strided_slice %19 {offsets = [0, 8], sizes = [8, 8], strides = [1, 1]} : vector<8x32xf32> to vector<8x8xf32>
    %52 = arith.truncf %51 : vector<8x8xf32> to vector<8x8xbf16>
    %53 = vector.extract_strided_slice %24 {offsets = [0, 8], sizes = [8, 8], strides = [1, 1]} : vector<8x32xf32> to vector<8x8xf32>
    %54 = arith.truncf %53 : vector<8x8xf32> to vector<8x8xbf16>
    %cst_21 = arith.constant dense<0.000000e+00> : vector<8x8xf32>
    %55 = tpu.matmul %50, %52, %cst_21 {dimension_numbers = #tpu.dot_dimension_numbers<[1], [1], [0], [0], [0, 0, 1, 0], [], []>} : vector<8x8xbf16>, vector<8x8xbf16>, vector<8x8xf32> -> vector<8x8xf32>
    %56 = arith.addf %55, %3 : vector<8x8xf32>
    %cst_22 = arith.constant dense<0xFF800000> : vector<8xf32>
    %57 = vector.multi_reduction <maximumf>, %56, %cst_22 [1] : vector<8x8xf32> to vector<8xf32>
    %58 = vector.shape_cast %57 : vector<8xf32> to vector<8x1xf32>
    %59 = vector.broadcast %58 : vector<8x1xf32> to vector<8x8xf32>
    %60 = arith.subf %56, %59 : vector<8x8xf32>
    %61 = math.exp %60 : vector<8x8xf32>
    %cst_23 = arith.constant dense<0.000000e+00> : vector<8xf32>
    %62 = vector.multi_reduction <add>, %61, %cst_23 [1] : vector<8x8xf32> to vector<8xf32>
    %63 = vector.shape_cast %62 : vector<8xf32> to vector<8x1xf32>
    %64 = tpu.reciprocal %63 {approx = true} : vector<8x1xf32> -> vector<8x1xf32>
    %65 = vector.broadcast %64 : vector<8x1xf32> to vector<8x8xf32>
    %66 = arith.mulf %61, %65 : vector<8x8xf32>
    %67 = arith.truncf %66 : vector<8x8xf32> to vector<8x8xbf16>
    %cst_24 = arith.constant dense<0.000000e+00> : vector<8x8xf32>
    %68 = tpu.matmul %67, %54, %cst_24 {dimension_numbers = #tpu.dot_dimension_numbers<[1], [0], [0], [1], [0, 0, 1, 1], [], []>} : vector<8x8xbf16>, vector<8x8xbf16>, vector<8x8xf32> -> vector<8x8xf32>
    %69 = vector.extract_strided_slice %14 {offsets = [0, 16], sizes = [8, 8], strides = [1, 1]} : vector<8x32xf32> to vector<8x8xf32>
    %cst_25 = arith.constant 0.353553385 : f32
    %70 = vector.broadcast %cst_25 : f32 to vector<8x8xf32>
    %71 = arith.mulf %69, %70 : vector<8x8xf32>
    %72 = arith.truncf %71 : vector<8x8xf32> to vector<8x8xbf16>
    %73 = vector.extract_strided_slice %19 {offsets = [0, 16], sizes = [8, 8], strides = [1, 1]} : vector<8x32xf32> to vector<8x8xf32>
    %74 = arith.truncf %73 : vector<8x8xf32> to vector<8x8xbf16>
    %75 = vector.extract_strided_slice %24 {offsets = [0, 16], sizes = [8, 8], strides = [1, 1]} : vector<8x32xf32> to vector<8x8xf32>
    %76 = arith.truncf %75 : vector<8x8xf32> to vector<8x8xbf16>
    %cst_26 = arith.constant dense<0.000000e+00> : vector<8x8xf32>
    %77 = tpu.matmul %72, %74, %cst_26 {dimension_numbers = #tpu.dot_dimension_numbers<[1], [1], [0], [0], [0, 0, 1, 0], [], []>} : vector<8x8xbf16>, vector<8x8xbf16>, vector<8x8xf32> -> vector<8x8xf32>
    %78 = arith.addf %77, %3 : vector<8x8xf32>
    %cst_27 = arith.constant dense<0xFF800000> : vector<8xf32>
    %79 = vector.multi_reduction <maximumf>, %78, %cst_27 [1] : vector<8x8xf32> to vector<8xf32>
    %80 = vector.shape_cast %79 : vector<8xf32> to vector<8x1xf32>
    %81 = vector.broadcast %80 : vector<8x1xf32> to vector<8x8xf32>
    %82 = arith.subf %78, %81 : vector<8x8xf32>
    %83 = math.exp %82 : vector<8x8xf32>
    %cst_28 = arith.constant dense<0.000000e+00> : vector<8xf32>
    %84 = vector.multi_reduction <add>, %83, %cst_28 [1] : vector<8x8xf32> to vector<8xf32>
    %85 = vector.shape_cast %84 : vector<8xf32> to vector<8x1xf32>
    %86 = tpu.reciprocal %85 {approx = true} : vector<8x1xf32> -> vector<8x1xf32>
    %87 = vector.broadcast %86 : vector<8x1xf32> to vector<8x8xf32>
    %88 = arith.mulf %83, %87 : vector<8x8xf32>
    %89 = arith.truncf %88 : vector<8x8xf32> to vector<8x8xbf16>
    %cst_29 = arith.constant dense<0.000000e+00> : vector<8x8xf32>
    %90 = tpu.matmul %89, %76, %cst_29 {dimension_numbers = #tpu.dot_dimension_numbers<[1], [0], [0], [1], [0, 0, 1, 1], [], []>} : vector<8x8xbf16>, vector<8x8xbf16>, vector<8x8xf32> -> vector<8x8xf32>
    %91 = vector.extract_strided_slice %14 {offsets = [0, 24], sizes = [8, 8], strides = [1, 1]} : vector<8x32xf32> to vector<8x8xf32>
    %cst_30 = arith.constant 0.353553385 : f32
    %92 = vector.broadcast %cst_30 : f32 to vector<8x8xf32>
    %93 = arith.mulf %91, %92 : vector<8x8xf32>
    %94 = arith.truncf %93 : vector<8x8xf32> to vector<8x8xbf16>
    %95 = vector.extract_strided_slice %19 {offsets = [0, 24], sizes = [8, 8], strides = [1, 1]} : vector<8x32xf32> to vector<8x8xf32>
    %96 = arith.truncf %95 : vector<8x8xf32> to vector<8x8xbf16>
    %97 = vector.extract_strided_slice %24 {offsets = [0, 24], sizes = [8, 8], strides = [1, 1]} : vector<8x32xf32> to vector<8x8xf32>
    %98 = arith.truncf %97 : vector<8x8xf32> to vector<8x8xbf16>
    %cst_31 = arith.constant dense<0.000000e+00> : vector<8x8xf32>
    %99 = tpu.matmul %94, %96, %cst_31 {dimension_numbers = #tpu.dot_dimension_numbers<[1], [1], [0], [0], [0, 0, 1, 0], [], []>} : vector<8x8xbf16>, vector<8x8xbf16>, vector<8x8xf32> -> vector<8x8xf32>
    %100 = arith.addf %99, %3 : vector<8x8xf32>
    %cst_32 = arith.constant dense<0xFF800000> : vector<8xf32>
    %101 = vector.multi_reduction <maximumf>, %100, %cst_32 [1] : vector<8x8xf32> to vector<8xf32>
    %102 = vector.shape_cast %101 : vector<8xf32> to vector<8x1xf32>
    %103 = vector.broadcast %102 : vector<8x1xf32> to vector<8x8xf32>
    %104 = arith.subf %100, %103 : vector<8x8xf32>
    %105 = math.exp %104 : vector<8x8xf32>
    %cst_33 = arith.constant dense<0.000000e+00> : vector<8xf32>
    %106 = vector.multi_reduction <add>, %105, %cst_33 [1] : vector<8x8xf32> to vector<8xf32>
    %107 = vector.shape_cast %106 : vector<8xf32> to vector<8x1xf32>
    %108 = tpu.reciprocal %107 {approx = true} : vector<8x1xf32> -> vector<8x1xf32>
    %109 = vector.broadcast %108 : vector<8x1xf32> to vector<8x8xf32>
    %110 = arith.mulf %105, %109 : vector<8x8xf32>
    %111 = arith.truncf %110 : vector<8x8xf32> to vector<8x8xbf16>
    %cst_34 = arith.constant dense<0.000000e+00> : vector<8x8xf32>
    %112 = tpu.matmul %111, %98, %cst_34 {dimension_numbers = #tpu.dot_dimension_numbers<[1], [0], [0], [1], [0, 0, 1, 1], [], []>} : vector<8x8xbf16>, vector<8x8xbf16>, vector<8x8xf32> -> vector<8x8xf32>
    %113 = tpu.concatenate %46, %68, %90, %112 in 1 : vector<8x8xf32>, vector<8x8xf32>, vector<8x8xf32>, vector<8x8xf32> -> vector<8x32xf32>
    %114 = arith.truncf %113 : vector<8x32xf32> to vector<8x32xbf16>
    %cst_35 = arith.constant dense<0.000000e+00> : vector<8x32xf32>
    %115 = tpu.matmul %114, %6, %cst_35 {dimension_numbers = #tpu.dot_dimension_numbers<[1], [0], [0], [1], [0, 0, 1, 1], [], []>} : vector<8x32xbf16>, vector<32x32xbf16>, vector<8x32xf32> -> vector<8x32xf32>
    %116 = vector.broadcast %7 : vector<1x32xf32> to vector<8x32xf32>
    %117 = arith.addf %115, %116 : vector<8x32xf32>
    %118 = arith.addf %1, %117 : vector<8x32xf32>
    %c0_36 = arith.constant 0 : index
    %c0_37 = arith.constant 0 : index
    %119 = vector.load %arg19[%c0_36, %c0_37] : memref<1x32xf32, #tpu.memory_space<vmem>>, vector<1x32xf32>
    %c0_38 = arith.constant 0 : index
    %c0_39 = arith.constant 0 : index
    %120 = vector.load %arg20[%c0_38, %c0_39] : memref<1x32xf32, #tpu.memory_space<vmem>>, vector<1x32xf32>
    %cst_40 = arith.constant dense<0.000000e+00> : vector<8xf32>
    %121 = vector.multi_reduction <add>, %118, %cst_40 [1] : vector<8x32xf32> to vector<8xf32>
    %122 = vector.shape_cast %121 : vector<8xf32> to vector<8x1xf32>
    %cst_41 = arith.constant 3.200000e+01 : f32
    %123 = vector.broadcast %cst_41 : f32 to vector<8x1xf32>
    %124 = arith.divf %122, %123 : vector<8x1xf32>
    %125 = vector.broadcast %124 : vector<8x1xf32> to vector<8x32xf32>
    %126 = arith.subf %118, %125 : vector<8x32xf32>
    %127 = arith.mulf %126, %126 : vector<8x32xf32>
    %cst_42 = arith.constant dense<0.000000e+00> : vector<8xf32>
    %128 = vector.multi_reduction <add>, %127, %cst_42 [1] : vector<8x32xf32> to vector<8xf32>
    %129 = vector.shape_cast %128 : vector<8xf32> to vector<8x1xf32>
    %cst_43 = arith.constant 3.200000e+01 : f32
    %130 = vector.broadcast %cst_43 : f32 to vector<8x1xf32>
    %131 = arith.divf %129, %130 : vector<8x1xf32>
    %cst_44 = arith.constant 9.99999974E-6 : f32
    %132 = vector.broadcast %cst_44 : f32 to vector<8x1xf32>
    %133 = arith.addf %131, %132 : vector<8x1xf32>
    %134 = math.rsqrt %133 : vector<8x1xf32>
    %135 = vector.broadcast %134 : vector<8x1xf32> to vector<8x32xf32>
    %136 = arith.mulf %126, %135 : vector<8x32xf32>
    %137 = vector.broadcast %119 : vector<1x32xf32> to vector<8x32xf32>
    %138 = arith.mulf %136, %137 : vector<8x32xf32>
    %139 = vector.broadcast %120 : vector<1x32xf32> to vector<8x32xf32>
    %140 = arith.addf %138, %139 : vector<8x32xf32>
    %c0_45 = arith.constant 0 : index
    %c0_46 = arith.constant 0 : index
    %c0_47 = arith.constant 0 : index
    %141 = vector.load %arg2[%c0_45, %c0_46, %c0_47] : memref<1x8x32xf32, #tpu.memory_space<vmem>>, vector<1x8x32xf32>
    %142 = vector.shape_cast %141 : vector<1x8x32xf32> to vector<8x32xf32>
    %c0_48 = arith.constant 0 : index
    %c0_49 = arith.constant 0 : index
    %c0_50 = arith.constant 0 : index
    %143 = vector.load %arg5[%c0_48, %c0_49, %c0_50] : memref<1x1x8xf32, #tpu.memory_space<vmem>>, vector<1x1x8xf32>
    %144 = vector.shape_cast %143 : vector<1x1x8xf32> to vector<1x8xf32>
    %c0_51 = arith.constant 0 : index
    %c0_52 = arith.constant 0 : index
    %145 = vector.load %arg11[%c0_51, %c0_52] : memref<32x96xbf16, #tpu.memory_space<vmem>>, vector<32x96xbf16>
    %c0_53 = arith.constant 0 : index
    %c0_54 = arith.constant 0 : index
    %146 = vector.load %arg12[%c0_53, %c0_54] : memref<1x96xf32, #tpu.memory_space<vmem>>, vector<1x96xf32>
    %c0_55 = arith.constant 0 : index
    %c0_56 = arith.constant 0 : index
    %147 = vector.load %arg13[%c0_55, %c0_56] : memref<32x32xbf16, #tpu.memory_space<vmem>>, vector<32x32xbf16>
    %c0_57 = arith.constant 0 : index
    %c0_58 = arith.constant 0 : index
    %148 = vector.load %arg14[%c0_57, %c0_58] : memref<1x32xf32, #tpu.memory_space<vmem>>, vector<1x32xf32>
    %149 = arith.truncf %140 : vector<8x32xf32> to vector<8x32xbf16>
    %150 = arith.truncf %142 : vector<8x32xf32> to vector<8x32xbf16>
    %151 = vector.extract_strided_slice %145 {offsets = [0, 0], sizes = [32, 32], strides = [1, 1]} : vector<32x96xbf16> to vector<32x32xbf16>
    %cst_59 = arith.constant dense<0.000000e+00> : vector<8x32xf32>
    %152 = tpu.matmul %149, %151, %cst_59 {dimension_numbers = #tpu.dot_dimension_numbers<[1], [0], [0], [1], [0, 0, 1, 1], [], []>} : vector<8x32xbf16>, vector<32x32xbf16>, vector<8x32xf32> -> vector<8x32xf32>
    %153 = vector.extract_strided_slice %146 {offsets = [0, 0], sizes = [1, 32], strides = [1, 1]} : vector<1x96xf32> to vector<1x32xf32>
    %154 = vector.broadcast %153 : vector<1x32xf32> to vector<8x32xf32>
    %155 = arith.addf %152, %154 : vector<8x32xf32>
    %156 = vector.extract_strided_slice %145 {offsets = [0, 32], sizes = [32, 32], strides = [1, 1]} : vector<32x96xbf16> to vector<32x32xbf16>
    %cst_60 = arith.constant dense<0.000000e+00> : vector<8x32xf32>
    %157 = tpu.matmul %150, %156, %cst_60 {dimension_numbers = #tpu.dot_dimension_numbers<[1], [0], [0], [1], [0, 0, 1, 1], [], []>} : vector<8x32xbf16>, vector<32x32xbf16>, vector<8x32xf32> -> vector<8x32xf32>
    %158 = vector.extract_strided_slice %146 {offsets = [0, 32], sizes = [1, 32], strides = [1, 1]} : vector<1x96xf32> to vector<1x32xf32>
    %159 = vector.broadcast %158 : vector<1x32xf32> to vector<8x32xf32>
    %160 = arith.addf %157, %159 : vector<8x32xf32>
    %161 = vector.extract_strided_slice %145 {offsets = [0, 64], sizes = [32, 32], strides = [1, 1]} : vector<32x96xbf16> to vector<32x32xbf16>
    %cst_61 = arith.constant dense<0.000000e+00> : vector<8x32xf32>
    %162 = tpu.matmul %150, %161, %cst_61 {dimension_numbers = #tpu.dot_dimension_numbers<[1], [0], [0], [1], [0, 0, 1, 1], [], []>} : vector<8x32xbf16>, vector<32x32xbf16>, vector<8x32xf32> -> vector<8x32xf32>
    %163 = vector.extract_strided_slice %146 {offsets = [0, 64], sizes = [1, 32], strides = [1, 1]} : vector<1x96xf32> to vector<1x32xf32>
    %164 = vector.broadcast %163 : vector<1x32xf32> to vector<8x32xf32>
    %165 = arith.addf %162, %164 : vector<8x32xf32>
    %166 = vector.extract_strided_slice %155 {offsets = [0, 0], sizes = [8, 8], strides = [1, 1]} : vector<8x32xf32> to vector<8x8xf32>
    %cst_62 = arith.constant 0.353553385 : f32
    %167 = vector.broadcast %cst_62 : f32 to vector<8x8xf32>
    %168 = arith.mulf %166, %167 : vector<8x8xf32>
    %169 = arith.truncf %168 : vector<8x8xf32> to vector<8x8xbf16>
    %170 = vector.extract_strided_slice %160 {offsets = [0, 0], sizes = [8, 8], strides = [1, 1]} : vector<8x32xf32> to vector<8x8xf32>
    %171 = arith.truncf %170 : vector<8x8xf32> to vector<8x8xbf16>
    %172 = vector.extract_strided_slice %165 {offsets = [0, 0], sizes = [8, 8], strides = [1, 1]} : vector<8x32xf32> to vector<8x8xf32>
    %173 = arith.truncf %172 : vector<8x8xf32> to vector<8x8xbf16>
    %cst_63 = arith.constant dense<0.000000e+00> : vector<8x8xf32>
    %174 = tpu.matmul %169, %171, %cst_63 {dimension_numbers = #tpu.dot_dimension_numbers<[1], [1], [0], [0], [0, 0, 1, 0], [], []>} : vector<8x8xbf16>, vector<8x8xbf16>, vector<8x8xf32> -> vector<8x8xf32>
    %175 = vector.broadcast %144 : vector<1x8xf32> to vector<8x8xf32>
    %176 = arith.addf %174, %175 : vector<8x8xf32>
    %cst_64 = arith.constant dense<0xFF800000> : vector<8xf32>
    %177 = vector.multi_reduction <maximumf>, %176, %cst_64 [1] : vector<8x8xf32> to vector<8xf32>
    %178 = vector.shape_cast %177 : vector<8xf32> to vector<8x1xf32>
    %179 = vector.broadcast %178 : vector<8x1xf32> to vector<8x8xf32>
    %180 = arith.subf %176, %179 : vector<8x8xf32>
    %181 = math.exp %180 : vector<8x8xf32>
    %cst_65 = arith.constant dense<0.000000e+00> : vector<8xf32>
    %182 = vector.multi_reduction <add>, %181, %cst_65 [1] : vector<8x8xf32> to vector<8xf32>
    %183 = vector.shape_cast %182 : vector<8xf32> to vector<8x1xf32>
    %184 = tpu.reciprocal %183 {approx = true} : vector<8x1xf32> -> vector<8x1xf32>
    %185 = vector.broadcast %184 : vector<8x1xf32> to vector<8x8xf32>
    %186 = arith.mulf %181, %185 : vector<8x8xf32>
    %187 = arith.truncf %186 : vector<8x8xf32> to vector<8x8xbf16>
    %cst_66 = arith.constant dense<0.000000e+00> : vector<8x8xf32>
    %188 = tpu.matmul %187, %173, %cst_66 {dimension_numbers = #tpu.dot_dimension_numbers<[1], [0], [0], [1], [0, 0, 1, 1], [], []>} : vector<8x8xbf16>, vector<8x8xbf16>, vector<8x8xf32> -> vector<8x8xf32>
    %189 = vector.extract_strided_slice %155 {offsets = [0, 8], sizes = [8, 8], strides = [1, 1]} : vector<8x32xf32> to vector<8x8xf32>
    %cst_67 = arith.constant 0.353553385 : f32
    %190 = vector.broadcast %cst_67 : f32 to vector<8x8xf32>
    %191 = arith.mulf %189, %190 : vector<8x8xf32>
    %192 = arith.truncf %191 : vector<8x8xf32> to vector<8x8xbf16>
    %193 = vector.extract_strided_slice %160 {offsets = [0, 8], sizes = [8, 8], strides = [1, 1]} : vector<8x32xf32> to vector<8x8xf32>
    %194 = arith.truncf %193 : vector<8x8xf32> to vector<8x8xbf16>
    %195 = vector.extract_strided_slice %165 {offsets = [0, 8], sizes = [8, 8], strides = [1, 1]} : vector<8x32xf32> to vector<8x8xf32>
    %196 = arith.truncf %195 : vector<8x8xf32> to vector<8x8xbf16>
    %cst_68 = arith.constant dense<0.000000e+00> : vector<8x8xf32>
    %197 = tpu.matmul %192, %194, %cst_68 {dimension_numbers = #tpu.dot_dimension_numbers<[1], [1], [0], [0], [0, 0, 1, 0], [], []>} : vector<8x8xbf16>, vector<8x8xbf16>, vector<8x8xf32> -> vector<8x8xf32>
    %198 = vector.broadcast %144 : vector<1x8xf32> to vector<8x8xf32>
    %199 = arith.addf %197, %198 : vector<8x8xf32>
    %cst_69 = arith.constant dense<0xFF800000> : vector<8xf32>
    %200 = vector.multi_reduction <maximumf>, %199, %cst_69 [1] : vector<8x8xf32> to vector<8xf32>
    %201 = vector.shape_cast %200 : vector<8xf32> to vector<8x1xf32>
    %202 = vector.broadcast %201 : vector<8x1xf32> to vector<8x8xf32>
    %203 = arith.subf %199, %202 : vector<8x8xf32>
    %204 = math.exp %203 : vector<8x8xf32>
    %cst_70 = arith.constant dense<0.000000e+00> : vector<8xf32>
    %205 = vector.multi_reduction <add>, %204, %cst_70 [1] : vector<8x8xf32> to vector<8xf32>
    %206 = vector.shape_cast %205 : vector<8xf32> to vector<8x1xf32>
    %207 = tpu.reciprocal %206 {approx = true} : vector<8x1xf32> -> vector<8x1xf32>
    %208 = vector.broadcast %207 : vector<8x1xf32> to vector<8x8xf32>
    %209 = arith.mulf %204, %208 : vector<8x8xf32>
    %210 = arith.truncf %209 : vector<8x8xf32> to vector<8x8xbf16>
    %cst_71 = arith.constant dense<0.000000e+00> : vector<8x8xf32>
    %211 = tpu.matmul %210, %196, %cst_71 {dimension_numbers = #tpu.dot_dimension_numbers<[1], [0], [0], [1], [0, 0, 1, 1], [], []>} : vector<8x8xbf16>, vector<8x8xbf16>, vector<8x8xf32> -> vector<8x8xf32>
    %212 = vector.extract_strided_slice %155 {offsets = [0, 16], sizes = [8, 8], strides = [1, 1]} : vector<8x32xf32> to vector<8x8xf32>
    %cst_72 = arith.constant 0.353553385 : f32
    %213 = vector.broadcast %cst_72 : f32 to vector<8x8xf32>
    %214 = arith.mulf %212, %213 : vector<8x8xf32>
    %215 = arith.truncf %214 : vector<8x8xf32> to vector<8x8xbf16>
    %216 = vector.extract_strided_slice %160 {offsets = [0, 16], sizes = [8, 8], strides = [1, 1]} : vector<8x32xf32> to vector<8x8xf32>
    %217 = arith.truncf %216 : vector<8x8xf32> to vector<8x8xbf16>
    %218 = vector.extract_strided_slice %165 {offsets = [0, 16], sizes = [8, 8], strides = [1, 1]} : vector<8x32xf32> to vector<8x8xf32>
    %219 = arith.truncf %218 : vector<8x8xf32> to vector<8x8xbf16>
    %cst_73 = arith.constant dense<0.000000e+00> : vector<8x8xf32>
    %220 = tpu.matmul %215, %217, %cst_73 {dimension_numbers = #tpu.dot_dimension_numbers<[1], [1], [0], [0], [0, 0, 1, 0], [], []>} : vector<8x8xbf16>, vector<8x8xbf16>, vector<8x8xf32> -> vector<8x8xf32>
    %221 = vector.broadcast %144 : vector<1x8xf32> to vector<8x8xf32>
    %222 = arith.addf %220, %221 : vector<8x8xf32>
    %cst_74 = arith.constant dense<0xFF800000> : vector<8xf32>
    %223 = vector.multi_reduction <maximumf>, %222, %cst_74 [1] : vector<8x8xf32> to vector<8xf32>
    %224 = vector.shape_cast %223 : vector<8xf32> to vector<8x1xf32>
    %225 = vector.broadcast %224 : vector<8x1xf32> to vector<8x8xf32>
    %226 = arith.subf %222, %225 : vector<8x8xf32>
    %227 = math.exp %226 : vector<8x8xf32>
    %cst_75 = arith.constant dense<0.000000e+00> : vector<8xf32>
    %228 = vector.multi_reduction <add>, %227, %cst_75 [1] : vector<8x8xf32> to vector<8xf32>
    %229 = vector.shape_cast %228 : vector<8xf32> to vector<8x1xf32>
    %230 = tpu.reciprocal %229 {approx = true} : vector<8x1xf32> -> vector<8x1xf32>
    %231 = vector.broadcast %230 : vector<8x1xf32> to vector<8x8xf32>
    %232 = arith.mulf %227, %231 : vector<8x8xf32>
    %233 = arith.truncf %232 : vector<8x8xf32> to vector<8x8xbf16>
    %cst_76 = arith.constant dense<0.000000e+00> : vector<8x8xf32>
    %234 = tpu.matmul %233, %219, %cst_76 {dimension_numbers = #tpu.dot_dimension_numbers<[1], [0], [0], [1], [0, 0, 1, 1], [], []>} : vector<8x8xbf16>, vector<8x8xbf16>, vector<8x8xf32> -> vector<8x8xf32>
    %235 = vector.extract_strided_slice %155 {offsets = [0, 24], sizes = [8, 8], strides = [1, 1]} : vector<8x32xf32> to vector<8x8xf32>
    %cst_77 = arith.constant 0.353553385 : f32
    %236 = vector.broadcast %cst_77 : f32 to vector<8x8xf32>
    %237 = arith.mulf %235, %236 : vector<8x8xf32>
    %238 = arith.truncf %237 : vector<8x8xf32> to vector<8x8xbf16>
    %239 = vector.extract_strided_slice %160 {offsets = [0, 24], sizes = [8, 8], strides = [1, 1]} : vector<8x32xf32> to vector<8x8xf32>
    %240 = arith.truncf %239 : vector<8x8xf32> to vector<8x8xbf16>
    %241 = vector.extract_strided_slice %165 {offsets = [0, 24], sizes = [8, 8], strides = [1, 1]} : vector<8x32xf32> to vector<8x8xf32>
    %242 = arith.truncf %241 : vector<8x8xf32> to vector<8x8xbf16>
    %cst_78 = arith.constant dense<0.000000e+00> : vector<8x8xf32>
    %243 = tpu.matmul %238, %240, %cst_78 {dimension_numbers = #tpu.dot_dimension_numbers<[1], [1], [0], [0], [0, 0, 1, 0], [], []>} : vector<8x8xbf16>, vector<8x8xbf16>, vector<8x8xf32> -> vector<8x8xf32>
    %244 = vector.broadcast %144 : vector<1x8xf32> to vector<8x8xf32>
    %245 = arith.addf %243, %244 : vector<8x8xf32>
    %cst_79 = arith.constant dense<0xFF800000> : vector<8xf32>
    %246 = vector.multi_reduction <maximumf>, %245, %cst_79 [1] : vector<8x8xf32> to vector<8xf32>
    %247 = vector.shape_cast %246 : vector<8xf32> to vector<8x1xf32>
    %248 = vector.broadcast %247 : vector<8x1xf32> to vector<8x8xf32>
    %249 = arith.subf %245, %248 : vector<8x8xf32>
    %250 = math.exp %249 : vector<8x8xf32>
    %cst_80 = arith.constant dense<0.000000e+00> : vector<8xf32>
    %251 = vector.multi_reduction <add>, %250, %cst_80 [1] : vector<8x8xf32> to vector<8xf32>
    %252 = vector.shape_cast %251 : vector<8xf32> to vector<8x1xf32>
    %253 = tpu.reciprocal %252 {approx = true} : vector<8x1xf32> -> vector<8x1xf32>
    %254 = vector.broadcast %253 : vector<8x1xf32> to vector<8x8xf32>
    %255 = arith.mulf %250, %254 : vector<8x8xf32>
    %256 = arith.truncf %255 : vector<8x8xf32> to vector<8x8xbf16>
    %cst_81 = arith.constant dense<0.000000e+00> : vector<8x8xf32>
    %257 = tpu.matmul %256, %242, %cst_81 {dimension_numbers = #tpu.dot_dimension_numbers<[1], [0], [0], [1], [0, 0, 1, 1], [], []>} : vector<8x8xbf16>, vector<8x8xbf16>, vector<8x8xf32> -> vector<8x8xf32>
    %258 = tpu.concatenate %188, %211, %234, %257 in 1 : vector<8x8xf32>, vector<8x8xf32>, vector<8x8xf32>, vector<8x8xf32> -> vector<8x32xf32>
    %259 = arith.truncf %258 : vector<8x32xf32> to vector<8x32xbf16>
    %cst_82 = arith.constant dense<0.000000e+00> : vector<8x32xf32>
    %260 = tpu.matmul %259, %147, %cst_82 {dimension_numbers = #tpu.dot_dimension_numbers<[1], [0], [0], [1], [0, 0, 1, 1], [], []>} : vector<8x32xbf16>, vector<32x32xbf16>, vector<8x32xf32> -> vector<8x32xf32>
    %261 = vector.broadcast %148 : vector<1x32xf32> to vector<8x32xf32>
    %262 = arith.addf %260, %261 : vector<8x32xf32>
    %263 = arith.addf %140, %262 : vector<8x32xf32>
    %c0_83 = arith.constant 0 : index
    %c0_84 = arith.constant 0 : index
    %264 = vector.load %arg21[%c0_83, %c0_84] : memref<1x32xf32, #tpu.memory_space<vmem>>, vector<1x32xf32>
    %c0_85 = arith.constant 0 : index
    %c0_86 = arith.constant 0 : index
    %265 = vector.load %arg22[%c0_85, %c0_86] : memref<1x32xf32, #tpu.memory_space<vmem>>, vector<1x32xf32>
    %cst_87 = arith.constant dense<0.000000e+00> : vector<8xf32>
    %266 = vector.multi_reduction <add>, %263, %cst_87 [1] : vector<8x32xf32> to vector<8xf32>
    %267 = vector.shape_cast %266 : vector<8xf32> to vector<8x1xf32>
    %cst_88 = arith.constant 3.200000e+01 : f32
    %268 = vector.broadcast %cst_88 : f32 to vector<8x1xf32>
    %269 = arith.divf %267, %268 : vector<8x1xf32>
    %270 = vector.broadcast %269 : vector<8x1xf32> to vector<8x32xf32>
    %271 = arith.subf %263, %270 : vector<8x32xf32>
    %272 = arith.mulf %271, %271 : vector<8x32xf32>
    %cst_89 = arith.constant dense<0.000000e+00> : vector<8xf32>
    %273 = vector.multi_reduction <add>, %272, %cst_89 [1] : vector<8x32xf32> to vector<8xf32>
    %274 = vector.shape_cast %273 : vector<8xf32> to vector<8x1xf32>
    %cst_90 = arith.constant 3.200000e+01 : f32
    %275 = vector.broadcast %cst_90 : f32 to vector<8x1xf32>
    %276 = arith.divf %274, %275 : vector<8x1xf32>
    %cst_91 = arith.constant 9.99999974E-6 : f32
    %277 = vector.broadcast %cst_91 : f32 to vector<8x1xf32>
    %278 = arith.addf %276, %277 : vector<8x1xf32>
    %279 = math.rsqrt %278 : vector<8x1xf32>
    %280 = vector.broadcast %279 : vector<8x1xf32> to vector<8x32xf32>
    %281 = arith.mulf %271, %280 : vector<8x32xf32>
    %282 = vector.broadcast %264 : vector<1x32xf32> to vector<8x32xf32>
    %283 = arith.mulf %281, %282 : vector<8x32xf32>
    %284 = vector.broadcast %265 : vector<1x32xf32> to vector<8x32xf32>
    %285 = arith.addf %283, %284 : vector<8x32xf32>
    %c0_92 = arith.constant 0 : index
    %c0_93 = arith.constant 0 : index
    %c0_94 = arith.constant 0 : index
    %286 = vector.load %arg3[%c0_92, %c0_93, %c0_94] : memref<1x16x32xf32, #tpu.memory_space<vmem>>, vector<1x16x32xf32>
    %287 = vector.shape_cast %286 : vector<1x16x32xf32> to vector<16x32xf32>
    %c0_95 = arith.constant 0 : index
    %c0_96 = arith.constant 0 : index
    %c0_97 = arith.constant 0 : index
    %288 = vector.load %arg6[%c0_95, %c0_96, %c0_97] : memref<1x1x16xf32, #tpu.memory_space<vmem>>, vector<1x1x16xf32>
    %289 = vector.shape_cast %288 : vector<1x1x16xf32> to vector<1x16xf32>
    %c0_98 = arith.constant 0 : index
    %c0_99 = arith.constant 0 : index
    %290 = vector.load %arg15[%c0_98, %c0_99] : memref<32x96xbf16, #tpu.memory_space<vmem>>, vector<32x96xbf16>
    %c0_100 = arith.constant 0 : index
    %c0_101 = arith.constant 0 : index
    %291 = vector.load %arg16[%c0_100, %c0_101] : memref<1x96xf32, #tpu.memory_space<vmem>>, vector<1x96xf32>
    %c0_102 = arith.constant 0 : index
    %c0_103 = arith.constant 0 : index
    %292 = vector.load %arg17[%c0_102, %c0_103] : memref<32x32xbf16, #tpu.memory_space<vmem>>, vector<32x32xbf16>
    %c0_104 = arith.constant 0 : index
    %c0_105 = arith.constant 0 : index
    %293 = vector.load %arg18[%c0_104, %c0_105] : memref<1x32xf32, #tpu.memory_space<vmem>>, vector<1x32xf32>
    %294 = arith.truncf %285 : vector<8x32xf32> to vector<8x32xbf16>
    %295 = arith.truncf %287 : vector<16x32xf32> to vector<16x32xbf16>
    %296 = vector.extract_strided_slice %290 {offsets = [0, 0], sizes = [32, 32], strides = [1, 1]} : vector<32x96xbf16> to vector<32x32xbf16>
    %cst_106 = arith.constant dense<0.000000e+00> : vector<8x32xf32>
    %297 = tpu.matmul %294, %296, %cst_106 {dimension_numbers = #tpu.dot_dimension_numbers<[1], [0], [0], [1], [0, 0, 1, 1], [], []>} : vector<8x32xbf16>, vector<32x32xbf16>, vector<8x32xf32> -> vector<8x32xf32>
    %298 = vector.extract_strided_slice %291 {offsets = [0, 0], sizes = [1, 32], strides = [1, 1]} : vector<1x96xf32> to vector<1x32xf32>
    %299 = vector.broadcast %298 : vector<1x32xf32> to vector<8x32xf32>
    %300 = arith.addf %297, %299 : vector<8x32xf32>
    %301 = vector.extract_strided_slice %290 {offsets = [0, 32], sizes = [32, 32], strides = [1, 1]} : vector<32x96xbf16> to vector<32x32xbf16>
    %cst_107 = arith.constant dense<0.000000e+00> : vector<16x32xf32>
    %302 = tpu.matmul %295, %301, %cst_107 {dimension_numbers = #tpu.dot_dimension_numbers<[1], [0], [0], [1], [0, 0, 1, 1], [], []>} : vector<16x32xbf16>, vector<32x32xbf16>, vector<16x32xf32> -> vector<16x32xf32>
    %303 = vector.extract_strided_slice %291 {offsets = [0, 32], sizes = [1, 32], strides = [1, 1]} : vector<1x96xf32> to vector<1x32xf32>
    %304 = vector.broadcast %303 : vector<1x32xf32> to vector<16x32xf32>
    %305 = arith.addf %302, %304 : vector<16x32xf32>
    %306 = vector.extract_strided_slice %290 {offsets = [0, 64], sizes = [32, 32], strides = [1, 1]} : vector<32x96xbf16> to vector<32x32xbf16>
    %cst_108 = arith.constant dense<0.000000e+00> : vector<16x32xf32>
    %307 = tpu.matmul %295, %306, %cst_108 {dimension_numbers = #tpu.dot_dimension_numbers<[1], [0], [0], [1], [0, 0, 1, 1], [], []>} : vector<16x32xbf16>, vector<32x32xbf16>, vector<16x32xf32> -> vector<16x32xf32>
    %308 = vector.extract_strided_slice %291 {offsets = [0, 64], sizes = [1, 32], strides = [1, 1]} : vector<1x96xf32> to vector<1x32xf32>
    %309 = vector.broadcast %308 : vector<1x32xf32> to vector<16x32xf32>
    %310 = arith.addf %307, %309 : vector<16x32xf32>
    %311 = vector.extract_strided_slice %300 {offsets = [0, 0], sizes = [8, 8], strides = [1, 1]} : vector<8x32xf32> to vector<8x8xf32>
    %cst_109 = arith.constant 0.353553385 : f32
    %312 = vector.broadcast %cst_109 : f32 to vector<8x8xf32>
    %313 = arith.mulf %311, %312 : vector<8x8xf32>
    %314 = arith.truncf %313 : vector<8x8xf32> to vector<8x8xbf16>
    %315 = vector.extract_strided_slice %305 {offsets = [0, 0], sizes = [16, 8], strides = [1, 1]} : vector<16x32xf32> to vector<16x8xf32>
    %316 = arith.truncf %315 : vector<16x8xf32> to vector<16x8xbf16>
    %317 = vector.extract_strided_slice %310 {offsets = [0, 0], sizes = [16, 8], strides = [1, 1]} : vector<16x32xf32> to vector<16x8xf32>
    %318 = arith.truncf %317 : vector<16x8xf32> to vector<16x8xbf16>
    %cst_110 = arith.constant dense<0.000000e+00> : vector<8x16xf32>
    %319 = tpu.matmul %314, %316, %cst_110 {dimension_numbers = #tpu.dot_dimension_numbers<[1], [1], [0], [0], [0, 0, 1, 0], [], []>} : vector<8x8xbf16>, vector<16x8xbf16>, vector<8x16xf32> -> vector<8x16xf32>
    %320 = vector.broadcast %289 : vector<1x16xf32> to vector<8x16xf32>
    %321 = arith.addf %319, %320 : vector<8x16xf32>
    %cst_111 = arith.constant dense<0xFF800000> : vector<8xf32>
    %322 = vector.multi_reduction <maximumf>, %321, %cst_111 [1] : vector<8x16xf32> to vector<8xf32>
    %323 = vector.shape_cast %322 : vector<8xf32> to vector<8x1xf32>
    %324 = vector.broadcast %323 : vector<8x1xf32> to vector<8x16xf32>
    %325 = arith.subf %321, %324 : vector<8x16xf32>
    %326 = math.exp %325 : vector<8x16xf32>
    %cst_112 = arith.constant dense<0.000000e+00> : vector<8xf32>
    %327 = vector.multi_reduction <add>, %326, %cst_112 [1] : vector<8x16xf32> to vector<8xf32>
    %328 = vector.shape_cast %327 : vector<8xf32> to vector<8x1xf32>
    %329 = tpu.reciprocal %328 {approx = true} : vector<8x1xf32> -> vector<8x1xf32>
    %330 = vector.broadcast %329 : vector<8x1xf32> to vector<8x16xf32>
    %331 = arith.mulf %326, %330 : vector<8x16xf32>
    %332 = arith.truncf %331 : vector<8x16xf32> to vector<8x16xbf16>
    %cst_113 = arith.constant dense<0.000000e+00> : vector<8x8xf32>
    %333 = tpu.matmul %332, %318, %cst_113 {dimension_numbers = #tpu.dot_dimension_numbers<[1], [0], [0], [1], [0, 0, 1, 1], [], []>} : vector<8x16xbf16>, vector<16x8xbf16>, vector<8x8xf32> -> vector<8x8xf32>
    %334 = vector.extract_strided_slice %300 {offsets = [0, 8], sizes = [8, 8], strides = [1, 1]} : vector<8x32xf32> to vector<8x8xf32>
    %cst_114 = arith.constant 0.353553385 : f32
    %335 = vector.broadcast %cst_114 : f32 to vector<8x8xf32>
    %336 = arith.mulf %334, %335 : vector<8x8xf32>
    %337 = arith.truncf %336 : vector<8x8xf32> to vector<8x8xbf16>
    %338 = vector.extract_strided_slice %305 {offsets = [0, 8], sizes = [16, 8], strides = [1, 1]} : vector<16x32xf32> to vector<16x8xf32>
    %339 = arith.truncf %338 : vector<16x8xf32> to vector<16x8xbf16>
    %340 = vector.extract_strided_slice %310 {offsets = [0, 8], sizes = [16, 8], strides = [1, 1]} : vector<16x32xf32> to vector<16x8xf32>
    %341 = arith.truncf %340 : vector<16x8xf32> to vector<16x8xbf16>
    %cst_115 = arith.constant dense<0.000000e+00> : vector<8x16xf32>
    %342 = tpu.matmul %337, %339, %cst_115 {dimension_numbers = #tpu.dot_dimension_numbers<[1], [1], [0], [0], [0, 0, 1, 0], [], []>} : vector<8x8xbf16>, vector<16x8xbf16>, vector<8x16xf32> -> vector<8x16xf32>
    %343 = vector.broadcast %289 : vector<1x16xf32> to vector<8x16xf32>
    %344 = arith.addf %342, %343 : vector<8x16xf32>
    %cst_116 = arith.constant dense<0xFF800000> : vector<8xf32>
    %345 = vector.multi_reduction <maximumf>, %344, %cst_116 [1] : vector<8x16xf32> to vector<8xf32>
    %346 = vector.shape_cast %345 : vector<8xf32> to vector<8x1xf32>
    %347 = vector.broadcast %346 : vector<8x1xf32> to vector<8x16xf32>
    %348 = arith.subf %344, %347 : vector<8x16xf32>
    %349 = math.exp %348 : vector<8x16xf32>
    %cst_117 = arith.constant dense<0.000000e+00> : vector<8xf32>
    %350 = vector.multi_reduction <add>, %349, %cst_117 [1] : vector<8x16xf32> to vector<8xf32>
    %351 = vector.shape_cast %350 : vector<8xf32> to vector<8x1xf32>
    %352 = tpu.reciprocal %351 {approx = true} : vector<8x1xf32> -> vector<8x1xf32>
    %353 = vector.broadcast %352 : vector<8x1xf32> to vector<8x16xf32>
    %354 = arith.mulf %349, %353 : vector<8x16xf32>
    %355 = arith.truncf %354 : vector<8x16xf32> to vector<8x16xbf16>
    %cst_118 = arith.constant dense<0.000000e+00> : vector<8x8xf32>
    %356 = tpu.matmul %355, %341, %cst_118 {dimension_numbers = #tpu.dot_dimension_numbers<[1], [0], [0], [1], [0, 0, 1, 1], [], []>} : vector<8x16xbf16>, vector<16x8xbf16>, vector<8x8xf32> -> vector<8x8xf32>
    %357 = vector.extract_strided_slice %300 {offsets = [0, 16], sizes = [8, 8], strides = [1, 1]} : vector<8x32xf32> to vector<8x8xf32>
    %cst_119 = arith.constant 0.353553385 : f32
    %358 = vector.broadcast %cst_119 : f32 to vector<8x8xf32>
    %359 = arith.mulf %357, %358 : vector<8x8xf32>
    %360 = arith.truncf %359 : vector<8x8xf32> to vector<8x8xbf16>
    %361 = vector.extract_strided_slice %305 {offsets = [0, 16], sizes = [16, 8], strides = [1, 1]} : vector<16x32xf32> to vector<16x8xf32>
    %362 = arith.truncf %361 : vector<16x8xf32> to vector<16x8xbf16>
    %363 = vector.extract_strided_slice %310 {offsets = [0, 16], sizes = [16, 8], strides = [1, 1]} : vector<16x32xf32> to vector<16x8xf32>
    %364 = arith.truncf %363 : vector<16x8xf32> to vector<16x8xbf16>
    %cst_120 = arith.constant dense<0.000000e+00> : vector<8x16xf32>
    %365 = tpu.matmul %360, %362, %cst_120 {dimension_numbers = #tpu.dot_dimension_numbers<[1], [1], [0], [0], [0, 0, 1, 0], [], []>} : vector<8x8xbf16>, vector<16x8xbf16>, vector<8x16xf32> -> vector<8x16xf32>
    %366 = vector.broadcast %289 : vector<1x16xf32> to vector<8x16xf32>
    %367 = arith.addf %365, %366 : vector<8x16xf32>
    %cst_121 = arith.constant dense<0xFF800000> : vector<8xf32>
    %368 = vector.multi_reduction <maximumf>, %367, %cst_121 [1] : vector<8x16xf32> to vector<8xf32>
    %369 = vector.shape_cast %368 : vector<8xf32> to vector<8x1xf32>
    %370 = vector.broadcast %369 : vector<8x1xf32> to vector<8x16xf32>
    %371 = arith.subf %367, %370 : vector<8x16xf32>
    %372 = math.exp %371 : vector<8x16xf32>
    %cst_122 = arith.constant dense<0.000000e+00> : vector<8xf32>
    %373 = vector.multi_reduction <add>, %372, %cst_122 [1] : vector<8x16xf32> to vector<8xf32>
    %374 = vector.shape_cast %373 : vector<8xf32> to vector<8x1xf32>
    %375 = tpu.reciprocal %374 {approx = true} : vector<8x1xf32> -> vector<8x1xf32>
    %376 = vector.broadcast %375 : vector<8x1xf32> to vector<8x16xf32>
    %377 = arith.mulf %372, %376 : vector<8x16xf32>
    %378 = arith.truncf %377 : vector<8x16xf32> to vector<8x16xbf16>
    %cst_123 = arith.constant dense<0.000000e+00> : vector<8x8xf32>
    %379 = tpu.matmul %378, %364, %cst_123 {dimension_numbers = #tpu.dot_dimension_numbers<[1], [0], [0], [1], [0, 0, 1, 1], [], []>} : vector<8x16xbf16>, vector<16x8xbf16>, vector<8x8xf32> -> vector<8x8xf32>
    %380 = vector.extract_strided_slice %300 {offsets = [0, 24], sizes = [8, 8], strides = [1, 1]} : vector<8x32xf32> to vector<8x8xf32>
    %cst_124 = arith.constant 0.353553385 : f32
    %381 = vector.broadcast %cst_124 : f32 to vector<8x8xf32>
    %382 = arith.mulf %380, %381 : vector<8x8xf32>
    %383 = arith.truncf %382 : vector<8x8xf32> to vector<8x8xbf16>
    %384 = vector.extract_strided_slice %305 {offsets = [0, 24], sizes = [16, 8], strides = [1, 1]} : vector<16x32xf32> to vector<16x8xf32>
    %385 = arith.truncf %384 : vector<16x8xf32> to vector<16x8xbf16>
    %386 = vector.extract_strided_slice %310 {offsets = [0, 24], sizes = [16, 8], strides = [1, 1]} : vector<16x32xf32> to vector<16x8xf32>
    %387 = arith.truncf %386 : vector<16x8xf32> to vector<16x8xbf16>
    %cst_125 = arith.constant dense<0.000000e+00> : vector<8x16xf32>
    %388 = tpu.matmul %383, %385, %cst_125 {dimension_numbers = #tpu.dot_dimension_numbers<[1], [1], [0], [0], [0, 0, 1, 0], [], []>} : vector<8x8xbf16>, vector<16x8xbf16>, vector<8x16xf32> -> vector<8x16xf32>
    %389 = vector.broadcast %289 : vector<1x16xf32> to vector<8x16xf32>
    %390 = arith.addf %388, %389 : vector<8x16xf32>
    %cst_126 = arith.constant dense<0xFF800000> : vector<8xf32>
    %391 = vector.multi_reduction <maximumf>, %390, %cst_126 [1] : vector<8x16xf32> to vector<8xf32>
    %392 = vector.shape_cast %391 : vector<8xf32> to vector<8x1xf32>
    %393 = vector.broadcast %392 : vector<8x1xf32> to vector<8x16xf32>
    %394 = arith.subf %390, %393 : vector<8x16xf32>
    %395 = math.exp %394 : vector<8x16xf32>
    %cst_127 = arith.constant dense<0.000000e+00> : vector<8xf32>
    %396 = vector.multi_reduction <add>, %395, %cst_127 [1] : vector<8x16xf32> to vector<8xf32>
    %397 = vector.shape_cast %396 : vector<8xf32> to vector<8x1xf32>
    %398 = tpu.reciprocal %397 {approx = true} : vector<8x1xf32> -> vector<8x1xf32>
    %399 = vector.broadcast %398 : vector<8x1xf32> to vector<8x16xf32>
    %400 = arith.mulf %395, %399 : vector<8x16xf32>
    %401 = arith.truncf %400 : vector<8x16xf32> to vector<8x16xbf16>
    %cst_128 = arith.constant dense<0.000000e+00> : vector<8x8xf32>
    %402 = tpu.matmul %401, %387, %cst_128 {dimension_numbers = #tpu.dot_dimension_numbers<[1], [0], [0], [1], [0, 0, 1, 1], [], []>} : vector<8x16xbf16>, vector<16x8xbf16>, vector<8x8xf32> -> vector<8x8xf32>
    %403 = tpu.concatenate %333, %356, %379, %402 in 1 : vector<8x8xf32>, vector<8x8xf32>, vector<8x8xf32>, vector<8x8xf32> -> vector<8x32xf32>
    %404 = arith.truncf %403 : vector<8x32xf32> to vector<8x32xbf16>
    %cst_129 = arith.constant dense<0.000000e+00> : vector<8x32xf32>
    %405 = tpu.matmul %404, %292, %cst_129 {dimension_numbers = #tpu.dot_dimension_numbers<[1], [0], [0], [1], [0, 0, 1, 1], [], []>} : vector<8x32xbf16>, vector<32x32xbf16>, vector<8x32xf32> -> vector<8x32xf32>
    %406 = vector.broadcast %293 : vector<1x32xf32> to vector<8x32xf32>
    %407 = arith.addf %405, %406 : vector<8x32xf32>
    %408 = arith.addf %285, %407 : vector<8x32xf32>
    %c0_130 = arith.constant 0 : index
    %c0_131 = arith.constant 0 : index
    %409 = vector.load %arg23[%c0_130, %c0_131] : memref<1x32xf32, #tpu.memory_space<vmem>>, vector<1x32xf32>
    %c0_132 = arith.constant 0 : index
    %c0_133 = arith.constant 0 : index
    %410 = vector.load %arg24[%c0_132, %c0_133] : memref<1x32xf32, #tpu.memory_space<vmem>>, vector<1x32xf32>
    %cst_134 = arith.constant dense<0.000000e+00> : vector<8xf32>
    %411 = vector.multi_reduction <add>, %408, %cst_134 [1] : vector<8x32xf32> to vector<8xf32>
    %412 = vector.shape_cast %411 : vector<8xf32> to vector<8x1xf32>
    %cst_135 = arith.constant 3.200000e+01 : f32
    %413 = vector.broadcast %cst_135 : f32 to vector<8x1xf32>
    %414 = arith.divf %412, %413 : vector<8x1xf32>
    %415 = vector.broadcast %414 : vector<8x1xf32> to vector<8x32xf32>
    %416 = arith.subf %408, %415 : vector<8x32xf32>
    %417 = arith.mulf %416, %416 : vector<8x32xf32>
    %cst_136 = arith.constant dense<0.000000e+00> : vector<8xf32>
    %418 = vector.multi_reduction <add>, %417, %cst_136 [1] : vector<8x32xf32> to vector<8xf32>
    %419 = vector.shape_cast %418 : vector<8xf32> to vector<8x1xf32>
    %cst_137 = arith.constant 3.200000e+01 : f32
    %420 = vector.broadcast %cst_137 : f32 to vector<8x1xf32>
    %421 = arith.divf %419, %420 : vector<8x1xf32>
    %cst_138 = arith.constant 9.99999974E-6 : f32
    %422 = vector.broadcast %cst_138 : f32 to vector<8x1xf32>
    %423 = arith.addf %421, %422 : vector<8x1xf32>
    %424 = math.rsqrt %423 : vector<8x1xf32>
    %425 = vector.broadcast %424 : vector<8x1xf32> to vector<8x32xf32>
    %426 = arith.mulf %416, %425 : vector<8x32xf32>
    %427 = vector.broadcast %409 : vector<1x32xf32> to vector<8x32xf32>
    %428 = arith.mulf %426, %427 : vector<8x32xf32>
    %429 = vector.broadcast %410 : vector<1x32xf32> to vector<8x32xf32>
    %430 = arith.addf %428, %429 : vector<8x32xf32>
    %c0_139 = arith.constant 0 : index
    %c0_140 = arith.constant 0 : index
    %431 = vector.load %arg27[%c0_139, %c0_140] : memref<32x64xbf16, #tpu.memory_space<vmem>>, vector<32x64xbf16>
    %c0_141 = arith.constant 0 : index
    %c0_142 = arith.constant 0 : index
    %432 = vector.load %arg28[%c0_141, %c0_142] : memref<1x64xf32, #tpu.memory_space<vmem>>, vector<1x64xf32>
    %c0_143 = arith.constant 0 : index
    %c0_144 = arith.constant 0 : index
    %433 = vector.load %arg29[%c0_143, %c0_144] : memref<64x32xbf16, #tpu.memory_space<vmem>>, vector<64x32xbf16>
    %c0_145 = arith.constant 0 : index
    %c0_146 = arith.constant 0 : index
    %434 = vector.load %arg30[%c0_145, %c0_146] : memref<1x32xf32, #tpu.memory_space<vmem>>, vector<1x32xf32>
    %435 = arith.truncf %430 : vector<8x32xf32> to vector<8x32xbf16>
    %cst_147 = arith.constant dense<0.000000e+00> : vector<8x64xf32>
    %436 = tpu.matmul %435, %431, %cst_147 {dimension_numbers = #tpu.dot_dimension_numbers<[1], [0], [0], [1], [0, 0, 1, 1], [], []>} : vector<8x32xbf16>, vector<32x64xbf16>, vector<8x64xf32> -> vector<8x64xf32>
    %437 = vector.broadcast %432 : vector<1x64xf32> to vector<8x64xf32>
    %438 = arith.addf %436, %437 : vector<8x64xf32>
    %cst_148 = arith.constant 5.000000e-01 : f32
    %439 = vector.broadcast %cst_148 : f32 to vector<8x64xf32>
    %440 = arith.mulf %439, %438 : vector<8x64xf32>
    %cst_149 = arith.constant 0.707106769 : f32
    %441 = vector.broadcast %cst_149 : f32 to vector<8x64xf32>
    %442 = arith.mulf %438, %441 : vector<8x64xf32>
    %443 = math.erf %442 : vector<8x64xf32>
    %cst_150 = arith.constant 1.000000e+00 : f32
    %444 = vector.broadcast %cst_150 : f32 to vector<8x64xf32>
    %445 = arith.addf %444, %443 : vector<8x64xf32>
    %446 = arith.mulf %440, %445 : vector<8x64xf32>
    %447 = arith.truncf %446 : vector<8x64xf32> to vector<8x64xbf16>
    %cst_151 = arith.constant dense<0.000000e+00> : vector<8x32xf32>
    %448 = tpu.matmul %447, %433, %cst_151 {dimension_numbers = #tpu.dot_dimension_numbers<[1], [0], [0], [1], [0, 0, 1, 1], [], []>} : vector<8x64xbf16>, vector<64x32xbf16>, vector<8x32xf32> -> vector<8x32xf32>
    %449 = vector.broadcast %434 : vector<1x32xf32> to vector<8x32xf32>
    %450 = arith.addf %448, %449 : vector<8x32xf32>
    %451 = arith.addf %430, %450 : vector<8x32xf32>
    %c0_152 = arith.constant 0 : index
    %c0_153 = arith.constant 0 : index
    %452 = vector.load %arg25[%c0_152, %c0_153] : memref<1x32xf32, #tpu.memory_space<vmem>>, vector<1x32xf32>
    %c0_154 = arith.constant 0 : index
    %c0_155 = arith.constant 0 : index
    %453 = vector.load %arg26[%c0_154, %c0_155] : memref<1x32xf32, #tpu.memory_space<vmem>>, vector<1x32xf32>
    %cst_156 = arith.constant dense<0.000000e+00> : vector<8xf32>
    %454 = vector.multi_reduction <add>, %451, %cst_156 [1] : vector<8x32xf32> to vector<8xf32>
    %455 = vector.shape_cast %454 : vector<8xf32> to vector<8x1xf32>
    %cst_157 = arith.constant 3.200000e+01 : f32
    %456 = vector.broadcast %cst_157 : f32 to vector<8x1xf32>
    %457 = arith.divf %455, %456 : vector<8x1xf32>
    %458 = vector.broadcast %457 : vector<8x1xf32> to vector<8x32xf32>
    %459 = arith.subf %451, %458 : vector<8x32xf32>
    %460 = arith.mulf %459, %459 : vector<8x32xf32>
    %cst_158 = arith.constant dense<0.000000e+00> : vector<8xf32>
    %461 = vector.multi_reduction <add>, %460, %cst_158 [1] : vector<8x32xf32> to vector<8xf32>
    %462 = vector.shape_cast %461 : vector<8xf32> to vector<8x1xf32>
    %cst_159 = arith.constant 3.200000e+01 : f32
    %463 = vector.broadcast %cst_159 : f32 to vector<8x1xf32>
    %464 = arith.divf %462, %463 : vector<8x1xf32>
    %cst_160 = arith.constant 9.99999974E-6 : f32
    %465 = vector.broadcast %cst_160 : f32 to vector<8x1xf32>
    %466 = arith.addf %464, %465 : vector<8x1xf32>
    %467 = math.rsqrt %466 : vector<8x1xf32>
    %468 = vector.broadcast %467 : vector<8x1xf32> to vector<8x32xf32>
    %469 = arith.mulf %459, %468 : vector<8x32xf32>
    %470 = vector.broadcast %452 : vector<1x32xf32> to vector<8x32xf32>
    %471 = arith.mulf %469, %470 : vector<8x32xf32>
    %472 = vector.broadcast %453 : vector<1x32xf32> to vector<8x32xf32>
    %473 = arith.addf %471, %472 : vector<8x32xf32>
    %c0_161 = arith.constant 0 : index
    %c0_162 = arith.constant 0 : index
    %c0_163 = arith.constant 0 : index
    %474 = vector.load %arg31[%c0_161, %c0_162, %c0_163] : memref<1x8x32xf32, #tpu.memory_space<vmem>>, vector<1x8x32xf32>
    %475 = vector.shape_cast %474 : vector<1x8x32xf32> to vector<8x32xf32>
    %476 = vector.shape_cast %473 : vector<8x32xf32> to vector<1x8x32xf32>
    tpu.vector_store %arg31[%c0_161, %c0_162, %c0_163], %476 {strides = array<i32>} : memref<1x8x32xf32, #tpu.memory_space<vmem>>, vector<1x8x32xf32>,
    return
  }
  func.func @transform_0(%arg0: i32) -> (i32, i32, i32) {
    %c0_i32 = arith.constant 0 : i32
    %c0_i32_0 = arith.constant 0 : i32
    %c0_i32_1 = arith.constant 0 : i32
    return %arg0, %c0_i32, %c0_i32_0 : i32, i32, i32
  }
  func.func @transform_1(%arg0: i32) -> (i32, i32, i32) {
    %c0_i32 = arith.constant 0 : i32
    %c0_i32_0 = arith.constant 0 : i32
    %c0_i32_1 = arith.constant 0 : i32
    return %arg0, %c0_i32, %c0_i32_0 : i32, i32, i32
  }
  func.func @transform_2(%arg0: i32) -> (i32, i32, i32) {
    %c0_i32 = arith.constant 0 : i32
    %c0_i32_0 = arith.constant 0 : i32
    %c0_i32_1 = arith.constant 0 : i32
    return %arg0, %c0_i32, %c0_i32_0 : i32, i32, i32
  }
  func.func @transform_3(%arg0: i32) -> (i32, i32, i32) {
    %c0_i32 = arith.constant 0 : i32
    %c0_i32_0 = arith.constant 0 : i32
    %c0_i32_1 = arith.constant 0 : i32
    return %arg0, %c0_i32, %c0_i32_0 : i32, i32, i32
  }
  func.func @transform_4(%arg0: i32) -> (i32, i32, i32) {
    %c0_i32 = arith.constant 0 : i32
    %c0_i32_0 = arith.constant 0 : i32
    %c0_i32_1 = arith.constant 0 : i32
    return %arg0, %c0_i32, %c0_i32_0 : i32, i32, i32
  }
  func.func @transform_5(%arg0: i32) -> (i32, i32, i32) {
    %c0_i32 = arith.constant 0 : i32
    %c0_i32_0 = arith.constant 0 : i32
    %c0_i32_1 = arith.constant 0 : i32
    return %arg0, %c0_i32, %c0_i32_0 : i32, i32, i32
  }
  func.func @transform_6(%arg0: i32) -> (i32, i32) {
    %c0_i32 = arith.constant 0 : i32
    %c0_i32_0 = arith.constant 0 : i32
    %c0_i32_1 = arith.constant 0 : i32
    return %c0_i32, %c0_i32_0 : i32, i32
  }
  func.func @transform_7(%arg0: i32) -> (i32, i32) {
    %c0_i32 = arith.constant 0 : i32
    %c0_i32_0 = arith.constant 0 : i32
    %c0_i32_1 = arith.constant 0 : i32
    return %c0_i32, %c0_i32_0 : i32, i32
  }
  func.func @transform_8(%arg0: i32) -> (i32, i32) {
    %c0_i32 = arith.constant 0 : i32
    %c0_i32_0 = arith.constant 0 : i32
    %c0_i32_1 = arith.constant 0 : i32
    return %c0_i32, %c0_i32_0 : i32, i32
  }
  func.func @transform_9(%arg0: i32) -> (i32, i32) {
    %c0_i32 = arith.constant 0 : i32
    %c0_i32_0 = arith.constant 0 : i32
    %c0_i32_1 = arith.constant 0 : i32
    return %c0_i32, %c0_i32_0 : i32, i32
  }
  func.func @transform_10(%arg0: i32) -> (i32, i32) {
    %c0_i32 = arith.constant 0 : i32
    %c0_i32_0 = arith.constant 0 : i32
    %c0_i32_1 = arith.constant 0 : i32
    return %c0_i32, %c0_i32_0 : i32, i32
  }
  func.func @transform_11(%arg0: i32) -> (i32, i32) {
    %c0_i32 = arith.constant 0 : i32
    %c0_i32_0 = arith.constant 0 : i32
    %c0_i32_1 = arith.constant 0 : i32
    return %c0_i32, %c0_i32_0 : i32, i32
  }
  func.func @transform_12(%arg0: i32) -> (i32, i32) {
    %c0_i32 = arith.constant 0 : i32
    %c0_i32_0 = arith.constant 0 : i32
    %c0_i32_1 = arith.constant 0 : i32
    return %c0_i32, %c0_i32_0 : i32, i32
  }
  func.func @transform_13(%arg0: i32) -> (i32, i32) {
    %c0_i32 = arith.constant 0 : i32
    %c0_i32_0 = arith.constant 0 : i32
    %c0_i32_1 = arith.constant 0 : i32
    return %c0_i32, %c0_i32_0 : i32, i32
  }
  func.func @transform_14(%arg0: i32) -> (i32, i32) {
    %c0_i32 = arith.constant 0 : i32
    %c0_i32_0 = arith.constant 0 : i32
    %c0_i32_1 = arith.constant 0 : i32
    return %c0_i32, %c0_i32_0 : i32, i32
  }
  func.func @transform_15(%arg0: i32) -> (i32, i32) {
    %c0_i32 = arith.constant 0 : i32
    %c0_i32_0 = arith.constant 0 : i32
    %c0_i32_1 = arith.constant 0 : i32
    return %c0_i32, %c0_i32_0 : i32, i32
  }
  func.func @transform_16(%arg0: i32) -> (i32, i32) {
    %c0_i32 = arith.constant 0 : i32
    %c0_i32_0 = arith.constant 0 : i32
    %c0_i32_1 = arith.constant 0 : i32
    return %c0_i32, %c0_i32_0 : i32, i32
  }
  func.func @transform_17(%arg0: i32) -> (i32, i32) {
    %c0_i32 = arith.constant 0 : i32
    %c0_i32_0 = arith.constant 0 : i32
    %c0_i32_1 = arith.constant 0 : i32
    return %c0_i32, %c0_i32_0 : i32, i32
  }
  func.func @transform_18(%arg0: i32) -> (i32, i32) {
    %c0_i32 = arith.constant 0 : i32
    %c0_i32_0 = arith.constant 0 : i32
    %c0_i32_1 = arith.constant 0 : i32
    return %c0_i32, %c0_i32_0 : i32, i32
  }
  func.func @transform_19(%arg0: i32) -> (i32, i32) {
    %c0_i32 = arith.constant 0 : i32
    %c0_i32_0 = arith.constant 0 : i32
    %c0_i32_1 = arith.constant 0 : i32
    return %c0_i32, %c0_i32_0 : i32, i32
  }
  func.func @transform_20(%arg0: i32) -> (i32, i32) {
    %c0_i32 = arith.constant 0 : i32
    %c0_i32_0 = arith.constant 0 : i32
    %c0_i32_1 = arith.constant 0 : i32
    return %c0_i32, %c0_i32_0 : i32, i32
  }
  func.func @transform_21(%arg0: i32) -> (i32, i32) {
    %c0_i32 = arith.constant 0 : i32
    %c0_i32_0 = arith.constant 0 : i32
    %c0_i32_1 = arith.constant 0 : i32
    return %c0_i32, %c0_i32_0 : i32, i32
  }
  func.func @transform_22(%arg0: i32) -> (i32, i32) {
    %c0_i32 = arith.constant 0 : i32
    %c0_i32_0 = arith.constant 0 : i32
    %c0_i32_1 = arith.constant 0 : i32
    return %c0_i32, %c0_i32_0 : i32, i32
  }
  func.func @transform_23(%arg0: i32) -> (i32, i32) {
    %c0_i32 = arith.constant 0 : i32
    %c0_i32_0 = arith.constant 0 : i32
    %c0_i32_1 = arith.constant 0 : i32
    return %c0_i32, %c0_i32_0 : i32, i32
  }
  func.func @transform_24(%arg0: i32) -> (i32, i32) {
    %c0_i32 = arith.constant 0 : i32
    %c0_i32_0 = arith.constant 0 : i32
    %c0_i32_1 = arith.constant 0 : i32
    return %c0_i32, %c0_i32_0 : i32, i32
  }
  func.func @transform_25(%arg0: i32) -> (i32, i32) {
    %c0_i32 = arith.constant 0 : i32
    %c0_i32_0 = arith.constant 0 : i32
    %c0_i32_1 = arith.constant 0 : i32
    return %c0_i32, %c0_i32_0 : i32, i32
  }
  func.func @transform_26(%arg0: i32) -> (i32, i32) {
    %c0_i32 = arith.constant 0 : i32
    %c0_i32_0 = arith.constant 0 : i32
    %c0_i32_1 = arith.constant 0 : i32
    return %c0_i32, %c0_i32_0 : i32, i32
  }
  func.func @transform_27(%arg0: i32) -> (i32, i32) {
    %c0_i32 = arith.constant 0 : i32
    %c0_i32_0 = arith.constant 0 : i32
    %c0_i32_1 = arith.constant 0 : i32
    return %c0_i32, %c0_i32_0 : i32, i32
  }
  func.func @transform_28(%arg0: i32) -> (i32, i32) {
    %c0_i32 = arith.constant 0 : i32
    %c0_i32_0 = arith.constant 0 : i32
    %c0_i32_1 = arith.constant 0 : i32
    return %c0_i32, %c0_i32_0 : i32, i32
  }
  func.func @transform_29(%arg0: i32) -> (i32, i32) {
    %c0_i32 = arith.constant 0 : i32
    %c0_i32_0 = arith.constant 0 : i32
    %c0_i32_1 = arith.constant 0 : i32
    return %c0_i32, %c0_i32_0 : i32, i32
  }
  func.func @transform_30(%arg0: i32) -> (i32, i32, i32) {
    %c0_i32 = arith.constant 0 : i32
    %c0_i32_0 = arith.constant 0 : i32
    %c0_i32_1 = arith.constant 0 : i32
    return %arg0, %c0_i32, %c0_i32_0 : i32, i32, i32
  }
}

module attributes {stable_mosaic.version = 11 : i64} {
  func.func @_pointer_gen_kernel(%arg0: i32, %arg1: memref<1x8x32xf32, #tpu.memory_space<vmem>>, %arg2: memref<1x8x32xf32, #tpu.memory_space<vmem>>, %arg3: memref<1x16x32xf32, #tpu.memory_space<vmem>>, %arg4: memref<1x1x16xf32, #tpu.memory_space<vmem>>, %arg5: memref<1x8x1xi32, #tpu.memory_space<vmem>>, %arg6: memref<1x16x1xi32, #tpu.memory_space<vmem>>, %arg7: memref<32x16xbf16, #tpu.memory_space<vmem>>, %arg8: memref<1x16xf32, #tpu.memory_space<vmem>>, %arg9: memref<16x32xbf16, #tpu.memory_space<vmem>>, %arg10: memref<1x32xf32, #tpu.memory_space<vmem>>, %arg11: memref<1x32xf32, #tpu.memory_space<vmem>>, %arg12: memref<1x1xf32, #tpu.memory_space<vmem>>, %arg13: memref<1x32xf32, #tpu.memory_space<vmem>>, %arg14: memref<1x32xf32, #tpu.memory_space<vmem>>, %arg15: memref<1x1xf32, #tpu.memory_space<vmem>>, %arg16: memref<96x3xf32, #tpu.memory_space<vmem>>, %arg17: memref<1x3xf32, #tpu.memory_space<vmem>>, %arg18: memref<1x8x48xf32, #tpu.memory_space<vmem>>) attributes {dimension_semantics = [#tpu.dimension_semantics<parallel>], iteration_bounds = array<i64: 2>, scalar_prefetch = 0 : i64, scratch_operands = 0 : i64, tpu.core_type = #tpu.core_type<tc>, window_params = [{transform_indices = @transform_0, window_bounds = array<i64: 1, 8, 32>}, {transform_indices = @transform_1, window_bounds = array<i64: 1, 8, 32>}, {transform_indices = @transform_2, window_bounds = array<i64: 1, 16, 32>}, {transform_indices = @transform_3, window_bounds = array<i64: 1, 1, 16>}, {transform_indices = @transform_4, window_bounds = array<i64: 1, 8, 1>}, {transform_indices = @transform_5, window_bounds = array<i64: 1, 16, 1>}, {pipeline_mode = #tpu.pipeline_mode<synchronous>, transform_indices = @transform_6, window_bounds = array<i64: 32, 16>}, {pipeline_mode = #tpu.pipeline_mode<synchronous>, transform_indices = @transform_7, window_bounds = array<i64: 1, 16>}, {pipeline_mode = #tpu.pipeline_mode<synchronous>, transform_indices = @transform_8, window_bounds = array<i64: 16, 32>}, {pipeline_mode = #tpu.pipeline_mode<synchronous>, transform_indices = @transform_9, window_bounds = array<i64: 1, 32>}, {pipeline_mode = #tpu.pipeline_mode<synchronous>, transform_indices = @transform_10, window_bounds = array<i64: 1, 32>}, {pipeline_mode = #tpu.pipeline_mode<synchronous>, transform_indices = @transform_11, window_bounds = array<i64: 1, 1>}, {pipeline_mode = #tpu.pipeline_mode<synchronous>, transform_indices = @transform_12, window_bounds = array<i64: 1, 32>}, {pipeline_mode = #tpu.pipeline_mode<synchronous>, transform_indices = @transform_13, window_bounds = array<i64: 1, 32>}, {pipeline_mode = #tpu.pipeline_mode<synchronous>, transform_indices = @transform_14, window_bounds = array<i64: 1, 1>}, {pipeline_mode = #tpu.pipeline_mode<synchronous>, transform_indices = @transform_15, window_bounds = array<i64: 96, 3>}, {pipeline_mode = #tpu.pipeline_mode<synchronous>, transform_indices = @transform_16, window_bounds = array<i64: 1, 3>}, {transform_indices = @transform_17, window_bounds = array<i64: 1, 8, 48>}]} {
    %c0 = arith.constant 0 : index
    %c0_0 = arith.constant 0 : index
    %c0_1 = arith.constant 0 : index
    %0 = vector.load %arg1[%c0, %c0_0, %c0_1] : memref<1x8x32xf32, #tpu.memory_space<vmem>>, vector<1x8x32xf32>
    %1 = vector.shape_cast %0 : vector<1x8x32xf32> to vector<8x32xf32>
    %c0_2 = arith.constant 0 : index
    %c0_3 = arith.constant 0 : index
    %c0_4 = arith.constant 0 : index
    %2 = vector.load %arg2[%c0_2, %c0_3, %c0_4] : memref<1x8x32xf32, #tpu.memory_space<vmem>>, vector<1x8x32xf32>
    %3 = vector.shape_cast %2 : vector<1x8x32xf32> to vector<8x32xf32>
    %c0_5 = arith.constant 0 : index
    %c0_6 = arith.constant 0 : index
    %c0_7 = arith.constant 0 : index
    %4 = vector.load %arg3[%c0_5, %c0_6, %c0_7] : memref<1x16x32xf32, #tpu.memory_space<vmem>>, vector<1x16x32xf32>
    %5 = vector.shape_cast %4 : vector<1x16x32xf32> to vector<16x32xf32>
    %6 = arith.truncf %1 : vector<8x32xf32> to vector<8x32xbf16>
    %c0_8 = arith.constant 0 : index
    %c0_9 = arith.constant 0 : index
    %7 = vector.load %arg7[%c0_8, %c0_9] : memref<32x16xbf16, #tpu.memory_space<vmem>>, vector<32x16xbf16>
    %cst = arith.constant dense<0.000000e+00> : vector<8x16xf32>
    %8 = tpu.matmul %6, %7, %cst {dimension_numbers = #tpu.dot_dimension_numbers<[1], [0], [0], [1], [0, 0, 1, 1], [], []>} : vector<8x32xbf16>, vector<32x16xbf16>, vector<8x16xf32> -> vector<8x16xf32>
    %c0_10 = arith.constant 0 : index
    %c0_11 = arith.constant 0 : index
    %9 = vector.load %arg8[%c0_10, %c0_11] : memref<1x16xf32, #tpu.memory_space<vmem>>, vector<1x16xf32>
    %10 = vector.broadcast %9 : vector<1x16xf32> to vector<8x16xf32>
    %11 = arith.addf %8, %10 : vector<8x16xf32>
    %12 = arith.truncf %11 : vector<8x16xf32> to vector<8x16xbf16>
    %c0_12 = arith.constant 0 : index
    %c0_13 = arith.constant 0 : index
    %13 = vector.load %arg9[%c0_12, %c0_13] : memref<16x32xbf16, #tpu.memory_space<vmem>>, vector<16x32xbf16>
    %cst_14 = arith.constant dense<0.000000e+00> : vector<8x32xf32>
    %14 = tpu.matmul %12, %13, %cst_14 {dimension_numbers = #tpu.dot_dimension_numbers<[1], [0], [0], [1], [0, 0, 1, 1], [], []>} : vector<8x16xbf16>, vector<16x32xbf16>, vector<8x32xf32> -> vector<8x32xf32>
    %cst_15 = arith.constant dense<0xFF800000> : vector<8xf32>
    %15 = vector.multi_reduction <maximumf>, %14, %cst_15 [1] : vector<8x32xf32> to vector<8xf32>
    %16 = vector.shape_cast %15 : vector<8xf32> to vector<8x1xf32>
    %17 = vector.broadcast %16 : vector<8x1xf32> to vector<8x32xf32>
    %18 = arith.subf %14, %17 : vector<8x32xf32>
    %19 = math.exp %18 : vector<8x32xf32>
    %cst_16 = arith.constant dense<0.000000e+00> : vector<8xf32>
    %20 = vector.multi_reduction <add>, %19, %cst_16 [1] : vector<8x32xf32> to vector<8xf32>
    %21 = vector.shape_cast %20 : vector<8xf32> to vector<8x1xf32>
    %22 = tpu.reciprocal %21 {approx = true} : vector<8x1xf32> -> vector<8x1xf32>
    %23 = vector.broadcast %22 : vector<8x1xf32> to vector<8x32xf32>
    %24 = arith.mulf %19, %23 : vector<8x32xf32>
    %cst_17 = arith.constant 0.000000e+00 : f32
    %25 = vector.broadcast %cst_17 : f32 to vector<8x16xf32>
    %26 = tpu.concatenate %24, %25 in 1 : vector<8x32xf32>, vector<8x16xf32> -> vector<8x48xf32>
    %c0_18 = arith.constant 0 : index
    %c0_19 = arith.constant 0 : index
    %27 = vector.load %arg10[%c0_18, %c0_19] : memref<1x32xf32, #tpu.memory_space<vmem>>, vector<1x32xf32>
    %cst_20 = arith.constant dense<0.000000e+00> : vector<1x16xf32>
    %28 = tpu.matmul %27, %5, %cst_20 {dimension_numbers = #tpu.dot_dimension_numbers<[1], [1], [0], [0], [0, 0, 1, 0], [], []>} : vector<1x32xf32>, vector<16x32xf32>, vector<1x16xf32> -> vector<1x16xf32>
    %c0_21 = arith.constant 0 : index
    %c0_22 = arith.constant 0 : index
    %29 = vector.load %arg11[%c0_21, %c0_22] : memref<1x32xf32, #tpu.memory_space<vmem>>, vector<1x32xf32>
    %30 = vector.broadcast %29 : vector<1x32xf32> to vector<8x32xf32>
    %31 = arith.mulf %1, %30 : vector<8x32xf32>
    %cst_23 = arith.constant dense<0.000000e+00> : vector<8xf32>
    %32 = vector.multi_reduction <add>, %31, %cst_23 [1] : vector<8x32xf32> to vector<8xf32>
    %33 = vector.shape_cast %32 : vector<8xf32> to vector<8x1xf32>
    %c0_24 = arith.constant 0 : index
    %c0_25 = arith.constant 0 : index
    %34 = vector.load %arg12[%c0_24, %c0_25] : memref<1x1xf32, #tpu.memory_space<vmem>>, vector<1x1xf32>
    %35 = vector.broadcast %34 : vector<1x1xf32> to vector<8x1xf32>
    %36 = arith.addf %33, %35 : vector<8x1xf32>
    %37 = vector.broadcast %36 : vector<8x1xf32> to vector<8x16xf32>
    %38 = vector.broadcast %28 : vector<1x16xf32> to vector<8x16xf32>
    %39 = arith.addf %37, %38 : vector<8x16xf32>
    %cst_26 = arith.constant dense<0xFF800000> : vector<8xf32>
    %40 = vector.multi_reduction <maximumf>, %39, %cst_26 [1] : vector<8x16xf32> to vector<8xf32>
    %41 = vector.shape_cast %40 : vector<8xf32> to vector<8x1xf32>
    %42 = vector.broadcast %41 : vector<8x1xf32> to vector<8x16xf32>
    %43 = arith.subf %39, %42 : vector<8x16xf32>
    %44 = math.exp %43 : vector<8x16xf32>
    %cst_27 = arith.constant dense<0.000000e+00> : vector<8xf32>
    %45 = vector.multi_reduction <add>, %44, %cst_27 [1] : vector<8x16xf32> to vector<8xf32>
    %46 = vector.shape_cast %45 : vector<8xf32> to vector<8x1xf32>
    %47 = tpu.reciprocal %46 {approx = true} : vector<8x1xf32> -> vector<8x1xf32>
    %48 = vector.broadcast %47 : vector<8x1xf32> to vector<8x16xf32>
    %49 = arith.mulf %44, %48 : vector<8x16xf32>
    %c0_28 = arith.constant 0 : index
    %c0_29 = arith.constant 0 : index
    %c0_30 = arith.constant 0 : index
    %50 = vector.load %arg4[%c0_28, %c0_29, %c0_30] : memref<1x1x16xf32, #tpu.memory_space<vmem>>, vector<1x1x16xf32>
    %51 = vector.shape_cast %50 : vector<1x1x16xf32> to vector<1x16xf32>
    %52 = vector.broadcast %51 : vector<1x16xf32> to vector<8x16xf32>
    %53 = arith.mulf %49, %52 : vector<8x16xf32>
    %cst_31 = arith.constant dense<0.000000e+00> : vector<8xf32>
    %54 = vector.multi_reduction <add>, %53, %cst_31 [1] : vector<8x16xf32> to vector<8xf32>
    %55 = vector.shape_cast %54 : vector<8xf32> to vector<8x1xf32>
    %56 = tpu.reciprocal %55 {approx = true} : vector<8x1xf32> -> vector<8x1xf32>
    %57 = vector.broadcast %56 : vector<8x1xf32> to vector<8x16xf32>
    %58 = arith.mulf %53, %57 : vector<8x16xf32>
    %c0_32 = arith.constant 0 : index
    %c0_33 = arith.constant 0 : index
    %c0_34 = arith.constant 0 : index
    %59 = vector.load %arg6[%c0_32, %c0_33, %c0_34] : memref<1x16x1xi32, #tpu.memory_space<vmem>>, vector<1x16x1xi32>
    %60 = vector.shape_cast %59 : vector<1x16x1xi32> to vector<16x1xi32>
    %61 = tpu.iota {dimensions = array<i32: 1>} : vector<16x48xi32>
    %62 = vector.broadcast %60 : vector<16x1xi32> to vector<16x48xi32>
    %63 = arith.cmpi eq, %62, %61 : vector<16x48xi32>
    %64 = arith.extui %63 : vector<16x48xi1> to vector<16x48xi32>
    %65 = arith.sitofp %64 : vector<16x48xi32> to vector<16x48xf32>
    %cst_35 = arith.constant dense<0.000000e+00> : vector<8x48xf32>
    %66 = tpu.matmul %58, %65, %cst_35 {dimension_numbers = #tpu.dot_dimension_numbers<[1], [0], [0], [1], [0, 0, 1, 1], [], []>} : vector<8x16xf32>, vector<16x48xf32>, vector<8x48xf32> -> vector<8x48xf32>
    %cst_36 = arith.constant dense<0.000000e+00> : vector<8x32xf32>
    %67 = tpu.matmul %58, %5, %cst_36 {dimension_numbers = #tpu.dot_dimension_numbers<[1], [0], [0], [1], [0, 0, 1, 1], [], []>} : vector<8x16xf32>, vector<16x32xf32>, vector<8x32xf32> -> vector<8x32xf32>
    %c0_37 = arith.constant 0 : index
    %c0_38 = arith.constant 0 : index
    %68 = vector.load %arg13[%c0_37, %c0_38] : memref<1x32xf32, #tpu.memory_space<vmem>>, vector<1x32xf32>
    %cst_39 = arith.constant dense<0.000000e+00> : vector<1x8xf32>
    %69 = tpu.matmul %68, %3, %cst_39 {dimension_numbers = #tpu.dot_dimension_numbers<[1], [1], [0], [0], [0, 0, 1, 0], [], []>} : vector<1x32xf32>, vector<8x32xf32>, vector<1x8xf32> -> vector<1x8xf32>
    %c0_40 = arith.constant 0 : index
    %c0_41 = arith.constant 0 : index
    %70 = vector.load %arg14[%c0_40, %c0_41] : memref<1x32xf32, #tpu.memory_space<vmem>>, vector<1x32xf32>
    %71 = vector.broadcast %70 : vector<1x32xf32> to vector<8x32xf32>
    %72 = arith.mulf %1, %71 : vector<8x32xf32>
    %cst_42 = arith.constant dense<0.000000e+00> : vector<8xf32>
    %73 = vector.multi_reduction <add>, %72, %cst_42 [1] : vector<8x32xf32> to vector<8xf32>
    %74 = vector.shape_cast %73 : vector<8xf32> to vector<8x1xf32>
    %c0_43 = arith.constant 0 : index
    %c0_44 = arith.constant 0 : index
    %75 = vector.load %arg15[%c0_43, %c0_44] : memref<1x1xf32, #tpu.memory_space<vmem>>, vector<1x1xf32>
    %76 = vector.broadcast %75 : vector<1x1xf32> to vector<8x1xf32>
    %77 = arith.addf %74, %76 : vector<8x1xf32>
    %78 = vector.broadcast %77 : vector<8x1xf32> to vector<8x8xf32>
    %79 = vector.broadcast %69 : vector<1x8xf32> to vector<8x8xf32>
    %80 = arith.addf %78, %79 : vector<8x8xf32>
    %cst_45 = arith.constant dense<0xFF800000> : vector<8xf32>
    %81 = vector.multi_reduction <maximumf>, %80, %cst_45 [1] : vector<8x8xf32> to vector<8xf32>
    %82 = vector.shape_cast %81 : vector<8xf32> to vector<8x1xf32>
    %83 = vector.broadcast %82 : vector<8x1xf32> to vector<8x8xf32>
    %84 = arith.subf %80, %83 : vector<8x8xf32>
    %85 = math.exp %84 : vector<8x8xf32>
    %cst_46 = arith.constant dense<0.000000e+00> : vector<8xf32>
    %86 = vector.multi_reduction <add>, %85, %cst_46 [1] : vector<8x8xf32> to vector<8xf32>
    %87 = vector.shape_cast %86 : vector<8xf32> to vector<8x1xf32>
    %88 = tpu.reciprocal %87 {approx = true} : vector<8x1xf32> -> vector<8x1xf32>
    %89 = vector.broadcast %88 : vector<8x1xf32> to vector<8x8xf32>
    %90 = arith.mulf %85, %89 : vector<8x8xf32>
    %c0_47 = arith.constant 0 : index
    %c0_48 = arith.constant 0 : index
    %c0_49 = arith.constant 0 : index
    %91 = vector.load %arg5[%c0_47, %c0_48, %c0_49] : memref<1x8x1xi32, #tpu.memory_space<vmem>>, vector<1x8x1xi32>
    %92 = vector.shape_cast %91 : vector<1x8x1xi32> to vector<8x1xi32>
    %93 = tpu.iota {dimensions = array<i32: 1>} : vector<8x48xi32>
    %94 = vector.broadcast %92 : vector<8x1xi32> to vector<8x48xi32>
    %95 = arith.cmpi eq, %94, %93 : vector<8x48xi32>
    %96 = arith.extui %95 : vector<8x48xi1> to vector<8x48xi32>
    %97 = arith.sitofp %96 : vector<8x48xi32> to vector<8x48xf32>
    %cst_50 = arith.constant dense<0.000000e+00> : vector<8x48xf32>
    %98 = tpu.matmul %90, %97, %cst_50 {dimension_numbers = #tpu.dot_dimension_numbers<[1], [0], [0], [1], [0, 0, 1, 1], [], []>} : vector<8x8xf32>, vector<8x48xf32>, vector<8x48xf32> -> vector<8x48xf32>
    %cst_51 = arith.constant dense<0.000000e+00> : vector<8x32xf32>
    %99 = tpu.matmul %90, %3, %cst_51 {dimension_numbers = #tpu.dot_dimension_numbers<[1], [0], [0], [1], [0, 0, 1, 1], [], []>} : vector<8x8xf32>, vector<8x32xf32>, vector<8x32xf32> -> vector<8x32xf32>
    %100 = tpu.concatenate %1, %99, %67 in 1 : vector<8x32xf32>, vector<8x32xf32>, vector<8x32xf32> -> vector<8x96xf32>
    %c0_52 = arith.constant 0 : index
    %c0_53 = arith.constant 0 : index
    %101 = vector.load %arg16[%c0_52, %c0_53] : memref<96x3xf32, #tpu.memory_space<vmem>>, vector<96x3xf32>
    %cst_54 = arith.constant dense<0.000000e+00> : vector<8x3xf32>
    %102 = tpu.matmul %100, %101, %cst_54 {dimension_numbers = #tpu.dot_dimension_numbers<[1], [0], [0], [1], [0, 0, 1, 1], [], []>} : vector<8x96xf32>, vector<96x3xf32>, vector<8x3xf32> -> vector<8x3xf32>
    %c0_55 = arith.constant 0 : index
    %c0_56 = arith.constant 0 : index
    %103 = vector.load %arg17[%c0_55, %c0_56] : memref<1x3xf32, #tpu.memory_space<vmem>>, vector<1x3xf32>
    %104 = vector.broadcast %103 : vector<1x3xf32> to vector<8x3xf32>
    %105 = arith.addf %102, %104 : vector<8x3xf32>
    %cst_57 = arith.constant dense<0xFF800000> : vector<8xf32>
    %106 = vector.multi_reduction <maximumf>, %105, %cst_57 [1] : vector<8x3xf32> to vector<8xf32>
    %107 = vector.shape_cast %106 : vector<8xf32> to vector<8x1xf32>
    %108 = vector.broadcast %107 : vector<8x1xf32> to vector<8x3xf32>
    %109 = arith.subf %105, %108 : vector<8x3xf32>
    %110 = math.exp %109 : vector<8x3xf32>
    %cst_58 = arith.constant dense<0.000000e+00> : vector<8xf32>
    %111 = vector.multi_reduction <add>, %110, %cst_58 [1] : vector<8x3xf32> to vector<8xf32>
    %112 = vector.shape_cast %111 : vector<8xf32> to vector<8x1xf32>
    %113 = tpu.reciprocal %112 {approx = true} : vector<8x1xf32> -> vector<8x1xf32>
    %114 = vector.broadcast %113 : vector<8x1xf32> to vector<8x3xf32>
    %115 = arith.mulf %110, %114 : vector<8x3xf32>
    %116 = vector.extract_strided_slice %115 {offsets = [0, 0], sizes = [8, 1], strides = [1, 1]} : vector<8x3xf32> to vector<8x1xf32>
    %117 = vector.broadcast %116 : vector<8x1xf32> to vector<8x48xf32>
    %118 = arith.mulf %117, %26 : vector<8x48xf32>
    %119 = vector.extract_strided_slice %115 {offsets = [0, 1], sizes = [8, 1], strides = [1, 1]} : vector<8x3xf32> to vector<8x1xf32>
    %120 = vector.broadcast %119 : vector<8x1xf32> to vector<8x48xf32>
    %121 = arith.mulf %120, %98 : vector<8x48xf32>
    %122 = arith.addf %118, %121 : vector<8x48xf32>
    %123 = vector.extract_strided_slice %115 {offsets = [0, 2], sizes = [8, 1], strides = [1, 1]} : vector<8x3xf32> to vector<8x1xf32>
    %124 = vector.broadcast %123 : vector<8x1xf32> to vector<8x48xf32>
    %125 = arith.mulf %124, %66 : vector<8x48xf32>
    %126 = arith.addf %122, %125 : vector<8x48xf32>
    %c0_59 = arith.constant 0 : index
    %c0_60 = arith.constant 0 : index
    %c0_61 = arith.constant 0 : index
    %127 = vector.load %arg18[%c0_59, %c0_60, %c0_61] : memref<1x8x48xf32, #tpu.memory_space<vmem>>, vector<1x8x48xf32>
    %128 = vector.shape_cast %127 : vector<1x8x48xf32> to vector<8x48xf32>
    %129 = vector.shape_cast %126 : vector<8x48xf32> to vector<1x8x48xf32>
    tpu.vector_store %arg18[%c0_59, %c0_60, %c0_61], %129 {strides = array<i32>} : memref<1x8x48xf32, #tpu.memory_space<vmem>>, vector<1x8x48xf32>,
    return
  }
  func.func @transform_0(%arg0: i32) -> (i32, i32, i32) {
    %c0_i32 = arith.constant 0 : i32
    %c0_i32_0 = arith.constant 0 : i32
    %c0_i32_1 = arith.constant 0 : i32
    return %arg0, %c0_i32, %c0_i32_0 : i32, i32, i32
  }
  func.func @transform_1(%arg0: i32) -> (i32, i32, i32) {
    %c0_i32 = arith.constant 0 : i32
    %c0_i32_0 = arith.constant 0 : i32
    %c0_i32_1 = arith.constant 0 : i32
    return %arg0, %c0_i32, %c0_i32_0 : i32, i32, i32
  }
  func.func @transform_2(%arg0: i32) -> (i32, i32, i32) {
    %c0_i32 = arith.constant 0 : i32
    %c0_i32_0 = arith.constant 0 : i32
    %c0_i32_1 = arith.constant 0 : i32
    return %arg0, %c0_i32, %c0_i32_0 : i32, i32, i32
  }
  func.func @transform_3(%arg0: i32) -> (i32, i32, i32) {
    %c0_i32 = arith.constant 0 : i32
    %c0_i32_0 = arith.constant 0 : i32
    %c0_i32_1 = arith.constant 0 : i32
    return %arg0, %c0_i32, %c0_i32_0 : i32, i32, i32
  }
  func.func @transform_4(%arg0: i32) -> (i32, i32, i32) {
    %c0_i32 = arith.constant 0 : i32
    %c0_i32_0 = arith.constant 0 : i32
    %c0_i32_1 = arith.constant 0 : i32
    return %arg0, %c0_i32, %c0_i32_0 : i32, i32, i32
  }
  func.func @transform_5(%arg0: i32) -> (i32, i32, i32) {
    %c0_i32 = arith.constant 0 : i32
    %c0_i32_0 = arith.constant 0 : i32
    %c0_i32_1 = arith.constant 0 : i32
    return %arg0, %c0_i32, %c0_i32_0 : i32, i32, i32
  }
  func.func @transform_6(%arg0: i32) -> (i32, i32) {
    %c0_i32 = arith.constant 0 : i32
    %c0_i32_0 = arith.constant 0 : i32
    %c0_i32_1 = arith.constant 0 : i32
    return %c0_i32, %c0_i32_0 : i32, i32
  }
  func.func @transform_7(%arg0: i32) -> (i32, i32) {
    %c0_i32 = arith.constant 0 : i32
    %c0_i32_0 = arith.constant 0 : i32
    %c0_i32_1 = arith.constant 0 : i32
    return %c0_i32, %c0_i32_0 : i32, i32
  }
  func.func @transform_8(%arg0: i32) -> (i32, i32) {
    %c0_i32 = arith.constant 0 : i32
    %c0_i32_0 = arith.constant 0 : i32
    %c0_i32_1 = arith.constant 0 : i32
    return %c0_i32, %c0_i32_0 : i32, i32
  }
  func.func @transform_9(%arg0: i32) -> (i32, i32) {
    %c0_i32 = arith.constant 0 : i32
    %c0_i32_0 = arith.constant 0 : i32
    %c0_i32_1 = arith.constant 0 : i32
    return %c0_i32, %c0_i32_0 : i32, i32
  }
  func.func @transform_10(%arg0: i32) -> (i32, i32) {
    %c0_i32 = arith.constant 0 : i32
    %c0_i32_0 = arith.constant 0 : i32
    %c0_i32_1 = arith.constant 0 : i32
    return %c0_i32, %c0_i32_0 : i32, i32
  }
  func.func @transform_11(%arg0: i32) -> (i32, i32) {
    %c0_i32 = arith.constant 0 : i32
    %c0_i32_0 = arith.constant 0 : i32
    %c0_i32_1 = arith.constant 0 : i32
    return %c0_i32, %c0_i32_0 : i32, i32
  }
  func.func @transform_12(%arg0: i32) -> (i32, i32) {
    %c0_i32 = arith.constant 0 : i32
    %c0_i32_0 = arith.constant 0 : i32
    %c0_i32_1 = arith.constant 0 : i32
    return %c0_i32, %c0_i32_0 : i32, i32
  }
  func.func @transform_13(%arg0: i32) -> (i32, i32) {
    %c0_i32 = arith.constant 0 : i32
    %c0_i32_0 = arith.constant 0 : i32
    %c0_i32_1 = arith.constant 0 : i32
    return %c0_i32, %c0_i32_0 : i32, i32
  }
  func.func @transform_14(%arg0: i32) -> (i32, i32) {
    %c0_i32 = arith.constant 0 : i32
    %c0_i32_0 = arith.constant 0 : i32
    %c0_i32_1 = arith.constant 0 : i32
    return %c0_i32, %c0_i32_0 : i32, i32
  }
  func.func @transform_15(%arg0: i32) -> (i32, i32) {
    %c0_i32 = arith.constant 0 : i32
    %c0_i32_0 = arith.constant 0 : i32
    %c0_i32_1 = arith.constant 0 : i32
    return %c0_i32, %c0_i32_0 : i32, i32
  }
  func.func @transform_16(%arg0: i32) -> (i32, i32) {
    %c0_i32 = arith.constant 0 : i32
    %c0_i32_0 = arith.constant 0 : i32
    %c0_i32_1 = arith.constant 0 : i32
    return %c0_i32, %c0_i32_0 : i32, i32
  }
  func.func @transform_17(%arg0: i32) -> (i32, i32, i32) {
    %c0_i32 = arith.constant 0 : i32
    %c0_i32_0 = arith.constant 0 : i32
    %c0_i32_1 = arith.constant 0 : i32
    return %arg0, %c0_i32, %c0_i32_0 : i32, i32, i32
  }
}

</mosaic_0001>

<bundles_post_ra>
// kernel: _lambda_.17
= control target key start
LH: loop header
LB: loop body
LE: loop exit
PB: predicated region body
PF: predicated region fallthrough
CT: control target
= control target key end

     0   :  { %vm44_vm0 = vcmask 261120   ;;  %s186_s1 = inlined_call_operand.vmem [shape: bf16[32,32], index: 1, kind: input, shape index: {}]   ;;  %s187_s0 = inlined_call_operand.vmem [shape: f32[32,32], index: 0, kind: input, shape index: {}]   ;;  %s188_s2 = inlined_call_operand.vmem [shape: f32[1,32], index: 2, kind: input, shape index: {}]   ;;  %s189_s3 = inlined_call_operand.vmem [shape: f32[32,32], index: 3, kind: output, shape index: {}]  }
   0x1   :  { %v125_v0 = vld [vmem:[%s186_s1] sm:$0xff]   ;;  %v126_v1 = vld [vmem:[%s186_s1 + $0x8] sm:$0xff]   ;;  %v17_v5 = vld [vmem:[%s187_s0 + $0x10] sm:$0xff] }
   0x2   :  { %117 = vmatprep.subr.bf16.mxu0 %v125_v0  ;;  %v15_v2 = vld [vmem:[%s187_s0] sm:$0xff]  ;;  %v16_v3 = vld [vmem:[%s187_s0 + $0x8] sm:$0xff]  ;;  %v18_v6 = vld [vmem:[%s187_s0 + $0x18] sm:$0xff] }
   0x3   :  { %118 = vmatpush3.bf16.msra.mxu0 %v125_v0  ;;  %v19_v4 = vpack.c.bf16 %v16_v3, %v15_v2  ;;  %v20_v7 = vpack.c.bf16 %v18_v6, %v17_v5  ;;  %v108_v8 = vld [vmem:[%s188_s2] ss:$0 sm:$0xff] }
   0x4   :  { %119 = vmatprep.subr.bf16.mxu0 %v126_v1 }
   0x5   :  { %121 = vmatprep.mubr.msk.bf16.mxu0 %vm44_vm0, %v19_v4 }
   0x7   :  { %120 = vmatpush3.bf16.msra.mxu0 %v126_v1 }
   0xa   :  { %122 = vmatmul.mubr.msk.bf16.vlgmr.msra.gmra.mrb[0].mxu0 %vm44_vm0, %v20_v7 }
  0xdd   :  { %v123_v9 = vpop.f32.mrb[0].mxu0 }
  0xde   :  { %v94_v10 = vadd.f32 %v123_v9, %v108_v8  ;;  %v85_v11 = vpop.f32.mrb[1].mxu0 }
  0xdf   :  { %v86_v12 = vadd.f32 %v108_v8, %v85_v11  ;;  %v124_v13 = vpop.f32.mrb[2].mxu0 }
  0xe0   :  { %102 = vst.msk [vmem:[%s189_s3 + $0x10] sm:$0xff] %vm44_vm0, %v94_v10  ;;  %v97_v14 = vadd.f32 %v124_v13, %v108_v8  ;;  %v88_v15 = vpop.f32.mrb[3].mxu0 }
  0xe1   :  { %100 = vst.msk [vmem:[%s189_s3] sm:$0xff] %vm44_vm0, %v86_v12  ;;  %v89_v16 = vadd.f32 %v108_v8, %v88_v15 }
  0xe2   :  { %103 = vst.msk [vmem:[%s189_s3 + $0x18] sm:$0xff] %vm44_vm0, %v97_v14 }
  0xe3   :  { %101 = vst.msk [vmem:[%s189_s3 + $0x8] sm:$0xff] %vm44_vm0, %v89_v16 }

// kernel: _lambda_.15
= control target key start
LH: loop header
LB: loop body
LE: loop exit
PB: predicated region body
PF: predicated region fallthrough
CT: control target
= control target key end

     0   :  { %v111_v0 = vmov 0.0   ;;  %vm112_vm0 = vmmov 0   ;;  %vm41_vm1 = vcmask 261120   ;;  %s154_s1 = inlined_call_operand.vmem [shape: bf16[32,32], index: 1, kind: input, shape index: {}]   ;;  %s155_s0 = inlined_call_operand.vmem [shape: f32[16,32], index: 0, kind: input, shape index: {}]   ;;  %s156_s2 = inlined_call_operand.vmem [shape: f32[1,32], index: 2, kind: input, shape index: {}]   ;;  %s157_s3 = inlined_call_operand.vmem [shape: f32[16,32], index: 3, kind: output, shape index: {}]  }
   0x1   :  { %99 = vmatprep.subr.bf16.mxu0 %v111_v0  ;;  %v109_v1 = vld [vmem:[%s154_s1] sm:$0xff]   ;;  %103 = vmatprep.mubr.msk.bf16.mxu0 %vm112_vm0, %v111_v0  ;;  %v110_v2 = vld [vmem:[%s154_s1 + $0x8] sm:$0xff]  }
   0x2   :  { %100 = vmatpush3.bf16.msra.mxu0 %v109_v1  ;;  %v15_v3 = vld [vmem:[%s155_s0] sm:$0xff]  ;;  %v16_v4 = vld [vmem:[%s155_s0 + $0x8] sm:$0xff] }
   0x3   :  { %101 = vmatprep.subr.bf16.mxu0 %v111_v0  ;;  %v17_v5 = vpack.c.bf16 %v16_v4, %v15_v3  ;;  %v92_v6 = vld [vmem:[%s156_s2] ss:$0 sm:$0xff] }
   0x6   :  { %102 = vmatpush3.bf16.msra.mxu0 %v110_v2 }
   0x9   :  { %104 = vmatmul.mubr.msk.bf16.vlgmr.msra.gmra.mrb[0].mxu0 %vm41_vm1, %v17_v5 }
  0xdc   :  { %v79_v7 = vpop.f32.mrb[0].mxu0 }
  0xdd   :  { %v80_v8 = vadd.f32 %v92_v6, %v79_v7  ;;  %v105_v9 = vpop.f32.mrb[1].mxu0 }
  0xde   :  { %v82_v10 = vpop.f32.mrb[2].mxu0 }
  0xdf   :  { %86 = vst.msk [vmem:[%s157_s3] sm:$0xff] %vm41_vm1, %v80_v8  ;;  %v83_v11 = vadd.f32 %v92_v6, %v82_v10  ;;  %v106_v12 = vpop.f32.mrb[3].mxu0 }
  0xe1   :  { %87 = vst.msk [vmem:[%s157_s3 + $0x8] sm:$0xff] %vm41_vm1, %v83_v11 }

// kernel: _lambda_.14
= control target key start
LH: loop header
LB: loop body
LE: loop exit
PB: predicated region body
PF: predicated region fallthrough
CT: control target
= control target key end

     0   :  { %v704_v0 = vmov 0.0   ;;  %vm705_vm0 = vmmov 0   ;;  %vm65_vm1 = vcmask 261120   ;;  %s926_s3 = inlined_call_operand.vmem [shape: bf16[32,32], index: 3, kind: input, shape index: {}]   ;;  %s927_s0 = inlined_call_operand.vmem [shape: f32[48,32], index: 0, kind: input, shape index: {}]   ;;  %s928_s1 = inlined_call_operand.vmem [shape: bf16[32,32], index: 1, kind: input, shape index: {}]   ;;  %s929_s7 = inlined_call_operand.vmem [shape: bf16[32,32], index: 7, kind: input, shape index: {}]   ;;  %s930_s5 = inlined_call_operand.vmem [shape: bf16[32,32], index: 5, kind: input, shape index: {}]   ;;  %s931_s4 = inlined_call_operand.vmem [shape: f32[1,32], index: 4, kind: input, shape index: {}]   ;;  %s932_s2 = inlined_call_operand.vmem [shape: f32[1,32], index: 2, kind: input, shape index: {}]   ;;  %s933_s8 = inlined_call_operand.vmem [shape: f32[1,32], index: 8, kind: input, shape index: {}]   ;;  %s934_s6 = inlined_call_operand.vmem [shape: f32[1,32], index: 6, kind: input, shape index: {}]   ;;  %s935_s9 = inlined_call_operand.vmem [shape: f32[48,32], index: 9, kind: output, shape index: {}]  }
   0x1   :  { %598 = vmatprep.subr.bf16.mxu1 %v704_v0  ;;  %v648_v1 = vld [vmem:[%s926_s3] sm:$0xff]   ;;  %602 = vmatprep.mubr.msk.bf16.mxu1 %vm705_vm0, %v704_v0  ;;  %v649_v2 = vld [vmem:[%s926_s3 + $0x8] sm:$0xff]   ;;  %v795_v8 = vld [vmem:[%s927_s0 + $0x10] sm:$0xff] }
   0x2   :  { %582 = vmatprep.subr.bf16.mxu0 %v704_v0  ;;  %586 = vmatprep.mubr.msk.bf16.mxu0 %vm705_vm0, %v704_v0  ;;  %v771_v3 = vld [vmem:[%s927_s0] sm:$0xff]  ;;  %v776_v4 = vld [vmem:[%s927_s0 + $0x8] sm:$0xff]  ;;  %v800_v9 = vld [vmem:[%s927_s0 + $0x18] sm:$0xff] }
   0x3   :  { %599 = vmatpush3.bf16.msra.mxu1 %v648_v1  ;;  %v650_v5 = vld [vmem:[%s928_s1] sm:$0xff]   ;;  %v39_v6 = vpack.c.bf16 %v776_v4, %v771_v3  ;;  %v651_v7 = vld [vmem:[%s928_s1 + $0x8] sm:$0xff]   ;;  %v40_v10 = vpack.c.bf16 %v800_v9, %v795_v8 }
   0x4   :  { %600 = vmatprep.subr.bf16.mxu1 %v704_v0  ;;  %583 = vmatpush3.bf16.msra.mxu0 %v650_v5  ;;  %v814_v11 = vld [vmem:[%s927_s0 + $0x20] sm:$0xff]  ;;  %v819_v12 = vld [vmem:[%s927_s0 + $0x28] sm:$0xff] }
   0x5   :  { %584 = vmatprep.subr.bf16.mxu0 %v704_v0  ;;  %v41_v13 = vpack.c.bf16 %v819_v12, %v814_v11  ;;  %v652_v14 = vld [vmem:[%s929_s7] sm:$0xff]   ;;  %v653_v16 = vld [vmem:[%s929_s7 + $0x8] sm:$0xff]  }
   0x6   :  { %v654_v15 = vld [vmem:[%s930_s5] sm:$0xff]   ;;  %v655_v17 = vld [vmem:[%s930_s5 + $0x8] sm:$0xff]  }
   0x7   :  { %601 = vmatpush3.bf16.msra.mxu1 %v649_v2  ;;  %v532_v18 = vld [vmem:[%s931_s4] ss:$0 sm:$0xff] }
   0x8   :  { %630 = vmatprep.subr.bf16.mxu1 %v704_v0  ;;  %585 = vmatpush3.bf16.msra.mxu0 %v651_v7  ;;  %v526_v51 = vld [vmem:[%s932_s2] ss:$0 sm:$0xff] }
   0x9   :  { %614 = vmatprep.subr.bf16.mxu0 %v704_v0 }
   0xa   :  { %603 = vmatmul.mubr.msk.bf16.vlgmr.msra.gmra.mrb[0].mxu1 %vm65_vm1, %v39_v6 }
   0xb   :  { %606 = vmatprep.mubr.msk.bf16.mxu1 %vm705_vm0, %v704_v0  ;;  %587 = vmatmul.mubr.msk.bf16.vlgmr.msra.gmra.mrb[0].mxu0 %vm65_vm1, %v39_v6 }
   0xc   :  { %590 = vmatprep.mubr.msk.bf16.mxu0 %vm705_vm0, %v704_v0  ;;  %631 = vmatpush3.bf16.msra.mxu1 %v652_v14 }
   0xd   :  { %632 = vmatprep.subr.bf16.mxu1 %v704_v0  ;;  %615 = vmatpush3.bf16.msra.mxu0 %v654_v15 }
   0xe   :  { %616 = vmatprep.subr.bf16.mxu0 %v704_v0 }
  0x10   :  { %633 = vmatpush3.bf16.msra.mxu1 %v653_v16 }
  0x11   :  { %617 = vmatpush3.bf16.msra.mxu0 %v655_v17 }
  0x12   :  { %607 = vmatmul.mubr.msk.bf16.gmra.mrb[4].mxu1 %vm65_vm1, %v40_v10 }
  0x13   :  { %610 = vmatprep.mubr.msk.bf16.mxu1 %vm705_vm0, %v704_v0  ;;  %591 = vmatmul.mubr.msk.bf16.gmra.mrb[4].mxu0 %vm65_vm1, %v40_v10 }
  0x14   :  { %594 = vmatprep.mubr.msk.bf16.mxu0 %vm705_vm0, %v704_v0 }
  0x1a   :  { %611 = vmatmul.mubr.msk.bf16.gmra.mrb[8].mxu1 %vm65_vm1, %v41_v13 }
  0x1b   :  { %634 = vmatprep.mubr.msk.bf16.mxu1 %vm705_vm0, %v704_v0  ;;  %595 = vmatmul.mubr.msk.bf16.gmra.mrb[8].mxu0 %vm65_vm1, %v41_v13 }
  0x1c   :  { %618 = vmatprep.mubr.msk.bf16.mxu0 %vm705_vm0, %v704_v0 }
  0xdd   :  { %v195_v19 = vpop.f32.mrb[0].mxu1 }
  0xde   :  { %v196_v20 = vadd.f32 %v532_v18, %v195_v19  ;;  %v604_v21 = vpop.f32.mrb[1].mxu1  ;;  %v109_v26 = vpop.f32.mrb[0].mxu0 }
  0xdf   :  { %v198_v22 = vpop.f32.mrb[2].mxu1  ;;  %v588_v28 = vpop.f32.mrb[1].mxu0  ;;  %v110_v57 = vadd.f32 %v526_v51, %v109_v26 }
  0xe0   :  { %v538_v23 = vmul.f32 -1.442695, %v196_v20  ;;  %v199_v24 = vadd.f32 %v532_v18, %v198_v22  ;;  %v605_v25 = vpop.f32.mrb[3].mxu1  ;;  %v112_v29 = vpop.f32.mrb[2].mxu0 }
  0xe1   :  { %v589_v30 = vpop.f32.mrb[3].mxu0  ;;  %v113_v61 = vadd.f32 %v526_v51, %v112_v29  ;;  %v132_v2 = vmax.f32 %v110_v57, 0.0 }
  0xe2   :  { %656 = vpow2.f32 %v538_v23  ;;  %v539_v27 = vmul.f32 -1.442695, %v199_v24 }
  0xe3   :  { %v133_v6 = vmax.f32 %v113_v61, 0.0 }
  0xe4   :  { %658 = vpow2.f32 %v539_v27 }
  0xe5   :  { %v203_v31 = vpop.f32.mrb[4].mxu1 }
  0xe6   :  { %v204_v32 = vadd.f32 %v532_v18, %v203_v31  ;;  %v608_v33 = vpop.f32.mrb[5].mxu1  ;;  %v117_v38 = vpop.f32.mrb[4].mxu0 }
  0xe7   :  { %v206_v34 = vpop.f32.mrb[6].mxu1  ;;  %v592_v40 = vpop.f32.mrb[5].mxu0  ;;  %v118_v14 = vadd.f32 %v526_v51, %v117_v38 }
  0xe8   :  { %v540_v35 = vmul.f32 -1.442695, %v204_v32  ;;  %v207_v36 = vadd.f32 %v532_v18, %v206_v34  ;;  %v609_v37 = vpop.f32.mrb[7].mxu1  ;;  %v120_v41 = vpop.f32.mrb[6].mxu0 }
  0xe9   :  { %v593_v43 = vpop.f32.mrb[7].mxu0  ;;  %v121_v20 = vadd.f32 %v526_v51, %v120_v41  ;;  %v134_v25 = vmax.f32 %v118_v14, 0.0 }
  0xea   :  { %660 = vpow2.f32 %v540_v35  ;;  %v541_v39 = vmul.f32 -1.442695, %v207_v36 }
  0xeb   :  { %v135_v28 = vmax.f32 %v121_v20, 0.0 }
  0xec   :  { %v657_v42 = vpop.eup %656  ;;  %662 = vpow2.f32 %v541_v39 }
  0xed   :  { %v236_v44 = vadd.f32 1.0, %v657_v42  ;;  %v211_v45 = vpop.f32.mrb[8].mxu1 }
  0xee   :  { %v659_v46 = vpop.eup %658  ;;  %v212_v47 = vadd.f32 %v532_v18, %v211_v45  ;;  %v612_v48 = vpop.f32.mrb[9].mxu1 }
  0xef   :  { %664 = vrcp.f32 %v236_v44  ;;  %v237_v49 = vadd.f32 1.0, %v659_v46  ;;  %v214_v50 = vpop.f32.mrb[10].mxu1  ;;  %v125_v55 = vpop.f32.mrb[8].mxu0 }
  0xf0   :  { %v542_v52 = vmul.f32 -1.442695, %v212_v47  ;;  %v215_v53 = vadd.f32 %v532_v18, %v214_v50  ;;  %v613_v54 = vpop.f32.mrb[11].mxu1  ;;  %v596_v58 = vpop.f32.mrb[9].mxu0  ;;  %v126_v32 = vadd.f32 %v526_v51, %v125_v55 }
  0xf1   :  { %666 = vrcp.f32 %v237_v49  ;;  %v128_v59 = vpop.f32.mrb[10].mxu0 }
  0xf2   :  { %668 = vpow2.f32 %v542_v52  ;;  %v543_v56 = vmul.f32 -1.442695, %v215_v53  ;;  %v597_v62 = vpop.f32.mrb[11].mxu0  ;;  %v136_v39 = vmax.f32 %v126_v32, 0.0 }
  0xf4   :  { %v661_v60 = vpop.eup %660  ;;  %670 = vpow2.f32 %v543_v56 }
  0xf5   :  { %v238_v63 = vadd.f32 1.0, %v661_v60 }
  0xf6   :  { %v663_v1 = vpop.eup %662 }
  0xf7   :  { %672 = vrcp.f32 %v238_v63  ;;  %v239_v5 = vadd.f32 1.0, %v663_v1 }
  0xf9   :  { %v665_v7 = vpop.eup %664  ;;  %674 = vrcp.f32 %v239_v5 }
  0xfa   :  { %v254_v10 = vmul.f32 %v665_v7, %v132_v2  ;;  %v260_v13 = vsub.f32 1.0, %v665_v7 }
  0xfb   :  { %v667_v15 = vpop.eup %666 }
  0xfc   :  { %v669_v16 = vpop.eup %668  ;;  %v266_v17 = vmul.f32 %v260_v13, %v771_v3  ;;  %v255_v18 = vmul.f32 %v667_v15, %v133_v6  ;;  %v261_v19 = vsub.f32 1.0, %v667_v15 }
  0xfd   :  { %v240_v21 = vadd.f32 1.0, %v669_v16 }
  0xfe   :  { %v671_v22 = vpop.eup %670  ;;  %v853_v23 = vadd.f32 %v266_v17, %v254_v10  ;;  %v267_v24 = vmul.f32 %v261_v19, %v776_v4  ;;  %v129_v4 = vadd.f32 %v526_v51, %v128_v59  ;;  %v550_v51 = vld [vmem:[%s933_s8] ss:$0 sm:$0xff] }
  0xff   :  { %676 = vrcp.f32 %v240_v21  ;;  %v241_v26 = vadd.f32 1.0, %v671_v22 }
 0x100   :  { %v856_v27 = vadd.f32 %v267_v24, %v255_v18 }
 0x101   :  { %v673_v29 = vpop.eup %672  ;;  %678 = vrcp.f32 %v241_v26 }
 0x102   :  { %v278_v3 = vpack.c.bf16 %v856_v27, %v853_v23  ;;  %v256_v30 = vmul.f32 %v673_v29, %v134_v25  ;;  %v262_v31 = vsub.f32 1.0, %v673_v29 }
 0x103   :  { %v675_v33 = vpop.eup %674 }
 0x104   :  { %v268_v34 = vmul.f32 %v262_v31, %v795_v8  ;;  %v257_v35 = vmul.f32 %v675_v33, %v135_v28  ;;  %v263_v36 = vsub.f32 1.0, %v675_v33  ;;  %619 = vmatmul.mubr.msk.bf16.vlgmr.msra.gmra.mrb[12].mxu0 %vm65_vm1, %v278_v3  ;;  %635 = vmatmul.mubr.msk.bf16.vlgmr.msra.gmra.mrb[12].mxu1 %vm65_vm1, %v278_v3  ;;  %v137_v8 = vmax.f32 %v129_v4, 0.0  ;;  %v544_v33 = vld [vmem:[%s934_s6] ss:$0 sm:$0xff] }
 0x105   :  { %622 = vmatprep.mubr.msk.bf16.mxu0 %vm705_vm0, %v704_v0  ;;  %638 = vmatprep.mubr.msk.bf16.mxu1 %vm705_vm0, %v704_v0 }
 0x106   :  { %v867_v37 = vadd.f32 %v268_v34, %v256_v30  ;;  %v269_v38 = vmul.f32 %v263_v36, %v800_v9 }
 0x108   :  { %v870_v40 = vadd.f32 %v269_v38, %v257_v35 }
 0x109   :  { %v677_v41 = vpop.eup %676 }
 0x10a   :  { %v279_v42 = vpack.c.bf16 %v870_v40, %v867_v37  ;;  %v258_v43 = vmul.f32 %v677_v41, %v136_v39  ;;  %v264_v44 = vsub.f32 1.0, %v677_v41 }
 0x10b   :  { %v679_v45 = vpop.eup %678 }
 0x10c   :  { %v270_v46 = vmul.f32 %v264_v44, %v814_v11  ;;  %v259_v47 = vmul.f32 %v679_v45, %v137_v8  ;;  %v265_v48 = vsub.f32 1.0, %v679_v45  ;;  %623 = vmatmul.mubr.msk.bf16.gmra.mrb[16].mxu0 %vm65_vm1, %v279_v42  ;;  %639 = vmatmul.mubr.msk.bf16.gmra.mrb[16].mxu1 %vm65_vm1, %v279_v42 }
 0x10d   :  { %626 = vmatprep.mubr.msk.bf16.mxu0 %vm705_vm0, %v704_v0  ;;  %642 = vmatprep.mubr.msk.bf16.mxu1 %vm705_vm0, %v704_v0 }
 0x10e   :  { %v881_v9 = vadd.f32 %v270_v46, %v258_v43  ;;  %v271_v49 = vmul.f32 %v265_v48, %v819_v12 }
 0x110   :  { %v884_v50 = vadd.f32 %v271_v49, %v259_v47 }
 0x112   :  { %v280_v11 = vpack.c.bf16 %v884_v50, %v881_v9 }
 0x114   :  { %627 = vmatmul.mubr.msk.bf16.gmra.mrb[20].mxu0 %vm65_vm1, %v280_v11  ;;  %643 = vmatmul.mubr.msk.bf16.gmra.mrb[20].mxu1 %vm65_vm1, %v280_v11 }
 0x1d7   :  { %v347_v52 = vpop.f32.mrb[12].mxu0  ;;  %v433_v53 = vpop.f32.mrb[12].mxu1 }
 0x1d8   :  { %v434_v0 = vadd.f32 %v550_v51, %v433_v53  ;;  %v620_v54 = vpop.f32.mrb[13].mxu0  ;;  %v636_v55 = vpop.f32.mrb[13].mxu1  ;;  %v348_v36 = vadd.f32 %v544_v33, %v347_v52 }
 0x1d9   :  { %v350_v56 = vpop.f32.mrb[14].mxu0  ;;  %v436_v12 = vpop.f32.mrb[14].mxu1 }
 0x1da   :  { %v556_v57 = vmul.f32 -1.442695, %v434_v0  ;;  %v437_v58 = vadd.f32 %v550_v51, %v436_v12  ;;  %v621_v59 = vpop.f32.mrb[15].mxu0  ;;  %v637_v60 = vpop.f32.mrb[15].mxu1  ;;  %v351_v39 = vadd.f32 %v544_v33, %v350_v56  ;;  %v370_v41 = vmax.f32 %v348_v36, 0.0 }
 0x1dc   :  { %680 = vpow2.f32 %v556_v57  ;;  %v557_v61 = vmul.f32 -1.442695, %v437_v58  ;;  %v371_v45 = vmax.f32 %v351_v39, 0.0 }
 0x1de   :  { %682 = vpow2.f32 %v557_v61 }
 0x1df   :  { %v355_v62 = vpop.f32.mrb[16].mxu0  ;;  %v441_v63 = vpop.f32.mrb[16].mxu1 }
 0x1e0   :  { %v442_v1 = vadd.f32 %v550_v51, %v441_v63  ;;  %v624_v2 = vpop.f32.mrb[17].mxu0  ;;  %v640_v5 = vpop.f32.mrb[17].mxu1 }
 0x1e1   :  { %v358_v6 = vpop.f32.mrb[18].mxu0  ;;  %v444_v7 = vpop.f32.mrb[18].mxu1 }
 0x1e2   :  { %v558_v10 = vmul.f32 -1.442695, %v442_v1  ;;  %v445_v13 = vadd.f32 %v550_v51, %v444_v7  ;;  %v625_v14 = vpop.f32.mrb[19].mxu0  ;;  %v641_v15 = vpop.f32.mrb[19].mxu1  ;;  %v359_v55 = vadd.f32 %v544_v33, %v358_v6 }
 0x1e4   :  { %684 = vpow2.f32 %v558_v10  ;;  %v559_v16 = vmul.f32 -1.442695, %v445_v13 }
 0x1e6   :  { %v681_v17 = vpop.eup %680  ;;  %686 = vpow2.f32 %v559_v16 }
 0x1e7   :  { %v474_v18 = vadd.f32 1.0, %v681_v17  ;;  %v363_v19 = vpop.f32.mrb[20].mxu0  ;;  %v449_v20 = vpop.f32.mrb[20].mxu1 }
 0x1e8   :  { %v683_v21 = vpop.eup %682  ;;  %v450_v22 = vadd.f32 %v550_v51, %v449_v20  ;;  %v628_v24 = vpop.f32.mrb[21].mxu0  ;;  %v364_v1 = vadd.f32 %v544_v33, %v363_v19 }
 0x1e9   :  { %v644_v25 = vpop.f32.mrb[21].mxu1  ;;  %688 = vrcp.f32 %v474_v18  ;;  %v475_v26 = vadd.f32 1.0, %v683_v21  ;;  %v366_v28 = vpop.f32.mrb[22].mxu0 }
 0x1ea   :  { %v452_v29 = vpop.f32.mrb[22].mxu1  ;;  %v560_v3 = vmul.f32 -1.442695, %v450_v22  ;;  %v629_v31 = vpop.f32.mrb[23].mxu0  ;;  %v367_v6 = vadd.f32 %v544_v33, %v366_v28  ;;  %v374_v10 = vmax.f32 %v364_v1, 0.0 }
 0x1eb   :  { %v453_v30 = vadd.f32 %v550_v51, %v452_v29  ;;  %v645_v32 = vpop.f32.mrb[23].mxu1  ;;  %690 = vrcp.f32 %v475_v26  ;;  %v356_v51 = vadd.f32 %v544_v33, %v355_v62 }
 0x1ec   :  { %692 = vpow2.f32 %v560_v3  ;;  %v375_v15 = vmax.f32 %v367_v6, 0.0 }
 0x1ed   :  { %v561_v34 = vmul.f32 -1.442695, %v453_v30  ;;  %v372_v57 = vmax.f32 %v356_v51, 0.0 }
 0x1ee   :  { %v685_v35 = vpop.eup %684 }
 0x1ef   :  { %694 = vpow2.f32 %v561_v34  ;;  %v476_v4 = vadd.f32 1.0, %v685_v35 }
 0x1f0   :  { %v687_v38 = vpop.eup %686 }
 0x1f1   :  { %696 = vrcp.f32 %v476_v4  ;;  %v477_v8 = vadd.f32 1.0, %v687_v38 }
 0x1f3   :  { %v689_v42 = vpop.eup %688  ;;  %698 = vrcp.f32 %v477_v8 }
 0x1f4   :  { %v492_v43 = vmul.f32 %v689_v42, %v370_v41  ;;  %v498_v44 = vsub.f32 1.0, %v689_v42 }
 0x1f5   :  { %v691_v46 = vpop.eup %690 }
 0x1f6   :  { %v693_v47 = vpop.eup %692  ;;  %v504_v48 = vmul.f32 %v498_v44, %v853_v23  ;;  %v493_v49 = vmul.f32 %v691_v46, %v371_v45  ;;  %v499_v11 = vsub.f32 1.0, %v691_v46 }
 0x1f7   :  { %v478_v52 = vadd.f32 1.0, %v693_v47 }
 0x1f8   :  { %v510_v0 = vadd.f32 %v504_v48, %v492_v43  ;;  %v505_v54 = vmul.f32 %v499_v11, %v856_v27  ;;  %v373_v27 = vmax.f32 %v359_v55, 0.0 }
 0x1f9   :  { %v695_v53 = vpop.eup %694  ;;  %700 = vrcp.f32 %v478_v52 }
 0x1fa   :  { %v479_v56 = vadd.f32 1.0, %v695_v53  ;;  %516 = vst.msk [vmem:[%s935_s9] sm:$0xff] %vm65_vm1, %v510_v0  ;;  %v511_v12 = vadd.f32 %v505_v54, %v493_v49 }
 0x1fb   :  { %v697_v58 = vpop.eup %696 }
 0x1fc   :  { %702 = vrcp.f32 %v479_v56  ;;  %517 = vst.msk [vmem:[%s935_s9 + $0x8] sm:$0xff] %vm65_vm1, %v511_v12  ;;  %v494_v23 = vmul.f32 %v697_v58, %v372_v57  ;;  %v500_v59 = vsub.f32 1.0, %v697_v58 }
 0x1fd   :  { %v699_v60 = vpop.eup %698 }
 0x1fe   :  { %v506_v61 = vmul.f32 %v500_v59, %v867_v37  ;;  %v495_v62 = vmul.f32 %v699_v60, %v373_v27  ;;  %v501_v63 = vsub.f32 1.0, %v699_v60 }
 0x200   :  { %v512_v2 = vadd.f32 %v506_v61, %v494_v23  ;;  %v507_v5 = vmul.f32 %v501_v63, %v870_v40 }
 0x202   :  { %518 = vst.msk [vmem:[%s935_s9 + $0x10] sm:$0xff] %vm65_vm1, %v512_v2  ;;  %v513_v7 = vadd.f32 %v507_v5, %v495_v62 }
 0x203   :  { %v701_v13 = vpop.eup %700 }
 0x204   :  { %519 = vst.msk [vmem:[%s935_s9 + $0x18] sm:$0xff] %vm65_vm1, %v513_v7  ;;  %v496_v37 = vmul.f32 %v701_v13, %v374_v10  ;;  %v502_v14 = vsub.f32 1.0, %v701_v13 }
 0x206   :  { %v703_v16 = vpop.eup %702  ;;  %v508_v40 = vmul.f32 %v502_v14, %v881_v9 }
 0x207   :  { %v497_v17 = vmul.f32 %v703_v16, %v375_v15  ;;  %v503_v18 = vsub.f32 1.0, %v703_v16 }
 0x208   :  { %v514_v19 = vadd.f32 %v508_v40, %v496_v37 }
 0x209   :  { %v509_v20 = vmul.f32 %v503_v18, %v884_v50 }
 0x20a   :  { %520 = vst.msk [vmem:[%s935_s9 + $0x20] sm:$0xff] %vm65_vm1, %v514_v19 }
 0x20b   :  { %v515_v21 = vadd.f32 %v509_v20, %v497_v17 }
 0x20d   :  { %521 = vst.msk [vmem:[%s935_s9 + $0x28] sm:$0xff] %vm65_vm1, %v515_v21 }

// kernel: _lambda_.16
= control target key start
LH: loop header
LB: loop body
LE: loop exit
PB: predicated region body
PF: predicated region fallthrough
CT: control target
= control target key end

     0   :  { %s1780_s29 = smov 0   ;;  %s1979_s0 = inlined_call_operand.vmem [shape: f32[2,8,32], index: 0, kind: input, shape index: {}]   ;;  %s1980_s1 = inlined_call_operand.vmem [shape: f32[2,1,8], index: 1, kind: input, shape index: {}]   ;;  %s1981_s2 = inlined_call_operand.vmem [shape: bf16[32,96], index: 2, kind: input, shape index: {}]   ;;  %s1982_s3 = inlined_call_operand.vmem [shape: f32[1,96], index: 3, kind: input, shape index: {}]   ;;  %s1983_s4 = inlined_call_operand.vmem [shape: bf16[32,32], index: 4, kind: input, shape index: {}]   ;;  %s1984_s5 = inlined_call_operand.vmem [shape: f32[1,32], index: 5, kind: input, shape index: {}]   ;;  %s1985_s6 = inlined_call_operand.vmem [shape: f32[1,32], index: 6, kind: input, shape index: {}]   ;;  %s1986_s7 = inlined_call_operand.vmem [shape: f32[1,32], index: 7, kind: input, shape index: {}]   ;;  %s1987_s8 = inlined_call_operand.vmem [shape: bf16[32,64], index: 8, kind: input, shape index: {}]   ;;  %s1988_s9 = inlined_call_operand.vmem [shape: f32[1,64], index: 9, kind: input, shape index: {}]   ;;  %s1989_s10 = inlined_call_operand.vmem [shape: bf16[64,32], index: 10, kind: input, shape index: {}]   ;;  %s1990_s11 = inlined_call_operand.vmem [shape: f32[1,32], index: 11, kind: input, shape index: {}]   ;;  %s1991_s12 = inlined_call_operand.vmem [shape: f32[1,32], index: 12, kind: input, shape index: {}]   ;;  %s1992_s13 = inlined_call_operand.vmem [shape: f32[1,32], index: 13, kind: input, shape index: {}]   ;;  %s1993_s14 = inlined_call_operand.vmem [shape: f32[2,8,32], index: 14, kind: output, shape index: {}]  }
   0x1 LB: > { %s1459_s30 = sadd.s32 4294967295, %s1693_s29   ;;  %p1463_p0 = scmp.ge.s32.totalorder %s1693_s29, 1  ;;  %s1693_s29 = sphi %s1780_s29, %s24_s29  }
   0x2   : > { %p419_p1 = scmp.lt.s32.totalorder %s1693_s29, 3 }
   0x4   : > { %p420_p2 = pnand %p1463_p0, %p419_p1 }
   0x5   : > { %v1791_v0 = vld [vmem:[%s1981_s2] sm:$0xff] (!%p420_p2)   ;;  %s1695_s17 = smov (!%p420_p2), 96   ;;  %v1656_v1 = vld [vmem:[%s1981_s2 + $0x8] sm:$0xff] (!%p420_p2)   ;;  %v1696_v2 = vmov (!%p420_p2), 0.0   ;;  %p466_p3 = scmp.lt.s32.totalorder (!%p420_p2), %s1459_s30, 1  ;;  %vm1697_vm0 = vmmov (!%p420_p2), 0  }
   0x6   : > { %423 = sbr.rel (%p420_p2) target bundleno = 2646 (0xa56), region = 76  ;;  %553 = vrot.lane.b32.xlu0 (!%p420_p2), %v1791_v0, %s1695_s17  ;;  %1537 = vmatprep.subr.bf16.mxu0 (!%p420_p2), %v1696_v2  ;;  %v1801_v3 = vld [vmem:[%s1982_s3] ss:$0 sm:$0xff] (!%p420_p2)  ;;  %vm509_vm1 = vcmask (!%p420_p2), 261120   ;;  %s1698_s26 = smov (!%p420_p2), 120   ;;  %vm661_vm2 = vcmask (!%p420_p2), 64512  }
   0x7   : > { %1538 = vmatpush3.bf16.msra.mxu0 (!%p420_p2), %v1791_v0  ;;  %1545 = vmatprep.subr.bf16.mxu1 (!%p420_p2), %v1696_v2  ;;  %s1699_s27 = smov (!%p420_p2), 112   ;;  %s1700_s28 = smov (!%p420_p2), 104   ;;  %vm723_vm3 = vcmask (!%p420_p2), 1043456   ;;  %vm1113_vm4 = vcmask (!%p420_p2), 130048   ;;  %vm1115_vm5 = vcmask (!%p420_p2), 195584   ;;  %vm1322_vm6 = vcmask (!%p420_p2), 523264  }
   0x8   : > { %1539 = vmatprep.subr.bf16.mxu0 (!%p420_p2), %v1696_v2  ;;  %1541 = vmatprep.mubr.msk.bf16.mxu0 (!%p420_p2), %vm1697_vm0, %v1696_v2  ;;  %s1701_s15 = smov (!%p420_p2), 64   ;;  %s1702_s21 = smov (!%p420_p2), 8  }
   0x9   : > { %1549 = vmatprep.mubr.msk.bf16.mxu1 (!%p420_p2), %vm1697_vm0, %v1696_v2  ;;  %559 = vrot.lane.b32.xlu1 (!%p420_p2), %v1801_v3, %s1695_s17 }
   0xa   : > { %555 = vrot.lane.b32.xlu0 (!%p420_p2), %v1656_v1, %s1695_s17 }
   0xb   : > { %1540 = vmatpush3.bf16.msra.mxu0 (!%p420_p2), %v1656_v1 }
   0xc   : > { %1553 = vmatprep.subr.bf16.mxu0 (!%p420_p2), %v1696_v2 }
   0xd   : > { %s1995_s30 = smov (!%p466_p3, %s1459_s30), 1 }
   0xe   : > { %s1464_s22 = sshll.u32 %s1995_s30, 3  ;;  %s472_s18 = scalar_lea.vmem %s1980_s1, %s1995_s30 }
   0xf   : > { %s469_s25 = scalar_lea.vmem %s1979_s0, %s1464_s22  ;;  %v1472_v34 = vld [vmem:[%s472_s18] ss:$0 sm:$0xff] }
  0x10   : > { %v1819_v4 = vld [vmem:[%s469_s25] sm:$0xff]  ;;  %s1703_s25 = smov 16  }
  0x11   : > { %v1824_v5 = vpack.c.bf16 %v1819_v4, %v1819_v4 }
  0x13   : > { %1542 = vmatmul.mubr.msk.bf16.vlgmr.msra.gmra.mrb[0].mxu0 %vm509_vm1, %v1824_v5 }
  0x14   : > { %1557 = vmatprep.mubr.msk.bf16.mxu0 %vm1697_vm0, %v1696_v2 }
  0x78   : > { %v554_v6 = vpop.permute.xlu0 %553 }
  0x79   : > { %1546 = vmatpush3.bf16.msra.mxu1 %v554_v6 }
  0x7a   : > { %1547 = vmatprep.subr.bf16.mxu1 %v1696_v2 }
  0x7b   : > { %v560_v15 = vpop.permute.xlu1 %559 }
  0x7c   : > { %v556_v7 = vpop.permute.xlu0 %555 }
  0x7d   : > { %1548 = vmatpush3.bf16.msra.mxu1 %v556_v7 }
  0x7e   : > { %1561 = vmatprep.subr.bf16.mxu1 %v1696_v2 }
  0x80   : > { %1550 = vmatmul.mubr.msk.bf16.vlgmr.msra.gmra.mrb[0].mxu1 %vm509_vm1, %v1824_v5 }
  0x81   : > { %1563 = vmatprep.mubr.msk.bf16.mxu1 %vm1697_vm0, %v1696_v2 }
  0xe6   : > { %v547_v8 = vpop.f32.mrb[0].mxu0 }
  0xe7   : > { %v548_v9 = vadd.f32 %v1801_v3, %v547_v8  ;;  %v1543_v10 = vpop.f32.mrb[1].mxu0 }
  0xe8   : > { %v550_v11 = vpop.f32.mrb[2].mxu0 }
  0xe9   : > { %v651_v12 = vmul.f32 0.35355338, %v548_v9  ;;  %v1544_v13 = vpop.f32.mrb[3].mxu0 }
  0xeb   : > { %v652_v14 = vpack.c.bf16 %v651_v12, %v651_v12 }
  0xed   : > { %768 = vrot.lane.b32.xlu0 %v652_v14, %s1698_s26 }
  0xf1   : > { %880 = vrot.lane.b32.xlu0 %v652_v14, %s1699_s27 }
  0xf5   : > { %990 = vrot.lane.b32.xlu0 %v652_v14, %s1700_s28 }
  0xf9   : > { %604 = vrot.lane.b32.xlu0 %v1656_v1, %s1701_s15 }
 0x153   : > { %v596_v16 = vpop.f32.mrb[0].mxu1 }
 0x154   : > { %v597_v17 = vadd.f32 %v596_v16, %v560_v15  ;;  %v1551_v18 = vpop.f32.mrb[1].mxu1 }
 0x155   : > { %v599_v19 = vpop.f32.mrb[2].mxu1 }
 0x156   : > { %v653_v20 = vpack.c.bf16 %v597_v17, %v597_v17  ;;  %v1552_v21 = vpop.f32.mrb[3].mxu1 }
 0x158   : > { %771 = vrot.lane.b32.xlu1 %v653_v20, %s1698_s26  ;;  %v666_v22 = vsel %vm661_vm2, %v653_v20, 0 }
 0x159   : > { %1562 = vmatpush3.bf16.xpose.msra.mxu1 %v666_v22 }
 0x15a   : > { %1573 = vmatprep.subr.bf16.mxu1 %v1696_v2 }
 0x15c   : > { %882 = vrot.lane.b32.xlu1 %v653_v20, %s1699_s27 }
 0x15f   : > { %v769_v23 = vpop.permute.xlu0 %768 }
 0x160   : > { %992 = vrot.lane.b32.xlu1 %v653_v20, %s1700_s28  ;;  %1564 = vmatmul.mubr.msk.bf16.vlgmr.msra.gmra.mrb[4].mxu1 %vm661_vm2, %v652_v14 }
 0x161   : > { %1575 = vmatprep.mubr.msk.bf16.mxu1 %vm1697_vm0, %v1696_v2 }
 0x163   : > { %v881_v27 = vpop.permute.xlu0 %880 }
 0x164   : > { %602 = vrot.lane.b32.xlu1 %v1791_v0, %s1701_s15 }
 0x167   : > { %v991_v30 = vpop.permute.xlu0 %990 }
 0x16b   : > { %v605_v32 = vpop.permute.xlu0 %604 }
 0x1ca   : > { %v772_v24 = vpop.permute.xlu1 %771 }
 0x1cb   : > { %v777_v25 = vsel %vm661_vm2, %v772_v24, 0 }
 0x1cc   : > { %1574 = vmatpush3.bf16.xpose.msra.mxu1 %v777_v25 }
 0x1cd   : > { %1585 = vmatprep.subr.bf16.mxu1 %v1696_v2 }
 0x1ce   : > { %v883_v26 = vpop.permute.xlu1 %882 }
 0x1cf   : > { %v888_v29 = vsel %vm661_vm2, %v883_v26, 0 }
 0x1d2   : > { %v993_v28 = vpop.permute.xlu1 %992 }
 0x1d3   : > { %1576 = vmatmul.mubr.msk.bf16.vlgmr.msra.gmra.mrb[8].mxu1 %vm661_vm2, %v769_v23  ;;  %v998_v33 = vsel %vm661_vm2, %v993_v28, 0 }
 0x1d4   : > { %1586 = vmatpush3.bf16.xpose.msra.mxu1 %v888_v29  ;;  %1587 = vmatprep.mubr.msk.bf16.mxu1 %vm1697_vm0, %v1696_v2 }
 0x1d5   : > { %1597 = vmatprep.subr.bf16.mxu1 %v1696_v2 }
 0x1d6   : > { %v603_v31 = vpop.permute.xlu1 %602 }
 0x1d7   : > { %1554 = vmatpush3.bf16.msra.mxu0 %v603_v31 }
 0x1d8   : > { %1555 = vmatprep.subr.bf16.mxu0 %v1696_v2 }
 0x1db   : > { %1588 = vmatmul.mubr.msk.bf16.vlgmr.msra.gmra.mrb[12].mxu1 %vm661_vm2, %v881_v27  ;;  %1556 = vmatpush3.bf16.msra.mxu0 %v605_v32 }
 0x1dc   : > { %1598 = vmatpush3.bf16.xpose.msra.mxu1 %v998_v33  ;;  %1599 = vmatprep.mubr.msk.bf16.mxu1 %vm1697_vm0, %v1696_v2 }
 0x1dd   : > { %1567 = vmatprep.subr.bf16.mxu0 %v1696_v2  ;;  %1609 = vmatprep.subr.bf16.mxu1 %v1696_v2 }
 0x1de   : > { %1558 = vmatmul.mubr.msk.bf16.vlgmr.msra.gmra.mrb[4].mxu0 %vm509_vm1, %v1824_v5 }
 0x1df   : > { %1569 = vmatprep.mubr.msk.bf16.mxu0 %vm1697_vm0, %v1696_v2 }
 0x1e3   : > { %1600 = vmatmul.mubr.msk.bf16.vlgmr.msra.gmra.mrb[16].mxu1 %vm661_vm2, %v991_v30 }
 0x1e4   : > { %1613 = vmatprep.mubr.msk.bf16.mxu1 %vm1697_vm0, %v1696_v2 }
 0x233   : > { %v702_v35 = vpop.f32.mrb[4].mxu1 }
 0x234   : > { %v703_v36 = vadd.f32 %v1472_v34, %v702_v35  ;;  %v1565_v37 = vpop.f32.mrb[5].mxu1 }
 0x235   : > { %v705_v38 = vpop.f32.mrb[6].mxu1 }
 0x236   : > { %v1566_v39 = vpop.f32.mrb[7].mxu1  ;;  %v708_v40 = vsel %vm661_vm2, %v703_v36, -inf }
 0x237   : > { %709 = vmax.xlane.f32.xlu1 %v708_v40 }
 0x2a6   : > { %v813_v41 = vpop.f32.mrb[8].mxu1 }
 0x2a7   : > { %v814_v42 = vadd.f32 %v1472_v34, %v813_v41  ;;  %v1577_v43 = vpop.f32.mrb[9].mxu1 }
 0x2a8   : > { %v816_v44 = vpop.f32.mrb[10].mxu1 }
 0x2a9   : > { %v1578_v45 = vpop.f32.mrb[11].mxu1  ;;  %v819_v46 = vsel %vm661_vm2, %v814_v42, -inf }
 0x2aa   : > { %820 = vmax.xlane.f32.xlu0 %v819_v46 }
 0x2ae   : > { %v924_v47 = vpop.f32.mrb[12].mxu1 }
 0x2af   : > { %v925_v48 = vadd.f32 %v1472_v34, %v924_v47  ;;  %v1589_v49 = vpop.f32.mrb[13].mxu1 }
 0x2b0   : > { %v927_v50 = vpop.f32.mrb[14].mxu1 }
 0x2b1   : > { %v1590_v51 = vpop.f32.mrb[15].mxu1  ;;  %v930_v52 = vsel %vm661_vm2, %v925_v48, -inf  ;;  %v645_v0 = vpop.f32.mrb[4].mxu0 }
 0x2b2   : > { %931 = vmax.xlane.f32.xlu0 %v930_v52  ;;  %v1559_v1 = vpop.f32.mrb[5].mxu0  ;;  %v1657_v51 = vld [vmem:[%s1983_s4] sm:$0xff]  }
 0x2b3   : > { %v648_v5 = vpop.f32.mrb[6].mxu0  ;;  %1610 = vmatpush3.bf16.msra.mxu1 %v1657_v51 }
 0x2b4   : > { %v1560_v6 = vpop.f32.mrb[7].mxu0  ;;  %1611 = vmatprep.subr.bf16.mxu1 %v1696_v2 }
 0x2b6   : > { %v1034_v53 = vpop.f32.mrb[16].mxu1 }
 0x2b7   : > { %v1035_v54 = vadd.f32 %v1472_v34, %v1034_v53  ;;  %v1601_v55 = vpop.f32.mrb[17].mxu1 }
 0x2b8   : > { %v1037_v56 = vpop.f32.mrb[18].mxu1 }
 0x2b9   : > { %v1602_v57 = vpop.f32.mrb[19].mxu1  ;;  %v1040_v58 = vsel %vm661_vm2, %v1035_v54, -inf  ;;  %v1658_v56 = vld [vmem:[%s1983_s4 + $0x8] sm:$0xff]  }
 0x2ba   : > { %1041 = vmax.xlane.f32.xlu1 %v1040_v58  ;;  %1612 = vmatpush3.bf16.msra.mxu1 %v1658_v56 }
 0x2bb   : > { %1625 = vmatprep.subr.bf16.mxu1 %v1696_v2 }
 0x2c4   : > { %v710_v59 = vpop.xlane.xlu1 %709 }
 0x2c5   : > { %v711_v60 = vsub.f32 %v703_v36, %v710_v59 }
 0x2c7   : > { %v712_v61 = vmul.f32 1.442695, %v711_v60 }
 0x2c8   : > { %608 = vrot.lane.b32.xlu0 %v1801_v3, %s1701_s15  ;;  %s476_s15 = scalar_lea.vmem %s1993_s14, %s1464_s22 }
 0x2c9   : > { %1665 = vpow2.f32 %v712_v61 }
 0x2d3   : > { %v1666_v62 = vpop.eup %1665 }
 0x2d4   : > { %v714_v63 = vsel %vm661_vm2, %v1666_v62, 0.0 }
 0x2d5   : > { %715 = vadd.xlane.f32.xlu1 %v714_v63 }
 0x337   : > { %v821_v7 = vpop.xlane.xlu0 %820 }
 0x338   : > { %v822_v8 = vsub.f32 %v814_v42, %v821_v7 }
 0x33a   : > { %v823_v9 = vmul.f32 1.442695, %v822_v8 }
 0x33c   : > { %1667 = vpow2.f32 %v823_v9 }
 0x33f   : > { %v932_v10 = vpop.xlane.xlu0 %931 }
 0x340   : > { %v933_v11 = vsub.f32 %v925_v48, %v932_v10 }
 0x342   : > { %v934_v12 = vmul.f32 1.442695, %v933_v11  ;;  %v1481_v11 = vld [vmem:[%s1984_s5] ss:$0 sm:$0xff] }
 0x343   : > { %v609_v13 = vpop.permute.xlu0 %608 }
 0x344   : > { %1669 = vpow2.f32 %v934_v12  ;;  %v646_v14 = vadd.f32 %v645_v0, %v609_v13 }
 0x346   : > { %v1668_v3 = vpop.eup %1667  ;;  %v654_v15 = vpack.c.bf16 %v646_v14, %v646_v14 }
 0x347   : > { %v1042_v16 = vpop.xlane.xlu1 %1041  ;;  %v825_v17 = vsel %vm661_vm2, %v1668_v3, 0.0 }
 0x348   : > { %v1043_v18 = vsub.f32 %v1035_v54, %v1042_v16  ;;  %826 = vadd.xlane.f32.xlu1 %v825_v17  ;;  %v725_v19 = vsel %vm723_vm3, %v654_v15, 0  ;;  %942 = vrot.lane.b32.xlu0 %v654_v15, %s1699_s27 }
 0x349   : > { %1568 = vmatpush3.bf16.msra.mxu0 %v725_v19 }
 0x34a   : > { %v1044_v20 = vmul.f32 1.442695, %v1043_v18  ;;  %1579 = vmatprep.subr.bf16.mxu0 %v1696_v2 }
 0x34c   : > { %1671 = vpow2.f32 %v1044_v20  ;;  %1052 = vrot.lane.b32.xlu0 %v654_v15, %s1700_s28 }
 0x34e   : > { %v1670_v21 = vpop.eup %1669 }
 0x34f   : > { %v936_v22 = vsel %vm661_vm2, %v1670_v21, 0.0 }
 0x350   : > { %937 = vadd.xlane.f32.xlu1 %v936_v22 }
 0x356   : > { %v1672_v23 = vpop.eup %1671 }
 0x357   : > { %v1046_v24 = vsel %vm661_vm2, %v1672_v23, 0.0 }
 0x358   : > { %1047 = vadd.xlane.f32.xlu1 %v1046_v24  ;;  %v1660_v24 = vld [vmem:[%s1987_s8 + $0x8] sm:$0xff]  }
 0x362   : > { %v716_v25 = vpop.xlane.xlu1 %715 }
 0x363   : > { %1673 = vrcp.f32 %v716_v25 }
 0x369   : > { %832 = vrot.lane.b32.xlu1 %v654_v15, %s1698_s26  ;;  %s1704_s26 = smov 24  }
 0x36d   : > { %v1674_v26 = vpop.eup %1673 }
 0x36e   : > { %v718_v27 = vmul.f32 %v1674_v26, %v1666_v62 }
 0x370   : > { %v719_v28 = vpack.c.bf16 %v718_v27, %v718_v27 }
 0x372   : > { %1570 = vmatmul.mubr.msk.bf16.vlgmr.msra.gmra.mrb[8].mxu0 %vm661_vm2, %v719_v28  ;;  %v1485_v28 = vld [vmem:[%s1985_s6] ss:$0 sm:$0xff] }
 0x373   : > { %1581 = vmatprep.mubr.msk.bf16.mxu0 %vm1697_vm0, %v1696_v2 }
 0x3ba   : > { %v943_v38 = vpop.permute.xlu0 %942 }
 0x3bb   : > { %v948_v39 = vsel %vm723_vm3, %v943_v38, 0  ;;  %v1487_v38 = vld [vmem:[%s1988_s9] ss:$0 sm:$0xff] }
 0x3be   : > { %v1053_v41 = vpop.permute.xlu0 %1052 }
 0x3bf   : > { %v1058_v44 = vsel %vm723_vm3, %v1053_v41, 0 }
 0x3d5   : > { %v827_v29 = vpop.xlane.xlu1 %826 }
 0x3d6   : > { %1675 = vrcp.f32 %v827_v29 }
 0x3dd   : > { %v938_v30 = vpop.xlane.xlu1 %937 }
 0x3de   : > { %1677 = vrcp.f32 %v938_v30  ;;  %v1486_v30 = vld [vmem:[%s1986_s7] ss:$0 sm:$0xff] }
 0x3e0   : > { %v1676_v31 = vpop.eup %1675 }
 0x3e1   : > { %v829_v33 = vmul.f32 %v1676_v31, %v1668_v3 }
 0x3e3   : > { %v830_v36 = vpack.c.bf16 %v829_v33, %v829_v33 }
 0x3e5   : > { %v1048_v32 = vpop.xlane.xlu1 %1047 }
 0x3e6   : > { %1679 = vrcp.f32 %v1048_v32 }
 0x3e8   : > { %v1678_v37 = vpop.eup %1677 }
 0x3e9   : > { %v833_v34 = vpop.permute.xlu1 %832  ;;  %v940_v40 = vmul.f32 %v1678_v37, %v1670_v21  ;;  %v1664_v37 = vld [vmem:[%s1989_s10 + $0x18] sm:$0xff]  }
 0x3ea   : > { %v838_v35 = vsel %vm723_vm3, %v833_v34, 0  ;;  %v1661_v34 = vld [vmem:[%s1989_s10] sm:$0xff]  }
 0x3eb   : > { %1580 = vmatpush3.bf16.msra.mxu0 %v838_v35  ;;  %v941_v42 = vpack.c.bf16 %v940_v40, %v940_v40  ;;  %v1662_v35 = vld [vmem:[%s1989_s10 + $0x8] sm:$0xff]  }
 0x3ec   : > { %1591 = vmatprep.subr.bf16.mxu0 %v1696_v2 }
 0x3ee   : > { %1582 = vmatmul.mubr.msk.bf16.vlgmr.msra.gmra.mrb[12].mxu0 %vm661_vm2, %v830_v36  ;;  %v1663_v36 = vld [vmem:[%s1989_s10 + $0x10] sm:$0xff]  }
 0x3ef   : > { %1592 = vmatpush3.bf16.msra.mxu0 %v948_v39  ;;  %1593 = vmatprep.mubr.msk.bf16.mxu0 %vm1697_vm0, %v1696_v2 }
 0x3f0   : > { %1603 = vmatprep.subr.bf16.mxu0 %v1696_v2  ;;  %v1680_v43 = vpop.eup %1679 }
 0x3f1   : > { %v1050_v45 = vmul.f32 %v1680_v43, %v1672_v23  ;;  %v1659_v23 = vld [vmem:[%s1987_s8] sm:$0xff]  }
 0x3f3   : > { %v1051_v46 = vpack.c.bf16 %v1050_v45, %v1050_v45 }
 0x3f6   : > { %1594 = vmatmul.mubr.msk.bf16.vlgmr.msra.gmra.mrb[16].mxu0 %vm661_vm2, %v941_v42 }
 0x3f7   : > { %1604 = vmatpush3.bf16.msra.mxu0 %v1058_v44  ;;  %1605 = vmatprep.mubr.msk.bf16.mxu0 %vm1697_vm0, %v1696_v2 }
 0x3f8   : > { %1617 = vmatprep.subr.bf16.mxu0 %v1696_v2 }
 0x3fe   : > { %1606 = vmatmul.mubr.msk.bf16.vlgmr.msra.gmra.mrb[20].mxu0 %vm661_vm2, %v1051_v46 }
 0x3ff   : > { %1621 = vmatprep.mubr.msk.bf16.mxu0 %vm1697_vm0, %v1696_v2  ;;  %1618 = vmatpush3.bf16.msra.mxu0 %v1659_v23 }
 0x400   : > { %1619 = vmatprep.subr.bf16.mxu0 %v1696_v2 }
 0x403   : > { %1620 = vmatpush3.bf16.msra.mxu0 %v1660_v24 }
 0x445   : > { %v761_v47 = vpop.f32.mrb[8].mxu0 }
 0x446   : > { %v1571_v48 = vpop.f32.mrb[9].mxu0 }
 0x447   : > { %v764_v49 = vpop.f32.mrb[10].mxu0 }
 0x448   : > { %v1572_v50 = vpop.f32.mrb[11].mxu0  ;;  %v1491_v49 = vld [vmem:[%s1990_s11] ss:$0 sm:$0xff] }
 0x4c1   : > { %v874_v52 = vpop.f32.mrb[12].mxu0 }
 0x4c2   : > { %1101 = vrot.lane.b32.xlu0 %v874_v52, %s1702_s21  ;;  %v1583_v53 = vpop.f32.mrb[13].mxu0 }
 0x4c3   : > { %v877_v54 = vpop.f32.mrb[14].mxu0 }
 0x4c4   : > { %v1584_v55 = vpop.f32.mrb[15].mxu0 }
 0x4c9   : > { %v984_v57 = vpop.f32.mrb[16].mxu0 }
 0x4ca   : > { %1105 = vrot.lane.b32.xlu0 %v984_v57, %s1703_s25  ;;  %v1595_v58 = vpop.f32.mrb[17].mxu0 }
 0x4cb   : > { %v987_v59 = vpop.f32.mrb[18].mxu0 }
 0x4cc   : > { %v1596_v60 = vpop.f32.mrb[19].mxu0 }
 0x4d1   : > { %v1094_v61 = vpop.f32.mrb[20].mxu0 }
 0x4d2   : > { %1109 = vrot.lane.b32.xlu1 %v1094_v61, %s1704_s26  ;;  %v1607_v62 = vpop.f32.mrb[21].mxu0 }
 0x4d3   : > { %v1097_v63 = vpop.f32.mrb[22].mxu0 }
 0x4d4   : > { %v1608_v0 = vpop.f32.mrb[23].mxu0 }
 0x534   : > { %v1102_v1 = vpop.permute.xlu0 %1101 }
 0x535   : > { %v1112_v6 = vsel %vm661_vm2, %v761_v47, %v1102_v1 }
 0x53c   : > { %v1106_v5 = vpop.permute.xlu0 %1105 }
 0x53d   : > { %v1114_v7 = vsel %vm1113_vm4, %v1112_v6, %v1106_v5  ;;  %v1497_v5 = vld [vmem:[%s1991_s12] ss:$0 sm:$0xff] }
 0x544   : > { %v1110_v8 = vpop.permute.xlu1 %1109 }
 0x545   : > { %v1116_v9 = vsel %vm1115_vm5, %v1114_v7, %v1110_v8  ;;  %v1498_v7 = vld [vmem:[%s1992_s13] ss:$0 sm:$0xff] }
 0x546   : > { %v1117_v10 = vpack.c.bf16 %v1116_v9, %v1116_v9 }
 0x548   : > { %1614 = vmatmul.mubr.msk.bf16.vlgmr.msra.gmra.mrb[20].mxu1 %vm509_vm1, %v1117_v10 }
 0x549   : > { %1633 = vmatprep.mubr.msk.bf16.mxu1 %vm1697_vm0, %v1696_v2  ;;  %1626 = vmatpush3.bf16.msra.mxu1 %v1661_v34 }
 0x54a   : > { %1627 = vmatprep.subr.bf16.mxu1 %v1696_v2 }
 0x54d   : > { %1628 = vmatpush3.bf16.msra.mxu1 %v1662_v35 }
 0x54e   : > { %1629 = vmatprep.subr.bf16.mxu1 %v1696_v2 }
 0x551   : > { %1630 = vmatpush3.bf16.msra.mxu1 %v1663_v36 }
 0x552   : > { %1631 = vmatprep.subr.bf16.mxu1 %v1696_v2 }
 0x555   : > { %1632 = vmatpush3.bf16.msra.mxu1 %v1664_v37 }
 0x61b   : > { %v1173_v12 = vpop.f32.mrb[20].mxu1 }
 0x61c   : > { %v1174_v13 = vadd.f32 %v1481_v11, %v1173_v12  ;;  %v1615_v14 = vpop.f32.mrb[21].mxu1 }
 0x61d   : > { %v1176_v3 = vpop.f32.mrb[22].mxu1 }
 0x61e   : > { %v1616_v15 = vpop.f32.mrb[23].mxu1  ;;  %v1179_v16 = vadd.f32 %v1174_v13, %v1819_v4 }
 0x620   : > { %v1182_v17 = vsel %vm509_vm1, %v1179_v16, 0.0 }
 0x621   : > { %1183 = vadd.xlane.f32.xlu0 %v1182_v17 }
 0x6ae   : > { %v1184_v18 = vpop.xlane.xlu0 %1183 }
 0x6af   : > { %v1186_v19 = vmul.f32 0.03125, %v1184_v18 }
 0x6b1   : > { %v1187_v20 = vsub.f32 %v1179_v16, %v1186_v19 }
 0x6b3   : > { %v1188_v21 = vmul.f32 %v1187_v20, %v1187_v20 }
 0x6b5   : > { %v1189_v22 = vsel %vm509_vm1, %v1188_v21, 0.0 }
 0x6b6   : > { %1190 = vadd.xlane.f32.xlu1 %v1189_v22 }
 0x743   : > { %v1191_v4 = vpop.xlane.xlu1 %1190 }
 0x744   : > { %v1192_v25 = vmul.f32 0.03125, %v1191_v4 }
 0x746   : > { %v1193_v26 = vadd.f32 1e-05, %v1192_v25 }
 0x748   : > { %1681 = vrsqrt.f32 %v1193_v26 }
 0x752   : > { %v1682_v27 = vpop.eup %1681 }
 0x753   : > { %v1195_v29 = vmul.f32 %v1682_v27, %v1187_v20 }
 0x755   : > { %v1202_v31 = vmul.f32 %v1485_v28, %v1195_v29 }
 0x757   : > { %v1209_v32 = vadd.f32 %v1486_v30, %v1202_v31 }
 0x759   : > { %v1224_v33 = vpack.c.bf16 %v1209_v32, %v1209_v32 }
 0x75b   : > { %1622 = vmatmul.mubr.msk.bf16.vlgmr.msra.gmra.mrb[24].mxu0 %vm509_vm1, %v1224_v33 }
 0x82e   : > { %v1280_v39 = vpop.f32.mrb[24].mxu0 }
 0x82f   : > { %v1281_v40 = vadd.f32 %v1487_v38, %v1280_v39  ;;  %v1623_v41 = vpop.f32.mrb[25].mxu0 }
 0x830   : > { %v1283_v42 = vpop.f32.mrb[26].mxu0 }
 0x831   : > { %v1287_v43 = vmul.f32 0.70710677, %v1281_v40  ;;  %v1624_v44 = vpop.f32.mrb[27].mxu0  ;;  %v1286_v46 = vmul.f32 0.5, %v1281_v40 }
 0x833   : > { %1683 = verf.f32 %v1287_v43 }
 0x83d   : > { %v1684_v45 = vpop.eup %1683 }
 0x83e   : > { %v1289_v47 = vadd.f32 1.0, %v1684_v45 }
 0x840   : > { %v1290_v2 = vmul.f32 %v1289_v47, %v1286_v46 }
 0x842   : > { %v1291_v48 = vpack.c.bf16 %v1290_v2, %v1290_v2 }
 0x844   : > { %1634 = vmatmul.mubr.msk.bf16.vlgmr.msra.gmra.mrb[24].mxu1 %vm1322_vm6, %v1291_v48 }
 0x917   : > { %v1360_v50 = vpop.f32.mrb[24].mxu1 }
 0x918   : > { %v1361_v51 = vadd.f32 %v1491_v49, %v1360_v50  ;;  %v1635_v52 = vpop.f32.mrb[25].mxu1 }
 0x919   : > { %v1363_v53 = vpop.f32.mrb[26].mxu1 }
 0x91a   : > { %v1636_v54 = vpop.f32.mrb[27].mxu1  ;;  %v1366_v55 = vadd.f32 %v1361_v51, %v1209_v32 }
 0x91c   : > { %v1369_v56 = vsel %vm509_vm1, %v1366_v55, 0.0 }
 0x91d   : > { %1370 = vadd.xlane.f32.xlu0 %v1369_v56 }
 0x9aa   : > { %v1371_v57 = vpop.xlane.xlu0 %1370 }
 0x9ab   : > { %v1372_v58 = vmul.f32 0.03125, %v1371_v57 }
 0x9ad   : > { %v1373_v59 = vsub.f32 %v1366_v55, %v1372_v58 }
 0x9af   : > { %v1374_v60 = vmul.f32 %v1373_v59, %v1373_v59 }
 0x9b1   : > { %v1375_v61 = vsel %vm509_vm1, %v1374_v60, 0.0 }
 0x9b2   : > { %1376 = vadd.xlane.f32.xlu0 %v1375_v61 }
 0xa3f   : > { %v1377_v62 = vpop.xlane.xlu0 %1376 }
 0xa40   : > { %v1378_v63 = vmul.f32 0.03125, %v1377_v62 }
 0xa42   : > { %v1379_v0 = vadd.f32 1e-05, %v1378_v63 }
 0xa44   : > { %1685 = vrsqrt.f32 %v1379_v0 }
 0xa4e   : > { %v1686_v1 = vpop.eup %1685 }
 0xa4f   : > { %v1381_v6 = vmul.f32 %v1686_v1, %v1373_v59 }
 0xa51   : > { %v1388_v8 = vmul.f32 %v1497_v5, %v1381_v6 }
 0xa53   : > { %v1395_v9 = vadd.f32 %v1498_v7, %v1388_v8 }
 0xa55   : > { %1396 = vst.msk [vmem:[%s476_s15] sm:$0xff] %vm509_vm1, %v1395_v9 }
 0xa56 PF: > { %s24_s29 = sadd.s32 1, %s1693_s29  }
 0xa57   : > { %p21_p4 = scmp.ge.s32.totalorder %s24_s29, 4  }
 0xa59   :  { %23 = sbr.rel (!%p21_p4) target bundleno = 1 (0x1), region = 109 }

// kernel: _lambda_.20
= control target key start
LH: loop header
LB: loop body
LE: loop exit
PB: predicated region body
PF: predicated region fallthrough
CT: control target
= control target key end

     0   :  { %v222_v0 = vmov 0   ;;  %vm114_vm0 = vcmask 261120   ;;  %s318_s1 = inlined_call_operand.vmem [shape: bf16[160,32], index: 1, kind: input, shape index: {}]   ;;  %s319_s0 = inlined_call_operand.vmem [shape: f32[32,160], index: 0, kind: input, shape index: {}]   ;;  %s320_s2 = inlined_call_operand.vmem [shape: f32[1,32], index: 2, kind: input, shape index: {}]   ;;  %s321_s3 = inlined_call_operand.vmem [shape: f32[32,32], index: 3, kind: output, shape index: {}]  }
   0x1   :  { %121 = vmatprep.subr.bf16.mxu0 %v222_v0  ;;  %191 = vmatprep.subr.bf16.mxu1 %v222_v0  ;;  %v212_v1 = vld [vmem:[%s318_s1] sm:$0xff]   ;;  %v213_v2 = vld [vmem:[%s318_s1 + $0x8] sm:$0xff]   ;;  %v214_v3 = vld [vmem:[%s318_s1 + $0x10] sm:$0xff]  }
   0x2   :  { %122 = vmatpush1.bf16.msra.mxu0 %v212_v1  ;;  %201 = vmatpush1.bf16.msra.mxu1 %v212_v1  ;;  %v215_v4 = vld [vmem:[%s318_s1 + $0x18] sm:$0xff]   ;;  %v16_v5 = vld [vmem:[%s319_s0 + $0x8] sm:$0xff]  ;;  %v216_v11 = vld [vmem:[%s318_s1 + $0x20] sm:$0xff]  }
   0x3   :  { %123 = vmatprep.subr.bf16.mxu0 %v222_v0  ;;  %192 = vmatprep.subr.bf16.mxu1 %v222_v0  ;;  %v18_v6 = vld [vmem:[%s319_s0 + $0x18] sm:$0xff]  ;;  %v20_v7 = vld [vmem:[%s319_s0 + $0x28] sm:$0xff]  ;;  %v218_v13 = vld [vmem:[%s318_s1 + $0x30] sm:$0xff]  }
   0x4   :  { %v24_v8 = vpack.c.bf16 %v18_v6, %v16_v5  ;;  %v22_v9 = vld [vmem:[%s319_s0 + $0x38] sm:$0xff]  ;;  %v217_v12 = vld [vmem:[%s318_s1 + $0x28] sm:$0xff]   ;;  %v220_v15 = vld [vmem:[%s318_s1 + $0x40] sm:$0xff]  }
   0x5   :  { %v26_v10 = vpack.c.bf16 %v22_v9, %v20_v7  ;;  %v219_v14 = vld [vmem:[%s318_s1 + $0x38] sm:$0xff]   ;;  %v221_v16 = vld [vmem:[%s318_s1 + $0x48] sm:$0xff]   ;;  %v15_v17 = vld [vmem:[%s319_s0] sm:$0xff] }
   0x6   :  { %124 = vmatpush1.bf16.msra.mxu0 %v213_v2  ;;  %202 = vmatpush1.bf16.msra.mxu1 %v213_v2  ;;  %v17_v18 = vld [vmem:[%s319_s0 + $0x10] sm:$0xff]  ;;  %v19_v19 = vld [vmem:[%s319_s0 + $0x20] sm:$0xff] }
   0x7   :  { %125 = vmatprep.subr.bf16.mxu0 %v222_v0  ;;  %193 = vmatprep.subr.bf16.mxu1 %v222_v0  ;;  %v21_v20 = vld [vmem:[%s319_s0 + $0x30] sm:$0xff]  ;;  %v23_v21 = vpack.c.bf16 %v17_v18, %v15_v17  ;;  %v178_v23 = vld [vmem:[%s320_s2] ss:$0 sm:$0xff] }
   0x8   :  { %189 = vmatprep.mubr.msk.bf16.mxu0 %vm114_vm0, %v24_v8  ;;  %190 = vmatprep.mubr.msk.bf16.mxu1 %vm114_vm0, %v26_v10  ;;  %v25_v22 = vpack.c.bf16 %v21_v20, %v19_v19 }
   0xa   :  { %126 = vmatpush1.bf16.msra.mxu0 %v214_v3  ;;  %203 = vmatpush1.bf16.msra.mxu1 %v214_v3 }
   0xb   :  { %127 = vmatprep.subr.bf16.mxu0 %v222_v0  ;;  %194 = vmatprep.subr.bf16.mxu1 %v222_v0 }
   0xe   :  { %128 = vmatpush1.bf16.msra.mxu0 %v215_v4  ;;  %204 = vmatpush1.bf16.msra.mxu1 %v215_v4 }
   0xf   :  { %129 = vmatprep.subr.bf16.mxu0 %v222_v0  ;;  %195 = vmatprep.subr.bf16.mxu1 %v222_v0 }
  0x12   :  { %130 = vmatpush1.bf16.msra.mxu0 %v216_v11  ;;  %205 = vmatpush1.bf16.msra.mxu1 %v216_v11 }
  0x13   :  { %131 = vmatprep.subr.bf16.mxu0 %v222_v0  ;;  %196 = vmatprep.subr.bf16.mxu1 %v222_v0 }
  0x16   :  { %132 = vmatpush1.bf16.msra.mxu0 %v217_v12  ;;  %206 = vmatpush1.bf16.msra.mxu1 %v217_v12 }
  0x17   :  { %133 = vmatprep.subr.bf16.mxu0 %v222_v0  ;;  %197 = vmatprep.subr.bf16.mxu1 %v222_v0 }
  0x1a   :  { %134 = vmatpush1.bf16.msra.mxu0 %v218_v13  ;;  %207 = vmatpush1.bf16.msra.mxu1 %v218_v13 }
  0x1b   :  { %135 = vmatprep.subr.bf16.mxu0 %v222_v0  ;;  %198 = vmatprep.subr.bf16.mxu1 %v222_v0 }
  0x1e   :  { %136 = vmatpush1.bf16.msra.mxu0 %v219_v14  ;;  %208 = vmatpush1.bf16.msra.mxu1 %v219_v14 }
  0x1f   :  { %137 = vmatprep.subr.bf16.mxu0 %v222_v0  ;;  %199 = vmatprep.subr.bf16.mxu1 %v222_v0 }
  0x22   :  { %138 = vmatpush1.bf16.msra.mxu0 %v220_v15  ;;  %209 = vmatpush1.bf16.msra.mxu1 %v220_v15 }
  0x23   :  { %139 = vmatprep.subr.bf16.mxu0 %v222_v0  ;;  %200 = vmatprep.subr.bf16.mxu1 %v222_v0 }
  0x26   :  { %140 = vmatpush1.bf16.msra.mxu0 %v221_v16  ;;  %210 = vmatpush1.bf16.msra.mxu1 %v221_v16 }
  0x29   :  { %154 = vmatmul.mubr.bf16.vlgmr.msra.gmra.mrb[0].mxu0 %v23_v21  ;;  %162 = vmatmul.mubr.bf16.vlgmr.msra.gmra.mrb[0].mxu1 %v25_v22 }
  0xfc   :  { %v155_v24 = vpop.f32.mrb[0].mxu0  ;;  %v163_v25 = vpop.f32.mrb[0].mxu1 }
  0xfd   :  { %v156_v26 = vadd.f32 %v178_v23, %v155_v24  ;;  %v164_v27 = vadd.f32 %v178_v23, %v163_v25  ;;  %v157_v28 = vpop.f32.mrb[1].mxu0  ;;  %v165_v29 = vpop.f32.mrb[1].mxu1 }
  0xfe   :  { %v158_v30 = vpop.f32.mrb[2].mxu0  ;;  %v166_v31 = vpop.f32.mrb[2].mxu1 }
  0xff   :  { %170 = vst.msk [vmem:[%s321_s3] sm:$0xff] %vm114_vm0, %v156_v26  ;;  %172 = vst.msk [vmem:[%s321_s3 + $0x10] sm:$0xff] %vm114_vm0, %v164_v27  ;;  %v159_v32 = vadd.f32 %v178_v23, %v158_v30  ;;  %v167_v33 = vadd.f32 %v178_v23, %v166_v31  ;;  %v160_v34 = vpop.f32.mrb[3].mxu0  ;;  %v168_v35 = vpop.f32.mrb[3].mxu1 }
 0x101   :  { %171 = vst.msk [vmem:[%s321_s3 + $0x8] sm:$0xff] %vm114_vm0, %v159_v32  ;;  %173 = vst.msk [vmem:[%s321_s3 + $0x18] sm:$0xff] %vm114_vm0, %v167_v33 }

// kernel: _lambda_.19
= control target key start
LH: loop header
LB: loop body
LE: loop exit
PB: predicated region body
PF: predicated region fallthrough
CT: control target
= control target key end

     0   :  { %s1669_s21 = smov 0   ;;  %s1854_s0 = inlined_call_operand.vmem [shape: f32[2,8,32], index: 0, kind: input, shape index: {}]   ;;  %s1855_s1 = inlined_call_operand.vmem [shape: f32[2,2,8,32], index: 1, kind: input, shape index: {}]   ;;  %s1856_s2 = inlined_call_operand.vmem [shape: f32[1,32], index: 2, kind: input, shape index: {}]   ;;  %s1857_s3 = inlined_call_operand.vmem [shape: f32[1,32], index: 3, kind: input, shape index: {}]   ;;  %s1858_s4 = inlined_call_operand.vmem [shape: f32[1,32], index: 4, kind: input, shape index: {}]   ;;  %s1859_s5 = inlined_call_operand.vmem [shape: f32[2,2,8,160], index: 5, kind: output, shape index: {0}]   ;;  %s1860_s6 = inlined_call_operand.vmem [shape: f32[2,8,160], index: 6, kind: output, shape index: {1}]  }
   0x1 LB: > { %s1461_s22 = sadd.s32 4294967295, %s1627_s21   ;;  %p1465_p0 = scmp.ge.s32.totalorder %s1627_s21, 1  ;;  %s1627_s21 = sphi %s1669_s21, %s17_s21  }
   0x2   : > { %p224_p1 = scmp.lt.s32.totalorder %s1627_s21, 3 }
   0x4   : > { %p225_p2 = pnand %p1465_p0, %p224_p1 }
   0x5   : > { %p263_p3 = scmp.lt.s32.totalorder (!%p225_p2), %s1461_s22, 1  ;;  %v377_v0 = vlaneseq (!%p225_p2)  ;;  %v1629_v1 = vmov (!%p225_p2), 0.0   ;;  %vm1630_vm0 = vmmov (!%p225_p2), 0   ;;  %vm300_vm1 = vcmask (!%p225_p2), 261120   ;;  %v1473_v3 = vld [vmem:[%s1858_s4] ss:$0 sm:$0xff] (!%p225_p2) }
   0x6   : > { %228 = sbr.rel (%p225_p2) target bundleno = 1850 (0x73a), region = 40  ;;  %1527 = vmatprep.subr.mxu0 (!%p225_p2), %v1629_v1  ;;  %1529 = vmatprep.mubr.msk.f32.mxu0 (!%p225_p2), %vm1630_vm0, %v1629_v1  ;;  %v284_v5 = vld [vmem:[%s1857_s3] sm:$0x1] (!%p225_p2)  ;;  %vm537_vm2 = vcmask (!%p225_p2), 64512   ;;  %s1631_s17 = smov (!%p225_p2), 32   ;;  %vm861_vm3 = vcmask (!%p225_p2), 523264  }
   0x7   : > { %1532 = vmatprep.subr.mxu1 (!%p225_p2), %v1629_v1  ;;  %1534 = vmatprep.mubr.msk.f32.mxu1 (!%p225_p2), %vm1630_vm0, %v1629_v1  ;;  %v378_v2 = vshrl.u32 (!%p225_p2), %v377_v0, 7  ;;  %v1474_v7 = vld [vmem:[%s1856_s2] ss:$0 sm:$0xff] (!%p225_p2)  ;;  %s1632_s18 = smov (!%p225_p2), 64   ;;  %s1633_s19 = smov (!%p225_p2), 96   ;;  %vm863_vm4 = vcmask (!%p225_p2), 785408  }
   0x9   : > { %v379_v4 = vsub.s32 (!%p225_p2), 0, %v378_v2 }
   0xb   : > { %v380_v8 = vrot.slane (!%p225_p2), %v284_v5, %v379_v4 }
   0xd   : > { %s1862_s22 = smov (!%p263_p3, %s1461_s22), 1 }
   0xe   : > { %s1466_s23 = sshll.u32 %s1862_s22, 3  ;;  %s1498_s26 = sshll.u32 %s1862_s22, 4 }
   0xf   : > { %s266_s29 = scalar_lea.vmem %s1854_s0, %s1466_s23  ;;  %s1701_s10 = scalar_lea.vmem %s1855_s1, %s1498_s26 }
  0x10   : > { %v1703_v6 = vld [vmem:[%s266_s29] sm:$0xff]  ;;  %v1768_v46 = vld [vmem:[%s1701_s10 + $0x8] sm:$0xff]  ;;  %s1499_s13 = sshll.u32 %s1862_s22, 5  ;;  %s281_s24 = scalar_lea.vmem %s1860_s6, %s1498_s26 }
  0x11   : > { %1528 = vmatpush3.xpose.msk.msra.mxu0 %vm300_vm1, %v1703_v6  ;;  %v292_v9 = vmul.f32 %v1473_v3, %v1703_v6  ;;  %v1713_v10 = vld [vmem:[%s1701_s10] sm:$0xff]  ;;  %v382_v11 = vmul.f32 %v380_v8, %v1703_v6  ;;  %s1792_s16 = scalar_lea.vmem %s1859_s5, %s1499_s13 }
  0x12   : > { %1537 = vmatprep.subr.mxu0 %v1629_v1 }
  0x13   : > { %v1716_v12 = vadd.f32 %v1474_v7, %v292_v9  ;;  %v383_v13 = vsel %vm300_vm1, %v382_v11, 0.0 }
  0x14   : > { %1530 = vmatmul.mubr.msk.f32.vlgmr.msra.gmra.mrb[0].mxu0 %vm300_vm1, %v284_v5  ;;  %384 = vadd.xlane.f32.xlu0 %v383_v13 }
  0x15   : > { %1533 = vmatpush3.xpose.msk.msra.mxu1 %vm300_vm1, %v1716_v12  ;;  %1538 = vmatpush3.xpose.msk.msra.mxu0 %vm300_vm1, %v1713_v10 }
  0x16   : > { %1539 = vmatprep.mubr.msk.f32.mxu0 %vm1630_vm0, %v1629_v1  ;;  %1542 = vmatprep.subr.mxu1 %v1629_v1 }
  0x17   : > { %1547 = vmatprep.subr.mxu0 %v1629_v1 }
  0x18   : > { %1535 = vmatmul.mubr.msk.f32.vlgmr.msra.gmra.mrb[0].mxu1 %vm300_vm1, %v1713_v10  ;;  %1540 = vmatmul.mubr.msk.f32.vlgmr.msra.gmra.mrb[2].mxu0 %vm300_vm1, %v1716_v12 }
  0x19   : > { %1543 = vmatpush3.msra.mxu1 %v1703_v6  ;;  %1544 = vmatprep.mubr.msk.f32.mxu1 %vm1630_vm0, %v1629_v1 }
  0x1a   : > { %1548 = vmatpush3.msra.mxu0 %v1713_v10  ;;  %1549 = vmatprep.mubr.msk.f32.mxu0 %vm1630_vm0, %v1629_v1 }
  0x1b   : > { %1552 = vmatprep.subr.mxu1 %v1629_v1  ;;  %1557 = vmatprep.subr.mxu0 %v1629_v1 }
  0xa1   : > { %v1740_v16 = vpop.xlane.xlu0 %384 }
  0xe7   : > { %v373_v14 = vpop.f32.mrb[0].mxu0 }
  0xe8   : > { %v1531_v15 = vpop.f32.mrb[1].mxu0  ;;  %v1742_v17 = vrot.slane %v373_v14, %v379_v4 }
  0xeb   : > { %v463_v18 = vpop.f32.mrb[0].mxu1  ;;  %v533_v19 = vpop.f32.mrb[2].mxu0 }
  0xec   : > { %v464_v20 = vadd.f32 %v463_v18, %v1742_v17  ;;  %v534_v21 = vadd.f32 %v533_v19, %v1740_v16  ;;  %v1541_v22 = vpop.f32.mrb[3].mxu0  ;;  %v1536_v23 = vpop.f32.mrb[1].mxu1 }
  0xee   : > { %v549_v24 = vsel %vm537_vm2, %v534_v21, -inf  ;;  %v538_v25 = vsel %vm537_vm2, %v464_v20, -inf }
  0xef   : > { %550 = vmax.xlane.f32.xlu0 %v549_v24  ;;  %539 = vmax.xlane.f32.xlu1 %v538_v25 }
 0x17c   : > { %v551_v26 = vpop.xlane.xlu0 %550  ;;  %v540_v27 = vpop.xlane.xlu1 %539 }
 0x17d   : > { %v552_v28 = vsub.f32 %v534_v21, %v551_v26  ;;  %v541_v29 = vsub.f32 %v464_v20, %v540_v27 }
 0x17f   : > { %v553_v30 = vmul.f32 1.442695, %v552_v28  ;;  %v542_v31 = vmul.f32 1.442695, %v541_v29 }
 0x181   : > { %1605 = vpow2.f32 %v553_v30 }
 0x182   : > { %1607 = vpow2.f32 %v542_v31 }
 0x18b   : > { %v1606_v32 = vpop.eup %1605 }
 0x18c   : > { %v1608_v33 = vpop.eup %1607  ;;  %v555_v34 = vsel %vm537_vm2, %v1606_v32, 0.0 }
 0x18d   : > { %556 = vadd.xlane.f32.xlu1 %v555_v34  ;;  %v544_v35 = vsel %vm537_vm2, %v1608_v33, 0.0 }
 0x18e   : > { %545 = vadd.xlane.f32.xlu0 %v544_v35 }
 0x21a   : > { %v557_v36 = vpop.xlane.xlu1 %556 }
 0x21b   : > { %v546_v37 = vpop.xlane.xlu0 %545  ;;  %1609 = vrcp.f32 %v557_v36 }
 0x21c   : > { %1611 = vrcp.f32 %v546_v37 }
 0x225   : > { %v1610_v38 = vpop.eup %1609 }
 0x226   : > { %v1612_v39 = vpop.eup %1611  ;;  %v559_v40 = vmul.f32 %v1610_v38, %v1606_v32 }
 0x227   : > { %v548_v41 = vmul.f32 %v1612_v39, %v1608_v33 }
 0x228   : > { %1550 = vmatmul.mubr.msk.f32.vlgmr.msra.gmra.mrb[4].mxu0 %vm537_vm2, %v559_v40 }
 0x229   : > { %1545 = vmatmul.mubr.msk.f32.vlgmr.msra.gmra.mrb[2].mxu1 %vm537_vm2, %v548_v41  ;;  %1559 = vmatprep.mubr.msk.f32.mxu0 %vm1630_vm0, %v1629_v1 }
 0x22a   : > { %1554 = vmatprep.mubr.msk.f32.mxu1 %vm1630_vm0, %v1629_v1 }
 0x2fb   : > { %v1756_v42 = vpop.f32.mrb[4].mxu0 }
 0x2fc   : > { %v629_v43 = vpop.f32.mrb[2].mxu1  ;;  %v1551_v44 = vpop.f32.mrb[5].mxu0  ;;  %1553 = vmatpush3.msra.mxu1 %v1756_v42 }
 0x2fd   : > { %v1546_v45 = vpop.f32.mrb[3].mxu1  ;;  %1558 = vmatpush3.msra.mxu0 %v629_v43  ;;  %1555 = vmatmul.mubr.msk.f32.vlgmr.msra.gmra.mrb[4].mxu1 %vm537_vm2, %v548_v41  ;;  %v846_v8 = vmul.f32 %v629_v43, %v1713_v10 }
 0x2fe   : > { %1560 = vmatmul.mubr.msk.f32.vlgmr.msra.gmra.mrb[6].mxu0 %vm537_vm2, %v559_v40  ;;  %1562 = vmatprep.subr.mxu1 %v1629_v1 }
 0x2ff   : > { %1567 = vmatprep.subr.mxu0 %v1629_v1  ;;  %1564 = vmatprep.mubr.msk.f32.mxu1 %vm1630_vm0, %v1629_v1 }
 0x300   : > { %1569 = vmatprep.mubr.msk.f32.mxu0 %vm1630_vm0, %v1629_v1 }
 0x303   : > { %1563 = vmatpush3.xpose.msk.msra.mxu1 %vm300_vm1, %v1716_v12 }
 0x304   : > { %1568 = vmatpush3.xpose.msk.msra.mxu0 %vm300_vm1, %v1768_v46  ;;  %1572 = vmatprep.subr.mxu1 %v1629_v1 }
 0x305   : > { %1577 = vmatprep.subr.mxu0 %v1629_v1 }
 0x306   : > { %1565 = vmatmul.mubr.msk.f32.vlgmr.msra.gmra.mrb[6].mxu1 %vm300_vm1, %v1768_v46 }
 0x307   : > { %1570 = vmatmul.mubr.msk.f32.vlgmr.msra.gmra.mrb[8].mxu0 %vm300_vm1, %v1716_v12  ;;  %1573 = vmatpush3.msra.mxu1 %v1703_v6 }
 0x308   : > { %1574 = vmatprep.mubr.msk.f32.mxu1 %vm1630_vm0, %v1629_v1  ;;  %1578 = vmatpush3.msra.mxu0 %v1768_v46 }
 0x309   : > { %1579 = vmatprep.mubr.msk.f32.mxu0 %vm1630_vm0, %v1629_v1  ;;  %1582 = vmatprep.subr.mxu1 %v1629_v1 }
 0x30a   : > { %1587 = vmatprep.subr.mxu0 %v1629_v1 }
 0x3d0   : > { %v772_v47 = vpop.f32.mrb[4].mxu1 }
 0x3d1   : > { %v847_v48 = vmul.f32 %v772_v47, %v1713_v10  ;;  %v1795_v49 = vpop.f32.mrb[6].mxu0  ;;  %v1556_v50 = vpop.f32.mrb[5].mxu1 }
 0x3d2   : > { %v1561_v51 = vpop.f32.mrb[7].mxu0 }
 0x3d3   : > { %866 = vst.msk [vmem:[%s1792_s16 + $0x8] sm:$0xff] %vm300_vm1, %v847_v48 }
 0x3d9   : > { %v938_v52 = vpop.f32.mrb[6].mxu1 }
 0x3da   : > { %v939_v53 = vadd.f32 %v938_v52, %v1742_v17  ;;  %v1008_v54 = vpop.f32.mrb[8].mxu0  ;;  %v1566_v55 = vpop.f32.mrb[7].mxu1 }
 0x3db   : > { %v1009_v56 = vadd.f32 %v1008_v54, %v1740_v16  ;;  %v1571_v57 = vpop.f32.mrb[9].mxu0 }
 0x3dc   : > { %v1012_v58 = vsel %vm537_vm2, %v939_v53, -inf }
 0x3dd   : > { %v1023_v59 = vsel %vm537_vm2, %v1009_v56, -inf  ;;  %1013 = vmax.xlane.f32.xlu1 %v1012_v58 }
 0x3de   : > { %1024 = vmax.xlane.f32.xlu0 %v1023_v59 }
 0x46a   : > { %v1014_v60 = vpop.xlane.xlu1 %1013 }
 0x46b   : > { %v1025_v61 = vpop.xlane.xlu0 %1024  ;;  %v1015_v62 = vsub.f32 %v939_v53, %v1014_v60 }
 0x46c   : > { %v1026_v63 = vsub.f32 %v1009_v56, %v1025_v61 }
 0x46d   : > { %v1016_v0 = vmul.f32 1.442695, %v1015_v62 }
 0x46e   : > { %v1027_v2 = vmul.f32 1.442695, %v1026_v63 }
 0x46f   : > { %1613 = vpow2.f32 %v1016_v0 }
 0x470   : > { %1615 = vpow2.f32 %v1027_v2 }
 0x479   : > { %v1614_v3 = vpop.eup %1613 }
 0x47a   : > { %v1616_v4 = vpop.eup %1615  ;;  %v1018_v5 = vsel %vm537_vm2, %v1614_v3, 0.0 }
 0x47b   : > { %v1029_v7 = vsel %vm537_vm2, %v1616_v4, 0.0  ;;  %1019 = vadd.xlane.f32.xlu1 %v1018_v5 }
 0x47c   : > { %1030 = vadd.xlane.f32.xlu0 %v1029_v7 }
 0x48c   : > { %849 = vrot.lane.b32.xlu1 %v629_v43, %s1631_s17 }
 0x490   : > { %853 = vrot.lane.b32.xlu1 %v772_v47, %s1632_s18 }
 0x494   : > { %857 = vrot.lane.b32.xlu1 %v846_v8, %s1633_s19 }
 0x508   : > { %v1020_v9 = vpop.xlane.xlu1 %1019 }
 0x509   : > { %v1031_v11 = vpop.xlane.xlu0 %1030  ;;  %1617 = vrcp.f32 %v1020_v9 }
 0x50a   : > { %1619 = vrcp.f32 %v1031_v11 }
 0x50c   : > { %v850_v12 = vpop.permute.xlu1 %849 }
 0x50d   : > { %v860_v15 = vsel %vm300_vm1, %v1713_v10, %v850_v12 }
 0x510   : > { %v854_v13 = vpop.permute.xlu1 %853 }
 0x511   : > { %v862_v18 = vsel %vm861_vm3, %v860_v15, %v854_v13 }
 0x513   : > { %v1618_v14 = vpop.eup %1617 }
 0x514   : > { %v1620_v16 = vpop.eup %1619  ;;  %v1022_v17 = vmul.f32 %v1618_v14, %v1614_v3  ;;  %v858_v19 = vpop.permute.xlu1 %857 }
 0x515   : > { %v1033_v20 = vmul.f32 %v1620_v16, %v1616_v4  ;;  %v864_v21 = vsel %vm863_vm4, %v862_v18, %v858_v19 }
 0x516   : > { %865 = vst [vmem:[%s1792_s16] sm:$0xff] %v864_v21  ;;  %1575 = vmatmul.mubr.msk.f32.vlgmr.msra.gmra.mrb[8].mxu1 %vm537_vm2, %v1022_v17 }
 0x517   : > { %1580 = vmatmul.mubr.msk.f32.vlgmr.msra.gmra.mrb[10].mxu0 %vm537_vm2, %v1033_v20  ;;  %1584 = vmatprep.mubr.msk.f32.mxu1 %vm1630_vm0, %v1629_v1 }
 0x518   : > { %1589 = vmatprep.mubr.msk.f32.mxu0 %vm1630_vm0, %v1629_v1 }
 0x5e9   : > { %v1103_v10 = vpop.f32.mrb[8].mxu1 }
 0x5ea   : > { %v1176_v22 = vpop.f32.mrb[10].mxu0  ;;  %1323 = vrot.lane.b32.xlu0 %v1103_v10, %s1631_s17  ;;  %v1576_v23 = vpop.f32.mrb[9].mxu1  ;;  %1588 = vmatpush3.msra.mxu0 %v1103_v10  ;;  %v1320_v33 = vmul.f32 %v1768_v46, %v1103_v10 }
 0x5eb   : > { %v1340_v24 = vmax.f32 %v1756_v42, %v1176_v22  ;;  %v1581_v25 = vpop.f32.mrb[11].mxu0  ;;  %1583 = vmatpush3.msra.mxu1 %v1176_v22  ;;  %1590 = vmatmul.mubr.msk.f32.vlgmr.msra.gmra.mrb[12].mxu0 %vm537_vm2, %v1033_v20 }
 0x5ec   : > { %1585 = vmatmul.mubr.msk.f32.vlgmr.msra.gmra.mrb[10].mxu1 %vm537_vm2, %v1022_v17 }
 0x5ed   : > { %1345 = vrot.lane.b32.xlu1 %v1340_v24, %s1631_s17  ;;  %v1342_v32 = vmul.f32 %v1340_v24, %v1703_v6 }
 0x65c   : > { %v1324_v35 = vpop.permute.xlu0 %1323 }
 0x65d   : > { %v1334_v40 = vsel %vm300_vm1, %v1768_v46, %v1324_v35 }
 0x65f   : > { %v1346_v34 = vpop.permute.xlu1 %1345 }
 0x660   : > { %v1356_v37 = vsel %vm300_vm1, %v1703_v6, %v1346_v34 }
 0x6be   : > { %v1316_v26 = vpop.f32.mrb[12].mxu0 }
 0x6bf   : > { %v1246_v1 = vpop.f32.mrb[10].mxu1  ;;  %v1341_v27 = vmax.f32 %v1795_v49, %v1316_v26  ;;  %v1591_v28 = vpop.f32.mrb[13].mxu0 }
 0x6c0   : > { %v1321_v29 = vmul.f32 %v1768_v46, %v1246_v1  ;;  %1327 = vrot.lane.b32.xlu1 %v1246_v1, %s1632_s18  ;;  %v1586_v30 = vpop.f32.mrb[11].mxu1 }
 0x6c1   : > { %v1343_v31 = vmul.f32 %v1341_v27, %v1703_v6  ;;  %1349 = vrot.lane.b32.xlu0 %v1341_v27, %s1632_s18 }
 0x6c2   : > { %1495 = vst.msk [vmem:[%s1792_s16 + $0x18] sm:$0xff] %vm300_vm1, %v1321_v29 }
 0x6c3   : > { %1360 = vst.msk [vmem:[%s281_s24 + $0x8] sm:$0xff] %vm300_vm1, %v1343_v31 }
 0x6c4   : > { %1353 = vrot.lane.b32.xlu1 %v1342_v32, %s1633_s19 }
 0x6c5   : > { %1331 = vrot.lane.b32.xlu0 %v1320_v33, %s1633_s19 }
 0x732   : > { %v1328_v36 = vpop.permute.xlu1 %1327 }
 0x733   : > { %v1350_v38 = vpop.permute.xlu0 %1349  ;;  %v1335_v42 = vsel %vm861_vm3, %v1334_v40, %v1328_v36 }
 0x734   : > { %v1357_v39 = vsel %vm861_vm3, %v1356_v37, %v1350_v38 }
 0x736   : > { %v1354_v41 = vpop.permute.xlu1 %1353 }
 0x737   : > { %v1358_v43 = vsel %vm863_vm4, %v1357_v39, %v1354_v41  ;;  %v1332_v44 = vpop.permute.xlu0 %1331 }
 0x738   : > { %1359 = vst [vmem:[%s281_s24] sm:$0xff] %v1358_v43  ;;  %v1336_v45 = vsel %vm863_vm4, %v1335_v42, %v1332_v44 }
 0x739   : > { %1494 = vst [vmem:[%s1792_s16 + $0x10] sm:$0xff] %v1336_v45 }
 0x73a PF: > { %s17_s21 = sadd.s32 1, %s1627_s21  }
 0x73b   : > { %p14_p4 = scmp.ge.s32.totalorder %s17_s21, 4  }
 0x73d   :  { %16 = sbr.rel (!%p14_p4) target bundleno = 1 (0x1), region = 87 }

// kernel: _lambda_.18
= control target key start
LH: loop header
LB: loop body
LE: loop exit
PB: predicated region body
PF: predicated region fallthrough
CT: control target
= control target key end

     0   :  { %s1780_s29 = smov 0   ;;  %s1979_s0 = inlined_call_operand.vmem [shape: f32[4,8,32], index: 0, kind: input, shape index: {}]   ;;  %s1980_s1 = inlined_call_operand.vmem [shape: f32[4,1,8], index: 1, kind: input, shape index: {}]   ;;  %s1981_s2 = inlined_call_operand.vmem [shape: bf16[32,96], index: 2, kind: input, shape index: {}]   ;;  %s1982_s3 = inlined_call_operand.vmem [shape: f32[1,96], index: 3, kind: input, shape index: {}]   ;;  %s1983_s4 = inlined_call_operand.vmem [shape: bf16[32,32], index: 4, kind: input, shape index: {}]   ;;  %s1984_s5 = inlined_call_operand.vmem [shape: f32[1,32], index: 5, kind: input, shape index: {}]   ;;  %s1985_s6 = inlined_call_operand.vmem [shape: f32[1,32], index: 6, kind: input, shape index: {}]   ;;  %s1986_s7 = inlined_call_operand.vmem [shape: f32[1,32], index: 7, kind: input, shape index: {}]   ;;  %s1987_s8 = inlined_call_operand.vmem [shape: bf16[32,64], index: 8, kind: input, shape index: {}]   ;;  %s1988_s9 = inlined_call_operand.vmem [shape: f32[1,64], index: 9, kind: input, shape index: {}]   ;;  %s1989_s10 = inlined_call_operand.vmem [shape: bf16[64,32], index: 10, kind: input, shape index: {}]   ;;  %s1990_s11 = inlined_call_operand.vmem [shape: f32[1,32], index: 11, kind: input, shape index: {}]   ;;  %s1991_s12 = inlined_call_operand.vmem [shape: f32[1,32], index: 12, kind: input, shape index: {}]   ;;  %s1992_s13 = inlined_call_operand.vmem [shape: f32[1,32], index: 13, kind: input, shape index: {}]   ;;  %s1993_s14 = inlined_call_operand.vmem [shape: f32[4,8,32], index: 14, kind: output, shape index: {}]  }
   0x1 LB: > { %s1459_s30 = sadd.s32 4294967295, %s1693_s29   ;;  %p1463_p0 = scmp.ge.s32.totalorder %s1693_s29, 1  ;;  %s1693_s29 = sphi %s1780_s29, %s24_s29  }
   0x2   : > { %p419_p1 = scmp.lt.s32.totalorder %s1693_s29, 5 }
   0x4   : > { %p420_p2 = pnand %p1463_p0, %p419_p1 }
   0x5   : > { %v1791_v0 = vld [vmem:[%s1981_s2] sm:$0xff] (!%p420_p2)   ;;  %s1695_s17 = smov (!%p420_p2), 96   ;;  %v1656_v1 = vld [vmem:[%s1981_s2 + $0x8] sm:$0xff] (!%p420_p2)   ;;  %v1696_v2 = vmov (!%p420_p2), 0.0   ;;  %p466_p3 = scmp.lt.s32.totalorder (!%p420_p2), %s1459_s30, 3  ;;  %vm1697_vm0 = vmmov (!%p420_p2), 0  }
   0x6   : > { %423 = sbr.rel (%p420_p2) target bundleno = 2646 (0xa56), region = 76  ;;  %553 = vrot.lane.b32.xlu0 (!%p420_p2), %v1791_v0, %s1695_s17  ;;  %1537 = vmatprep.subr.bf16.mxu0 (!%p420_p2), %v1696_v2  ;;  %v1801_v3 = vld [vmem:[%s1982_s3] ss:$0 sm:$0xff] (!%p420_p2)  ;;  %vm509_vm1 = vcmask (!%p420_p2), 261120   ;;  %s1698_s26 = smov (!%p420_p2), 120   ;;  %vm661_vm2 = vcmask (!%p420_p2), 64512  }
   0x7   : > { %1538 = vmatpush3.bf16.msra.mxu0 (!%p420_p2), %v1791_v0  ;;  %1545 = vmatprep.subr.bf16.mxu1 (!%p420_p2), %v1696_v2  ;;  %s1699_s27 = smov (!%p420_p2), 112   ;;  %s1700_s28 = smov (!%p420_p2), 104   ;;  %vm723_vm3 = vcmask (!%p420_p2), 1043456   ;;  %vm1113_vm4 = vcmask (!%p420_p2), 130048   ;;  %vm1115_vm5 = vcmask (!%p420_p2), 195584   ;;  %vm1322_vm6 = vcmask (!%p420_p2), 523264  }
   0x8   : > { %1539 = vmatprep.subr.bf16.mxu0 (!%p420_p2), %v1696_v2  ;;  %1541 = vmatprep.mubr.msk.bf16.mxu0 (!%p420_p2), %vm1697_vm0, %v1696_v2  ;;  %s1701_s15 = smov (!%p420_p2), 64   ;;  %s1702_s21 = smov (!%p420_p2), 8  }
   0x9   : > { %1549 = vmatprep.mubr.msk.bf16.mxu1 (!%p420_p2), %vm1697_vm0, %v1696_v2  ;;  %559 = vrot.lane.b32.xlu1 (!%p420_p2), %v1801_v3, %s1695_s17 }
   0xa   : > { %555 = vrot.lane.b32.xlu0 (!%p420_p2), %v1656_v1, %s1695_s17 }
   0xb   : > { %1540 = vmatpush3.bf16.msra.mxu0 (!%p420_p2), %v1656_v1 }
   0xc   : > { %1553 = vmatprep.subr.bf16.mxu0 (!%p420_p2), %v1696_v2 }
   0xd   : > { %s1995_s30 = smov (!%p466_p3, %s1459_s30), 3 }
   0xe   : > { %s1464_s22 = sshll.u32 %s1995_s30, 3  ;;  %s472_s18 = scalar_lea.vmem %s1980_s1, %s1995_s30 }
   0xf   : > { %s469_s25 = scalar_lea.vmem %s1979_s0, %s1464_s22  ;;  %v1472_v34 = vld [vmem:[%s472_s18] ss:$0 sm:$0xff] }
  0x10   : > { %v1819_v4 = vld [vmem:[%s469_s25] sm:$0xff]  ;;  %s1703_s25 = smov 16  }
  0x11   : > { %v1824_v5 = vpack.c.bf16 %v1819_v4, %v1819_v4 }
  0x13   : > { %1542 = vmatmul.mubr.msk.bf16.vlgmr.msra.gmra.mrb[0].mxu0 %vm509_vm1, %v1824_v5 }
  0x14   : > { %1557 = vmatprep.mubr.msk.bf16.mxu0 %vm1697_vm0, %v1696_v2 }
  0x78   : > { %v554_v6 = vpop.permute.xlu0 %553 }
  0x79   : > { %1546 = vmatpush3.bf16.msra.mxu1 %v554_v6 }
  0x7a   : > { %1547 = vmatprep.subr.bf16.mxu1 %v1696_v2 }
  0x7b   : > { %v560_v15 = vpop.permute.xlu1 %559 }
  0x7c   : > { %v556_v7 = vpop.permute.xlu0 %555 }
  0x7d   : > { %1548 = vmatpush3.bf16.msra.mxu1 %v556_v7 }
  0x7e   : > { %1561 = vmatprep.subr.bf16.mxu1 %v1696_v2 }
  0x80   : > { %1550 = vmatmul.mubr.msk.bf16.vlgmr.msra.gmra.mrb[0].mxu1 %vm509_vm1, %v1824_v5 }
  0x81   : > { %1563 = vmatprep.mubr.msk.bf16.mxu1 %vm1697_vm0, %v1696_v2 }
  0xe6   : > { %v547_v8 = vpop.f32.mrb[0].mxu0 }
  0xe7   : > { %v548_v9 = vadd.f32 %v1801_v3, %v547_v8  ;;  %v1543_v10 = vpop.f32.mrb[1].mxu0 }
  0xe8   : > { %v550_v11 = vpop.f32.mrb[2].mxu0 }
  0xe9   : > { %v651_v12 = vmul.f32 0.35355338, %v548_v9  ;;  %v1544_v13 = vpop.f32.mrb[3].mxu0 }
  0xeb   : > { %v652_v14 = vpack.c.bf16 %v651_v12, %v651_v12 }
  0xed   : > { %768 = vrot.lane.b32.xlu0 %v652_v14, %s1698_s26 }
  0xf1   : > { %880 = vrot.lane.b32.xlu0 %v652_v14, %s1699_s27 }
  0xf5   : > { %990 = vrot.lane.b32.xlu0 %v652_v14, %s1700_s28 }
  0xf9   : > { %604 = vrot.lane.b32.xlu0 %v1656_v1, %s1701_s15 }
 0x153   : > { %v596_v16 = vpop.f32.mrb[0].mxu1 }
 0x154   : > { %v597_v17 = vadd.f32 %v596_v16, %v560_v15  ;;  %v1551_v18 = vpop.f32.mrb[1].mxu1 }
 0x155   : > { %v599_v19 = vpop.f32.mrb[2].mxu1 }
 0x156   : > { %v653_v20 = vpack.c.bf16 %v597_v17, %v597_v17  ;;  %v1552_v21 = vpop.f32.mrb[3].mxu1 }
 0x158   : > { %771 = vrot.lane.b32.xlu1 %v653_v20, %s1698_s26  ;;  %v666_v22 = vsel %vm661_vm2, %v653_v20, 0 }
 0x159   : > { %1562 = vmatpush3.bf16.xpose.msra.mxu1 %v666_v22 }
 0x15a   : > { %1573 = vmatprep.subr.bf16.mxu1 %v1696_v2 }
 0x15c   : > { %882 = vrot.lane.b32.xlu1 %v653_v20, %s1699_s27 }
 0x15f   : > { %v769_v23 = vpop.permute.xlu0 %768 }
 0x160   : > { %992 = vrot.lane.b32.xlu1 %v653_v20, %s1700_s28  ;;  %1564 = vmatmul.mubr.msk.bf16.vlgmr.msra.gmra.mrb[4].mxu1 %vm661_vm2, %v652_v14 }
 0x161   : > { %1575 = vmatprep.mubr.msk.bf16.mxu1 %vm1697_vm0, %v1696_v2 }
 0x163   : > { %v881_v27 = vpop.permute.xlu0 %880 }
 0x164   : > { %602 = vrot.lane.b32.xlu1 %v1791_v0, %s1701_s15 }
 0x167   : > { %v991_v30 = vpop.permute.xlu0 %990 }
 0x16b   : > { %v605_v32 = vpop.permute.xlu0 %604 }
 0x1ca   : > { %v772_v24 = vpop.permute.xlu1 %771 }
 0x1cb   : > { %v777_v25 = vsel %vm661_vm2, %v772_v24, 0 }
 0x1cc   : > { %1574 = vmatpush3.bf16.xpose.msra.mxu1 %v777_v25 }
 0x1cd   : > { %1585 = vmatprep.subr.bf16.mxu1 %v1696_v2 }
 0x1ce   : > { %v883_v26 = vpop.permute.xlu1 %882 }
 0x1cf   : > { %v888_v29 = vsel %vm661_vm2, %v883_v26, 0 }
 0x1d2   : > { %v993_v28 = vpop.permute.xlu1 %992 }
 0x1d3   : > { %1576 = vmatmul.mubr.msk.bf16.vlgmr.msra.gmra.mrb[8].mxu1 %vm661_vm2, %v769_v23  ;;  %v998_v33 = vsel %vm661_vm2, %v993_v28, 0 }
 0x1d4   : > { %1586 = vmatpush3.bf16.xpose.msra.mxu1 %v888_v29  ;;  %1587 = vmatprep.mubr.msk.bf16.mxu1 %vm1697_vm0, %v1696_v2 }
 0x1d5   : > { %1597 = vmatprep.subr.bf16.mxu1 %v1696_v2 }
 0x1d6   : > { %v603_v31 = vpop.permute.xlu1 %602 }
 0x1d7   : > { %1554 = vmatpush3.bf16.msra.mxu0 %v603_v31 }
 0x1d8   : > { %1555 = vmatprep.subr.bf16.mxu0 %v1696_v2 }
 0x1db   : > { %1588 = vmatmul.mubr.msk.bf16.vlgmr.msra.gmra.mrb[12].mxu1 %vm661_vm2, %v881_v27  ;;  %1556 = vmatpush3.bf16.msra.mxu0 %v605_v32 }
 0x1dc   : > { %1598 = vmatpush3.bf16.xpose.msra.mxu1 %v998_v33  ;;  %1599 = vmatprep.mubr.msk.bf16.mxu1 %vm1697_vm0, %v1696_v2 }
 0x1dd   : > { %1567 = vmatprep.subr.bf16.mxu0 %v1696_v2  ;;  %1609 = vmatprep.subr.bf16.mxu1 %v1696_v2 }
 0x1de   : > { %1558 = vmatmul.mubr.msk.bf16.vlgmr.msra.gmra.mrb[4].mxu0 %vm509_vm1, %v1824_v5 }
 0x1df   : > { %1569 = vmatprep.mubr.msk.bf16.mxu0 %vm1697_vm0, %v1696_v2 }
 0x1e3   : > { %1600 = vmatmul.mubr.msk.bf16.vlgmr.msra.gmra.mrb[16].mxu1 %vm661_vm2, %v991_v30 }
 0x1e4   : > { %1613 = vmatprep.mubr.msk.bf16.mxu1 %vm1697_vm0, %v1696_v2 }
 0x233   : > { %v702_v35 = vpop.f32.mrb[4].mxu1 }
 0x234   : > { %v703_v36 = vadd.f32 %v1472_v34, %v702_v35  ;;  %v1565_v37 = vpop.f32.mrb[5].mxu1 }
 0x235   : > { %v705_v38 = vpop.f32.mrb[6].mxu1 }
 0x236   : > { %v1566_v39 = vpop.f32.mrb[7].mxu1  ;;  %v708_v40 = vsel %vm661_vm2, %v703_v36, -inf }
 0x237   : > { %709 = vmax.xlane.f32.xlu1 %v708_v40 }
 0x2a6   : > { %v813_v41 = vpop.f32.mrb[8].mxu1 }
 0x2a7   : > { %v814_v42 = vadd.f32 %v1472_v34, %v813_v41  ;;  %v1577_v43 = vpop.f32.mrb[9].mxu1 }
 0x2a8   : > { %v816_v44 = vpop.f32.mrb[10].mxu1 }
 0x2a9   : > { %v1578_v45 = vpop.f32.mrb[11].mxu1  ;;  %v819_v46 = vsel %vm661_vm2, %v814_v42, -inf }
 0x2aa   : > { %820 = vmax.xlane.f32.xlu0 %v819_v46 }
 0x2ae   : > { %v924_v47 = vpop.f32.mrb[12].mxu1 }
 0x2af   : > { %v925_v48 = vadd.f32 %v1472_v34, %v924_v47  ;;  %v1589_v49 = vpop.f32.mrb[13].mxu1 }
 0x2b0   : > { %v927_v50 = vpop.f32.mrb[14].mxu1 }
 0x2b1   : > { %v1590_v51 = vpop.f32.mrb[15].mxu1  ;;  %v930_v52 = vsel %vm661_vm2, %v925_v48, -inf  ;;  %v645_v0 = vpop.f32.mrb[4].mxu0 }
 0x2b2   : > { %931 = vmax.xlane.f32.xlu0 %v930_v52  ;;  %v1559_v1 = vpop.f32.mrb[5].mxu0  ;;  %v1657_v51 = vld [vmem:[%s1983_s4] sm:$0xff]  }
 0x2b3   : > { %v648_v5 = vpop.f32.mrb[6].mxu0  ;;  %1610 = vmatpush3.bf16.msra.mxu1 %v1657_v51 }
 0x2b4   : > { %v1560_v6 = vpop.f32.mrb[7].mxu0  ;;  %1611 = vmatprep.subr.bf16.mxu1 %v1696_v2 }
 0x2b6   : > { %v1034_v53 = vpop.f32.mrb[16].mxu1 }
 0x2b7   : > { %v1035_v54 = vadd.f32 %v1472_v34, %v1034_v53  ;;  %v1601_v55 = vpop.f32.mrb[17].mxu1 }
 0x2b8   : > { %v1037_v56 = vpop.f32.mrb[18].mxu1 }
 0x2b9   : > { %v1602_v57 = vpop.f32.mrb[19].mxu1  ;;  %v1040_v58 = vsel %vm661_vm2, %v1035_v54, -inf  ;;  %v1658_v56 = vld [vmem:[%s1983_s4 + $0x8] sm:$0xff]  }
 0x2ba   : > { %1041 = vmax.xlane.f32.xlu1 %v1040_v58  ;;  %1612 = vmatpush3.bf16.msra.mxu1 %v1658_v56 }
 0x2bb   : > { %1625 = vmatprep.subr.bf16.mxu1 %v1696_v2 }
 0x2c4   : > { %v710_v59 = vpop.xlane.xlu1 %709 }
 0x2c5   : > { %v711_v60 = vsub.f32 %v703_v36, %v710_v59 }
 0x2c7   : > { %v712_v61 = vmul.f32 1.442695, %v711_v60 }
 0x2c8   : > { %608 = vrot.lane.b32.xlu0 %v1801_v3, %s1701_s15  ;;  %s476_s15 = scalar_lea.vmem %s1993_s14, %s1464_s22 }
 0x2c9   : > { %1665 = vpow2.f32 %v712_v61 }
 0x2d3   : > { %v1666_v62 = vpop.eup %1665 }
 0x2d4   : > { %v714_v63 = vsel %vm661_vm2, %v1666_v62, 0.0 }
 0x2d5   : > { %715 = vadd.xlane.f32.xlu1 %v714_v63 }
 0x337   : > { %v821_v7 = vpop.xlane.xlu0 %820 }
 0x338   : > { %v822_v8 = vsub.f32 %v814_v42, %v821_v7 }
 0x33a   : > { %v823_v9 = vmul.f32 1.442695, %v822_v8 }
 0x33c   : > { %1667 = vpow2.f32 %v823_v9 }
 0x33f   : > { %v932_v10 = vpop.xlane.xlu0 %931 }
 0x340   : > { %v933_v11 = vsub.f32 %v925_v48, %v932_v10 }
 0x342   : > { %v934_v12 = vmul.f32 1.442695, %v933_v11  ;;  %v1481_v11 = vld [vmem:[%s1984_s5] ss:$0 sm:$0xff] }
 0x343   : > { %v609_v13 = vpop.permute.xlu0 %608 }
 0x344   : > { %1669 = vpow2.f32 %v934_v12  ;;  %v646_v14 = vadd.f32 %v645_v0, %v609_v13 }
 0x346   : > { %v1668_v3 = vpop.eup %1667  ;;  %v654_v15 = vpack.c.bf16 %v646_v14, %v646_v14 }
 0x347   : > { %v1042_v16 = vpop.xlane.xlu1 %1041  ;;  %v825_v17 = vsel %vm661_vm2, %v1668_v3, 0.0 }
 0x348   : > { %v1043_v18 = vsub.f32 %v1035_v54, %v1042_v16  ;;  %826 = vadd.xlane.f32.xlu1 %v825_v17  ;;  %v725_v19 = vsel %vm723_vm3, %v654_v15, 0  ;;  %942 = vrot.lane.b32.xlu0 %v654_v15, %s1699_s27 }
 0x349   : > { %1568 = vmatpush3.bf16.msra.mxu0 %v725_v19 }
 0x34a   : > { %v1044_v20 = vmul.f32 1.442695, %v1043_v18  ;;  %1579 = vmatprep.subr.bf16.mxu0 %v1696_v2 }
 0x34c   : > { %1671 = vpow2.f32 %v1044_v20  ;;  %1052 = vrot.lane.b32.xlu0 %v654_v15, %s1700_s28 }
 0x34e   : > { %v1670_v21 = vpop.eup %1669 }
 0x34f   : > { %v936_v22 = vsel %vm661_vm2, %v1670_v21, 0.0 }
 0x350   : > { %937 = vadd.xlane.f32.xlu1 %v936_v22 }
 0x356   : > { %v1672_v23 = vpop.eup %1671 }
 0x357   : > { %v1046_v24 = vsel %vm661_vm2, %v1672_v23, 0.0 }
 0x358   : > { %1047 = vadd.xlane.f32.xlu1 %v1046_v24  ;;  %v1660_v24 = vld [vmem:[%s1987_s8 + $0x8] sm:$0xff]  }
 0x362   : > { %v716_v25 = vpop.xlane.xlu1 %715 }
 0x363   : > { %1673 = vrcp.f32 %v716_v25 }
 0x369   : > { %832 = vrot.lane.b32.xlu1 %v654_v15, %s1698_s26  ;;  %s1704_s26 = smov 24  }
 0x36d   : > { %v1674_v26 = vpop.eup %1673 }
 0x36e   : > { %v718_v27 = vmul.f32 %v1674_v26, %v1666_v62 }
 0x370   : > { %v719_v28 = vpack.c.bf16 %v718_v27, %v718_v27 }
 0x372   : > { %1570 = vmatmul.mubr.msk.bf16.vlgmr.msra.gmra.mrb[8].mxu0 %vm661_vm2, %v719_v28  ;;  %v1485_v28 = vld [vmem:[%s1985_s6] ss:$0 sm:$0xff] }
 0x373   : > { %1581 = vmatprep.mubr.msk.bf16.mxu0 %vm1697_vm0, %v1696_v2 }
 0x3ba   : > { %v943_v38 = vpop.permute.xlu0 %942 }
 0x3bb   : > { %v948_v39 = vsel %vm723_vm3, %v943_v38, 0  ;;  %v1487_v38 = vld [vmem:[%s1988_s9] ss:$0 sm:$0xff] }
 0x3be   : > { %v1053_v41 = vpop.permute.xlu0 %1052 }
 0x3bf   : > { %v1058_v44 = vsel %vm723_vm3, %v1053_v41, 0 }
 0x3d5   : > { %v827_v29 = vpop.xlane.xlu1 %826 }
 0x3d6   : > { %1675 = vrcp.f32 %v827_v29 }
 0x3dd   : > { %v938_v30 = vpop.xlane.xlu1 %937 }
 0x3de   : > { %1677 = vrcp.f32 %v938_v30  ;;  %v1486_v30 = vld [vmem:[%s1986_s7] ss:$0 sm:$0xff] }
 0x3e0   : > { %v1676_v31 = vpop.eup %1675 }
 0x3e1   : > { %v829_v33 = vmul.f32 %v1676_v31, %v1668_v3 }
 0x3e3   : > { %v830_v36 = vpack.c.bf16 %v829_v33, %v829_v33 }
 0x3e5   : > { %v1048_v32 = vpop.xlane.xlu1 %1047 }
 0x3e6   : > { %1679 = vrcp.f32 %v1048_v32 }
 0x3e8   : > { %v1678_v37 = vpop.eup %1677 }
 0x3e9   : > { %v833_v34 = vpop.permute.xlu1 %832  ;;  %v940_v40 = vmul.f32 %v1678_v37, %v1670_v21  ;;  %v1664_v37 = vld [vmem:[%s1989_s10 + $0x18] sm:$0xff]  }
 0x3ea   : > { %v838_v35 = vsel %vm723_vm3, %v833_v34, 0  ;;  %v1661_v34 = vld [vmem:[%s1989_s10] sm:$0xff]  }
 0x3eb   : > { %1580 = vmatpush3.bf16.msra.mxu0 %v838_v35  ;;  %v941_v42 = vpack.c.bf16 %v940_v40, %v940_v40  ;;  %v1662_v35 = vld [vmem:[%s1989_s10 + $0x8] sm:$0xff]  }
 0x3ec   : > { %1591 = vmatprep.subr.bf16.mxu0 %v1696_v2 }
 0x3ee   : > { %1582 = vmatmul.mubr.msk.bf16.vlgmr.msra.gmra.mrb[12].mxu0 %vm661_vm2, %v830_v36  ;;  %v1663_v36 = vld [vmem:[%s1989_s10 + $0x10] sm:$0xff]  }
 0x3ef   : > { %1592 = vmatpush3.bf16.msra.mxu0 %v948_v39  ;;  %1593 = vmatprep.mubr.msk.bf16.mxu0 %vm1697_vm0, %v1696_v2 }
 0x3f0   : > { %1603 = vmatprep.subr.bf16.mxu0 %v1696_v2  ;;  %v1680_v43 = vpop.eup %1679 }
 0x3f1   : > { %v1050_v45 = vmul.f32 %v1680_v43, %v1672_v23  ;;  %v1659_v23 = vld [vmem:[%s1987_s8] sm:$0xff]  }
 0x3f3   : > { %v1051_v46 = vpack.c.bf16 %v1050_v45, %v1050_v45 }
 0x3f6   : > { %1594 = vmatmul.mubr.msk.bf16.vlgmr.msra.gmra.mrb[16].mxu0 %vm661_vm2, %v941_v42 }
 0x3f7   : > { %1604 = vmatpush3.bf16.msra.mxu0 %v1058_v44  ;;  %1605 = vmatprep.mubr.msk.bf16.mxu0 %vm1697_vm0, %v1696_v2 }
 0x3f8   : > { %1617 = vmatprep.subr.bf16.mxu0 %v1696_v2 }
 0x3fe   : > { %1606 = vmatmul.mubr.msk.bf16.vlgmr.msra.gmra.mrb[20].mxu0 %vm661_vm2, %v1051_v46 }
 0x3ff   : > { %1621 = vmatprep.mubr.msk.bf16.mxu0 %vm1697_vm0, %v1696_v2  ;;  %1618 = vmatpush3.bf16.msra.mxu0 %v1659_v23 }
 0x400   : > { %1619 = vmatprep.subr.bf16.mxu0 %v1696_v2 }
 0x403   : > { %1620 = vmatpush3.bf16.msra.mxu0 %v1660_v24 }
 0x445   : > { %v761_v47 = vpop.f32.mrb[8].mxu0 }
 0x446   : > { %v1571_v48 = vpop.f32.mrb[9].mxu0 }
 0x447   : > { %v764_v49 = vpop.f32.mrb[10].mxu0 }
 0x448   : > { %v1572_v50 = vpop.f32.mrb[11].mxu0  ;;  %v1491_v49 = vld [vmem:[%s1990_s11] ss:$0 sm:$0xff] }
 0x4c1   : > { %v874_v52 = vpop.f32.mrb[12].mxu0 }
 0x4c2   : > { %1101 = vrot.lane.b32.xlu0 %v874_v52, %s1702_s21  ;;  %v1583_v53 = vpop.f32.mrb[13].mxu0 }
 0x4c3   : > { %v877_v54 = vpop.f32.mrb[14].mxu0 }
 0x4c4   : > { %v1584_v55 = vpop.f32.mrb[15].mxu0 }
 0x4c9   : > { %v984_v57 = vpop.f32.mrb[16].mxu0 }
 0x4ca   : > { %1105 = vrot.lane.b32.xlu0 %v984_v57, %s1703_s25  ;;  %v1595_v58 = vpop.f32.mrb[17].mxu0 }
 0x4cb   : > { %v987_v59 = vpop.f32.mrb[18].mxu0 }
 0x4cc   : > { %v1596_v60 = vpop.f32.mrb[19].mxu0 }
 0x4d1   : > { %v1094_v61 = vpop.f32.mrb[20].mxu0 }
 0x4d2   : > { %1109 = vrot.lane.b32.xlu1 %v1094_v61, %s1704_s26  ;;  %v1607_v62 = vpop.f32.mrb[21].mxu0 }
 0x4d3   : > { %v1097_v63 = vpop.f32.mrb[22].mxu0 }
 0x4d4   : > { %v1608_v0 = vpop.f32.mrb[23].mxu0 }
 0x534   : > { %v1102_v1 = vpop.permute.xlu0 %1101 }
 0x535   : > { %v1112_v6 = vsel %vm661_vm2, %v761_v47, %v1102_v1 }
 0x53c   : > { %v1106_v5 = vpop.permute.xlu0 %1105 }
 0x53d   : > { %v1114_v7 = vsel %vm1113_vm4, %v1112_v6, %v1106_v5  ;;  %v1497_v5 = vld [vmem:[%s1991_s12] ss:$0 sm:$0xff] }
 0x544   : > { %v1110_v8 = vpop.permute.xlu1 %1109 }
 0x545   : > { %v1116_v9 = vsel %vm1115_vm5, %v1114_v7, %v1110_v8  ;;  %v1498_v7 = vld [vmem:[%s1992_s13] ss:$0 sm:$0xff] }
 0x546   : > { %v1117_v10 = vpack.c.bf16 %v1116_v9, %v1116_v9 }
 0x548   : > { %1614 = vmatmul.mubr.msk.bf16.vlgmr.msra.gmra.mrb[20].mxu1 %vm509_vm1, %v1117_v10 }
 0x549   : > { %1633 = vmatprep.mubr.msk.bf16.mxu1 %vm1697_vm0, %v1696_v2  ;;  %1626 = vmatpush3.bf16.msra.mxu1 %v1661_v34 }
 0x54a   : > { %1627 = vmatprep.subr.bf16.mxu1 %v1696_v2 }
 0x54d   : > { %1628 = vmatpush3.bf16.msra.mxu1 %v1662_v35 }
 0x54e   : > { %1629 = vmatprep.subr.bf16.mxu1 %v1696_v2 }
 0x551   : > { %1630 = vmatpush3.bf16.msra.mxu1 %v1663_v36 }
 0x552   : > { %1631 = vmatprep.subr.bf16.mxu1 %v1696_v2 }
 0x555   : > { %1632 = vmatpush3.bf16.msra.mxu1 %v1664_v37 }
 0x61b   : > { %v1173_v12 = vpop.f32.mrb[20].mxu1 }
 0x61c   : > { %v1174_v13 = vadd.f32 %v1481_v11, %v1173_v12  ;;  %v1615_v14 = vpop.f32.mrb[21].mxu1 }
 0x61d   : > { %v1176_v3 = vpop.f32.mrb[22].mxu1 }
 0x61e   : > { %v1616_v15 = vpop.f32.mrb[23].mxu1  ;;  %v1179_v16 = vadd.f32 %v1174_v13, %v1819_v4 }
 0x620   : > { %v1182_v17 = vsel %vm509_vm1, %v1179_v16, 0.0 }
 0x621   : > { %1183 = vadd.xlane.f32.xlu0 %v1182_v17 }
 0x6ae   : > { %v1184_v18 = vpop.xlane.xlu0 %1183 }
 0x6af   : > { %v1186_v19 = vmul.f32 0.03125, %v1184_v18 }
 0x6b1   : > { %v1187_v20 = vsub.f32 %v1179_v16, %v1186_v19 }
 0x6b3   : > { %v1188_v21 = vmul.f32 %v1187_v20, %v1187_v20 }
 0x6b5   : > { %v1189_v22 = vsel %vm509_vm1, %v1188_v21, 0.0 }
 0x6b6   : > { %1190 = vadd.xlane.f32.xlu1 %v1189_v22 }
 0x743   : > { %v1191_v4 = vpop.xlane.xlu1 %1190 }
 0x744   : > { %v1192_v25 = vmul.f32 0.03125, %v1191_v4 }
 0x746   : > { %v1193_v26 = vadd.f32 1e-05, %v1192_v25 }
 0x748   : > { %1681 = vrsqrt.f32 %v1193_v26 }
 0x752   : > { %v1682_v27 = vpop.eup %1681 }
 0x753   : > { %v1195_v29 = vmul.f32 %v1682_v27, %v1187_v20 }
 0x755   : > { %v1202_v31 = vmul.f32 %v1485_v28, %v1195_v29 }
 0x757   : > { %v1209_v32 = vadd.f32 %v1486_v30, %v1202_v31 }
 0x759   : > { %v1224_v33 = vpack.c.bf16 %v1209_v32, %v1209_v32 }
 0x75b   : > { %1622 = vmatmul.mubr.msk.bf16.vlgmr.msra.gmra.mrb[24].mxu0 %vm509_vm1, %v1224_v33 }
 0x82e   : > { %v1280_v39 = vpop.f32.mrb[24].mxu0 }
 0x82f   : > { %v1281_v40 = vadd.f32 %v1487_v38, %v1280_v39  ;;  %v1623_v41 = vpop.f32.mrb[25].mxu0 }
 0x830   : > { %v1283_v42 = vpop.f32.mrb[26].mxu0 }
 0x831   : > { %v1287_v43 = vmul.f32 0.70710677, %v1281_v40  ;;  %v1624_v44 = vpop.f32.mrb[27].mxu0  ;;  %v1286_v46 = vmul.f32 0.5, %v1281_v40 }
 0x833   : > { %1683 = verf.f32 %v1287_v43 }
 0x83d   : > { %v1684_v45 = vpop.eup %1683 }
 0x83e   : > { %v1289_v47 = vadd.f32 1.0, %v1684_v45 }
 0x840   : > { %v1290_v2 = vmul.f32 %v1289_v47, %v1286_v46 }
 0x842   : > { %v1291_v48 = vpack.c.bf16 %v1290_v2, %v1290_v2 }
 0x844   : > { %1634 = vmatmul.mubr.msk.bf16.vlgmr.msra.gmra.mrb[24].mxu1 %vm1322_vm6, %v1291_v48 }
 0x917   : > { %v1360_v50 = vpop.f32.mrb[24].mxu1 }
 0x918   : > { %v1361_v51 = vadd.f32 %v1491_v49, %v1360_v50  ;;  %v1635_v52 = vpop.f32.mrb[25].mxu1 }
 0x919   : > { %v1363_v53 = vpop.f32.mrb[26].mxu1 }
 0x91a   : > { %v1636_v54 = vpop.f32.mrb[27].mxu1  ;;  %v1366_v55 = vadd.f32 %v1361_v51, %v1209_v32 }
 0x91c   : > { %v1369_v56 = vsel %vm509_vm1, %v1366_v55, 0.0 }
 0x91d   : > { %1370 = vadd.xlane.f32.xlu0 %v1369_v56 }
 0x9aa   : > { %v1371_v57 = vpop.xlane.xlu0 %1370 }
 0x9ab   : > { %v1372_v58 = vmul.f32 0.03125, %v1371_v57 }
 0x9ad   : > { %v1373_v59 = vsub.f32 %v1366_v55, %v1372_v58 }
 0x9af   : > { %v1374_v60 = vmul.f32 %v1373_v59, %v1373_v59 }
 0x9b1   : > { %v1375_v61 = vsel %vm509_vm1, %v1374_v60, 0.0 }
 0x9b2   : > { %1376 = vadd.xlane.f32.xlu0 %v1375_v61 }
 0xa3f   : > { %v1377_v62 = vpop.xlane.xlu0 %1376 }
 0xa40   : > { %v1378_v63 = vmul.f32 0.03125, %v1377_v62 }
 0xa42   : > { %v1379_v0 = vadd.f32 1e-05, %v1378_v63 }
 0xa44   : > { %1685 = vrsqrt.f32 %v1379_v0 }
 0xa4e   : > { %v1686_v1 = vpop.eup %1685 }
 0xa4f   : > { %v1381_v6 = vmul.f32 %v1686_v1, %v1373_v59 }
 0xa51   : > { %v1388_v8 = vmul.f32 %v1497_v5, %v1381_v6 }
 0xa53   : > { %v1395_v9 = vadd.f32 %v1498_v7, %v1388_v8 }
 0xa55   : > { %1396 = vst.msk [vmem:[%s476_s15] sm:$0xff] %vm509_vm1, %v1395_v9 }
 0xa56 PF: > { %s24_s29 = sadd.s32 1, %s1693_s29  }
 0xa57   : > { %p21_p4 = scmp.ge.s32.totalorder %s24_s29, 6  }
 0xa59   :  { %23 = sbr.rel (!%p21_p4) target bundleno = 1 (0x1), region = 109 }

// kernel: _lambda_.22
= control target key start
LH: loop header
LB: loop body
LE: loop exit
PB: predicated region body
PF: predicated region fallthrough
CT: control target
= control target key end

     0   :  { %v182_v0 = vmov 0   ;;  %vm108_vm0 = vcmask 261120   ;;  %s257_s1 = inlined_call_operand.vmem [shape: bf16[160,32], index: 1, kind: input, shape index: {}]   ;;  %s258_s0 = inlined_call_operand.vmem [shape: f32[16,160], index: 0, kind: input, shape index: {}]   ;;  %s259_s2 = inlined_call_operand.vmem [shape: f32[1,32], index: 2, kind: input, shape index: {}]   ;;  %s260_s3 = inlined_call_operand.vmem [shape: f32[16,32], index: 3, kind: output, shape index: {}]  }
   0x1   :  { %112 = vmatprep.subr.bf16.mxu0 %v182_v0  ;;  %v172_v1 = vld [vmem:[%s257_s1] sm:$0xff]   ;;  %v173_v2 = vld [vmem:[%s257_s1 + $0x8] sm:$0xff]   ;;  %v174_v3 = vld [vmem:[%s257_s1 + $0x10] sm:$0xff]  }
   0x2   :  { %113 = vmatpush1.bf16.msra.mxu0 %v172_v1  ;;  %v175_v4 = vld [vmem:[%s257_s1 + $0x18] sm:$0xff]   ;;  %v16_v5 = vld [vmem:[%s258_s0 + $0x8] sm:$0xff]  ;;  %v176_v8 = vld [vmem:[%s257_s1 + $0x20] sm:$0xff]  }
   0x3   :  { %114 = vmatprep.subr.bf16.mxu0 %v182_v0  ;;  %v18_v6 = vld [vmem:[%s258_s0 + $0x18] sm:$0xff]  ;;  %v177_v9 = vld [vmem:[%s257_s1 + $0x28] sm:$0xff]   ;;  %v178_v10 = vld [vmem:[%s257_s1 + $0x30] sm:$0xff]  }
   0x4   :  { %v20_v7 = vpack.c.bf16 %v18_v6, %v16_v5  ;;  %v179_v11 = vld [vmem:[%s257_s1 + $0x38] sm:$0xff]   ;;  %v180_v12 = vld [vmem:[%s257_s1 + $0x40] sm:$0xff]   ;;  %v181_v13 = vld [vmem:[%s257_s1 + $0x48] sm:$0xff]  }
   0x5   :  { %v15_v14 = vld [vmem:[%s258_s0] sm:$0xff]  ;;  %v17_v15 = vld [vmem:[%s258_s0 + $0x10] sm:$0xff] }
   0x6   :  { %115 = vmatpush1.bf16.msra.mxu0 %v173_v2  ;;  %170 = vmatprep.mubr.msk.bf16.mxu0 %vm108_vm0, %v20_v7  ;;  %v19_v16 = vpack.c.bf16 %v17_v15, %v15_v14  ;;  %v159_v17 = vld [vmem:[%s259_s2] ss:$0 sm:$0xff] }
   0x7   :  { %116 = vmatprep.subr.bf16.mxu0 %v182_v0 }
   0xa   :  { %117 = vmatpush1.bf16.msra.mxu0 %v174_v3 }
   0xb   :  { %118 = vmatprep.subr.bf16.mxu0 %v182_v0 }
   0xe   :  { %119 = vmatpush1.bf16.msra.mxu0 %v175_v4 }
   0xf   :  { %120 = vmatprep.subr.bf16.mxu0 %v182_v0 }
  0x12   :  { %121 = vmatpush1.bf16.msra.mxu0 %v176_v8 }
  0x13   :  { %122 = vmatprep.subr.bf16.mxu0 %v182_v0 }
  0x16   :  { %123 = vmatpush1.bf16.msra.mxu0 %v177_v9 }
  0x17   :  { %124 = vmatprep.subr.bf16.mxu0 %v182_v0 }
  0x1a   :  { %125 = vmatpush1.bf16.msra.mxu0 %v178_v10 }
  0x1b   :  { %126 = vmatprep.subr.bf16.mxu0 %v182_v0 }
  0x1e   :  { %127 = vmatpush1.bf16.msra.mxu0 %v179_v11 }
  0x1f   :  { %128 = vmatprep.subr.bf16.mxu0 %v182_v0 }
  0x22   :  { %129 = vmatpush1.bf16.msra.mxu0 %v180_v12 }
  0x23   :  { %130 = vmatprep.subr.bf16.mxu0 %v182_v0 }
  0x26   :  { %131 = vmatpush1.bf16.msra.mxu0 %v181_v13 }
  0x29   :  { %145 = vmatmul.mubr.bf16.vlgmr.msra.gmra.mrb[0].mxu0 %v19_v16 }
  0xfc   :  { %v146_v18 = vpop.f32.mrb[0].mxu0 }
  0xfd   :  { %v147_v19 = vadd.f32 %v159_v17, %v146_v18  ;;  %v148_v20 = vpop.f32.mrb[1].mxu0 }
  0xfe   :  { %v149_v21 = vpop.f32.mrb[2].mxu0 }
  0xff   :  { %153 = vst.msk [vmem:[%s260_s3] sm:$0xff] %vm108_vm0, %v147_v19  ;;  %v150_v22 = vadd.f32 %v159_v17, %v149_v21  ;;  %v151_v23 = vpop.f32.mrb[3].mxu0 }
 0x101   :  { %154 = vst.msk [vmem:[%s260_s3 + $0x8] sm:$0xff] %vm108_vm0, %v150_v22 }

// kernel: _lambda_.24
= control target key start
LH: loop header
LB: loop body
LE: loop exit
PB: predicated region body
PF: predicated region fallthrough
CT: control target
= control target key end

     0   :  { %v440_v0 = vmov 0.0   ;;  %vm441_vm0 = vmmov 0   ;;  %vm59_vm1 = vcmask 261120   ;;  %s554_s3 = inlined_call_operand.vmem [shape: bf16[32,32], index: 3, kind: input, shape index: {}]   ;;  %s555_s0 = inlined_call_operand.vmem [shape: f32[16,32], index: 0, kind: input, shape index: {}]   ;;  %s556_s1 = inlined_call_operand.vmem [shape: bf16[32,32], index: 1, kind: input, shape index: {}]   ;;  %s557_s7 = inlined_call_operand.vmem [shape: bf16[32,32], index: 7, kind: input, shape index: {}]   ;;  %s558_s5 = inlined_call_operand.vmem [shape: bf16[32,32], index: 5, kind: input, shape index: {}]   ;;  %s559_s4 = inlined_call_operand.vmem [shape: f32[1,32], index: 4, kind: input, shape index: {}]   ;;  %s560_s2 = inlined_call_operand.vmem [shape: f32[1,32], index: 2, kind: input, shape index: {}]   ;;  %s561_s8 = inlined_call_operand.vmem [shape: f32[1,32], index: 8, kind: input, shape index: {}]   ;;  %s562_s6 = inlined_call_operand.vmem [shape: f32[1,32], index: 6, kind: input, shape index: {}]   ;;  %s563_s9 = inlined_call_operand.vmem [shape: f32[16,32], index: 9, kind: output, shape index: {}]  }
   0x1   :  { %390 = vmatprep.subr.bf16.mxu1 %v440_v0  ;;  %v416_v1 = vld [vmem:[%s554_s3] sm:$0xff]   ;;  %394 = vmatprep.mubr.msk.bf16.mxu1 %vm441_vm0, %v440_v0  ;;  %v417_v2 = vld [vmem:[%s554_s3 + $0x8] sm:$0xff]  }
   0x2   :  { %382 = vmatprep.subr.bf16.mxu0 %v440_v0  ;;  %386 = vmatprep.mubr.msk.bf16.mxu0 %vm441_vm0, %v440_v0  ;;  %v33_v3 = vld [vmem:[%s555_s0] sm:$0xff]  ;;  %v506_v4 = vld [vmem:[%s555_s0 + $0x8] sm:$0xff] }
   0x3   :  { %391 = vmatpush3.bf16.msra.mxu1 %v416_v1  ;;  %v418_v5 = vld [vmem:[%s556_s1] sm:$0xff]   ;;  %v35_v6 = vpack.c.bf16 %v506_v4, %v33_v3  ;;  %v419_v7 = vld [vmem:[%s556_s1 + $0x8] sm:$0xff]  }
   0x4   :  { %392 = vmatprep.subr.bf16.mxu1 %v440_v0  ;;  %383 = vmatpush3.bf16.msra.mxu0 %v418_v5  ;;  %v420_v8 = vld [vmem:[%s557_s7] sm:$0xff]   ;;  %v422_v10 = vld [vmem:[%s557_s7 + $0x8] sm:$0xff]  }
   0x5   :  { %384 = vmatprep.subr.bf16.mxu0 %v440_v0  ;;  %v421_v9 = vld [vmem:[%s558_s5] sm:$0xff]   ;;  %v423_v11 = vld [vmem:[%s558_s5 + $0x8] sm:$0xff]  }
   0x6   :  { %v354_v12 = vld [vmem:[%s559_s4] ss:$0 sm:$0xff] }
   0x7   :  { %393 = vmatpush3.bf16.msra.mxu1 %v417_v2  ;;  %v350_v29 = vld [vmem:[%s560_s2] ss:$0 sm:$0xff] }
   0x8   :  { %406 = vmatprep.subr.bf16.mxu1 %v440_v0  ;;  %385 = vmatpush3.bf16.msra.mxu0 %v419_v7  ;;  %v364_v45 = vld [vmem:[%s561_s8] ss:$0 sm:$0xff] }
   0x9   :  { %398 = vmatprep.subr.bf16.mxu0 %v440_v0  ;;  %v360_v62 = vld [vmem:[%s562_s6] ss:$0 sm:$0xff] }
   0xa   :  { %395 = vmatmul.mubr.msk.bf16.vlgmr.msra.gmra.mrb[0].mxu1 %vm59_vm1, %v35_v6 }
   0xb   :  { %410 = vmatprep.mubr.msk.bf16.mxu1 %vm441_vm0, %v440_v0  ;;  %387 = vmatmul.mubr.msk.bf16.vlgmr.msra.gmra.mrb[0].mxu0 %vm59_vm1, %v35_v6 }
   0xc   :  { %402 = vmatprep.mubr.msk.bf16.mxu0 %vm441_vm0, %v440_v0  ;;  %407 = vmatpush3.bf16.msra.mxu1 %v420_v8 }
   0xd   :  { %399 = vmatpush3.bf16.msra.mxu0 %v421_v9  ;;  %408 = vmatprep.subr.bf16.mxu1 %v440_v0 }
   0xe   :  { %400 = vmatprep.subr.bf16.mxu0 %v440_v0 }
  0x10   :  { %409 = vmatpush3.bf16.msra.mxu1 %v422_v10 }
  0x11   :  { %401 = vmatpush3.bf16.msra.mxu0 %v423_v11 }
  0xdd   :  { %v163_v13 = vpop.f32.mrb[0].mxu1 }
  0xde   :  { %v164_v14 = vadd.f32 %v354_v12, %v163_v13  ;;  %v396_v15 = vpop.f32.mrb[1].mxu1  ;;  %v97_v20 = vpop.f32.mrb[0].mxu0 }
  0xdf   :  { %v166_v16 = vpop.f32.mrb[2].mxu1  ;;  %v388_v21 = vpop.f32.mrb[1].mxu0  ;;  %v98_v30 = vadd.f32 %v350_v29, %v97_v20 }
  0xe0   :  { %v358_v17 = vmul.f32 -1.442695, %v164_v14  ;;  %v167_v18 = vadd.f32 %v354_v12, %v166_v16  ;;  %v397_v19 = vpop.f32.mrb[3].mxu1  ;;  %v100_v23 = vpop.f32.mrb[2].mxu0 }
  0xe1   :  { %v389_v24 = vpop.f32.mrb[3].mxu0  ;;  %v101_v31 = vadd.f32 %v350_v29, %v100_v23  ;;  %v104_v32 = vmax.f32 %v98_v30, 0.0 }
  0xe2   :  { %424 = vpow2.f32 %v358_v17  ;;  %v359_v22 = vmul.f32 -1.442695, %v167_v18 }
  0xe3   :  { %v105_v33 = vmax.f32 %v101_v31, 0.0 }
  0xe4   :  { %426 = vpow2.f32 %v359_v22 }
  0xec   :  { %v425_v25 = vpop.eup %424 }
  0xed   :  { %v176_v26 = vadd.f32 1.0, %v425_v25 }
  0xee   :  { %v427_v27 = vpop.eup %426 }
  0xef   :  { %428 = vrcp.f32 %v176_v26  ;;  %v177_v28 = vadd.f32 1.0, %v427_v27 }
  0xf1   :  { %430 = vrcp.f32 %v177_v28 }
  0xf9   :  { %v429_v34 = vpop.eup %428 }
  0xfa   :  { %v182_v35 = vmul.f32 %v429_v34, %v104_v32  ;;  %v184_v36 = vsub.f32 1.0, %v429_v34 }
  0xfb   :  { %v431_v37 = vpop.eup %430 }
  0xfc   :  { %v186_v38 = vmul.f32 %v184_v36, %v33_v3  ;;  %v183_v39 = vmul.f32 %v431_v37, %v105_v33  ;;  %v185_v40 = vsub.f32 1.0, %v431_v37 }
  0xfe   :  { %v188_v41 = vadd.f32 %v186_v38, %v182_v35  ;;  %v187_v42 = vmul.f32 %v185_v40, %v506_v4 }
 0x100   :  { %v189_v43 = vadd.f32 %v187_v42, %v183_v39 }
 0x102   :  { %v190_v44 = vpack.c.bf16 %v189_v43, %v188_v41 }
 0x104   :  { %403 = vmatmul.mubr.msk.bf16.vlgmr.msra.gmra.mrb[4].mxu0 %vm59_vm1, %v190_v44  ;;  %411 = vmatmul.mubr.msk.bf16.vlgmr.msra.gmra.mrb[4].mxu1 %vm59_vm1, %v190_v44 }
 0x1d7   :  { %v251_v46 = vpop.f32.mrb[4].mxu0  ;;  %v317_v47 = vpop.f32.mrb[4].mxu1 }
 0x1d8   :  { %v318_v48 = vadd.f32 %v364_v45, %v317_v47  ;;  %v404_v49 = vpop.f32.mrb[5].mxu0  ;;  %v412_v50 = vpop.f32.mrb[5].mxu1  ;;  %v252_v63 = vadd.f32 %v360_v62, %v251_v46 }
 0x1d9   :  { %v254_v51 = vpop.f32.mrb[6].mxu0  ;;  %v320_v52 = vpop.f32.mrb[6].mxu1 }
 0x1da   :  { %v368_v53 = vmul.f32 -1.442695, %v318_v48  ;;  %v321_v54 = vadd.f32 %v364_v45, %v320_v52  ;;  %v405_v55 = vpop.f32.mrb[7].mxu0  ;;  %v413_v56 = vpop.f32.mrb[7].mxu1  ;;  %v255_v0 = vadd.f32 %v360_v62, %v254_v51  ;;  %v258_v1 = vmax.f32 %v252_v63, 0.0 }
 0x1dc   :  { %432 = vpow2.f32 %v368_v53  ;;  %v369_v57 = vmul.f32 -1.442695, %v321_v54  ;;  %v259_v5 = vmax.f32 %v255_v0, 0.0 }
 0x1de   :  { %434 = vpow2.f32 %v369_v57 }
 0x1e6   :  { %v433_v58 = vpop.eup %432 }
 0x1e7   :  { %v330_v59 = vadd.f32 1.0, %v433_v58 }
 0x1e8   :  { %v435_v60 = vpop.eup %434 }
 0x1e9   :  { %436 = vrcp.f32 %v330_v59  ;;  %v331_v61 = vadd.f32 1.0, %v435_v60 }
 0x1eb   :  { %438 = vrcp.f32 %v331_v61 }
 0x1f3   :  { %v437_v2 = vpop.eup %436 }
 0x1f4   :  { %v336_v3 = vmul.f32 %v437_v2, %v258_v1  ;;  %v338_v4 = vsub.f32 1.0, %v437_v2 }
 0x1f5   :  { %v439_v6 = vpop.eup %438 }
 0x1f6   :  { %v340_v7 = vmul.f32 %v338_v4, %v188_v41  ;;  %v337_v8 = vmul.f32 %v439_v6, %v259_v5  ;;  %v339_v9 = vsub.f32 1.0, %v439_v6 }
 0x1f8   :  { %v342_v10 = vadd.f32 %v340_v7, %v336_v3  ;;  %v341_v11 = vmul.f32 %v339_v9, %v189_v43 }
 0x1fa   :  { %344 = vst.msk [vmem:[%s563_s9] sm:$0xff] %vm59_vm1, %v342_v10  ;;  %v343_v12 = vadd.f32 %v341_v11, %v337_v8 }
 0x1fc   :  { %345 = vst.msk [vmem:[%s563_s9 + $0x8] sm:$0xff] %vm59_vm1, %v343_v12 }

// kernel: _lambda_.27
= control target key start
LH: loop header
LB: loop body
LE: loop exit
PB: predicated region body
PF: predicated region fallthrough
CT: control target
= control target key end

     0   :  { %s2298_s0 = inlined_call_operand.vmem [shape: f32[2,8,32], index: 0, kind: input, shape index: {}]   ;;  %s2299_s1 = inlined_call_operand.vmem [shape: f32[2,8,32], index: 1, kind: input, shape index: {}]   ;;  %s2300_s2 = inlined_call_operand.vmem [shape: f32[2,16,32], index: 2, kind: input, shape index: {}]   ;;  %s2301_s3 = inlined_call_operand.vmem [shape: f32[2,1,16], index: 3, kind: input, shape index: {}]   ;;  %s2302_s4 = inlined_call_operand.vmem [shape: s32[2,8,1], index: 4, kind: input, shape index: {}]   ;;  %s2303_s5 = inlined_call_operand.vmem [shape: s32[2,16,1], index: 5, kind: input, shape index: {}]   ;;  %s2304_s6 = inlined_call_operand.vmem [shape: bf16[32,16], index: 6, kind: input, shape index: {}]   ;;  %s2305_s7 = inlined_call_operand.vmem [shape: f32[1,16], index: 7, kind: input, shape index: {}]   ;;  %s2306_s8 = inlined_call_operand.vmem [shape: bf16[16,32], index: 8, kind: input, shape index: {}]   ;;  %s2307_s9 = inlined_call_operand.vmem [shape: f32[1,32], index: 9, kind: input, shape index: {}]   ;;  %s2308_s10 = inlined_call_operand.vmem [shape: f32[1,32], index: 10, kind: input, shape index: {}]   ;;  %s2309_s11 = inlined_call_operand.<no memory space> [shape: f32[1,1], index: 11, kind: input, shape index: {}]   ;;  %s2310_s12 = inlined_call_operand.vmem [shape: f32[1,32], index: 12, kind: input, shape index: {}]   ;;  %s2311_s13 = inlined_call_operand.vmem [shape: f32[1,32], index: 13, kind: input, shape index: {}]   ;;  %s2312_s15 = inlined_call_operand.vmem [shape: f32[96,3], index: 15, kind: input, shape index: {}]   ;;  %s2313_s16 = inlined_call_operand.vmem [shape: f32[1,3], index: 16, kind: input, shape index: {}]   ;;  %s2314_s17 = inlined_call_operand.hbm [shape: f32[2,8,48], index: 17, kind: output, shape index: {}]   ;;  %s2315_s14 = inlined_call_operand.<no memory space> [shape: f32[1,1], index: 14, kind: input, shape index: {}]  }
   0x1   :  { %2316 = sst [smem:[#allocation8_spill]] %s2298_s0  ;;  %v22_v0 = vstv %s2309_s11  ;;  %v24_v1 = vstv %s2315_s14 }
   0x2   :  { %2317 = sst [smem:[#allocation9_spill]] %s2299_s1  ;;  %23 = vst [vmem:[#allocation2] sm:$0x1] %v22_v0  ;;  %25 = vst [vmem:[#allocation3] sm:$0x1] %v24_v1 }
   0x3   :  { %2318 = sst [smem:[#allocation10_spill]] %s2300_s2 }
   0x4   :  { %2319 = sst [smem:[#allocation11_spill]] %s2304_s6 }
   0x5   :  { %26 = vsyncpa [#allocation5], 0 }
   0x6   :  { %28 = vsyncpa [#allocation5 + $0x1], 0  ;;  %s2030_s28 = smov 0   ;;  %s2032_s29 = smov 0  }
   0x7   :  { %s2034_s0 = smov 0   ;;  %s2036_s30 = smov 0  }
   0x8 LB: > { %s2051_s11 = sadd.s32 4294967295, %s1921_s30   ;;  %s1600_s14 = sadd.s32 4294967294, %s1921_s30   ;;  %s1921_s30 = sphi %s2036_s30, %s2331_s30   ;;  %s1917_s0 = sphi %s2034_s0, %s2330_s0   ;;  %s1913_s29 = sphi %s2032_s29, %s2329_s29   ;;  %s1909_s28 = sphi %s2030_s28, %s2328_s28  }
   0x9   : > { %s2055_s18 = sadd.s32 1, %s1921_s30   ;;  %s428_s19 = sadd.s32 1, %s1917_s0 }
   0xa   : > { %s425_s1 = ssub.s32 %s1921_s30, %s2055_s18  ;;  %p438_p0 = scmp.ne.s32.totalorder %s1917_s0, %s1913_s29 }
   0xb   : > { %p426_p1 = scmp.eq.s32.totalorder %s425_s1, 0  ;;  %p439_p2 = scmp.eq.s32.totalorder %s2051_s11, 1 }
   0xc   : > { %p444_p3 = scmp.ne.s32.totalorder %s1913_s29, %s1909_s28  ;;  %p445_p4 = scmp.eq.s32.totalorder %s1600_s14, 1 }
   0xd   : > { %s2066_s20 = scalar_select %p426_p1, %s1917_s0, %s428_s19  }
   0xe   : > { %p2068_p5 = por %p439_p2, %p438_p0  ;;  %p2072_p6 = por %p445_p4, %p444_p3 }
   0xf   : > { %2320 = sst [smem:[#allocation7_spill]] %s2066_s20  ;;  %p1603_p7 = scmp.ge.s32.totalorder %s1921_s30, 1 }
  0x10   : > { %p539_p8 = scmp.lt.s32.totalorder %s1921_s30, 3 }
  0x12   : > { %p540_p9 = pnand %p1603_p7, %p539_p8 }
  0x13   : > { %s2323_s6 = sld [smem:[#allocation11_spill]] (!%p540_p9)  ;;  %v1923_v3 = vmov (!%p540_p9), 0.0   ;;  %vm1924_vm0 = vmmov (!%p540_p9), 0   ;;  %p611_p10 = scmp.lt.s32.totalorder (!%p540_p9), %s2051_s11, 1  ;;  %v1621_v5 = vld [vmem:[%s2308_s10] ss:$0 sm:$0xff] (!%p540_p9)  ;;  %v878_v27 = vlaneseq (!%p540_p9) }
  0x14   : > { %543 = sbr.rel (%p540_p9) target bundleno = 2489 (0x9b9), region = 88  ;;  %1679 = vmatprep.subr.bf16.mxu0 (!%p540_p9), %v1923_v3  ;;  %1683 = vmatprep.mubr.msk.bf16.mxu0 (!%p540_p9), %vm1924_vm0, %v1923_v3  ;;  %s2324_s25 = sld [smem:[#allocation8_spill]] (!%p540_p9)  ;;  %vm665_vm1 = vcmask (!%p540_p9), 261120   ;;  %v1840_v7 = vld [vmem:[%s2306_s8] sm:$0xff] (!%p540_p9)   ;;  %v1925_v14 = vmov (!%p540_p9), 0.0|0.0   ;;  %v1926_v15 = vmov (!%p540_p9), 0  }
  0x15   : > { %1711 = vmatprep.mubr.msk.f32.mxu1 (!%p540_p9), %vm1924_vm0, %v1923_v3  ;;  %s2325_s2 = sld [smem:[#allocation10_spill]] (!%p540_p9)  ;;  %1763 = vmatprep.subr.bf16.mxu1 (!%p540_p9), %v1925_v14  ;;  %v1622_v16 = vld [vmem:[#allocation2] ss:$0 sm:$0xff] (!%p540_p9)  ;;  %vm718_vm2 = vcmask (!%p540_p9), 130048   ;;  %vm1758_vm3 = vmpackc.low (!%p540_p9), %vm665_vm1, %vm665_vm1  ;;  %v2143_v30 = vshrl.u32 (!%p540_p9), %v878_v27, 7  ;;  %v910_v58 = vand.u32 (!%p540_p9), 127, %v878_v27 }
  0x16   : > { %1833 = vset.pattern.permute.xlu0 (!%p540_p9), %v1926_v15  ;;  %1834 = vset.pattern.permute.xlu1 (!%p540_p9), %v1926_v15  ;;  %v1612_v19 = vld [vmem:[%s2305_s7] ss:$0 sm:$0xff] (!%p540_p9)  ;;  %v1927_v60 = vmov (!%p540_p9), 1.0|1.0   ;;  %s2326_s23 = sld [smem:[#allocation9_spill]] (!%p540_p9)  ;;  %vm1172_vm7 = vcmask (!%p540_p9), 64512  }
  0x17   : > { %v774_v26 = vld [vmem:[%s2307_s9] sm:$0x1] (!%p540_p9)  ;;  %v880_v33 = vsub.s32 (!%p540_p9), 0, %v2143_v30  ;;  %v1633_v1 = vld [vmem:[#allocation3] ss:$0 sm:$0xff] (!%p540_p9)  ;;  %v1346_v30 = vld [vmem:[%s2312_s15 + $0x8] sm:$0xff] (!%p540_p9) }
  0x18   : > { %v1632_v53 = vld [vmem:[%s2311_s13] ss:$0 sm:$0xff] (!%p540_p9)  ;;  %s1930_s20 = smov (!%p540_p9), 32   ;;  %vm1343_vm9 = vcmask (!%p540_p9), 523264   ;;  %vm1364_vm10 = vcmask (!%p540_p9), 785408   ;;  %vm1438_vm11 = vcmask (!%p540_p9), 23552  }
  0x19   : > { %v1838_v2 = vld [vmem:[%s2323_s6] sm:$0xff] (!%p540_p9)   ;;  %v1839_v4 = vld [vmem:[%s2323_s6 + $0x8] sm:$0xff] (!%p540_p9)   ;;  %vm1468_vm12 = vcmask (!%p540_p9), 392192  }
  0x1a   : > { %1680 = vmatpush3.bf16.msra.mxu0 (!%p540_p9), %v1838_v2  ;;  %v1066_v0 = vld [vmem:[%s2310_s12] sm:$0x1] (!%p540_p9) }
  0x1b   : > { %1681 = vmatprep.subr.bf16.mxu0 %v1923_v3  ;;  %s2092_s27 = scalar_select %p611_p10, %s2051_s11, 1 }
  0x1d   : > { %s2095_s14 = sshll.u32 %s2092_s27, 3  ;;  %s1644_s19 = sshll.u32 %s2092_s27, 4 }
  0x1e   : > { %1682 = vmatpush3.bf16.msra.mxu0 %v1839_v4  ;;  %s614_s26 = scalar_lea.vmem %s2324_s25, %s2095_s14  ;;  %s623_s6 = scalar_lea.vmem %s2325_s2, %s1644_s19 }
  0x1f   : > { %1687 = vmatprep.subr.bf16.mxu0 %v1923_v3  ;;  %v2105_v6 = vld [vmem:[%s614_s26] sm:$0xff]  ;;  %v640_v12 = vld [vmem:[%s623_s6 + $0x8] sm:$0xff]  ;;  %s626_s25 = scalar_lea.vmem %s2301_s3, %s2092_s27  ;;  %s630_s1 = scalar_lea.vmem %s2302_s4, %s2095_s14 }
  0x20   : > { %v641_v8 = vpack.c.bf16 %v2105_v6, %v2105_v6  ;;  %v861_v9 = vmul.f32 %v1621_v5, %v2105_v6  ;;  %v639_v11 = vld [vmem:[%s623_s6] sm:$0xff]  ;;  %s635_s6 = scalar_lea.vmem %s2303_s5, %s1644_s19  ;;  %v1150_v54 = vmul.f32 %v1632_v53, %v2105_v6  ;;  %s1928_s27 = smov 64  }
  0x21   : > { %v1757_v13 = vpack.c.bf16 %v640_v12, %v639_v11  ;;  %v907_v45 = vld [vmem:[%s635_s6] sm:$0xff]  ;;  %v908_v52 = vld [vmem:[%s635_s6 + $0x8] sm:$0xff]  ;;  %s618_s6 = scalar_lea.vmem %s2326_s23, %s2095_s14  ;;  %s608_s26 = sand.u32 1, %s1913_s29  }
  0x22   : > { %1684 = vmatmul.mubr.msk.bf16.vlgmr.msra.gmra.mrb[0].mxu0 %vm665_vm1, %v641_v8  ;;  %v862_v10 = vsel %vm665_vm1, %v861_v9, 0.0  ;;  %v1623_v48 = vld [vmem:[%s626_s25] ss:$0 sm:$0xff]  ;;  %v1151_v55 = vsel %vm665_vm1, %v1150_v54, 0.0  ;;  %s1471_s24 = scalar_lea.sflag [#allocation5], %s608_s26  ;;  %s1933_s25 = smov [#allocation4]  }
  0x23   : > { %863 = vadd.xlane.f32.xlu0 %v862_v10  ;;  %1688 = vmatpush3.bf16.msra.mxu0 %v1840_v7  ;;  %v638_v63 = vld [vmem:[%s618_s6] sm:$0xff] }
  0x24   : > { %1689 = vmatprep.mubr.msk.bf16.mxu0 %vm1924_vm0, %v1923_v3  ;;  %1756 = vmatprep.subr.bf16.mxu0 %v1925_v14 }
  0x25   : > { %1765 = vmatpush3.bf16.msra.mxu1 %v1757_v13 }
  0x26   : > { %1719 = vmatprep.subr.mxu1 %v1923_v3 }
  0xb0   : > { %v864_v17 = vpop.xlane.xlu0 %863 }
  0xb1   : > { %v872_v18 = vadd.f32 %v1622_v16, %v864_v17 }
  0xb3   : > { %875 = vperm.xlu0 %1833, %v872_v18  }
  0xf5   : > { %v703_v20 = vpop.f32.mrb[0].mxu0 }
  0xf6   : > { %v704_v21 = vadd.f32 %v1612_v19, %v703_v20  ;;  %v1685_v22 = vpop.f32.mrb[1].mxu0 }
  0xf7   : > { %v706_v23 = vpop.f32.mrb[2].mxu0  ;;  %v1184_v22 = vld [vmem:[%s630_s1] sm:$0xff]  ;;  %s1604_s1 = sshll.u32 %s608_s26, 3 }
  0xf8   : > { %v709_v24 = vpack.c.bf16 %v704_v21, %v704_v21  ;;  %v1686_v25 = vpop.f32.mrb[3].mxu0  ;;  %s610_s14 = scalar_lea.vmem [#allocation4], %s1604_s1  ;;  %s1863_s1 = sshll.u32 %s1933_s25, 4  ;;  %s1864_s1 = int_to_ptr.vmem [resolvable:$false] %s1863_s1 }
  0xf9   : > { %v1929_v25 = vmov 1.0   ;;  %s1484_s19 = sshll.u32 %s610_s14, 4  ;;  %s1865_s2 = scalar_lea.vmem %s1864_s1, 256  ;;  %s2258_s19 = int_to_ptr.vmem [resolvable:$true] %s1484_s19 }
  0xfa   : > { %1690 = vmatmul.mubr.msk.bf16.vlgmr.msra.gmra.mrb[4].mxu0 %vm718_vm2, %v709_v24  ;;  %p1866_p0 = scmp.lt.s32.totalorder %s2258_s19, %s1864_s1 }
  0xfb   : > { %1759 = vmatpush3.bf16.xpose.msk.msra.mxu0 %vm1758_vm3, %v1757_v13  ;;  %1697 = vmatprep.mubr.msk.f32.mxu0 %vm1924_vm0, %v1923_v3 }
  0xfc   : > { %1760 = vmatprep.subr.bf16.mxu0 %v1925_v14 }
 0x102   : > { %1698 = vmatmul.mubr.msk.f32.vlgmr.msra.gmra.mrb[8].mxu0 %vm665_vm1, %v774_v26 }
 0x103   : > { %1704 = vmatprep.mubr.msk.f32.mxu0 %vm1924_vm0, %v1923_v3 }
 0x132   : > { %v876_v35 = vpop.permute.xlu0 %875 }
 0x1cd   : > { %v2141_v28 = vpop.f32.mrb[4].mxu0 }
 0x1ce   : > { %v1691_v29 = vpop.f32.mrb[5].mxu0 }
 0x1cf   : > { %v759_v31 = vpop.f32.mrb[6].mxu0  ;;  %v1345_v29 = vld [vmem:[%s2312_s15] sm:$0xff] }
 0x1d0   : > { %v1692_v32 = vpop.f32.mrb[7].mxu0  ;;  %v1347_v31 = vld [vmem:[%s2312_s15 + $0x10] sm:$0xff] }
 0x1d1   : > { %v1767_v32 = vpack.c.bf16 %v1346_v30, %v1345_v29 }
 0x1d5   : > { %v850_v34 = vpop.f32.mrb[8].mxu0 }
 0x1d6   : > { %v881_v36 = vrot.slane %v850_v34, %v880_v33  ;;  %v1699_v37 = vpop.f32.mrb[9].mxu0 }
 0x1d7   : > { %v1351_v37 = vld [vmem:[%s2312_s15 + $0x30] sm:$0xff] }
 0x1d8   : > { %v882_v38 = vadd.f32 %v881_v36, %v876_v35  ;;  %v1350_v35 = vld [vmem:[%s2312_s15 + $0x28] sm:$0xff] }
 0x1da   : > { %v883_v39 = vsel %vm718_vm2, %v882_v38, -inf }
 0x1db   : > { %884 = vmax.xlane.f32.xlu1 %v883_v39 }
 0x268   : > { %v885_v40 = vpop.xlane.xlu1 %884 }
 0x269   : > { %v886_v41 = vsub.f32 %v882_v38, %v885_v40  ;;  %v1352_v38 = vld [vmem:[%s2312_s15 + $0x38] sm:$0xff]  ;;  %v1353_v40 = vld [vmem:[%s2312_s15 + $0x40] sm:$0xff] }
 0x26a   : > { %v1776_v39 = vpack.c.bf16 %v1352_v38, %v1351_v37 }
 0x26b   : > { %v887_v42 = vmul.f32 1.442695, %v886_v41  ;;  %v1354_v41 = vld [vmem:[%s2312_s15 + $0x48] sm:$0xff] }
 0x26d   : > { %1841 = vpow2.f32 %v887_v42  ;;  %v1779_v42 = vpack.c.bf16 %v1354_v41, %v1353_v40 }
 0x277   : > { %v1842_v43 = vpop.eup %1841 }
 0x278   : > { %v889_v44 = vsel %vm718_vm2, %v1842_v43, 0.0 }
 0x279   : > { %890 = vadd.xlane.f32.xlu1 %v889_v44  ;;  %v1356_v44 = vld [vmem:[%s2312_s15 + $0x58] sm:$0xff] }
 0x28a   : > { %912 = vperm.xlu1 %1834, %v907_v45  }
 0x306   : > { %v891_v46 = vpop.xlane.xlu1 %890 }
 0x307   : > { %1843 = vrcp.f32 %v891_v46 }
 0x30a   : > { %v913_v56 = vpop.permute.xlu1 %912 }
 0x30b   : > { %vm917_vm4 = vcmp.eq.s32.totalorder %v913_v56, %v910_v58 }
 0x311   : > { %v1844_v47 = vpop.eup %1843 }
 0x312   : > { %v893_v49 = vmul.f32 %v1844_v47, %v1842_v43  ;;  %v1355_v43 = vld [vmem:[%s2312_s15 + $0x50] sm:$0xff] }
 0x313   : > { %v1782_v45 = vpack.c.bf16 %v1356_v44, %v1355_v43 }
 0x314   : > { %v901_v50 = vmul.f32 %v1623_v48, %v893_v49 }
 0x316   : > { %v902_v51 = vsel %vm718_vm2, %v901_v50, 0.0 }
 0x317   : > { %903 = vadd.xlane.f32.xlu1 %v902_v51 }
 0x328   : > { %915 = vperm.xlu1 %1834, %v908_v52  }
 0x34c   : > { %1152 = vadd.xlane.f32.xlu1 %v1151_v55 }
 0x3a4   : > { %v904_v57 = vpop.xlane.xlu1 %903 }
 0x3a5   : > { %1845 = vrcp.f32 %v904_v57 }
 0x3a8   : > { %v916_v59 = vpop.permute.xlu1 %915 }
 0x3a9   : > { %vm918_vm5 = vcmp.eq.s32.totalorder %v916_v59, %v910_v58 }
 0x3aa   : > { %vm1761_vm6 = vmpackc.low %vm918_vm5, %vm917_vm4 }
 0x3ab   : > { %1762 = vmatpush3.bf16.msk.msra.mxu0 %vm1761_vm6, %v1927_v60 }
 0x3ac   : > { %1714 = vmatprep.subr.mxu0 %v1923_v3 }
 0x3af   : > { %v1846_v61 = vpop.eup %1845 }
 0x3b0   : > { %v906_v62 = vmul.f32 %v1846_v61, %v901_v50  ;;  %v762_v50 = vsel %vm665_vm1, %v2141_v28, -inf }
 0x3b2   : > { %1705 = vmatmul.mubr.msk.f32.vlgmr.msra.gmra.mrb[10].mxu0 %vm718_vm2, %v906_v62  ;;  %1712 = vmatmul.mubr.msk.f32.vlgmr.msra.gmra.mrb[0].mxu1 %vm718_vm2, %v906_v62 }
 0x3b3   : > { %1716 = vmatprep.mubr.msk.f32.mxu0 %vm1924_vm0, %v1923_v3  ;;  %1721 = vmatprep.mubr.msk.f32.mxu1 %vm1924_vm0, %v1923_v3 }
 0x3b4   : > { %1715 = vmatpush3.xpose.msk.msra.mxu0 %vm665_vm1, %v638_v63 }
 0x3b5   : > { %1724 = vmatprep.subr.mxu0 %v1923_v3 }
 0x3b7   : > { %1717 = vmatmul.mubr.msk.f32.vlgmr.msra.gmra.mrb[12].mxu0 %vm665_vm1, %v1066_v0 }
 0x3b8   : > { %1725 = vmatpush3.msra.mxu0 %v638_v63  ;;  %1726 = vmatprep.mubr.msk.f32.mxu0 %vm1924_vm0, %v1923_v3 }
 0x3d9   : > { %v1153_v2 = vpop.xlane.xlu1 %1152 }
 0x3da   : > { %v1161_v4 = vadd.f32 %v1633_v1, %v1153_v2 }
 0x3dc   : > { %1164 = vperm.xlu0 %1833, %v1161_v4  }
 0x45b   : > { %v1165_v13 = vpop.permute.xlu0 %1164 }
 0x485   : > { %v2184_v5 = vpop.f32.mrb[10].mxu0  ;;  %v1062_v7 = vpop.f32.mrb[0].mxu1 }
 0x486   : > { %v1706_v8 = vpop.f32.mrb[11].mxu0  ;;  %v1713_v9 = vpop.f32.mrb[1].mxu1 }
 0x48a   : > { %v1139_v10 = vpop.f32.mrb[12].mxu0 }
 0x48b   : > { %v1170_v11 = vrot.slane %v1139_v10, %v880_v33  ;;  %v1718_v12 = vpop.f32.mrb[13].mxu0  ;;  %v1348_v33 = vld [vmem:[%s2312_s15 + $0x18] sm:$0xff]  ;;  %v1932_v10 = vmov 2  }
 0x48c   : > { %v1770_v34 = vpack.c.bf16 %v1348_v33, %v1347_v31 }
 0x48d   : > { %v1171_v15 = vadd.f32 %v1170_v11, %v1165_v13 }
 0x48f   : > { %v1173_v16 = vsel %vm1172_vm7, %v1171_v15, -inf }
 0x490   : > { %1174 = vmax.xlane.f32.xlu0 %v1173_v16 }
 0x51d   : > { %v1175_v17 = vpop.xlane.xlu0 %1174 }
 0x51e   : > { %v1176_v18 = vsub.f32 %v1171_v15, %v1175_v17 }
 0x520   : > { %v1177_v19 = vmul.f32 1.442695, %v1176_v18 }
 0x522   : > { %1847 = vpow2.f32 %v1177_v19 }
 0x52c   : > { %v1848_v20 = vpop.eup %1847 }
 0x52d   : > { %v1179_v21 = vsel %vm1172_vm7, %v1848_v20, 0.0 }
 0x52e   : > { %1180 = vadd.xlane.f32.xlu1 %v1179_v21 }
 0x53f   : > { %1186 = vperm.xlu1 %1834, %v1184_v22  }
 0x543   : > { %1339 = vrot.lane.b32.xlu1 %v1062_v7, %s1928_s27  ;;  %v1931_v7 = vmov 1   ;;  %s1641_s27 = sshll.u32 %s2051_s11, 7  ;;  %s1859_s11 = scalar_lea.vmem %s2258_s19, 128 }
 0x544   : > { %1835 = vset.pattern.permute.xlu1 %v1931_v7  ;;  %p1860_p11 = scmp.ne.s32.totalorder %s2258_s19, %s1859_s11  ;;  %p1867_p1 = scmp.lt.s32.totalorder %s1865_s2, %s1859_s11 }
 0x546   : > { %p1861_p12 = pnand %p1860_p11, %p2068_p5  ;;  %p1868_p2 = por %p1867_p1, %p1866_p0 }
 0x548   : > { %p1862_p13 = pneg %p1861_p12 }
 0x54a   : > { %p1869_p3 = pnand %p1868_p2, %p1862_p13 }
 0x5bb   : > { %v1181_v23 = vpop.xlane.xlu1 %1180 }
 0x5bc   : > { %1849 = vrcp.f32 %v1181_v23 }
 0x5bf   : > { %v1187_v24 = vpop.permute.xlu1 %1186 }
 0x5c0   : > { %vm1188_vm8 = vcmp.eq.s32.totalorder %v1187_v24, %v910_v58 }
 0x5c1   : > { %1720 = vmatpush3.msk.msra.mxu1 %vm1188_vm8, %v1929_v25 }
 0x5c2   : > { %1766 = vmatprep.subr.bf16.mxu1 %v1925_v14 }
 0x5c3   : > { %v1340_v52 = vpop.permute.xlu1 %1339 }
 0x5c6   : > { %v1850_v26 = vpop.eup %1849 }
 0x5c7   : > { %v1183_v27 = vmul.f32 %v1850_v26, %v1848_v20 }
 0x5c9   : > { %1722 = vmatmul.mubr.msk.f32.vlgmr.msra.gmra.mrb[2].mxu1 %vm1172_vm7, %v1183_v27  ;;  %1727 = vmatmul.mubr.msk.f32.vlgmr.msra.gmra.mrb[14].mxu0 %vm1172_vm7, %v1183_v27 }
 0x5ca   : > { %1753 = vmatprep.mubr.msk.f32.mxu1 %vm1924_vm0, %v1923_v3  ;;  %1768 = vmatpush3.bf16.msra.mxu1 %v1767_v32  ;;  %v1349_v3 = vld [vmem:[%s2312_s15 + $0x20] sm:$0xff] }
 0x5cb   : > { %1769 = vmatprep.subr.bf16.mxu1 %v1925_v14  ;;  %v1773_v36 = vpack.c.bf16 %v1350_v35, %v1349_v3 }
 0x5ce   : > { %1771 = vmatpush3.bf16.msra.mxu1 %v1770_v34 }
 0x5cf   : > { %1772 = vmatprep.subr.bf16.mxu1 %v1925_v14 }
 0x5d2   : > { %1774 = vmatpush3.bf16.msra.mxu1 %v1773_v36 }
 0x5d3   : > { %1775 = vmatprep.subr.bf16.mxu1 %v1925_v14 }
 0x5d6   : > { %1777 = vmatpush3.bf16.msra.mxu1 %v1776_v39 }
 0x5d7   : > { %1778 = vmatprep.subr.bf16.mxu1 %v1925_v14 }
 0x5da   : > { %1780 = vmatpush3.bf16.msra.mxu1 %v1779_v42 }
 0x5db   : > { %1781 = vmatprep.subr.bf16.mxu1 %v1925_v14  ;;  %v1638_v14 = vld [vmem:[%s2313_s16] ss:$0 sm:$0xff] }
 0x5de   : > { %1783 = vmatpush3.bf16.msra.mxu1 %v1782_v45 }
 0x69c   : > { %v1260_v46 = vpop.f32.mrb[2].mxu1  ;;  %v1330_v47 = vpop.f32.mrb[14].mxu0 }
 0x69d   : > { %v1723_v48 = vpop.f32.mrb[3].mxu1  ;;  %1335 = vrot.lane.b32.xlu0 %v1330_v47, %s1930_s20  ;;  %v1728_v49 = vpop.f32.mrb[15].mxu0  ;;  %s2256_s20 = scalar_lea.hbm %s2314_s17, %s1641_s27 }
 0x6bc   : > { %763 = vmax.xlane.f32.xlu0 %v762_v50 }
 0x70f   : > { %v1336_v51 = vpop.permute.xlu0 %1335 }
 0x710   : > { %v1342_v53 = vsel %vm665_vm1, %v2105_v6, %v1336_v51 }
 0x711   : > { %v1344_v54 = vsel %vm1343_vm9, %v1342_v53, %v1340_v52 }
 0x712   : > { %1754 = vmatmul.mubr.msk.f32.vlgmr.msra.gmra.mrb[4].mxu1 %vm1364_vm10, %v1344_v54 }
 0x749   : > { %v764_v59 = vpop.xlane.xlu0 %763 }
 0x74a   : > { %v765_v60 = vsub.f32 %v2141_v28, %v764_v59 }
 0x74c   : > { %v766_v63 = vmul.f32 1.442695, %v765_v60 }
 0x7e5   : > { %v1434_v55 = vpop.f32.mrb[4].mxu1 }
 0x7e6   : > { %v1435_v56 = vadd.f32 %v1638_v14, %v1434_v55  ;;  %v1755_v57 = vpop.f32.mrb[5].mxu1 }
 0x7e8   : > { %v1439_v58 = vsel %vm1438_vm11, %v1435_v56, -inf }
 0x7e9   : > { %1440 = vmax.xlane.f32.xlu1 %v1439_v58 }
 0x876   : > { %v1441_v61 = vpop.xlane.xlu1 %1440 }
 0x877   : > { %v1442_v62 = vsub.f32 %v1435_v56, %v1441_v61 }
 0x879   : > { %v1443_v0 = vmul.f32 1.442695, %v1442_v62 }
 0x87b   : > { %1851 = vpow2.f32 %v1443_v0 }
 0x87c   : > { %1853 = vpow2.f32 %v766_v63 }
 0x885   : > { %v1852_v6 = vpop.eup %1851 }
 0x886   : > { %v1445_v1 = vsel %vm1438_vm11, %v1852_v6, 0.0  ;;  %v1854_v2 = vpop.eup %1853 }
 0x887   : > { %1446 = vadd.xlane.f32.xlu1 %v1445_v1  ;;  %v768_v4 = vsel %vm665_vm1, %v1854_v2, 0.0 }
 0x88b   : > { %769 = vadd.xlane.f32.xlu1 %v768_v4 }
 0x914   : > { %v1447_v8 = vpop.xlane.xlu1 %1446 }
 0x915   : > { %1855 = vrcp.f32 %v1447_v8 }
 0x918   : > { %v770_v11 = vpop.xlane.xlu1 %769 }
 0x919   : > { %1857 = vrcp.f32 %v770_v11 }
 0x91f   : > { %v1856_v9 = vpop.eup %1855 }
 0x920   : > { %v1449_v28 = vmul.f32 %v1856_v9, %v1852_v6 }
 0x922   : > { %1452 = vperm.xlu0 %1833, %v1449_v28   ;;  %1457 = vperm.xlu1 %1835, %v1449_v28  }
 0x923   : > { %v1858_v12 = vpop.eup %1857 }
 0x924   : > { %v772_v13 = vmul.f32 %v1858_v12, %v1854_v2 }
 0x926   : > { %1836 = vset.pattern.permute.xlu1 %v1932_v10  ;;  %1837 = vset.pattern.permute.xlu0 %v1932_v10  ;;  %v773_v17 = vsel %vm665_vm1, %v772_v13, 0.0 }
 0x927   : > { %1463 = vperm.xlu1 %1836, %v1449_v28  }
 0x9a1   : > { %v1458_v15 = vpop.permute.xlu1 %1457  ;;  %v1453_v16 = vpop.permute.xlu0 %1452 }
 0x9a2   : > { %v1460_v18 = vmul.f32 %v1458_v15, %v1260_v46  ;;  %v1455_v19 = vmul.f32 %v1453_v16, %v773_v17 }
 0x9a4   : > { %v1461_v21 = vadd.f32 %v1460_v18, %v1455_v19 }
 0x9a6   : > { %v1464_v20 = vpop.permute.xlu1 %1463 }
 0x9a7   : > { %v1466_v22 = vmul.f32 %v1464_v20, %v2184_v5 }
 0x9a9   : > { %v1467_v23 = vadd.f32 %v1466_v22, %v1461_v21 }
 0x9ab   : > { %1469 = vst.msk [vmem:[%s610_s14] sm:$0xff] %vm1468_vm12, %v1467_v23 }
 0x9ac   : > { %1872 = shalt.err (!%p1869_p3)
}
 0x9ad   : > { %s1873_s26 = scalar_lea.hbm %s2256_s20, 128  ;;  %s1877_s23 = scalar_lea.hbm %s2314_s17, 256 }
 0x9ae   : > { %p1874_p4 = scmp.ne.s32.totalorder %s2256_s20, %s1873_s26  ;;  %p1878_p9 = scmp.lt.u32.totalorder %s2256_s20, %s2314_s17 }
 0x9af   : > { %p1879_p10 = scmp.lt.u32.totalorder %s1877_s23, %s1873_s26  ;;  %p1881_p12 = scmp.lt.u32.totalorder %s1873_s26, %s2256_s20 }
 0x9b0   : > { %p1875_p7 = pnand %p1874_p4, %p2068_p5 }
 0x9b1   : > { %p1880_p11 = por %p1879_p10, %p1878_p9 }
 0x9b2   : > { %p1876_p8 = pneg %p1875_p7 }
 0x9b3   : > { %p1882_p13 = por %p1881_p12, %p1880_p11 }
 0x9b5   : > { %p1883_p0 = pnand %p1882_p13, %p1876_p8 }
 0x9b7   : > { %1886 = shalt.err (!%p1883_p0)
}
 0x9b8   : > { %1784 = dma.vmem_to_hbm [thread:$0]  (%p2068_p5), %s2258_s19, 128, %s2256_s20, %s1471_s24  }
 0x9b9 PF: > { %p1790_p1 = scmp.ge.s32.totalorder %s1921_s30, 2  ;;  %s1496_s2 = sand.u32 1, %s1909_s28  }
 0x9ba   : > { %s1497_s11 = scalar_lea.sflag [#allocation5], %s1496_s2 }
 0x9bb   : > { %p1787_p2 = pnand %p1790_p1, %p2072_p6 }
 0x9bd   : > { %1904 = dma.done.wait (!%p1787_p2), %s1497_s11, 128  }
 0x9be   : > { %1906 = vsyncadd (!%p1787_p2), %s1497_s11, 4294967168  ;;  %s2327_s1 = sld [smem:[#allocation7_spill]]  ;;  %p31_p3 = scmp.ge.s32.totalorder %s2055_s18, 4  }
 0x9bf   : > { %s2328_s28 = smov %s1913_s29  ;;  %s2329_s29 = smov %s1917_s0 }
 0x9c0   : > { %s2331_s30 = smov %s2055_s18  ;;  %33 = sbr.rel (!%p31_p3) target bundleno = 8 (0x8), region = 138 }
 0x9c4   : > { %s2330_s0 = smov %s2327_s1 }
 0x9c7   :  { %1502 = vsyncpa [#allocation5], 1 }
 0x9c8   :  { %1504 = vsyncpa [#allocation5 + $0x1], 1 }

// kernel: _lambda_.26
= control target key start
LH: loop header
LB: loop body
LE: loop exit
PB: predicated region body
PF: predicated region fallthrough
CT: control target
= control target key end

     0   :  { %s4085_s6 = smov 1   ;;  %s4086_s10 = smov 2   ;;  %s4685_s0 = inlined_call_operand.smem [shape: u32[31], index: -1, kind: input, shape index: {}] }
   0x1   :  { %s4133_s5 = sld [smem:[%s4685_s0]]   ;;  %s4087_s14 = smov 3  }
   0x2   :  { %s4138_s9 = sld [smem:[%s4685_s0 + %s4085_s6]]   ;;  %s4088_s18 = smov 4  }
   0x3   :  { %s4143_s13 = sld [smem:[%s4685_s0 + %s4086_s10]]   ;;  %s4089_s22 = smov 5  }
   0x4   :  { %s4148_s17 = sld [smem:[%s4685_s0 + %s4087_s14]]   ;;  %s4090_s26 = smov 6  }
   0x5   :  { %s4153_s21 = sld [smem:[%s4685_s0 + %s4088_s18]]   ;;  %s4091_s30 = smov 7  }
   0x6   :  { %s4158_s25 = sld [smem:[%s4685_s0 + %s4089_s22]]   ;;  %s4092_s4 = smov 8  }
   0x7   :  { %s4163_s29 = sld [smem:[%s4685_s0 + %s4090_s26]]   ;;  %s4093_s10 = smov 9  }
   0x8   :  { %s4168_s3 = sld [smem:[%s4685_s0 + %s4091_s30]]   ;;  %s4094_s15 = smov 10  }
   0x9   :  { %4696 = sst [smem:[#allocation2_spill]] %s4143_s13  ;;  %s4095_s20 = smov 11  }
   0xa   :  { %s4173_s8 = sld [smem:[%s4685_s0 + %s4092_s4]]   ;;  %s4096_s26 = smov 12  }
   0xb   :  { %s4178_s14 = sld [smem:[%s4685_s0 + %s4093_s10]]   ;;  %s4097_s1 = smov 13  }
   0xc   :  { %4697 = sst [smem:[#allocation3_spill]] %s4158_s25  ;;  %s4098_s7 = smov 14  }
   0xd   :  { %s4183_s19 = sld [smem:[%s4685_s0 + %s4094_s15]]   ;;  %s4099_s15 = smov 15  }
   0xe   :  { %s4188_s24 = sld [smem:[%s4685_s0 + %s4095_s20]]   ;;  %s4100_s22 = smov 16  }
   0xf   :  { %s4193_s30 = sld [smem:[%s4685_s0 + %s4096_s26]]   ;;  %s4101_s28 = smov 17  }
  0x10   :  { %s4198_s6 = sld [smem:[%s4685_s0 + %s4097_s1]]  }
  0x11   :  { %s4203_s12 = sld [smem:[%s4685_s0 + %s4098_s7]]   ;;  %s4102_s7 = smov 18  }
  0x12   :  { %s4208_s20 = sld [smem:[%s4685_s0 + %s4099_s15]]   ;;  %s4103_s15 = smov 19  }
  0x13   :  { %s4213_s27 = sld [smem:[%s4685_s0 + %s4100_s22]]   ;;  %s4104_s22 = smov 20  }
  0x14   :  { %s4218_s4 = sld [smem:[%s4685_s0 + %s4101_s28]]   ;;  %s4105_s28 = smov 21  }
  0x15   :  { %s4223_s25 = sld [smem:[%s4685_s0 + %s4102_s7]]   ;;  %s4106_s7 = smov 22  }
  0x16   :  { %s4228_s13 = sld [smem:[%s4685_s0 + %s4103_s15]]   ;;  %s4107_s15 = smov 23  }
  0x17   :  { %4698 = sst [smem:[#allocation4_spill]] %s4203_s12 }
  0x18   :  { %4699 = sst [smem:[#allocation5_spill]] %s4208_s20 }
  0x19   :  { %4700 = sst [smem:[#allocation6_spill]] %s4213_s27 }
  0x1a   :  { %4701 = sst [smem:[#allocation7_spill]] %s4218_s4 }
  0x1b   :  { %s4233_s27 = sld [smem:[%s4685_s0 + %s4104_s22]]   ;;  %s4108_s22 = smov 24  }
  0x1c   :  { %s4238_s4 = sld [smem:[%s4685_s0 + %s4105_s28]]   ;;  %s4109_s28 = smov 25  }
  0x1d   :  { %s4243_s20 = sld [smem:[%s4685_s0 + %s4106_s7]]   ;;  %s4110_s7 = smov 26  }
  0x1e   :  { %s4248_s12 = sld [smem:[%s4685_s0 + %s4107_s15]]   ;;  %s4111_s15 = smov 27  }
  0x21   :  { %4702 = sst [smem:[#allocation8_spill]] %s4233_s27 }
  0x22   :  { %4703 = sst [smem:[#allocation9_spill]] %s4238_s4 }
  0x23   :  { %4704 = sst [smem:[#allocation10_spill]] %s4243_s20 }
  0x24   :  { %4705 = sst [smem:[#allocation11_spill]] %s4248_s12 }
  0x25   :  { %s4253_s27 = sld [smem:[%s4685_s0 + %s4108_s22]]   ;;  %s4112_s22 = smov 28  }
  0x26   :  { %s4258_s4 = sld [smem:[%s4685_s0 + %s4109_s28]]   ;;  %s4113_s28 = smov 29  }
  0x27   :  { %s4263_s20 = sld [smem:[%s4685_s0 + %s4110_s7]]   ;;  %s4114_s7 = smov 30  }
  0x28   :  { %s4268_s12 = sld [smem:[%s4685_s0 + %s4111_s15]]   ;;  %s4285_s15 = smov 0  }
  0x2b   :  { %4706 = sst [smem:[#allocation12_spill]] %s4253_s27 }
  0x2c   :  { %4707 = sst [smem:[#allocation13_spill]] %s4258_s4 }
  0x2d   :  { %4708 = sst [smem:[#allocation14_spill]] %s4263_s20 }
  0x2e   :  { %s4273_s27 = sld [smem:[%s4685_s0 + %s4112_s22]]  }
  0x2f   :  { %s4278_s4 = sld [smem:[%s4685_s0 + %s4113_s28]]  }
  0x30   :  { %s4283_s20 = sld [smem:[%s4685_s0 + %s4114_s7]]  }
  0x31 LB: > { %s3513_s16 = sadd.s32 4294967295, %s4083_s15   ;;  %p3517_p0 = scmp.ge.s32.totalorder %s4083_s15, 1  ;;  %s4083_s15 = sphi %s4285_s15, %s71_s15  }
  0x32   : > { %p886_p1 = scmp.lt.s32.totalorder %s4083_s15, 3 }
  0x34   : > { %p887_p2 = pnand %p3517_p0, %p886_p1 }
  0x35   : > { %v4294_v0 = vld [vmem:[%s4163_s29] sm:$0xff] (!%p887_p2)   ;;  %s4115_s0 = smov (!%p887_p2), 96   ;;  %v4002_v1 = vld [vmem:[%s4163_s29 + $0x8] sm:$0xff] (!%p887_p2)   ;;  %v4116_v2 = vmov (!%p887_p2), 0.0   ;;  %p981_p3 = scmp.lt.s32.totalorder (!%p887_p2), %s3513_s16, 1  ;;  %vm4117_vm0 = vmmov (!%p887_p2), 0  }
  0x36   : > { %890 = sbr.rel (%p887_p2) target bundleno = 6191 (0x182f), region = 140  ;;  %1084 = vrot.lane.b32.xlu0 (!%p887_p2), %v4294_v0, %s4115_s0  ;;  %3693 = vmatprep.subr.bf16.mxu0 (!%p887_p2), %v4116_v2  ;;  %v4301_v3 = vld [vmem:[%s4168_s3] ss:$0 sm:$0xff] (!%p887_p2)  ;;  %vm1040_vm1 = vcmask (!%p887_p2), 261120   ;;  %s4118_s23 = smov (!%p887_p2), 120   ;;  %vm1186_vm2 = vcmask (!%p887_p2), 64512  }
  0x37   : > { %3694 = vmatpush3.bf16.msra.mxu0 (!%p887_p2), %v4294_v0  ;;  %3701 = vmatprep.subr.bf16.mxu1 (!%p887_p2), %v4116_v2  ;;  %s4119_s26 = smov (!%p887_p2), 112   ;;  %s4694_s28 = smov (!%p887_p2), 104   ;;  %vm1248_vm3 = vcmask (!%p887_p2), 1043456   ;;  %vm1638_vm4 = vcmask (!%p887_p2), 130048   ;;  %vm1640_vm5 = vcmask (!%p887_p2), 195584   ;;  %vm3301_vm6 = vcmask (!%p887_p2), 523264  }
  0x38   : > { %3695 = vmatprep.subr.bf16.mxu0 (!%p887_p2), %v4116_v2  ;;  %3697 = vmatprep.mubr.msk.bf16.mxu0 (!%p887_p2), %vm4117_vm0, %v4116_v2  ;;  %s4692_s1 = smov (!%p887_p2), 64   ;;  %s4691_s7 = smov (!%p887_p2), 8  }
  0x39   : > { %3705 = vmatprep.mubr.msk.bf16.mxu1 (!%p887_p2), %vm4117_vm0, %v4116_v2  ;;  %1090 = vrot.lane.b32.xlu1 (!%p887_p2), %v4301_v3, %s4115_s0  ;;  %s4690_s10 = smov (!%p887_p2), 16   ;;  %s4689_s11 = smov (!%p887_p2), 24  }
  0x3a   : > { %1086 = vrot.lane.b32.xlu0 (!%p887_p2), %v4002_v1, %s4115_s0 }
  0x3b   : > { %3696 = vmatpush3.bf16.msra.mxu0 (!%p887_p2), %v4002_v1 }
  0x3c   : > { %3709 = vmatprep.subr.bf16.mxu0 (!%p887_p2), %v4116_v2 }
  0x3d   : > { %s4728_s16 = smov (!%p981_p3, %s3513_s16), 1 }
  0x3e   : > { %s4316_s18 = sshll.u32 %s4728_s16, 3 }
  0x3f   : > { %s984_s22 = scalar_lea.vmem %s4133_s5, %s4316_s18  ;;  %s997_s2 = scalar_lea.vmem %s4148_s17, %s4316_s18 }
  0x40   : > { %v4320_v4 = vld [vmem:[%s984_s22] sm:$0xff]  ;;  %s988_s22 = scalar_lea.vmem %s4138_s9, %s4316_s18 }
  0x41   : > { %v4325_v5 = vpack.c.bf16 %v4320_v4, %v4320_v4  ;;  %v1010_v34 = vld [vmem:[%s997_s2] sm:$0xff]  ;;  %s1000_s2 = scalar_lea.vmem %s4153_s21, %s4728_s16 }
  0x43   : > { %3698 = vmatmul.mubr.msk.bf16.vlgmr.msra.gmra.mrb[0].mxu0 %vm1040_vm1, %v4325_v5 }
  0x44   : > { %3713 = vmatprep.mubr.msk.bf16.mxu0 %vm4117_vm0, %v4116_v2 }
  0xa8   : > { %v1085_v6 = vpop.permute.xlu0 %1084 }
  0xa9   : > { %3702 = vmatpush3.bf16.msra.mxu1 %v1085_v6 }
  0xaa   : > { %3703 = vmatprep.subr.bf16.mxu1 %v4116_v2 }
  0xab   : > { %v1091_v15 = vpop.permute.xlu1 %1090 }
  0xac   : > { %v1087_v7 = vpop.permute.xlu0 %1086 }
  0xad   : > { %3704 = vmatpush3.bf16.msra.mxu1 %v1087_v7 }
  0xae   : > { %3717 = vmatprep.subr.bf16.mxu1 %v4116_v2 }
  0xb0   : > { %3706 = vmatmul.mubr.msk.bf16.vlgmr.msra.gmra.mrb[0].mxu1 %vm1040_vm1, %v4325_v5 }
  0xb1   : > { %3719 = vmatprep.mubr.msk.bf16.mxu1 %vm4117_vm0, %v4116_v2 }
 0x116   : > { %v1078_v8 = vpop.f32.mrb[0].mxu0 }
 0x117   : > { %v1079_v9 = vadd.f32 %v4301_v3, %v1078_v8  ;;  %v3699_v10 = vpop.f32.mrb[1].mxu0 }
 0x118   : > { %v1081_v11 = vpop.f32.mrb[2].mxu0 }
 0x119   : > { %v1182_v12 = vmul.f32 0.35355338, %v1079_v9  ;;  %v3700_v13 = vpop.f32.mrb[3].mxu0 }
 0x11b   : > { %v1183_v14 = vpack.c.bf16 %v1182_v12, %v1182_v12 }
 0x11d   : > { %1293 = vrot.lane.b32.xlu0 %v1183_v14, %s4118_s23 }
 0x121   : > { %1405 = vrot.lane.b32.xlu0 %v1183_v14, %s4119_s26 }
 0x125   : > { %1515 = vrot.lane.b32.xlu0 %v1183_v14, %s4694_s28 }
 0x129   : > { %1135 = vrot.lane.b32.xlu0 %v4002_v1, %s4692_s1 }
 0x183   : > { %v1127_v16 = vpop.f32.mrb[0].mxu1 }
 0x184   : > { %v1128_v17 = vadd.f32 %v1127_v16, %v1091_v15  ;;  %v3707_v18 = vpop.f32.mrb[1].mxu1 }
 0x185   : > { %v1130_v19 = vpop.f32.mrb[2].mxu1 }
 0x186   : > { %v1184_v20 = vpack.c.bf16 %v1128_v17, %v1128_v17  ;;  %v3708_v21 = vpop.f32.mrb[3].mxu1 }
 0x188   : > { %1296 = vrot.lane.b32.xlu1 %v1184_v20, %s4118_s23  ;;  %v1191_v22 = vsel %vm1186_vm2, %v1184_v20, 0 }
 0x189   : > { %3718 = vmatpush3.bf16.xpose.msra.mxu1 %v1191_v22 }
 0x18a   : > { %3729 = vmatprep.subr.bf16.mxu1 %v4116_v2 }
 0x18c   : > { %1407 = vrot.lane.b32.xlu1 %v1184_v20, %s4119_s26 }
 0x18f   : > { %v1294_v23 = vpop.permute.xlu0 %1293 }
 0x190   : > { %1517 = vrot.lane.b32.xlu1 %v1184_v20, %s4694_s28  ;;  %3720 = vmatmul.mubr.msk.bf16.vlgmr.msra.gmra.mrb[4].mxu1 %vm1186_vm2, %v1183_v14 }
 0x191   : > { %3731 = vmatprep.mubr.msk.bf16.mxu1 %vm4117_vm0, %v4116_v2 }
 0x193   : > { %v1406_v27 = vpop.permute.xlu0 %1405 }
 0x194   : > { %1133 = vrot.lane.b32.xlu1 %v4294_v0, %s4692_s1 }
 0x197   : > { %v1516_v30 = vpop.permute.xlu0 %1515 }
 0x19b   : > { %v1136_v32 = vpop.permute.xlu0 %1135 }
 0x1fa   : > { %v1297_v24 = vpop.permute.xlu1 %1296 }
 0x1fb   : > { %v1302_v25 = vsel %vm1186_vm2, %v1297_v24, 0 }
 0x1fc   : > { %3730 = vmatpush3.bf16.xpose.msra.mxu1 %v1302_v25 }
 0x1fd   : > { %3741 = vmatprep.subr.bf16.mxu1 %v4116_v2 }
 0x1fe   : > { %v1408_v26 = vpop.permute.xlu1 %1407 }
 0x1ff   : > { %v1413_v29 = vsel %vm1186_vm2, %v1408_v26, 0 }
 0x202   : > { %v1518_v28 = vpop.permute.xlu1 %1517 }
 0x203   : > { %3732 = vmatmul.mubr.msk.bf16.vlgmr.msra.gmra.mrb[8].mxu1 %vm1186_vm2, %v1294_v23  ;;  %v1523_v33 = vsel %vm1186_vm2, %v1518_v28, 0 }
 0x204   : > { %3742 = vmatpush3.bf16.xpose.msra.mxu1 %v1413_v29  ;;  %3743 = vmatprep.mubr.msk.bf16.mxu1 %vm4117_vm0, %v4116_v2 }
 0x205   : > { %3753 = vmatprep.subr.bf16.mxu1 %v4116_v2 }
 0x206   : > { %v1134_v31 = vpop.permute.xlu1 %1133 }
 0x207   : > { %3710 = vmatpush3.bf16.msra.mxu0 %v1134_v31 }
 0x208   : > { %3711 = vmatprep.subr.bf16.mxu0 %v4116_v2 }
 0x20b   : > { %3744 = vmatmul.mubr.msk.bf16.vlgmr.msra.gmra.mrb[12].mxu1 %vm1186_vm2, %v1406_v27  ;;  %3712 = vmatpush3.bf16.msra.mxu0 %v1136_v32 }
 0x20c   : > { %3754 = vmatpush3.bf16.xpose.msra.mxu1 %v1523_v33  ;;  %3755 = vmatprep.mubr.msk.bf16.mxu1 %vm4117_vm0, %v4116_v2 }
 0x20d   : > { %3723 = vmatprep.subr.bf16.mxu0 %v4116_v2  ;;  %3765 = vmatprep.subr.bf16.mxu1 %v4116_v2 }
 0x20e   : > { %3714 = vmatmul.mubr.msk.bf16.vlgmr.msra.gmra.mrb[4].mxu0 %vm1040_vm1, %v4325_v5 }
 0x20f   : > { %3725 = vmatprep.mubr.msk.bf16.mxu0 %vm4117_vm0, %v4116_v2 }
 0x213   : > { %3756 = vmatmul.mubr.msk.bf16.vlgmr.msra.gmra.mrb[16].mxu1 %vm1186_vm2, %v1516_v30 }
 0x214   : > { %3769 = vmatprep.mubr.msk.bf16.mxu1 %vm4117_vm0, %v4116_v2 }
 0x263   : > { %v1227_v35 = vpop.f32.mrb[4].mxu1 }
 0x264   : > { %v1228_v36 = vadd.f32 %v1227_v35, %v1010_v34  ;;  %v3721_v37 = vpop.f32.mrb[5].mxu1 }
 0x265   : > { %v1230_v38 = vpop.f32.mrb[6].mxu1 }
 0x266   : > { %v3722_v39 = vpop.f32.mrb[7].mxu1  ;;  %v1233_v40 = vsel %vm1186_vm2, %v1228_v36, -inf }
 0x267   : > { %1234 = vmax.xlane.f32.xlu1 %v1233_v40 }
 0x2d6   : > { %v1338_v41 = vpop.f32.mrb[8].mxu1 }
 0x2d7   : > { %v1339_v42 = vadd.f32 %v1338_v41, %v1010_v34  ;;  %v3733_v43 = vpop.f32.mrb[9].mxu1 }
 0x2d8   : > { %v1341_v44 = vpop.f32.mrb[10].mxu1 }
 0x2d9   : > { %v3734_v45 = vpop.f32.mrb[11].mxu1  ;;  %v1344_v46 = vsel %vm1186_vm2, %v1339_v42, -inf }
 0x2da   : > { %1345 = vmax.xlane.f32.xlu0 %v1344_v46 }
 0x2de   : > { %v1449_v47 = vpop.f32.mrb[12].mxu1 }
 0x2df   : > { %v1450_v48 = vadd.f32 %v1449_v47, %v1010_v34  ;;  %v3745_v49 = vpop.f32.mrb[13].mxu1 }
 0x2e0   : > { %v1452_v50 = vpop.f32.mrb[14].mxu1 }
 0x2e1   : > { %v3746_v51 = vpop.f32.mrb[15].mxu1  ;;  %v1455_v52 = vsel %vm1186_vm2, %v1450_v48, -inf  ;;  %v1176_v0 = vpop.f32.mrb[4].mxu0 }
 0x2e2   : > { %1456 = vmax.xlane.f32.xlu0 %v1455_v52  ;;  %v3715_v1 = vpop.f32.mrb[5].mxu0  ;;  %v4003_v51 = vld [vmem:[%s4173_s8] sm:$0xff]  }
 0x2e3   : > { %v1179_v5 = vpop.f32.mrb[6].mxu0  ;;  %3766 = vmatpush3.bf16.msra.mxu1 %v4003_v51 }
 0x2e4   : > { %v3716_v6 = vpop.f32.mrb[7].mxu0  ;;  %3767 = vmatprep.subr.bf16.mxu1 %v4116_v2 }
 0x2e6   : > { %v1559_v53 = vpop.f32.mrb[16].mxu1 }
 0x2e7   : > { %v1560_v54 = vadd.f32 %v1559_v53, %v1010_v34  ;;  %v3757_v55 = vpop.f32.mrb[17].mxu1 }
 0x2e8   : > { %v1562_v56 = vpop.f32.mrb[18].mxu1 }
 0x2e9   : > { %v3758_v57 = vpop.f32.mrb[19].mxu1  ;;  %v1565_v58 = vsel %vm1186_vm2, %v1560_v54, -inf  ;;  %v4004_v56 = vld [vmem:[%s4173_s8 + $0x8] sm:$0xff]  }
 0x2ea   : > { %1566 = vmax.xlane.f32.xlu1 %v1565_v58  ;;  %3768 = vmatpush3.bf16.msra.mxu1 %v4004_v56 }
 0x2eb   : > { %3781 = vmatprep.subr.bf16.mxu1 %v4116_v2 }
 0x2f4   : > { %v1235_v59 = vpop.xlane.xlu1 %1234 }
 0x2f5   : > { %v1236_v60 = vsub.f32 %v1228_v36, %v1235_v59 }
 0x2f7   : > { %v1237_v61 = vmul.f32 1.442695, %v1236_v60 }
 0x2f8   : > { %1139 = vrot.lane.b32.xlu0 %v4301_v3, %s4692_s1 }
 0x2f9   : > { %4019 = vpow2.f32 %v1237_v61 }
 0x303   : > { %v4020_v62 = vpop.eup %4019 }
 0x304   : > { %v1239_v63 = vsel %vm1186_vm2, %v4020_v62, 0.0 }
 0x305   : > { %1240 = vadd.xlane.f32.xlu1 %v1239_v63 }
 0x367   : > { %v1346_v7 = vpop.xlane.xlu0 %1345 }
 0x368   : > { %v1347_v8 = vsub.f32 %v1339_v42, %v1346_v7 }
 0x36a   : > { %v1348_v9 = vmul.f32 1.442695, %v1347_v8 }
 0x36c   : > { %4021 = vpow2.f32 %v1348_v9 }
 0x36f   : > { %v1457_v10 = vpop.xlane.xlu0 %1456 }
 0x370   : > { %v1458_v11 = vsub.f32 %v1450_v48, %v1457_v10 }
 0x372   : > { %v1459_v12 = vmul.f32 1.442695, %v1458_v11  ;;  %v3538_v11 = vld [vmem:[%s4178_s14] ss:$0 sm:$0xff] }
 0x373   : > { %v1140_v13 = vpop.permute.xlu0 %1139 }
 0x374   : > { %4023 = vpow2.f32 %v1459_v12  ;;  %v1177_v14 = vadd.f32 %v1176_v0, %v1140_v13 }
 0x376   : > { %v4022_v3 = vpop.eup %4021  ;;  %v1185_v15 = vpack.c.bf16 %v1177_v14, %v1177_v14 }
 0x377   : > { %v1567_v16 = vpop.xlane.xlu1 %1566  ;;  %v1350_v17 = vsel %vm1186_vm2, %v4022_v3, 0.0 }
 0x378   : > { %v1568_v18 = vsub.f32 %v1560_v54, %v1567_v16  ;;  %1351 = vadd.xlane.f32.xlu1 %v1350_v17  ;;  %v1250_v19 = vsel %vm1248_vm3, %v1185_v15, 0  ;;  %1467 = vrot.lane.b32.xlu0 %v1185_v15, %s4119_s26 }
 0x379   : > { %3724 = vmatpush3.bf16.msra.mxu0 %v1250_v19  ;;  %v4006_v19 = vld [vmem:[%s4183_s19 + $0x8] sm:$0xff]  }
 0x37a   : > { %v1569_v20 = vmul.f32 1.442695, %v1568_v18  ;;  %3735 = vmatprep.subr.bf16.mxu0 %v4116_v2  ;;  %v4005_v18 = vld [vmem:[%s4183_s19] sm:$0xff]  }
 0x37c   : > { %4025 = vpow2.f32 %v1569_v20  ;;  %1577 = vrot.lane.b32.xlu0 %v1185_v15, %s4694_s28 }
 0x37e   : > { %v4024_v21 = vpop.eup %4023 }
 0x37f   : > { %v1461_v22 = vsel %vm1186_vm2, %v4024_v21, 0.0 }
 0x380   : > { %1462 = vadd.xlane.f32.xlu1 %v1461_v22 }
 0x386   : > { %v4026_v23 = vpop.eup %4025 }
 0x387   : > { %v1571_v24 = vsel %vm1186_vm2, %v4026_v23, 0.0 }
 0x388   : > { %1572 = vadd.xlane.f32.xlu1 %v1571_v24 }
 0x392   : > { %v1241_v25 = vpop.xlane.xlu1 %1240 }
 0x393   : > { %4027 = vrcp.f32 %v1241_v25  ;;  %v4433_v25 = vld [vmem:[%s4188_s24] ss:$0 sm:$0xff] }
 0x399   : > { %1357 = vrot.lane.b32.xlu1 %v1185_v15, %s4118_s23 }
 0x39d   : > { %v4028_v26 = vpop.eup %4027 }
 0x39e   : > { %v1243_v27 = vmul.f32 %v4028_v26, %v4020_v62 }
 0x3a0   : > { %v1244_v28 = vpack.c.bf16 %v1243_v27, %v1243_v27 }
 0x3a2   : > { %3726 = vmatmul.mubr.msk.bf16.vlgmr.msra.gmra.mrb[8].mxu0 %vm1186_vm2, %v1244_v28  ;;  %v1735_v28 = vld [vmem:[%s988_s22] sm:$0xff]  ;;  %s4709_s22 = sld [smem:[#allocation4_spill]] }
 0x3a3   : > { %3737 = vmatprep.mubr.msk.bf16.mxu0 %vm4117_vm0, %v4116_v2 }
 0x3ea   : > { %v1468_v38 = vpop.permute.xlu0 %1467 }
 0x3eb   : > { %v1473_v39 = vsel %vm1248_vm3, %v1468_v38, 0 }
 0x3ee   : > { %v1578_v41 = vpop.permute.xlu0 %1577 }
 0x3ef   : > { %v1583_v44 = vsel %vm1248_vm3, %v1578_v41, 0 }
 0x405   : > { %v1352_v29 = vpop.xlane.xlu1 %1351 }
 0x406   : > { %4029 = vrcp.f32 %v1352_v29 }
 0x40d   : > { %v1463_v30 = vpop.xlane.xlu1 %1462 }
 0x40e   : > { %4031 = vrcp.f32 %v1463_v30 }
 0x410   : > { %v4030_v31 = vpop.eup %4029 }
 0x411   : > { %v1354_v33 = vmul.f32 %v4030_v31, %v4022_v3  ;;  %v4439_v31 = vpack.c.bf16 %v1735_v28, %v1735_v28 }
 0x413   : > { %v1355_v36 = vpack.c.bf16 %v1354_v33, %v1354_v33  ;;  %v3542_v33 = vld [vmem:[%s4223_s25] ss:$0 sm:$0xff] }
 0x415   : > { %v1573_v32 = vpop.xlane.xlu1 %1572 }
 0x416   : > { %4033 = vrcp.f32 %v1573_v32 }
 0x418   : > { %v4032_v37 = vpop.eup %4031 }
 0x419   : > { %v1358_v34 = vpop.permute.xlu1 %1357  ;;  %v1465_v40 = vmul.f32 %v4032_v37, %v4024_v21 }
 0x41a   : > { %v1363_v35 = vsel %vm1248_vm3, %v1358_v34, 0 }
 0x41b   : > { %3736 = vmatpush3.bf16.msra.mxu0 %v1363_v35  ;;  %v1466_v42 = vpack.c.bf16 %v1465_v40, %v1465_v40  ;;  %v3543_v35 = vld [vmem:[%s4228_s13] ss:$0 sm:$0xff] }
 0x41c   : > { %3747 = vmatprep.subr.bf16.mxu0 %v4116_v2 }
 0x41e   : > { %3738 = vmatmul.mubr.msk.bf16.vlgmr.msra.gmra.mrb[12].mxu0 %vm1186_vm2, %v1355_v36 }
 0x41f   : > { %3748 = vmatpush3.bf16.msra.mxu0 %v1473_v39  ;;  %3749 = vmatprep.mubr.msk.bf16.mxu0 %vm4117_vm0, %v4116_v2 }
 0x420   : > { %3759 = vmatprep.subr.bf16.mxu0 %v4116_v2  ;;  %v4034_v43 = vpop.eup %4033 }
 0x421   : > { %v1575_v45 = vmul.f32 %v4034_v43, %v4026_v23 }
 0x423   : > { %v1576_v46 = vpack.c.bf16 %v1575_v45, %v1575_v45 }
 0x426   : > { %3750 = vmatmul.mubr.msk.bf16.vlgmr.msra.gmra.mrb[16].mxu0 %vm1186_vm2, %v1466_v42 }
 0x427   : > { %3760 = vmatpush3.bf16.msra.mxu0 %v1583_v44  ;;  %3761 = vmatprep.mubr.msk.bf16.mxu0 %vm4117_vm0, %v4116_v2 }
 0x428   : > { %3773 = vmatprep.subr.bf16.mxu0 %v4116_v2 }
 0x42e   : > { %3762 = vmatmul.mubr.msk.bf16.vlgmr.msra.gmra.mrb[20].mxu0 %vm1186_vm2, %v1576_v46 }
 0x42f   : > { %3777 = vmatprep.mubr.msk.bf16.mxu0 %vm4117_vm0, %v4116_v2  ;;  %3774 = vmatpush3.bf16.msra.mxu0 %v4005_v18 }
 0x430   : > { %3775 = vmatprep.subr.bf16.mxu0 %v4116_v2 }
 0x433   : > { %3776 = vmatpush3.bf16.msra.mxu0 %v4006_v19 }
 0x434   : > { %3789 = vmatprep.subr.bf16.mxu0 %v4116_v2 }
 0x475   : > { %v1286_v47 = vpop.f32.mrb[8].mxu0 }
 0x476   : > { %v3727_v48 = vpop.f32.mrb[9].mxu0 }
 0x477   : > { %v1289_v49 = vpop.f32.mrb[10].mxu0 }
 0x478   : > { %v3728_v50 = vpop.f32.mrb[11].mxu0 }
 0x4f1   : > { %v1399_v52 = vpop.f32.mrb[12].mxu0 }
 0x4f2   : > { %1626 = vrot.lane.b32.xlu0 %v1399_v52, %s4691_s7  ;;  %v3739_v53 = vpop.f32.mrb[13].mxu0 }
 0x4f3   : > { %v1402_v54 = vpop.f32.mrb[14].mxu0 }
 0x4f4   : > { %v3740_v55 = vpop.f32.mrb[15].mxu0 }
 0x4f9   : > { %v1509_v57 = vpop.f32.mrb[16].mxu0 }
 0x4fa   : > { %1630 = vrot.lane.b32.xlu0 %v1509_v57, %s4690_s10  ;;  %v3751_v58 = vpop.f32.mrb[17].mxu0 }
 0x4fb   : > { %v1512_v59 = vpop.f32.mrb[18].mxu0 }
 0x4fc   : > { %v3752_v60 = vpop.f32.mrb[19].mxu0 }
 0x501   : > { %v1619_v61 = vpop.f32.mrb[20].mxu0 }
 0x502   : > { %1634 = vrot.lane.b32.xlu1 %v1619_v61, %s4689_s11  ;;  %v3763_v62 = vpop.f32.mrb[21].mxu0 }
 0x503   : > { %v1622_v63 = vpop.f32.mrb[22].mxu0 }
 0x504   : > { %v3764_v0 = vpop.f32.mrb[23].mxu0 }
 0x564   : > { %v1627_v1 = vpop.permute.xlu0 %1626 }
 0x565   : > { %v1637_v6 = vsel %vm1186_vm2, %v1286_v47, %v1627_v1  ;;  %v3550_v1 = vld [vmem:[%s1000_s2] ss:$0 sm:$0xff]  ;;  %s4710_s2 = sld [smem:[#allocation5_spill]] }
 0x56c   : > { %v1631_v5 = vpop.permute.xlu0 %1630 }
 0x56d   : > { %v1639_v7 = vsel %vm1638_vm4, %v1637_v6, %v1631_v5 }
 0x574   : > { %v1635_v8 = vpop.permute.xlu1 %1634 }
 0x575   : > { %v1641_v9 = vsel %vm1640_vm5, %v1639_v7, %v1635_v8 }
 0x576   : > { %v1642_v10 = vpack.c.bf16 %v1641_v9, %v1641_v9 }
 0x578   : > { %3770 = vmatmul.mubr.msk.bf16.vlgmr.msra.gmra.mrb[20].mxu1 %vm1040_vm1, %v1642_v10 }
 0x579   : > { %3785 = vmatprep.mubr.msk.bf16.mxu1 %vm4117_vm0, %v4116_v2 }
 0x64b   : > { %v1698_v12 = vpop.f32.mrb[20].mxu1 }
 0x64c   : > { %v1699_v13 = vadd.f32 %v3538_v11, %v1698_v12  ;;  %v3771_v14 = vpop.f32.mrb[21].mxu1 }
 0x64d   : > { %v1701_v3 = vpop.f32.mrb[22].mxu1 }
 0x64e   : > { %v3772_v15 = vpop.f32.mrb[23].mxu1  ;;  %v1704_v16 = vadd.f32 %v1699_v13, %v4320_v4 }
 0x650   : > { %v1707_v17 = vsel %vm1040_vm1, %v1704_v16, 0.0 }
 0x651   : > { %1708 = vadd.xlane.f32.xlu0 %v1707_v17 }
 0x667   : > { %1810 = vrot.lane.b32.xlu0 %v4005_v18, %s4115_s0 }
 0x66b   : > { %1816 = vrot.lane.b32.xlu0 %v4433_v25, %s4115_s0 }
 0x6de   : > { %v1709_v20 = vpop.xlane.xlu0 %1708 }
 0x6df   : > { %v1711_v21 = vmul.f32 0.03125, %v1709_v20 }
 0x6e1   : > { %v1712_v22 = vsub.f32 %v1704_v16, %v1711_v21 }
 0x6e2   : > { %v1811_v24 = vpop.permute.xlu0 %1810 }
 0x6e3   : > { %v1713_v4 = vmul.f32 %v1712_v22, %v1712_v22  ;;  %3782 = vmatpush3.bf16.msra.mxu1 %v1811_v24 }
 0x6e4   : > { %3783 = vmatprep.subr.bf16.mxu1 %v4116_v2 }
 0x6e5   : > { %v1714_v23 = vsel %vm1040_vm1, %v1713_v4, 0.0 }
 0x6e6   : > { %1715 = vadd.xlane.f32.xlu1 %v1714_v23  ;;  %v1817_v39 = vpop.permute.xlu0 %1816 }
 0x6f7   : > { %1812 = vrot.lane.b32.xlu1 %v4006_v19, %s4115_s0 }
 0x773   : > { %v1716_v26 = vpop.xlane.xlu1 %1715 }
 0x774   : > { %v1717_v27 = vmul.f32 0.03125, %v1716_v26 }
 0x776   : > { %v1718_v29 = vadd.f32 1e-05, %v1717_v27 }
 0x777   : > { %v1813_v30 = vpop.permute.xlu1 %1812 }
 0x778   : > { %4035 = vrsqrt.f32 %v1718_v29  ;;  %3784 = vmatpush3.bf16.msra.mxu1 %v1813_v30 }
 0x779   : > { %3797 = vmatprep.subr.bf16.mxu1 %v4116_v2 }
 0x77b   : > { %3786 = vmatmul.mubr.msk.bf16.vlgmr.msra.gmra.mrb[24].mxu1 %vm1040_vm1, %v4439_v31 }
 0x77c   : > { %3799 = vmatprep.mubr.msk.bf16.mxu1 %vm4117_vm0, %v4116_v2 }
 0x782   : > { %v4036_v32 = vpop.eup %4035 }
 0x783   : > { %v1720_v34 = vmul.f32 %v4036_v32, %v1712_v22 }
 0x785   : > { %v1727_v36 = vmul.f32 %v3542_v33, %v1720_v34 }
 0x787   : > { %v4448_v37 = vadd.f32 %v3543_v35, %v1727_v36 }
 0x789   : > { %v1747_v38 = vpack.c.bf16 %v4448_v37, %v4448_v37 }
 0x78b   : > { %3778 = vmatmul.mubr.msk.bf16.vlgmr.msra.gmra.mrb[24].mxu0 %vm1040_vm1, %v1747_v38 }
 0x78c   : > { %3793 = vmatprep.mubr.msk.bf16.mxu0 %vm4117_vm0, %v4116_v2 }
 0x84e   : > { %v1856_v40 = vpop.f32.mrb[24].mxu1 }
 0x84f   : > { %v1857_v41 = vadd.f32 %v1856_v40, %v1817_v39  ;;  %v3787_v42 = vpop.f32.mrb[25].mxu1 }
 0x850   : > { %v1859_v43 = vpop.f32.mrb[26].mxu1 }
 0x851   : > { %v1913_v44 = vpack.c.bf16 %v1857_v41, %v1857_v41  ;;  %v3788_v45 = vpop.f32.mrb[27].mxu1 }
 0x853   : > { %2029 = vrot.lane.b32.xlu1 %v1913_v44, %s4118_s23  ;;  %v1925_v46 = vsel %vm1186_vm2, %v1913_v44, 0 }
 0x854   : > { %3798 = vmatpush3.bf16.xpose.msra.mxu1 %v1925_v46 }
 0x855   : > { %3809 = vmatprep.subr.bf16.mxu1 %v4116_v2 }
 0x857   : > { %2140 = vrot.lane.b32.xlu1 %v1913_v44, %s4119_s26 }
 0x85b   : > { %2250 = vrot.lane.b32.xlu1 %v1913_v44, %s4694_s28 }
 0x85e   : > { %v1804_v47 = vpop.f32.mrb[24].mxu0 }
 0x85f   : > { %v1805_v48 = vadd.f32 %v4433_v25, %v1804_v47  ;;  %v3779_v49 = vpop.f32.mrb[25].mxu0  ;;  %1862 = vrot.lane.b32.xlu1 %v4005_v18, %s4692_s1 }
 0x860   : > { %v1807_v50 = vpop.f32.mrb[26].mxu0 }
 0x861   : > { %v1911_v51 = vmul.f32 0.35355338, %v1805_v48  ;;  %v3780_v52 = vpop.f32.mrb[27].mxu0 }
 0x863   : > { %v1912_v53 = vpack.c.bf16 %v1911_v51, %v1911_v51 }
 0x865   : > { %2026 = vrot.lane.b32.xlu0 %v1912_v53, %s4118_s23  ;;  %3800 = vmatmul.mubr.msk.bf16.vlgmr.msra.gmra.mrb[28].mxu1 %vm1186_vm2, %v1912_v53 }
 0x866   : > { %3811 = vmatprep.mubr.msk.bf16.mxu1 %vm4117_vm0, %v4116_v2 }
 0x869   : > { %2138 = vrot.lane.b32.xlu0 %v1912_v53, %s4119_s26 }
 0x86d   : > { %2248 = vrot.lane.b32.xlu0 %v1912_v53, %s4694_s28 }
 0x871   : > { %1864 = vrot.lane.b32.xlu0 %v4006_v19, %s4692_s1 }
 0x8c5   : > { %v2030_v54 = vpop.permute.xlu1 %2029 }
 0x8c6   : > { %v2035_v55 = vsel %vm1186_vm2, %v2030_v54, 0 }
 0x8c7   : > { %3810 = vmatpush3.bf16.xpose.msra.mxu1 %v2035_v55 }
 0x8c8   : > { %3821 = vmatprep.subr.bf16.mxu1 %v4116_v2 }
 0x8c9   : > { %v2141_v56 = vpop.permute.xlu1 %2140 }
 0x8ca   : > { %v2146_v60 = vsel %vm1186_vm2, %v2141_v56, 0 }
 0x8cd   : > { %v2251_v57 = vpop.permute.xlu1 %2250 }
 0x8ce   : > { %v2256_v63 = vsel %vm1186_vm2, %v2251_v57, 0 }
 0x8d1   : > { %v1863_v58 = vpop.permute.xlu1 %1862 }
 0x8d2   : > { %3790 = vmatpush3.bf16.msra.mxu0 %v1863_v58 }
 0x8d3   : > { %3791 = vmatprep.subr.bf16.mxu0 %v4116_v2 }
 0x8d7   : > { %v2027_v59 = vpop.permute.xlu0 %2026 }
 0x8d8   : > { %3812 = vmatmul.mubr.msk.bf16.vlgmr.msra.gmra.mrb[32].mxu1 %vm1186_vm2, %v2027_v59 }
 0x8d9   : > { %3822 = vmatpush3.bf16.xpose.msra.mxu1 %v2146_v60  ;;  %3823 = vmatprep.mubr.msk.bf16.mxu1 %vm4117_vm0, %v4116_v2 }
 0x8da   : > { %3833 = vmatprep.subr.bf16.mxu1 %v4116_v2 }
 0x8db   : > { %v2139_v61 = vpop.permute.xlu0 %2138 }
 0x8df   : > { %v2249_v62 = vpop.permute.xlu0 %2248 }
 0x8e0   : > { %3824 = vmatmul.mubr.msk.bf16.vlgmr.msra.gmra.mrb[36].mxu1 %vm1186_vm2, %v2139_v61 }
 0x8e1   : > { %3834 = vmatpush3.bf16.xpose.msra.mxu1 %v2256_v63  ;;  %3835 = vmatprep.mubr.msk.bf16.mxu1 %vm4117_vm0, %v4116_v2 }
 0x8e2   : > { %3845 = vmatprep.subr.bf16.mxu1 %v4116_v2 }
 0x8e3   : > { %v1865_v0 = vpop.permute.xlu0 %1864 }
 0x8e4   : > { %3792 = vmatpush3.bf16.msra.mxu0 %v1865_v0 }
 0x8e5   : > { %3803 = vmatprep.subr.bf16.mxu0 %v4116_v2 }
 0x8e7   : > { %3794 = vmatmul.mubr.msk.bf16.vlgmr.msra.gmra.mrb[28].mxu0 %vm1040_vm1, %v4439_v31 }
 0x8e8   : > { %3836 = vmatmul.mubr.msk.bf16.vlgmr.msra.gmra.mrb[40].mxu1 %vm1186_vm2, %v2249_v62  ;;  %3805 = vmatprep.mubr.msk.bf16.mxu0 %vm4117_vm0, %v4116_v2 }
 0x8e9   : > { %3849 = vmatprep.mubr.msk.bf16.mxu1 %vm4117_vm0, %v4116_v2 }
 0x938   : > { %v1961_v5 = vpop.f32.mrb[28].mxu1 }
 0x939   : > { %v1962_v6 = vadd.f32 %v3550_v1, %v1961_v5  ;;  %v3801_v7 = vpop.f32.mrb[29].mxu1 }
 0x93a   : > { %v1964_v8 = vpop.f32.mrb[30].mxu1 }
 0x93b   : > { %v3802_v9 = vpop.f32.mrb[31].mxu1  ;;  %v1967_v10 = vsel %vm1186_vm2, %v1962_v6, -inf }
 0x93c   : > { %1968 = vmax.xlane.f32.xlu1 %v1967_v10 }
 0x9ab   : > { %v2071_v11 = vpop.f32.mrb[32].mxu1 }
 0x9ac   : > { %v2072_v12 = vadd.f32 %v3550_v1, %v2071_v11  ;;  %v3813_v13 = vpop.f32.mrb[33].mxu1 }
 0x9ad   : > { %v2074_v14 = vpop.f32.mrb[34].mxu1 }
 0x9ae   : > { %v3814_v3 = vpop.f32.mrb[35].mxu1  ;;  %v2077_v15 = vsel %vm1186_vm2, %v2072_v12, -inf }
 0x9af   : > { %2078 = vmax.xlane.f32.xlu0 %v2077_v15 }
 0x9b3   : > { %v2182_v16 = vpop.f32.mrb[36].mxu1 }
 0x9b4   : > { %v2183_v17 = vadd.f32 %v3550_v1, %v2182_v16  ;;  %v3825_v18 = vpop.f32.mrb[37].mxu1 }
 0x9b5   : > { %v2185_v19 = vpop.f32.mrb[38].mxu1 }
 0x9b6   : > { %v3826_v20 = vpop.f32.mrb[39].mxu1  ;;  %v2188_v21 = vsel %vm1186_vm2, %v2183_v17, -inf }
 0x9b7   : > { %2189 = vmax.xlane.f32.xlu0 %v2188_v21  ;;  %v4007_v20 = vld [vmem:[%s4193_s30] sm:$0xff]  }
 0x9b8   : > { %3846 = vmatpush3.bf16.msra.mxu1 %v4007_v20 }
 0x9b9   : > { %3847 = vmatprep.subr.bf16.mxu1 %v4116_v2 }
 0x9ba   : > { %v1905_v33 = vpop.f32.mrb[28].mxu0 }
 0x9bb   : > { %v2292_v22 = vpop.f32.mrb[40].mxu1  ;;  %v3795_v34 = vpop.f32.mrb[29].mxu0 }
 0x9bc   : > { %v2293_v4 = vadd.f32 %v3550_v1, %v2292_v22  ;;  %v3837_v23 = vpop.f32.mrb[41].mxu1  ;;  %v1908_v35 = vpop.f32.mrb[30].mxu0 }
 0x9bd   : > { %v2295_v24 = vpop.f32.mrb[42].mxu1  ;;  %v3796_v36 = vpop.f32.mrb[31].mxu0 }
 0x9be   : > { %v3838_v26 = vpop.f32.mrb[43].mxu1  ;;  %v2298_v27 = vsel %vm1186_vm2, %v2293_v4, -inf  ;;  %v4008_v24 = vld [vmem:[%s4193_s30 + $0x8] sm:$0xff]  }
 0x9bf   : > { %2299 = vmax.xlane.f32.xlu1 %v2298_v27  ;;  %3848 = vmatpush3.bf16.msra.mxu1 %v4008_v24 }
 0x9c0   : > { %3861 = vmatprep.subr.bf16.mxu1 %v4116_v2 }
 0x9c9   : > { %v1969_v28 = vpop.xlane.xlu1 %1968 }
 0x9ca   : > { %v1970_v29 = vsub.f32 %v1962_v6, %v1969_v28 }
 0x9cc   : > { %v1971_v30 = vmul.f32 1.442695, %v1970_v29 }
 0x9cd   : > { %1868 = vrot.lane.b32.xlu0 %v4433_v25, %s4692_s1 }
 0x9ce   : > { %4037 = vpow2.f32 %v1971_v30 }
 0x9d8   : > { %v4038_v31 = vpop.eup %4037 }
 0x9d9   : > { %v1973_v32 = vsel %vm1186_vm2, %v4038_v31, 0.0 }
 0x9da   : > { %1974 = vadd.xlane.f32.xlu1 %v1973_v32 }
 0xa3c   : > { %v2079_v38 = vpop.xlane.xlu0 %2078 }
 0xa3d   : > { %v2080_v39 = vsub.f32 %v2072_v12, %v2079_v38 }
 0xa3f   : > { %v2081_v40 = vmul.f32 1.442695, %v2080_v39 }
 0xa41   : > { %4039 = vpow2.f32 %v2081_v40 }
 0xa44   : > { %v2190_v41 = vpop.xlane.xlu0 %2189 }
 0xa45   : > { %v2191_v42 = vsub.f32 %v2183_v17, %v2190_v41 }
 0xa47   : > { %v2192_v43 = vmul.f32 1.442695, %v2191_v42  ;;  %v3559_v42 = vld [vmem:[%s4198_s6] ss:$0 sm:$0xff] }
 0xa48   : > { %v1869_v44 = vpop.permute.xlu0 %1868 }
 0xa49   : > { %4041 = vpow2.f32 %v2192_v43  ;;  %v1906_v45 = vadd.f32 %v1905_v33, %v1869_v44 }
 0xa4b   : > { %v4040_v25 = vpop.eup %4039  ;;  %v1914_v46 = vpack.c.bf16 %v1906_v45, %v1906_v45 }
 0xa4c   : > { %v2300_v47 = vpop.xlane.xlu1 %2299  ;;  %v2083_v48 = vsel %vm1186_vm2, %v4040_v25, 0.0 }
 0xa4d   : > { %v2301_v49 = vsub.f32 %v2293_v4, %v2300_v47  ;;  %2084 = vadd.xlane.f32.xlu1 %v2083_v48  ;;  %v1983_v50 = vsel %vm1248_vm3, %v1914_v46, 0  ;;  %2200 = vrot.lane.b32.xlu0 %v1914_v46, %s4119_s26 }
 0xa4e   : > { %3804 = vmatpush3.bf16.msra.mxu0 %v1983_v50  ;;  %v4545_v50 = vld [vmem:[%s4709_s22 + $0x8] sm:$0xff]  }
 0xa4f   : > { %v2302_v51 = vmul.f32 1.442695, %v2301_v49  ;;  %3815 = vmatprep.subr.bf16.mxu0 %v4116_v2  ;;  %v4009_v49 = vld [vmem:[%s4709_s22] sm:$0xff]  }
 0xa51   : > { %4043 = vpow2.f32 %v2302_v51  ;;  %2310 = vrot.lane.b32.xlu0 %v1914_v46, %s4694_s28  ;;  %s4713_s28 = sld [smem:[#allocation9_spill]] }
 0xa53   : > { %v4042_v52 = vpop.eup %4041 }
 0xa54   : > { %v2194_v53 = vsel %vm1186_vm2, %v4042_v52, 0.0 }
 0xa55   : > { %2195 = vadd.xlane.f32.xlu1 %v2194_v53 }
 0xa5b   : > { %v4044_v54 = vpop.eup %4043 }
 0xa5c   : > { %v2304_v55 = vsel %vm1186_vm2, %v4044_v54, 0.0 }
 0xa5d   : > { %2305 = vadd.xlane.f32.xlu1 %v2304_v55 }
 0xa67   : > { %v1975_v56 = vpop.xlane.xlu1 %1974 }
 0xa68   : > { %4045 = vrcp.f32 %v1975_v56  ;;  %v4554_v56 = vld [vmem:[%s4710_s2] ss:$0 sm:$0xff]  ;;  %s4722_s2 = sld [smem:[#allocation14_spill]] }
 0xa6e   : > { %2090 = vrot.lane.b32.xlu1 %v1914_v46, %s4118_s23 }
 0xa72   : > { %v4046_v57 = vpop.eup %4045 }
 0xa73   : > { %v1977_v58 = vmul.f32 %v4046_v57, %v4038_v31 }
 0xa75   : > { %v1978_v59 = vpack.c.bf16 %v1977_v58, %v1977_v58 }
 0xa77   : > { %3806 = vmatmul.mubr.msk.bf16.vlgmr.msra.gmra.mrb[32].mxu0 %vm1186_vm2, %v1978_v59 }
 0xa78   : > { %3817 = vmatprep.mubr.msk.bf16.mxu0 %vm4117_vm0, %v4116_v2 }
 0xabf   : > { %v2201_v8 = vpop.permute.xlu0 %2200 }
 0xac0   : > { %v2206_v9 = vsel %vm1248_vm3, %v2201_v8, 0 }
 0xac3   : > { %v2311_v11 = vpop.permute.xlu0 %2310 }
 0xac4   : > { %v2316_v14 = vsel %vm1248_vm3, %v2311_v11, 0 }
 0xada   : > { %v2085_v60 = vpop.xlane.xlu1 %2084 }
 0xadb   : > { %4047 = vrcp.f32 %v2085_v60 }
 0xae2   : > { %v2196_v61 = vpop.xlane.xlu1 %2195 }
 0xae3   : > { %4049 = vrcp.f32 %v2196_v61 }
 0xae5   : > { %v4048_v62 = vpop.eup %4047 }
 0xae6   : > { %v2087_v0 = vmul.f32 %v4048_v62, %v4040_v25 }
 0xae8   : > { %v2088_v6 = vpack.c.bf16 %v2087_v0, %v2087_v0 }
 0xaea   : > { %v2306_v63 = vpop.xlane.xlu1 %2305 }
 0xaeb   : > { %4051 = vrcp.f32 %v2306_v63 }
 0xaed   : > { %v4050_v7 = vpop.eup %4049 }
 0xaee   : > { %v2091_v1 = vpop.permute.xlu1 %2090  ;;  %v2198_v10 = vmul.f32 %v4050_v7, %v4042_v52 }
 0xaef   : > { %v2096_v5 = vsel %vm1248_vm3, %v2091_v1, 0 }
 0xaf0   : > { %3816 = vmatpush3.bf16.msra.mxu0 %v2096_v5  ;;  %v2199_v12 = vpack.c.bf16 %v2198_v10, %v2198_v10 }
 0xaf1   : > { %3827 = vmatprep.subr.bf16.mxu0 %v4116_v2 }
 0xaf3   : > { %3818 = vmatmul.mubr.msk.bf16.vlgmr.msra.gmra.mrb[36].mxu0 %vm1186_vm2, %v2088_v6  ;;  %v3564_v6 = vld [vmem:[%s4713_s28] ss:$0 sm:$0xff]  ;;  %s4715_s28 = smov 64  }
 0xaf4   : > { %3828 = vmatpush3.bf16.msra.mxu0 %v2206_v9  ;;  %3829 = vmatprep.mubr.msk.bf16.mxu0 %vm4117_vm0, %v4116_v2 }
 0xaf5   : > { %3839 = vmatprep.subr.bf16.mxu0 %v4116_v2  ;;  %v4052_v13 = vpop.eup %4051 }
 0xaf6   : > { %v2308_v3 = vmul.f32 %v4052_v13, %v4044_v54 }
 0xaf8   : > { %v2309_v15 = vpack.c.bf16 %v2308_v3, %v2308_v3 }
 0xafb   : > { %3830 = vmatmul.mubr.msk.bf16.vlgmr.msra.gmra.mrb[40].mxu0 %vm1186_vm2, %v2199_v12 }
 0xafc   : > { %3840 = vmatpush3.bf16.msra.mxu0 %v2316_v14  ;;  %3841 = vmatprep.mubr.msk.bf16.mxu0 %vm4117_vm0, %v4116_v2 }
 0xafd   : > { %3853 = vmatprep.subr.bf16.mxu0 %v4116_v2 }
 0xb03   : > { %3842 = vmatmul.mubr.msk.bf16.vlgmr.msra.gmra.mrb[44].mxu0 %vm1186_vm2, %v2309_v15 }
 0xb04   : > { %3857 = vmatprep.mubr.msk.bf16.mxu0 %vm4117_vm0, %v4116_v2  ;;  %3854 = vmatpush3.bf16.msra.mxu0 %v4009_v49 }
 0xb05   : > { %3855 = vmatprep.subr.bf16.mxu0 %v4116_v2 }
 0xb08   : > { %3856 = vmatpush3.bf16.msra.mxu0 %v4545_v50 }
 0xb09   : > { %3869 = vmatprep.subr.bf16.mxu0 %v4116_v2 }
 0xb4a   : > { %v2019_v16 = vpop.f32.mrb[32].mxu0 }
 0xb4b   : > { %v3807_v17 = vpop.f32.mrb[33].mxu0 }
 0xb4c   : > { %v2022_v18 = vpop.f32.mrb[34].mxu0 }
 0xb4d   : > { %v3808_v19 = vpop.f32.mrb[35].mxu0 }
 0xbc6   : > { %v2132_v21 = vpop.f32.mrb[36].mxu0 }
 0xbc7   : > { %2359 = vrot.lane.b32.xlu0 %v2132_v21, %s4691_s7  ;;  %v3819_v22 = vpop.f32.mrb[37].mxu0  ;;  %s3600_s7 = sshll.u32 %s4728_s16, 4 }
 0xbc8   : > { %v2135_v4 = vpop.f32.mrb[38].mxu0 }
 0xbc9   : > { %v3820_v23 = vpop.f32.mrb[39].mxu0 }
 0xbce   : > { %v2242_v26 = vpop.f32.mrb[40].mxu0 }
 0xbcf   : > { %2363 = vrot.lane.b32.xlu0 %v2242_v26, %s4690_s10  ;;  %v3831_v27 = vpop.f32.mrb[41].mxu0  ;;  %s4712_s10 = sld [smem:[#allocation8_spill]] }
 0xbd0   : > { %v2245_v28 = vpop.f32.mrb[42].mxu0 }
 0xbd1   : > { %v3832_v29 = vpop.f32.mrb[43].mxu0 }
 0xbd5   : > { %v3563_v1 = vld [vmem:[%s4712_s10] ss:$0 sm:$0xff]  ;;  %s4720_s10 = sld [smem:[#allocation7_spill]] }
 0xbd6   : > { %v2352_v30 = vpop.f32.mrb[44].mxu0 }
 0xbd7   : > { %2367 = vrot.lane.b32.xlu1 %v2352_v30, %s4689_s11  ;;  %v3843_v31 = vpop.f32.mrb[45].mxu0  ;;  %s4711_s11 = sld [smem:[#allocation2_spill]] }
 0xbd8   : > { %v2355_v32 = vpop.f32.mrb[46].mxu0 }
 0xbd9   : > { %v3844_v33 = vpop.f32.mrb[47].mxu0 }
 0xbdd   : > { %s993_s1 = scalar_lea.vmem %s4711_s11, %s3600_s7  ;;  %s4721_s11 = smov 24  }
 0xbde   : > { %v2465_v59 = vld [vmem:[%s993_s1] sm:$0xff]  ;;  %v2466_v60 = vld [vmem:[%s993_s1 + $0x8] sm:$0xff]  ;;  %s4716_s1 = sld [smem:[#allocation3_spill]] }
 0xbdf   : > { %v4560_v63 = vpack.c.bf16 %v2466_v60, %v2465_v59 }
 0xbe4   : > { %s1003_s7 = scalar_lea.vmem %s4716_s1, %s4728_s16  ;;  %s4717_s16 = sld [smem:[#allocation6_spill]] }
 0xbe5   : > { %s4725_s1 = sld [smem:[#allocation12_spill]] }
 0xc39   : > { %v2360_v34 = vpop.permute.xlu0 %2359 }
 0xc3a   : > { %v2370_v36 = vsel %vm1186_vm2, %v2019_v16, %v2360_v34 }
 0xc41   : > { %v2364_v35 = vpop.permute.xlu0 %2363 }
 0xc42   : > { %v2371_v38 = vsel %vm1638_vm4, %v2370_v36, %v2364_v35  ;;  %v3571_v36 = vld [vmem:[%s1003_s7] ss:$0 sm:$0xff]  ;;  %s4726_s7 = sld [smem:[#allocation13_spill]] }
 0xc49   : > { %v2368_v39 = vpop.permute.xlu1 %2367 }
 0xc4a   : > { %v2372_v40 = vsel %vm1640_vm5, %v2371_v38, %v2368_v39 }
 0xc4b   : > { %v2373_v41 = vpack.c.bf16 %v2372_v40, %v2372_v40 }
 0xc4d   : > { %3850 = vmatmul.mubr.msk.bf16.vlgmr.msra.gmra.mrb[44].mxu1 %vm1040_vm1, %v2373_v41 }
 0xc4e   : > { %3865 = vmatprep.mubr.msk.bf16.mxu1 %vm4117_vm0, %v4116_v2 }
 0xd20   : > { %v2429_v43 = vpop.f32.mrb[44].mxu1 }
 0xd21   : > { %v2430_v44 = vadd.f32 %v3559_v42, %v2429_v43  ;;  %v3851_v45 = vpop.f32.mrb[45].mxu1 }
 0xd22   : > { %v2432_v25 = vpop.f32.mrb[46].mxu1 }
 0xd23   : > { %v3852_v46 = vpop.f32.mrb[47].mxu1  ;;  %v2435_v47 = vadd.f32 %v2430_v44, %v4448_v37 }
 0xd25   : > { %v2438_v48 = vsel %vm1040_vm1, %v2435_v47, 0.0 }
 0xd26   : > { %2439 = vadd.xlane.f32.xlu0 %v2438_v48 }
 0xd3c   : > { %2541 = vrot.lane.b32.xlu0 %v4009_v49, %s4115_s0 }
 0xd40   : > { %2547 = vrot.lane.b32.xlu0 %v4554_v56, %s4115_s0 }
 0xdb3   : > { %v2440_v51 = vpop.xlane.xlu0 %2439 }
 0xdb4   : > { %v2441_v37 = vmul.f32 0.03125, %v2440_v51 }
 0xdb6   : > { %v2442_v52 = vsub.f32 %v2435_v47, %v2441_v37 }
 0xdb7   : > { %v2542_v55 = vpop.permute.xlu0 %2541 }
 0xdb8   : > { %v2443_v53 = vmul.f32 %v2442_v52, %v2442_v52  ;;  %3862 = vmatpush3.bf16.msra.mxu1 %v2542_v55 }
 0xdb9   : > { %3863 = vmatprep.subr.bf16.mxu1 %v4116_v2 }
 0xdba   : > { %v2444_v54 = vsel %vm1040_vm1, %v2443_v53, 0.0 }
 0xdbb   : > { %2445 = vadd.xlane.f32.xlu1 %v2444_v54  ;;  %v2548_v10 = vpop.permute.xlu0 %2547 }
 0xdcc   : > { %2543 = vrot.lane.b32.xlu1 %v4545_v50, %s4115_s0  ;;  %s4714_s0 = smov 104  }
 0xe48   : > { %v2446_v57 = vpop.xlane.xlu1 %2445 }
 0xe49   : > { %v2447_v58 = vmul.f32 0.03125, %v2446_v57 }
 0xe4b   : > { %v2448_v61 = vadd.f32 1e-05, %v2447_v58 }
 0xe4c   : > { %v2544_v62 = vpop.permute.xlu1 %2543 }
 0xe4d   : > { %4053 = vrsqrt.f32 %v2448_v61  ;;  %3864 = vmatpush3.bf16.msra.mxu1 %v2544_v62 }
 0xe4e   : > { %3877 = vmatprep.subr.bf16.mxu1 %v4116_v2 }
 0xe50   : > { %3866 = vmatmul.mubr.msk.bf16.vlgmr.msra.gmra.mrb[48].mxu1 %vm1040_vm1, %v4560_v63 }
 0xe51   : > { %3879 = vmatprep.mubr.msk.bf16.mxu1 %vm4117_vm0, %v4116_v2 }
 0xe57   : > { %v4054_v0 = vpop.eup %4053 }
 0xe58   : > { %v2450_v5 = vmul.f32 %v4054_v0, %v2442_v52 }
 0xe5a   : > { %v2457_v7 = vmul.f32 %v3563_v1, %v2450_v5 }
 0xe5c   : > { %v4569_v8 = vadd.f32 %v3564_v6, %v2457_v7 }
 0xe5e   : > { %v2478_v9 = vpack.c.bf16 %v4569_v8, %v4569_v8 }
 0xe60   : > { %3858 = vmatmul.mubr.msk.bf16.vlgmr.msra.gmra.mrb[48].mxu0 %vm1040_vm1, %v2478_v9 }
 0xe61   : > { %3873 = vmatprep.mubr.msk.bf16.mxu0 %vm4117_vm0, %v4116_v2 }
 0xf23   : > { %v2587_v11 = vpop.f32.mrb[48].mxu1 }
 0xf24   : > { %v3867_v12 = vpop.f32.mrb[49].mxu1  ;;  %v2588_v13 = vadd.f32 %v2587_v11, %v2548_v10 }
 0xf25   : > { %v2590_v14 = vpop.f32.mrb[50].mxu1 }
 0xf26   : > { %v2591_v3 = vadd.f32 %v2590_v14, %v2548_v10  ;;  %v3868_v15 = vpop.f32.mrb[51].mxu1 }
 0xf28   : > { %v2646_v16 = vpack.c.bf16 %v2591_v3, %v2588_v13 }
 0xf2a   : > { %2759 = vrot.lane.b32.xlu1 %v2646_v16, %s4118_s23  ;;  %v2658_v17 = vsel %vm1186_vm2, %v2646_v16, 0 }
 0xf2b   : > { %3878 = vmatpush3.bf16.xpose.msra.mxu1 %v2658_v17 }
 0xf2c   : > { %3889 = vmatprep.subr.bf16.mxu1 %v4116_v2 }
 0xf2e   : > { %2868 = vrot.lane.b32.xlu1 %v2646_v16, %s4119_s26 }
 0xf32   : > { %2976 = vrot.lane.b32.xlu1 %v2646_v16, %s4714_s0 }
 0xf33   : > { %v2535_v18 = vpop.f32.mrb[48].mxu0 }
 0xf34   : > { %v2536_v19 = vadd.f32 %v4554_v56, %v2535_v18  ;;  %v3859_v20 = vpop.f32.mrb[49].mxu0 }
 0xf35   : > { %v2538_v21 = vpop.f32.mrb[50].mxu0 }
 0xf36   : > { %v2644_v22 = vmul.f32 0.35355338, %v2536_v19  ;;  %v3860_v4 = vpop.f32.mrb[51].mxu0  ;;  %2594 = vrot.lane.b32.xlu1 %v4009_v49, %s4715_s28 }
 0xf38   : > { %v2645_v23 = vpack.c.bf16 %v2644_v22, %v2644_v22 }
 0xf3a   : > { %2756 = vrot.lane.b32.xlu0 %v2645_v23, %s4118_s23  ;;  %3880 = vmatmul.mubr.msk.bf16.vlgmr.msra.gmra.mrb[52].mxu1 %vm1186_vm2, %v2645_v23 }
 0xf3b   : > { %3891 = vmatprep.mubr.msk.bf16.mxu1 %vm4117_vm0, %v4116_v2 }
 0xf3e   : > { %2866 = vrot.lane.b32.xlu0 %v2645_v23, %s4119_s26 }
 0xf42   : > { %2974 = vrot.lane.b32.xlu0 %v2645_v23, %s4714_s0 }
 0xf46   : > { %2596 = vrot.lane.b32.xlu0 %v4545_v50, %s4715_s28 }
 0xf9c   : > { %v2760_v24 = vpop.permute.xlu1 %2759 }
 0xf9d   : > { %v2765_v26 = vsel %vm1186_vm2, %v2760_v24, 0 }
 0xf9e   : > { %3890 = vmatpush3.bf16.xpose.msra.mxu1 %v2765_v26 }
 0xf9f   : > { %3901 = vmatprep.subr.bf16.mxu1 %v4116_v2 }
 0xfa0   : > { %v2869_v27 = vpop.permute.xlu1 %2868 }
 0xfa1   : > { %v2874_v31 = vsel %vm1186_vm2, %v2869_v27, 0 }
 0xfa4   : > { %v2977_v28 = vpop.permute.xlu1 %2976 }
 0xfa5   : > { %v2982_v34 = vsel %vm1186_vm2, %v2977_v28, 0 }
 0xfa8   : > { %v2595_v29 = vpop.permute.xlu1 %2594 }
 0xfa9   : > { %3870 = vmatpush3.bf16.msra.mxu0 %v2595_v29 }
 0xfaa   : > { %3871 = vmatprep.subr.bf16.mxu0 %v4116_v2 }
 0xfac   : > { %v2757_v30 = vpop.permute.xlu0 %2756 }
 0xfad   : > { %3892 = vmatmul.mubr.msk.bf16.vlgmr.msra.gmra.mrb[56].mxu1 %vm1186_vm2, %v2757_v30 }
 0xfae   : > { %3902 = vmatpush3.bf16.xpose.msra.mxu1 %v2874_v31  ;;  %3903 = vmatprep.mubr.msk.bf16.mxu1 %vm4117_vm0, %v4116_v2 }
 0xfaf   : > { %3913 = vmatprep.subr.bf16.mxu1 %v4116_v2 }
 0xfb0   : > { %v2867_v32 = vpop.permute.xlu0 %2866 }
 0xfb4   : > { %v2975_v33 = vpop.permute.xlu0 %2974 }
 0xfb5   : > { %3904 = vmatmul.mubr.msk.bf16.vlgmr.msra.gmra.mrb[60].mxu1 %vm1186_vm2, %v2867_v32 }
 0xfb6   : > { %3914 = vmatpush3.bf16.xpose.msra.mxu1 %v2982_v34  ;;  %3915 = vmatprep.mubr.msk.bf16.mxu1 %vm4117_vm0, %v4116_v2 }
 0xfb7   : > { %3925 = vmatprep.subr.bf16.mxu1 %v4116_v2 }
 0xfb8   : > { %v2597_v35 = vpop.permute.xlu0 %2596 }
 0xfb9   : > { %3872 = vmatpush3.bf16.msra.mxu0 %v2597_v35 }
 0xfba   : > { %3883 = vmatprep.subr.bf16.mxu0 %v4116_v2 }
 0xfbc   : > { %3874 = vmatmul.mubr.msk.bf16.vlgmr.msra.gmra.mrb[52].mxu0 %vm1040_vm1, %v4560_v63 }
 0xfbd   : > { %3916 = vmatmul.mubr.msk.bf16.vlgmr.msra.gmra.mrb[64].mxu1 %vm1186_vm2, %v2975_v33  ;;  %3885 = vmatprep.mubr.msk.bf16.mxu0 %vm4117_vm0, %v4116_v2 }
 0xfbe   : > { %3929 = vmatprep.mubr.msk.bf16.mxu1 %vm4117_vm0, %v4116_v2 }
0x100d   : > { %v2694_v38 = vpop.f32.mrb[52].mxu1 }
0x100e   : > { %v2695_v39 = vadd.f32 %v3571_v36, %v2694_v38  ;;  %v3881_v40 = vpop.f32.mrb[53].mxu1 }
0x100f   : > { %v2697_v41 = vpop.f32.mrb[54].mxu1 }
0x1010   : > { %v3882_v42 = vpop.f32.mrb[55].mxu1  ;;  %v2700_v43 = vsel %vm1638_vm4, %v2695_v39, -inf }
0x1011   : > { %2701 = vmax.xlane.f32.xlu1 %v2700_v43 }
0x1080   : > { %v2801_v44 = vpop.f32.mrb[56].mxu1 }
0x1081   : > { %v2802_v45 = vadd.f32 %v3571_v36, %v2801_v44  ;;  %v3893_v25 = vpop.f32.mrb[57].mxu1 }
0x1082   : > { %v2804_v46 = vpop.f32.mrb[58].mxu1 }
0x1083   : > { %v3894_v47 = vpop.f32.mrb[59].mxu1  ;;  %v2807_v48 = vsel %vm1638_vm4, %v2802_v45, -inf }
0x1084   : > { %2808 = vmax.xlane.f32.xlu0 %v2807_v48 }
0x1088   : > { %v2910_v49 = vpop.f32.mrb[60].mxu1 }
0x1089   : > { %v2911_v50 = vadd.f32 %v3571_v36, %v2910_v49  ;;  %v3905_v51 = vpop.f32.mrb[61].mxu1 }
0x108a   : > { %v2913_v37 = vpop.f32.mrb[62].mxu1 }
0x108b   : > { %v3906_v52 = vpop.f32.mrb[63].mxu1  ;;  %v2916_v53 = vsel %vm1638_vm4, %v2911_v50, -inf }
0x108c   : > { %2917 = vmax.xlane.f32.xlu0 %v2916_v53 }
0x108f   : > { %v2637_v5 = vpop.f32.mrb[52].mxu0 }
0x1090   : > { %v3018_v54 = vpop.f32.mrb[64].mxu1  ;;  %v3875_v6 = vpop.f32.mrb[53].mxu0 }
0x1091   : > { %v3019_v55 = vadd.f32 %v3571_v36, %v3018_v54  ;;  %v3917_v57 = vpop.f32.mrb[65].mxu1  ;;  %v2640_v7 = vpop.f32.mrb[54].mxu0  ;;  %v4012_v54 = vld [vmem:[%s4717_s16 + $0x8] sm:$0xff]  }
0x1092   : > { %v3021_v58 = vpop.f32.mrb[66].mxu1  ;;  %v3876_v9 = vpop.f32.mrb[55].mxu0 }
0x1093   : > { %v3918_v59 = vpop.f32.mrb[67].mxu1  ;;  %v3024_v60 = vsel %vm1638_vm4, %v3019_v55, -inf }
0x1094   : > { %3025 = vmax.xlane.f32.xlu1 %v3024_v60 }
0x109e   : > { %v2702_v61 = vpop.xlane.xlu1 %2701 }
0x109f   : > { %v2703_v62 = vsub.f32 %v2695_v39, %v2702_v61 }
0x10a1   : > { %v2704_v63 = vmul.f32 1.442695, %v2703_v62 }
0x10a2   : > { %2600 = vrot.lane.b32.xlu0 %v4554_v56, %s4715_s28  ;;  %s4724_s28 = sld [smem:[#allocation11_spill]] }
0x10a3   : > { %4055 = vpow2.f32 %v2704_v63 }
0x10ad   : > { %v4056_v0 = vpop.eup %4055 }
0x10ae   : > { %v2706_v1 = vsel %vm1638_vm4, %v4056_v0, 0.0 }
0x10af   : > { %2707 = vadd.xlane.f32.xlu1 %v2706_v1 }
0x1111   : > { %v2809_v10 = vpop.xlane.xlu0 %2808 }
0x1112   : > { %v2810_v11 = vsub.f32 %v2802_v45, %v2809_v10 }
0x1114   : > { %v2811_v12 = vmul.f32 1.442695, %v2810_v11  ;;  %v3580_v11 = vld [vmem:[%s4720_s10] ss:$0 sm:$0xff] }
0x1116   : > { %4057 = vpow2.f32 %v2811_v12 }
0x1119   : > { %v2918_v13 = vpop.xlane.xlu0 %2917 }
0x111a   : > { %v2919_v14 = vsub.f32 %v2911_v50, %v2918_v13  ;;  %v4011_v50 = vld [vmem:[%s4717_s16] sm:$0xff]  }
0x111b   : > { %3926 = vmatpush3.bf16.msra.mxu1 %v4011_v50 }
0x111c   : > { %v2920_v3 = vmul.f32 1.442695, %v2919_v14  ;;  %3927 = vmatprep.subr.bf16.mxu1 %v4116_v2 }
0x111d   : > { %v2601_v15 = vpop.permute.xlu0 %2600 }
0x111e   : > { %4059 = vpow2.f32 %v2920_v3  ;;  %v2638_v16 = vadd.f32 %v2637_v5, %v2601_v15  ;;  %v2641_v56 = vadd.f32 %v2640_v7, %v2601_v15 }
0x111f   : > { %3928 = vmatpush3.bf16.msra.mxu1 %v4012_v54 }
0x1120   : > { %v4058_v17 = vpop.eup %4057  ;;  %v2647_v18 = vpack.c.bf16 %v2641_v56, %v2638_v16  ;;  %3941 = vmatprep.subr.bf16.mxu1 %v4116_v2 }
0x1121   : > { %v3026_v19 = vpop.xlane.xlu1 %3025  ;;  %v2813_v20 = vsel %vm1638_vm4, %v4058_v17, 0.0 }
0x1122   : > { %v3027_v21 = vsub.f32 %v3019_v55, %v3026_v19  ;;  %2814 = vadd.xlane.f32.xlu1 %v2813_v20  ;;  %3884 = vmatpush3.bf16.msra.mxu0 %v2647_v18 }
0x1123   : > { %2928 = vrot.lane.b32.xlu0 %v2647_v18, %s4119_s26  ;;  %3895 = vmatprep.subr.bf16.mxu0 %v4116_v2  ;;  %s4719_s26 = smov 16  }
0x1124   : > { %v3028_v22 = vmul.f32 1.442695, %v3027_v21 }
0x1126   : > { %4061 = vpow2.f32 %v3028_v22  ;;  %v4013_v22 = vld [vmem:[%s4722_s2] sm:$0xff]  }
0x1127   : > { %3036 = vrot.lane.b32.xlu0 %v2647_v18, %s4714_s0  ;;  %s4723_s0 = sld [smem:[#allocation10_spill]] }
0x1128   : > { %v4060_v4 = vpop.eup %4059 }
0x1129   : > { %v2922_v23 = vsel %vm1638_vm4, %v4060_v4, 0.0 }
0x112a   : > { %2923 = vadd.xlane.f32.xlu1 %v2922_v23 }
0x1130   : > { %v4062_v24 = vpop.eup %4061 }
0x1131   : > { %v3030_v26 = vsel %vm1638_vm4, %v4062_v24, 0.0 }
0x1132   : > { %3031 = vadd.xlane.f32.xlu1 %v3030_v26 }
0x113c   : > { %v2708_v27 = vpop.xlane.xlu1 %2707 }
0x113d   : > { %4063 = vrcp.f32 %v2708_v27  ;;  %v3584_v27 = vld [vmem:[%s4723_s0] ss:$0 sm:$0xff] }
0x1143   : > { %2820 = vrot.lane.b32.xlu1 %v2647_v18, %s4118_s23  ;;  %s4718_s23 = smov 8  }
0x1147   : > { %v4064_v28 = vpop.eup %4063 }
0x1148   : > { %v2710_v29 = vmul.f32 %v4064_v28, %v4056_v0 }
0x114a   : > { %v2711_v30 = vpack.c.bf16 %v2710_v29, %v2710_v29  ;;  %v3585_v29 = vld [vmem:[%s4724_s28] ss:$0 sm:$0xff] }
0x114c   : > { %3886 = vmatmul.mubr.msk.bf16.vlgmr.msra.gmra.mrb[56].mxu0 %vm1638_vm4, %v2711_v30 }
0x114d   : > { %3897 = vmatprep.mubr.msk.bf16.mxu0 %vm4117_vm0, %v4116_v2 }
0x1195   : > { %v2929_v40 = vpop.permute.xlu0 %2928 }
0x1199   : > { %v3037_v44 = vpop.permute.xlu0 %3036 }
0x11af   : > { %v2815_v31 = vpop.xlane.xlu1 %2814 }
0x11b0   : > { %4065 = vrcp.f32 %v2815_v31 }
0x11b7   : > { %v2924_v32 = vpop.xlane.xlu1 %2923 }
0x11b8   : > { %4067 = vrcp.f32 %v2924_v32 }
0x11ba   : > { %v4066_v33 = vpop.eup %4065 }
0x11bb   : > { %v2817_v35 = vmul.f32 %v4066_v33, %v4058_v17  ;;  %v4015_v33 = vld [vmem:[%s4273_s27] sm:$0xff]  }
0x11bd   : > { %v2818_v38 = vpack.c.bf16 %v2817_v35, %v2817_v35  ;;  %v4017_v35 = vld [vmem:[%s4273_s27 + $0x10] sm:$0xff]  }
0x11bf   : > { %v3032_v34 = vpop.xlane.xlu1 %3031 }
0x11c0   : > { %4069 = vrcp.f32 %v3032_v34  ;;  %v4016_v34 = vld [vmem:[%s4273_s27 + $0x8] sm:$0xff]  }
0x11c2   : > { %v4068_v39 = vpop.eup %4067 }
0x11c3   : > { %v2821_v36 = vpop.permute.xlu1 %2820  ;;  %v2926_v41 = vmul.f32 %v4068_v39, %v4060_v4  ;;  %v4014_v4 = vld [vmem:[%s4722_s2 + $0x8] sm:$0xff]  }
0x11c4   : > { %3896 = vmatpush3.bf16.msra.mxu0 %v2821_v36  ;;  %v4018_v36 = vld [vmem:[%s4273_s27 + $0x18] sm:$0xff]  }
0x11c5   : > { %3907 = vmatprep.subr.bf16.mxu0 %v4116_v2  ;;  %v2927_v42 = vpack.c.bf16 %v2926_v41, %v2926_v41 }
0x11c7   : > { %3898 = vmatmul.mubr.msk.bf16.vlgmr.msra.gmra.mrb[60].mxu0 %vm1638_vm4, %v2818_v38  ;;  %v3586_v38 = vld [vmem:[%s4268_s12] ss:$0 sm:$0xff] }
0x11c8   : > { %3908 = vmatpush3.bf16.msra.mxu0 %v2929_v40  ;;  %3909 = vmatprep.mubr.msk.bf16.mxu0 %vm4117_vm0, %v4116_v2 }
0x11c9   : > { %3919 = vmatprep.subr.bf16.mxu0 %v4116_v2 }
0x11ca   : > { %v4070_v43 = vpop.eup %4069 }
0x11cb   : > { %v3034_v45 = vmul.f32 %v4070_v43, %v4062_v24 }
0x11cd   : > { %v3035_v25 = vpack.c.bf16 %v3034_v45, %v3034_v45 }
0x11cf   : > { %3910 = vmatmul.mubr.msk.bf16.vlgmr.msra.gmra.mrb[64].mxu0 %vm1638_vm4, %v2927_v42 }
0x11d0   : > { %3920 = vmatpush3.bf16.msra.mxu0 %v3037_v44  ;;  %3921 = vmatprep.mubr.msk.bf16.mxu0 %vm4117_vm0, %v4116_v2 }
0x11d1   : > { %3933 = vmatprep.subr.bf16.mxu0 %v4116_v2 }
0x11d7   : > { %3922 = vmatmul.mubr.msk.bf16.vlgmr.msra.gmra.mrb[68].mxu0 %vm1638_vm4, %v3035_v25 }
0x11d8   : > { %3937 = vmatprep.mubr.msk.bf16.mxu0 %vm4117_vm0, %v4116_v2  ;;  %3934 = vmatpush3.bf16.msra.mxu0 %v4013_v22 }
0x11d9   : > { %3935 = vmatprep.subr.bf16.mxu0 %v4116_v2 }
0x11dc   : > { %3936 = vmatpush3.bf16.msra.mxu0 %v4014_v4 }
0x121f   : > { %v2749_v46 = vpop.f32.mrb[56].mxu0 }
0x1220   : > { %v3887_v47 = vpop.f32.mrb[57].mxu0 }
0x1221   : > { %v2752_v48 = vpop.f32.mrb[58].mxu0 }
0x1222   : > { %v3888_v49 = vpop.f32.mrb[59].mxu0 }
0x1223   : > { %v3590_v49 = vld [vmem:[%s4278_s4] ss:$0 sm:$0xff] }
0x129a   : > { %v2860_v51 = vpop.f32.mrb[60].mxu0 }
0x129b   : > { %3083 = vrot.lane.b32.xlu0 %v2860_v51, %s4718_s23  ;;  %v3899_v37 = vpop.f32.mrb[61].mxu0  ;;  %s1007_s23 = scalar_lea.vmem %s4283_s20, %s4316_s18 }
0x129c   : > { %v2863_v52 = vpop.f32.mrb[62].mxu0 }
0x129d   : > { %v3900_v53 = vpop.f32.mrb[63].mxu0 }
0x12a2   : > { %v2968_v55 = vpop.f32.mrb[64].mxu0 }
0x12a3   : > { %3087 = vrot.lane.b32.xlu0 %v2968_v55, %s4719_s26  ;;  %v3911_v57 = vpop.f32.mrb[65].mxu0 }
0x12a4   : > { %v2971_v58 = vpop.f32.mrb[66].mxu0 }
0x12a5   : > { %v3912_v59 = vpop.f32.mrb[67].mxu0 }
0x12aa   : > { %v3076_v60 = vpop.f32.mrb[68].mxu0 }
0x12ab   : > { %3091 = vrot.lane.b32.xlu1 %v3076_v60, %s4721_s11  ;;  %v3923_v61 = vpop.f32.mrb[69].mxu0 }
0x12ac   : > { %v3079_v62 = vpop.f32.mrb[70].mxu0 }
0x12ad   : > { %v3924_v63 = vpop.f32.mrb[71].mxu0 }
0x130d   : > { %v3084_v0 = vpop.permute.xlu0 %3083 }
0x130e   : > { %v3094_v5 = vsel %vm1186_vm2, %v2749_v46, %v3084_v0 }
0x1315   : > { %v3088_v1 = vpop.permute.xlu0 %3087 }
0x1316   : > { %v3095_v6 = vsel %vm1638_vm4, %v3094_v5, %v3088_v1  ;;  %v3596_v1 = vld [vmem:[%s4725_s1] ss:$0 sm:$0xff] }
0x131d   : > { %v3092_v7 = vpop.permute.xlu1 %3091 }
0x131e   : > { %v3096_v9 = vsel %vm1640_vm5, %v3095_v6, %v3092_v7  ;;  %v3597_v6 = vld [vmem:[%s4726_s7] ss:$0 sm:$0xff] }
0x131f   : > { %v3097_v10 = vpack.c.bf16 %v3096_v9, %v3096_v9 }
0x1321   : > { %3930 = vmatmul.mubr.msk.bf16.vlgmr.msra.gmra.mrb[68].mxu1 %vm1040_vm1, %v3097_v10 }
0x1322   : > { %3949 = vmatprep.mubr.msk.bf16.mxu1 %vm4117_vm0, %v4116_v2  ;;  %3942 = vmatpush3.bf16.msra.mxu1 %v4015_v33 }
0x1323   : > { %3943 = vmatprep.subr.bf16.mxu1 %v4116_v2 }
0x1326   : > { %3944 = vmatpush3.bf16.msra.mxu1 %v4016_v34 }
0x1327   : > { %3945 = vmatprep.subr.bf16.mxu1 %v4116_v2 }
0x132a   : > { %3946 = vmatpush3.bf16.msra.mxu1 %v4017_v35 }
0x132b   : > { %3947 = vmatprep.subr.bf16.mxu1 %v4116_v2 }
0x132e   : > { %3948 = vmatpush3.bf16.msra.mxu1 %v4018_v36 }
0x13f4   : > { %v3153_v12 = vpop.f32.mrb[68].mxu1 }
0x13f5   : > { %v3154_v13 = vadd.f32 %v3580_v11, %v3153_v12  ;;  %v3931_v14 = vpop.f32.mrb[69].mxu1 }
0x13f6   : > { %v3156_v3 = vpop.f32.mrb[70].mxu1 }
0x13f7   : > { %v3932_v15 = vpop.f32.mrb[71].mxu1  ;;  %v3159_v16 = vadd.f32 %v3154_v13, %v4569_v8 }
0x13f9   : > { %v3162_v56 = vsel %vm1040_vm1, %v3159_v16, 0.0 }
0x13fa   : > { %3163 = vadd.xlane.f32.xlu0 %v3162_v56 }
0x1487   : > { %v3164_v17 = vpop.xlane.xlu0 %3163 }
0x1488   : > { %v3165_v18 = vmul.f32 0.03125, %v3164_v17 }
0x148a   : > { %v3166_v19 = vsub.f32 %v3159_v16, %v3165_v18 }
0x148c   : > { %v3167_v20 = vmul.f32 %v3166_v19, %v3166_v19 }
0x148e   : > { %v3168_v21 = vsel %vm1040_vm1, %v3167_v20, 0.0 }
0x148f   : > { %3169 = vadd.xlane.f32.xlu1 %v3168_v21 }
0x151c   : > { %v3170_v8 = vpop.xlane.xlu1 %3169 }
0x151d   : > { %v3171_v23 = vmul.f32 0.03125, %v3170_v8 }
0x151f   : > { %v3172_v24 = vadd.f32 1e-05, %v3171_v23 }
0x1521   : > { %4071 = vrsqrt.f32 %v3172_v24 }
0x152b   : > { %v4072_v26 = vpop.eup %4071 }
0x152c   : > { %v3174_v28 = vmul.f32 %v4072_v26, %v3166_v19 }
0x152e   : > { %v3181_v30 = vmul.f32 %v3584_v27, %v3174_v28 }
0x1530   : > { %v3188_v31 = vadd.f32 %v3585_v29, %v3181_v30 }
0x1532   : > { %v3203_v32 = vpack.c.bf16 %v3188_v31, %v3188_v31 }
0x1534   : > { %3938 = vmatmul.mubr.msk.bf16.vlgmr.msra.gmra.mrb[72].mxu0 %vm1040_vm1, %v3203_v32 }
0x1607   : > { %v3259_v39 = vpop.f32.mrb[72].mxu0 }
0x1608   : > { %v3260_v40 = vadd.f32 %v3586_v38, %v3259_v39  ;;  %v3939_v41 = vpop.f32.mrb[73].mxu0 }
0x1609   : > { %v3262_v42 = vpop.f32.mrb[74].mxu0 }
0x160a   : > { %v3266_v43 = vmul.f32 0.70710677, %v3260_v40  ;;  %v3940_v44 = vpop.f32.mrb[75].mxu0  ;;  %v3265_v25 = vmul.f32 0.5, %v3260_v40 }
0x160c   : > { %4073 = verf.f32 %v3266_v43 }
0x1616   : > { %v4074_v45 = vpop.eup %4073 }
0x1617   : > { %v3268_v46 = vadd.f32 1.0, %v4074_v45 }
0x1619   : > { %v3269_v47 = vmul.f32 %v3268_v46, %v3265_v25 }
0x161b   : > { %v3270_v48 = vpack.c.bf16 %v3269_v47, %v3269_v47 }
0x161d   : > { %3950 = vmatmul.mubr.msk.bf16.vlgmr.msra.gmra.mrb[72].mxu1 %vm3301_vm6, %v3270_v48 }
0x16f0   : > { %v3339_v2 = vpop.f32.mrb[72].mxu1 }
0x16f1   : > { %v3340_v50 = vadd.f32 %v3590_v49, %v3339_v2  ;;  %v3951_v51 = vpop.f32.mrb[73].mxu1 }
0x16f2   : > { %v3342_v37 = vpop.f32.mrb[74].mxu1 }
0x16f3   : > { %v3952_v52 = vpop.f32.mrb[75].mxu1  ;;  %v3345_v53 = vadd.f32 %v3340_v50, %v3188_v31 }
0x16f5   : > { %v3348_v54 = vsel %vm1040_vm1, %v3345_v53, 0.0 }
0x16f6   : > { %3349 = vadd.xlane.f32.xlu0 %v3348_v54 }
0x1783   : > { %v3350_v55 = vpop.xlane.xlu0 %3349 }
0x1784   : > { %v3351_v57 = vmul.f32 0.03125, %v3350_v55 }
0x1786   : > { %v3352_v58 = vsub.f32 %v3345_v53, %v3351_v57 }
0x1788   : > { %v3353_v59 = vmul.f32 %v3352_v58, %v3352_v58 }
0x178a   : > { %v3354_v60 = vsel %vm1040_vm1, %v3353_v59, 0.0 }
0x178b   : > { %3355 = vadd.xlane.f32.xlu0 %v3354_v60 }
0x1818   : > { %v3356_v61 = vpop.xlane.xlu0 %3355 }
0x1819   : > { %v3357_v62 = vmul.f32 0.03125, %v3356_v61 }
0x181b   : > { %v3358_v63 = vadd.f32 1e-05, %v3357_v62 }
0x181d   : > { %4075 = vrsqrt.f32 %v3358_v63 }
0x1827   : > { %v4076_v0 = vpop.eup %4075 }
0x1828   : > { %v3360_v5 = vmul.f32 %v4076_v0, %v3352_v58 }
0x182a   : > { %v3367_v7 = vmul.f32 %v3596_v1, %v3360_v5 }
0x182c   : > { %v3374_v9 = vadd.f32 %v3597_v6, %v3367_v7 }
0x182e   : > { %3375 = vst.msk [vmem:[%s1007_s23] sm:$0xff] %vm1040_vm1, %v3374_v9 }
0x182f PF: > { %s71_s15 = sadd.s32 1, %s4083_s15  }
0x1830   : > { %p68_p4 = scmp.ge.s32.totalorder %s71_s15, 4  }
0x1832   :  { %70 = sbr.rel (!%p68_p4) target bundleno = 49 (0x31), region = 215 }

</bundles_post_ra>
